<compile_context>
chip_gen: v6e
topology: v6e:2x2x1
jax: 0.10.0
libtpu: 0.0.40
codegen_flags: <defaults>
</compile_context>

<pallas_src>
import functools

import jax
import jax.numpy as jnp
from jax import lax
from jax.experimental import pallas as pl
from jax.experimental.pallas import tpu as pltpu

KSIZE = 7
PAD = 3
ROW_OFF = 8          # sublane-aligned top margin of the padded scratch (>= PAD)


def _round_up(n, m):
    return (n + m - 1) // m * m


def convnext_block_kernel(
    x_ref, cw_ref, vec_ref, mln_ref, w1b_ref, w2b_ref, rg_ref, eg_ref,
    o_ref, pad_ref,
    *, H, W, C, HID, lane_off, norm_eps, grn_eps, v2, mm_dtype,
):
    WC = W * C
    WH = W * HID

    x = x_ref[0]                                  # (H, W*C), lane-dense block
    xf = x.astype(jnp.float32)

    # ---- zero-padded image tile in VMEM (margins >= PAD rows / PAD*C lanes);
    #      the interior store is (8,128)-tile aligned ----------------------------
    pad_ref[...] = jnp.zeros_like(pad_ref)
    pad_ref[ROW_OFF:ROW_OFF + H, lane_off:lane_off + WC] = xf

    # ---- depthwise 7x7: 49 statically shifted slices of the padded tile.
    #      Sublane/lane shifts run on the XLU (like pltpu.roll) while the VPU
    #      does the MACs; 4 partial accumulators give extra ILP headroom. -------
    accs = [jnp.zeros((H, WC), jnp.float32) for _ in range(4)]
    k = 0
    for dy in range(KSIZE):
        r0 = ROW_OFF - PAD + dy
        band = pad_ref[r0:r0 + H, :]              # (H, WCP), one read per dy
        for dx in range(KSIZE):
            c0 = lane_off + (dx - PAD) * C
            tap = band[:, c0:c0 + WC]             # (H, W*C) shifted window
            accs[k % 4] = accs[k % 4] + tap * cw_ref[k:k + 1, :]
            k += 1
    h = (accs[0] + accs[1]) + (accs[2] + accs[3]) + vec_ref[0:1, :WC]  # + conv bias

    # ---- LayerNorm over C (block-diagonal averaging matmul; stays lane-dense) --
    mln = mln_ref[...]                                    # kron(I_W, ones(C,C)/C)
    mu = jnp.dot(h, mln, preferred_element_type=jnp.float32)
    xc = h - mu
    var = jnp.dot(xc * xc, mln, preferred_element_type=jnp.float32)  # biased var
    h = xc * lax.rsqrt(var + norm_eps)
    h = h * vec_ref[1:2, :WC] + vec_ref[2:3, :WC]

    # ---- Linear C -> HID on the MXU: (H, W*C) @ kron(I_W, W1) -------------------
    a = jnp.dot(h.astype(mm_dtype), w1b_ref[...],
                preferred_element_type=jnp.float32) + vec_ref[3:4, :]

    # ---- exact GELU (erf form, matching nn.GELU() default) ----------------------
    a = 0.5 * a * (1.0 + lax.erf(a * 0.7071067811865476))

    # ---- GlobalResponseNorm (v2 only) -------------------------------------------
    if v2:
        colsum = jnp.sum(a * a, axis=0, keepdims=True)                  # (1, W*HID)
        gsq = jnp.dot(colsum, rg_ref[...],
                      preferred_element_type=jnp.float32)               # (1, HID)
        gx = jnp.sqrt(gsq)                                              # L2 over H*W
        nx = gx / (jnp.mean(gx, axis=-1, keepdims=True) + grn_eps)
        nxt = jnp.dot(nx, eg_ref[...],
                      preferred_element_type=jnp.float32)               # (1, W*HID)
        a = a + a * nxt * vec_ref[4:5, :] + vec_ref[5:6, :]

    # ---- Linear HID -> C: (H, W*HID) @ kron(I_W, W2) ----------------------------
    y = jnp.dot(a.astype(mm_dtype), w2b_ref[...],
                preferred_element_type=jnp.float32) + vec_ref[6:7, :WC]

    # ---- LayerScale (v1 only); StochasticDepth(p=0) == identity -----------------
    if not v2:
        y = y * vec_ref[7:8, :WC]

    # ---- residual add + lane-dense store ----------------------------------------
    o_ref[0] = (xf + y).astype(o_ref.dtype)


def convnext_block(x, params, *, v2=False, norm_eps=1e-6, grn_eps=1e-6,
                   matmul_dtype=jnp.bfloat16):
    N, H, W, C = x.shape
    HID = params["w1"].shape[1]
    WC, WH = W * C, W * HID
    assert WH >= WC, "expansion_ratio >= 1 assumed for the packed vector array"

    f32 = jnp.float32
    eye_w = jnp.eye(W, dtype=f32)

    # depthwise weights tiled across W so they broadcast over (H, W*C) slabs
    cw = jnp.tile(params["conv_w"].astype(f32).reshape(KSIZE * KSIZE, 1, C),
                  (1, W, 1)).reshape(KSIZE * KSIZE, WC)

    # all tiny per-channel vectors: tile across W, pack into one (8, W*HID) array
    def trow(v):
        t = jnp.tile(v.astype(f32), W)
        return jnp.pad(t, (0, WH - t.shape[0]))
    vec = jnp.stack([
        trow(params["conv_b"]), trow(params["ln_w"]), trow(params["ln_b"]),
        trow(params["b1"]), trow(params["grn_g"]), trow(params["grn_b"]),
        trow(params["b2"]), trow(params["ls"]),
    ])                                                           # (8, W*HID)

    # block-diagonal (kron) matrices keep channel mixing lane-dense on the MXU
    mln = jnp.kron(eye_w, jnp.full((C, C), 1.0 / C, f32))                # (WC, WC)
    w1b = jnp.kron(eye_w, params["w1"].astype(f32)).astype(matmul_dtype)  # (WC, WH)
    w2b = jnp.kron(eye_w, params["w2"].astype(f32)).astype(matmul_dtype)  # (WH, WC)
    if v2:
        rg = jnp.kron(jnp.ones((W, 1), f32), jnp.eye(HID, dtype=f32))     # (WH, HID)
        eg = jnp.kron(jnp.ones((1, W), f32), jnp.eye(HID, dtype=f32))     # (HID, WH)
    else:  # never read when v2=False; pass tiny placeholders to keep DMA minimal
        rg = jnp.zeros((8, 128), f32)
        eg = jnp.zeros((8, 128), f32)

    # padded scratch geometry (aligned interior, >= PAD-row / PAD*C-lane margins)
    lane_off = _round_up(PAD * C, 128)
    hp = ROW_OFF + H + 8
    wcp = lane_off + _round_up(WC + PAD * C, 128)

    x2 = x.reshape(N, H, WC)         # free host reshape to the lane-dense layout

    def rep(a):                      # whole-array block, constant index map
        nd = a.ndim
        return pl.BlockSpec(a.shape, lambda b, _nd=nd: (0,) * _nd)

    kernel = functools.partial(
        convnext_block_kernel, H=H, W=W, C=C, HID=HID, lane_off=lane_off,
        norm_eps=norm_eps, grn_eps=grn_eps, v2=v2, mm_dtype=matmul_dtype)

    flops = N * (2 * KSIZE * KSIZE * H * W * C          # depthwise conv
                 + 2 * 2 * H * WC * WC                  # LayerNorm statistics
                 + 2 * H * WC * WH + 2 * H * WH * WC)   # the two Linears
    transcendentals = N * H * W * HID                   # erf
    bytes_accessed = (2 * x2.size * x2.dtype.itemsize
                      + cw.size * 4 + vec.size * 4 + mln.size * 4
                      + w1b.size * w1b.dtype.itemsize
                      + w2b.size * w2b.dtype.itemsize
                      + rg.size * 4 + eg.size * 4)

    out = pl.pallas_call(
        kernel,
        out_shape=jax.ShapeDtypeStruct((N, H, WC), x.dtype),
        grid=(N,),
        in_specs=[
            pl.BlockSpec((1, H, WC), lambda b: (b, 0, 0)),   # x (lane-dense block)
            rep(cw), rep(vec), rep(mln), rep(w1b), rep(w2b), rep(rg), rep(eg),
        ],
        out_specs=pl.BlockSpec((1, H, WC), lambda b: (b, 0, 0)),
        scratch_shapes=[pltpu.VMEM((hp, wcp), jnp.float32)],
        compiler_params=pltpu.CompilerParams(
            dimension_semantics=("parallel",),
            vmem_limit_bytes=48 * 1024 * 1024),
        cost_estimate=pl.CostEstimate(
            flops=flops, transcendentals=transcendentals,
            bytes_accessed=bytes_accessed),
    )(x2, cw, vec, mln, w1b, w2b, rg, eg)

    return out.reshape(N, H, W, C)


def convnext_block_ref(x, params, *, v2=False, norm_eps=1e-6, grn_eps=1e-6,
                       matmul_dtype=jnp.float32):
    """Pure-JAX reference mirroring the PyTorch forward (optionally with bf16
    matmul operands to match the kernel's default MXU precision)."""
    N, H, W, C = x.shape
    md = matmul_dtype
    xpad = jnp.pad(x, ((0, 0), (PAD, PAD), (PAD, PAD), (0, 0)))
    acc = jnp.zeros_like(x)
    for dy in range(KSIZE):
        for dx in range(KSIZE):
            acc = acc + xpad[:, dy:dy + H, dx:dx + W, :] * params["conv_w"][dy, dx, :]
    h = acc + params["conv_b"]
    mu = jnp.mean(h, axis=-1, keepdims=True)
    var = jnp.mean((h - mu) ** 2, axis=-1, keepdims=True)
    h = (h - mu) / jnp.sqrt(var + norm_eps) * params["ln_w"] + params["ln_b"]
    h = (h.astype(md) @ params["w1"].astype(md)).astype(jnp.float32) + params["b1"]
    h = 0.5 * h * (1.0 + lax.erf(h * 0.7071067811865476))
    if v2:
        gx = jnp.sqrt(jnp.sum(h * h, axis=(1, 2), keepdims=True))
        nx = gx / (jnp.mean(gx, axis=-1, keepdims=True) + grn_eps)
        h = h + h * nx * params["grn_g"] + params["grn_b"]
    h = (h.astype(md) @ params["w2"].astype(md)).astype(jnp.float32) + params["b2"]
    if not v2:
        h = h * params["ls"]
    return x + h


if __name__ == "__main__":
    import numpy as np

    N, H, W, C = 2, 16, 16, 16          # d_model = 16
    HID = int(C * 4.0)                  # expansion_ratio = 4.0

    key = jax.random.PRNGKey(0)
    ks = jax.random.split(key, 11)
    x = jax.random.normal(ks[0], (N, H, W, C), jnp.float32)

    params = dict(
        conv_w=0.1 * jax.random.normal(ks[1], (KSIZE, KSIZE, C), jnp.float32),
        conv_b=0.1 * jax.random.normal(ks[2], (C,), jnp.float32),
        ln_w=1.0 + 0.1 * jax.random.normal(ks[3], (C,), jnp.float32),
        ln_b=0.1 * jax.random.normal(ks[4], (C,), jnp.float32),
        w1=jax.random.normal(ks[5], (C, HID), jnp.float32) / jnp.sqrt(C),
        b1=0.1 * jax.random.normal(ks[6], (HID,), jnp.float32),
        grn_g=0.1 * jax.random.normal(ks[7], (HID,), jnp.float32),
        grn_b=0.1 * jax.random.normal(ks[8], (HID,), jnp.float32),
        w2=jax.random.normal(ks[9], (HID, C), jnp.float32) / jnp.sqrt(HID),
        b2=0.1 * jax.random.normal(ks[10], (C,), jnp.float32),
        ls=jnp.full((C,), 1e-6, jnp.float32),   # layer_scale_init = 1e-6
    )

    for v2 in (False, True):   # v1: LayerScale, no GRN.  v2: GRN, no LayerScale.
        # f32-matmul variant vs pure-f32 reference (tolerance leaves headroom for
        # backend matmul-precision policy differences; structural bugs are O(1)).
        out_f32 = convnext_block(x, params, v2=v2, matmul_dtype=jnp.float32)
        jax.block_until_ready(out_f32)
        ref_f32 = convnext_block_ref(x, params, v2=v2)
        np.testing.assert_allclose(np.asarray(out_f32), np.asarray(ref_f32),
                                   rtol=3e-2, atol=3e-2)

        # default bf16-operand MXU variant vs a precision-matched reference.
        out_bf16 = convnext_block(x, params, v2=v2)
        jax.block_until_ready(out_bf16)
        ref_bf16 = convnext_block_ref(x, params, v2=v2,
                                      matmul_dtype=jnp.bfloat16)
        np.testing.assert_allclose(np.asarray(out_bf16), np.asarray(ref_bf16),
                                   rtol=3e-2, atol=3e-2)

    print("KERNEL_OK")
</pallas_src>

<mosaic_0001>
module attributes {stable_mosaic.version = 11 : i64} {
  func.func @convnext_block_kernel(%arg0: i32, %arg1: memref<1x16x256xf32, #tpu.memory_space<vmem>>, %arg2: memref<49x256xf32, #tpu.memory_space<vmem>>, %arg3: memref<8x1024xf32, #tpu.memory_space<vmem>>, %arg4: memref<256x256xf32, #tpu.memory_space<vmem>>, %arg5: memref<256x1024xf32, #tpu.memory_space<vmem>>, %arg6: memref<1024x256xf32, #tpu.memory_space<vmem>>, %arg7: memref<8x128xf32, #tpu.memory_space<vmem>>, %arg8: memref<8x128xf32, #tpu.memory_space<vmem>>, %arg9: memref<1x16x256xf32, #tpu.memory_space<vmem>>, %arg10: memref<32x512xf32, #tpu.memory_space<vmem>>) attributes {dimension_semantics = [#tpu.dimension_semantics<parallel>], iteration_bounds = array<i64: 2>, scalar_prefetch = 0 : i64, scratch_operands = 1 : i64, tpu.core_type = #tpu.core_type<tc>, window_params = [{transform_indices = @transform_0, window_bounds = array<i64: 1, 16, 256>}, {pipeline_mode = #tpu.pipeline_mode<synchronous>, transform_indices = @transform_1, window_bounds = array<i64: 49, 256>}, {pipeline_mode = #tpu.pipeline_mode<synchronous>, transform_indices = @transform_2, window_bounds = array<i64: 8, 1024>}, {pipeline_mode = #tpu.pipeline_mode<synchronous>, transform_indices = @transform_3, window_bounds = array<i64: 256, 256>}, {pipeline_mode = #tpu.pipeline_mode<synchronous>, transform_indices = @transform_4, window_bounds = array<i64: 256, 1024>}, {pipeline_mode = #tpu.pipeline_mode<synchronous>, transform_indices = @transform_5, window_bounds = array<i64: 1024, 256>}, {pipeline_mode = #tpu.pipeline_mode<synchronous>, transform_indices = @transform_6, window_bounds = array<i64: 8, 128>}, {pipeline_mode = #tpu.pipeline_mode<synchronous>, transform_indices = @transform_7, window_bounds = array<i64: 8, 128>}, {transform_indices = @transform_8, window_bounds = array<i64: 1, 16, 256>}]} {
    %c0 = arith.constant 0 : index
    %c0_0 = arith.constant 0 : index
    %c0_1 = arith.constant 0 : index
    %0 = vector.load %arg1[%c0, %c0_0, %c0_1] : memref<1x16x256xf32, #tpu.memory_space<vmem>>, vector<1x16x256xf32>
    %1 = vector.shape_cast %0 : vector<1x16x256xf32> to vector<16x256xf32>
    %cst = arith.constant 0.000000e+00 : f32
    %2 = vector.broadcast %cst : f32 to vector<32x512xf32>
    %c0_2 = arith.constant 0 : index
    %c0_3 = arith.constant 0 : index
    %3 = vector.load %arg10[%c0_2, %c0_3] : memref<32x512xf32, #tpu.memory_space<vmem>>, vector<32x512xf32>
    tpu.vector_store %arg10[%c0_2, %c0_3], %2 {strides = array<i32>} : memref<32x512xf32, #tpu.memory_space<vmem>>, vector<32x512xf32>,
    %c8 = arith.constant 8 : index
    %c128 = arith.constant 128 : index
    %4 = vector.load %arg10[%c8, %c128] : memref<32x512xf32, #tpu.memory_space<vmem>>, vector<16x256xf32>
    tpu.vector_store %arg10[%c8, %c128], %1 {strides = array<i32>} : memref<32x512xf32, #tpu.memory_space<vmem>>, vector<16x256xf32>,
    %cst_4 = arith.constant 0.000000e+00 : f32
    %5 = vector.broadcast %cst_4 : f32 to vector<16x256xf32>
    %cst_5 = arith.constant 0.000000e+00 : f32
    %6 = vector.broadcast %cst_5 : f32 to vector<16x256xf32>
    %cst_6 = arith.constant 0.000000e+00 : f32
    %7 = vector.broadcast %cst_6 : f32 to vector<16x256xf32>
    %cst_7 = arith.constant 0.000000e+00 : f32
    %8 = vector.broadcast %cst_7 : f32 to vector<16x256xf32>
    %c5 = arith.constant 5 : index
    %c0_8 = arith.constant 0 : index
    %9 = vector.load %arg10[%c5, %c0_8] : memref<32x512xf32, #tpu.memory_space<vmem>>, vector<16x512xf32>
    %10 = vector.extract_strided_slice %9 {offsets = [0, 80], sizes = [16, 256], strides = [1, 1]} : vector<16x512xf32> to vector<16x256xf32>
    %c0_9 = arith.constant 0 : index
    %c0_10 = arith.constant 0 : index
    %11 = vector.load %arg2[%c0_9, %c0_10] : memref<49x256xf32, #tpu.memory_space<vmem>>, vector<1x256xf32>
    %12 = vector.broadcast %11 : vector<1x256xf32> to vector<16x256xf32>
    %13 = arith.mulf %10, %12 : vector<16x256xf32>
    %14 = arith.addf %5, %13 : vector<16x256xf32>
    %15 = vector.extract_strided_slice %9 {offsets = [0, 96], sizes = [16, 256], strides = [1, 1]} : vector<16x512xf32> to vector<16x256xf32>
    %c1 = arith.constant 1 : index
    %c0_11 = arith.constant 0 : index
    %16 = vector.load %arg2[%c1, %c0_11] : memref<49x256xf32, #tpu.memory_space<vmem>>, vector<1x256xf32>
    %17 = vector.broadcast %16 : vector<1x256xf32> to vector<16x256xf32>
    %18 = arith.mulf %15, %17 : vector<16x256xf32>
    %19 = arith.addf %6, %18 : vector<16x256xf32>
    %20 = vector.extract_strided_slice %9 {offsets = [0, 112], sizes = [16, 256], strides = [1, 1]} : vector<16x512xf32> to vector<16x256xf32>
    %c2 = arith.constant 2 : index
    %c0_12 = arith.constant 0 : index
    %21 = vector.load %arg2[%c2, %c0_12] : memref<49x256xf32, #tpu.memory_space<vmem>>, vector<1x256xf32>
    %22 = vector.broadcast %21 : vector<1x256xf32> to vector<16x256xf32>
    %23 = arith.mulf %20, %22 : vector<16x256xf32>
    %24 = arith.addf %7, %23 : vector<16x256xf32>
    %25 = vector.extract_strided_slice %9 {offsets = [0, 128], sizes = [16, 256], strides = [1, 1]} : vector<16x512xf32> to vector<16x256xf32>
    %c3 = arith.constant 3 : index
    %c0_13 = arith.constant 0 : index
    %26 = vector.load %arg2[%c3, %c0_13] : memref<49x256xf32, #tpu.memory_space<vmem>>, vector<1x256xf32>
    %27 = vector.broadcast %26 : vector<1x256xf32> to vector<16x256xf32>
    %28 = arith.mulf %25, %27 : vector<16x256xf32>
    %29 = arith.addf %8, %28 : vector<16x256xf32>
    %30 = vector.extract_strided_slice %9 {offsets = [0, 144], sizes = [16, 256], strides = [1, 1]} : vector<16x512xf32> to vector<16x256xf32>
    %c4 = arith.constant 4 : index
    %c0_14 = arith.constant 0 : index
    %31 = vector.load %arg2[%c4, %c0_14] : memref<49x256xf32, #tpu.memory_space<vmem>>, vector<1x256xf32>
    %32 = vector.broadcast %31 : vector<1x256xf32> to vector<16x256xf32>
    %33 = arith.mulf %30, %32 : vector<16x256xf32>
    %34 = arith.addf %14, %33 : vector<16x256xf32>
    %35 = vector.extract_strided_slice %9 {offsets = [0, 160], sizes = [16, 256], strides = [1, 1]} : vector<16x512xf32> to vector<16x256xf32>
    %c5_15 = arith.constant 5 : index
    %c0_16 = arith.constant 0 : index
    %36 = vector.load %arg2[%c5_15, %c0_16] : memref<49x256xf32, #tpu.memory_space<vmem>>, vector<1x256xf32>
    %37 = vector.broadcast %36 : vector<1x256xf32> to vector<16x256xf32>
    %38 = arith.mulf %35, %37 : vector<16x256xf32>
    %39 = arith.addf %19, %38 : vector<16x256xf32>
    %40 = vector.extract_strided_slice %9 {offsets = [0, 176], sizes = [16, 256], strides = [1, 1]} : vector<16x512xf32> to vector<16x256xf32>
    %c6 = arith.constant 6 : index
    %c0_17 = arith.constant 0 : index
    %41 = vector.load %arg2[%c6, %c0_17] : memref<49x256xf32, #tpu.memory_space<vmem>>, vector<1x256xf32>
    %42 = vector.broadcast %41 : vector<1x256xf32> to vector<16x256xf32>
    %43 = arith.mulf %40, %42 : vector<16x256xf32>
    %44 = arith.addf %24, %43 : vector<16x256xf32>
    %c6_18 = arith.constant 6 : index
    %c0_19 = arith.constant 0 : index
    %45 = vector.load %arg10[%c6_18, %c0_19] : memref<32x512xf32, #tpu.memory_space<vmem>>, vector<16x512xf32>
    %46 = vector.extract_strided_slice %45 {offsets = [0, 80], sizes = [16, 256], strides = [1, 1]} : vector<16x512xf32> to vector<16x256xf32>
    %c7 = arith.constant 7 : index
    %c0_20 = arith.constant 0 : index
    %47 = vector.load %arg2[%c7, %c0_20] : memref<49x256xf32, #tpu.memory_space<vmem>>, vector<1x256xf32>
    %48 = vector.broadcast %47 : vector<1x256xf32> to vector<16x256xf32>
    %49 = arith.mulf %46, %48 : vector<16x256xf32>
    %50 = arith.addf %29, %49 : vector<16x256xf32>
    %51 = vector.extract_strided_slice %45 {offsets = [0, 96], sizes = [16, 256], strides = [1, 1]} : vector<16x512xf32> to vector<16x256xf32>
    %c8_21 = arith.constant 8 : index
    %c0_22 = arith.constant 0 : index
    %52 = vector.load %arg2[%c8_21, %c0_22] : memref<49x256xf32, #tpu.memory_space<vmem>>, vector<1x256xf32>
    %53 = vector.broadcast %52 : vector<1x256xf32> to vector<16x256xf32>
    %54 = arith.mulf %51, %53 : vector<16x256xf32>
    %55 = arith.addf %34, %54 : vector<16x256xf32>
    %56 = vector.extract_strided_slice %45 {offsets = [0, 112], sizes = [16, 256], strides = [1, 1]} : vector<16x512xf32> to vector<16x256xf32>
    %c9 = arith.constant 9 : index
    %c0_23 = arith.constant 0 : index
    %57 = vector.load %arg2[%c9, %c0_23] : memref<49x256xf32, #tpu.memory_space<vmem>>, vector<1x256xf32>
    %58 = vector.broadcast %57 : vector<1x256xf32> to vector<16x256xf32>
    %59 = arith.mulf %56, %58 : vector<16x256xf32>
    %60 = arith.addf %39, %59 : vector<16x256xf32>
    %61 = vector.extract_strided_slice %45 {offsets = [0, 128], sizes = [16, 256], strides = [1, 1]} : vector<16x512xf32> to vector<16x256xf32>
    %c10 = arith.constant 10 : index
    %c0_24 = arith.constant 0 : index
    %62 = vector.load %arg2[%c10, %c0_24] : memref<49x256xf32, #tpu.memory_space<vmem>>, vector<1x256xf32>
    %63 = vector.broadcast %62 : vector<1x256xf32> to vector<16x256xf32>
    %64 = arith.mulf %61, %63 : vector<16x256xf32>
    %65 = arith.addf %44, %64 : vector<16x256xf32>
    %66 = vector.extract_strided_slice %45 {offsets = [0, 144], sizes = [16, 256], strides = [1, 1]} : vector<16x512xf32> to vector<16x256xf32>
    %c11 = arith.constant 11 : index
    %c0_25 = arith.constant 0 : index
    %67 = vector.load %arg2[%c11, %c0_25] : memref<49x256xf32, #tpu.memory_space<vmem>>, vector<1x256xf32>
    %68 = vector.broadcast %67 : vector<1x256xf32> to vector<16x256xf32>
    %69 = arith.mulf %66, %68 : vector<16x256xf32>
    %70 = arith.addf %50, %69 : vector<16x256xf32>
    %71 = vector.extract_strided_slice %45 {offsets = [0, 160], sizes = [16, 256], strides = [1, 1]} : vector<16x512xf32> to vector<16x256xf32>
    %c12 = arith.constant 12 : index
    %c0_26 = arith.constant 0 : index
    %72 = vector.load %arg2[%c12, %c0_26] : memref<49x256xf32, #tpu.memory_space<vmem>>, vector<1x256xf32>
    %73 = vector.broadcast %72 : vector<1x256xf32> to vector<16x256xf32>
    %74 = arith.mulf %71, %73 : vector<16x256xf32>
    %75 = arith.addf %55, %74 : vector<16x256xf32>
    %76 = vector.extract_strided_slice %45 {offsets = [0, 176], sizes = [16, 256], strides = [1, 1]} : vector<16x512xf32> to vector<16x256xf32>
    %c13 = arith.constant 13 : index
    %c0_27 = arith.constant 0 : index
    %77 = vector.load %arg2[%c13, %c0_27] : memref<49x256xf32, #tpu.memory_space<vmem>>, vector<1x256xf32>
    %78 = vector.broadcast %77 : vector<1x256xf32> to vector<16x256xf32>
    %79 = arith.mulf %76, %78 : vector<16x256xf32>
    %80 = arith.addf %60, %79 : vector<16x256xf32>
    %c7_28 = arith.constant 7 : index
    %c0_29 = arith.constant 0 : index
    %81 = vector.load %arg10[%c7_28, %c0_29] : memref<32x512xf32, #tpu.memory_space<vmem>>, vector<16x512xf32>
    %82 = vector.extract_strided_slice %81 {offsets = [0, 80], sizes = [16, 256], strides = [1, 1]} : vector<16x512xf32> to vector<16x256xf32>
    %c14 = arith.constant 14 : index
    %c0_30 = arith.constant 0 : index
    %83 = vector.load %arg2[%c14, %c0_30] : memref<49x256xf32, #tpu.memory_space<vmem>>, vector<1x256xf32>
    %84 = vector.broadcast %83 : vector<1x256xf32> to vector<16x256xf32>
    %85 = arith.mulf %82, %84 : vector<16x256xf32>
    %86 = arith.addf %65, %85 : vector<16x256xf32>
    %87 = vector.extract_strided_slice %81 {offsets = [0, 96], sizes = [16, 256], strides = [1, 1]} : vector<16x512xf32> to vector<16x256xf32>
    %c15 = arith.constant 15 : index
    %c0_31 = arith.constant 0 : index
    %88 = vector.load %arg2[%c15, %c0_31] : memref<49x256xf32, #tpu.memory_space<vmem>>, vector<1x256xf32>
    %89 = vector.broadcast %88 : vector<1x256xf32> to vector<16x256xf32>
    %90 = arith.mulf %87, %89 : vector<16x256xf32>
    %91 = arith.addf %70, %90 : vector<16x256xf32>
    %92 = vector.extract_strided_slice %81 {offsets = [0, 112], sizes = [16, 256], strides = [1, 1]} : vector<16x512xf32> to vector<16x256xf32>
    %c16 = arith.constant 16 : index
    %c0_32 = arith.constant 0 : index
    %93 = vector.load %arg2[%c16, %c0_32] : memref<49x256xf32, #tpu.memory_space<vmem>>, vector<1x256xf32>
    %94 = vector.broadcast %93 : vector<1x256xf32> to vector<16x256xf32>
    %95 = arith.mulf %92, %94 : vector<16x256xf32>
    %96 = arith.addf %75, %95 : vector<16x256xf32>
    %97 = vector.extract_strided_slice %81 {offsets = [0, 128], sizes = [16, 256], strides = [1, 1]} : vector<16x512xf32> to vector<16x256xf32>
    %c17 = arith.constant 17 : index
    %c0_33 = arith.constant 0 : index
    %98 = vector.load %arg2[%c17, %c0_33] : memref<49x256xf32, #tpu.memory_space<vmem>>, vector<1x256xf32>
    %99 = vector.broadcast %98 : vector<1x256xf32> to vector<16x256xf32>
    %100 = arith.mulf %97, %99 : vector<16x256xf32>
    %101 = arith.addf %80, %100 : vector<16x256xf32>
    %102 = vector.extract_strided_slice %81 {offsets = [0, 144], sizes = [16, 256], strides = [1, 1]} : vector<16x512xf32> to vector<16x256xf32>
    %c18 = arith.constant 18 : index
    %c0_34 = arith.constant 0 : index
    %103 = vector.load %arg2[%c18, %c0_34] : memref<49x256xf32, #tpu.memory_space<vmem>>, vector<1x256xf32>
    %104 = vector.broadcast %103 : vector<1x256xf32> to vector<16x256xf32>
    %105 = arith.mulf %102, %104 : vector<16x256xf32>
    %106 = arith.addf %86, %105 : vector<16x256xf32>
    %107 = vector.extract_strided_slice %81 {offsets = [0, 160], sizes = [16, 256], strides = [1, 1]} : vector<16x512xf32> to vector<16x256xf32>
    %c19 = arith.constant 19 : index
    %c0_35 = arith.constant 0 : index
    %108 = vector.load %arg2[%c19, %c0_35] : memref<49x256xf32, #tpu.memory_space<vmem>>, vector<1x256xf32>
    %109 = vector.broadcast %108 : vector<1x256xf32> to vector<16x256xf32>
    %110 = arith.mulf %107, %109 : vector<16x256xf32>
    %111 = arith.addf %91, %110 : vector<16x256xf32>
    %112 = vector.extract_strided_slice %81 {offsets = [0, 176], sizes = [16, 256], strides = [1, 1]} : vector<16x512xf32> to vector<16x256xf32>
    %c20 = arith.constant 20 : index
    %c0_36 = arith.constant 0 : index
    %113 = vector.load %arg2[%c20, %c0_36] : memref<49x256xf32, #tpu.memory_space<vmem>>, vector<1x256xf32>
    %114 = vector.broadcast %113 : vector<1x256xf32> to vector<16x256xf32>
    %115 = arith.mulf %112, %114 : vector<16x256xf32>
    %116 = arith.addf %96, %115 : vector<16x256xf32>
    %c8_37 = arith.constant 8 : index
    %c0_38 = arith.constant 0 : index
    %117 = vector.load %arg10[%c8_37, %c0_38] : memref<32x512xf32, #tpu.memory_space<vmem>>, vector<16x512xf32>
    %118 = vector.extract_strided_slice %117 {offsets = [0, 80], sizes = [16, 256], strides = [1, 1]} : vector<16x512xf32> to vector<16x256xf32>
    %c21 = arith.constant 21 : index
    %c0_39 = arith.constant 0 : index
    %119 = vector.load %arg2[%c21, %c0_39] : memref<49x256xf32, #tpu.memory_space<vmem>>, vector<1x256xf32>
    %120 = vector.broadcast %119 : vector<1x256xf32> to vector<16x256xf32>
    %121 = arith.mulf %118, %120 : vector<16x256xf32>
    %122 = arith.addf %101, %121 : vector<16x256xf32>
    %123 = vector.extract_strided_slice %117 {offsets = [0, 96], sizes = [16, 256], strides = [1, 1]} : vector<16x512xf32> to vector<16x256xf32>
    %c22 = arith.constant 22 : index
    %c0_40 = arith.constant 0 : index
    %124 = vector.load %arg2[%c22, %c0_40] : memref<49x256xf32, #tpu.memory_space<vmem>>, vector<1x256xf32>
    %125 = vector.broadcast %124 : vector<1x256xf32> to vector<16x256xf32>
    %126 = arith.mulf %123, %125 : vector<16x256xf32>
    %127 = arith.addf %106, %126 : vector<16x256xf32>
    %128 = vector.extract_strided_slice %117 {offsets = [0, 112], sizes = [16, 256], strides = [1, 1]} : vector<16x512xf32> to vector<16x256xf32>
    %c23 = arith.constant 23 : index
    %c0_41 = arith.constant 0 : index
    %129 = vector.load %arg2[%c23, %c0_41] : memref<49x256xf32, #tpu.memory_space<vmem>>, vector<1x256xf32>
    %130 = vector.broadcast %129 : vector<1x256xf32> to vector<16x256xf32>
    %131 = arith.mulf %128, %130 : vector<16x256xf32>
    %132 = arith.addf %111, %131 : vector<16x256xf32>
    %133 = vector.extract_strided_slice %117 {offsets = [0, 128], sizes = [16, 256], strides = [1, 1]} : vector<16x512xf32> to vector<16x256xf32>
    %c24 = arith.constant 24 : index
    %c0_42 = arith.constant 0 : index
    %134 = vector.load %arg2[%c24, %c0_42] : memref<49x256xf32, #tpu.memory_space<vmem>>, vector<1x256xf32>
    %135 = vector.broadcast %134 : vector<1x256xf32> to vector<16x256xf32>
    %136 = arith.mulf %133, %135 : vector<16x256xf32>
    %137 = arith.addf %116, %136 : vector<16x256xf32>
    %138 = vector.extract_strided_slice %117 {offsets = [0, 144], sizes = [16, 256], strides = [1, 1]} : vector<16x512xf32> to vector<16x256xf32>
    %c25 = arith.constant 25 : index
    %c0_43 = arith.constant 0 : index
    %139 = vector.load %arg2[%c25, %c0_43] : memref<49x256xf32, #tpu.memory_space<vmem>>, vector<1x256xf32>
    %140 = vector.broadcast %139 : vector<1x256xf32> to vector<16x256xf32>
    %141 = arith.mulf %138, %140 : vector<16x256xf32>
    %142 = arith.addf %122, %141 : vector<16x256xf32>
    %143 = vector.extract_strided_slice %117 {offsets = [0, 160], sizes = [16, 256], strides = [1, 1]} : vector<16x512xf32> to vector<16x256xf32>
    %c26 = arith.constant 26 : index
    %c0_44 = arith.constant 0 : index
    %144 = vector.load %arg2[%c26, %c0_44] : memref<49x256xf32, #tpu.memory_space<vmem>>, vector<1x256xf32>
    %145 = vector.broadcast %144 : vector<1x256xf32> to vector<16x256xf32>
    %146 = arith.mulf %143, %145 : vector<16x256xf32>
    %147 = arith.addf %127, %146 : vector<16x256xf32>
    %148 = vector.extract_strided_slice %117 {offsets = [0, 176], sizes = [16, 256], strides = [1, 1]} : vector<16x512xf32> to vector<16x256xf32>
    %c27 = arith.constant 27 : index
    %c0_45 = arith.constant 0 : index
    %149 = vector.load %arg2[%c27, %c0_45] : memref<49x256xf32, #tpu.memory_space<vmem>>, vector<1x256xf32>
    %150 = vector.broadcast %149 : vector<1x256xf32> to vector<16x256xf32>
    %151 = arith.mulf %148, %150 : vector<16x256xf32>
    %152 = arith.addf %132, %151 : vector<16x256xf32>
    %c9_46 = arith.constant 9 : index
    %c0_47 = arith.constant 0 : index
    %153 = vector.load %arg10[%c9_46, %c0_47] : memref<32x512xf32, #tpu.memory_space<vmem>>, vector<16x512xf32>
    %154 = vector.extract_strided_slice %153 {offsets = [0, 80], sizes = [16, 256], strides = [1, 1]} : vector<16x512xf32> to vector<16x256xf32>
    %c28 = arith.constant 28 : index
    %c0_48 = arith.constant 0 : index
    %155 = vector.load %arg2[%c28, %c0_48] : memref<49x256xf32, #tpu.memory_space<vmem>>, vector<1x256xf32>
    %156 = vector.broadcast %155 : vector<1x256xf32> to vector<16x256xf32>
    %157 = arith.mulf %154, %156 : vector<16x256xf32>
    %158 = arith.addf %137, %157 : vector<16x256xf32>
    %159 = vector.extract_strided_slice %153 {offsets = [0, 96], sizes = [16, 256], strides = [1, 1]} : vector<16x512xf32> to vector<16x256xf32>
    %c29 = arith.constant 29 : index
    %c0_49 = arith.constant 0 : index
    %160 = vector.load %arg2[%c29, %c0_49] : memref<49x256xf32, #tpu.memory_space<vmem>>, vector<1x256xf32>
    %161 = vector.broadcast %160 : vector<1x256xf32> to vector<16x256xf32>
    %162 = arith.mulf %159, %161 : vector<16x256xf32>
    %163 = arith.addf %142, %162 : vector<16x256xf32>
    %164 = vector.extract_strided_slice %153 {offsets = [0, 112], sizes = [16, 256], strides = [1, 1]} : vector<16x512xf32> to vector<16x256xf32>
    %c30 = arith.constant 30 : index
    %c0_50 = arith.constant 0 : index
    %165 = vector.load %arg2[%c30, %c0_50] : memref<49x256xf32, #tpu.memory_space<vmem>>, vector<1x256xf32>
    %166 = vector.broadcast %165 : vector<1x256xf32> to vector<16x256xf32>
    %167 = arith.mulf %164, %166 : vector<16x256xf32>
    %168 = arith.addf %147, %167 : vector<16x256xf32>
    %169 = vector.extract_strided_slice %153 {offsets = [0, 128], sizes = [16, 256], strides = [1, 1]} : vector<16x512xf32> to vector<16x256xf32>
    %c31 = arith.constant 31 : index
    %c0_51 = arith.constant 0 : index
    %170 = vector.load %arg2[%c31, %c0_51] : memref<49x256xf32, #tpu.memory_space<vmem>>, vector<1x256xf32>
    %171 = vector.broadcast %170 : vector<1x256xf32> to vector<16x256xf32>
    %172 = arith.mulf %169, %171 : vector<16x256xf32>
    %173 = arith.addf %152, %172 : vector<16x256xf32>
    %174 = vector.extract_strided_slice %153 {offsets = [0, 144], sizes = [16, 256], strides = [1, 1]} : vector<16x512xf32> to vector<16x256xf32>
    %c32 = arith.constant 32 : index
    %c0_52 = arith.constant 0 : index
    %175 = vector.load %arg2[%c32, %c0_52] : memref<49x256xf32, #tpu.memory_space<vmem>>, vector<1x256xf32>
    %176 = vector.broadcast %175 : vector<1x256xf32> to vector<16x256xf32>
    %177 = arith.mulf %174, %176 : vector<16x256xf32>
    %178 = arith.addf %158, %177 : vector<16x256xf32>
    %179 = vector.extract_strided_slice %153 {offsets = [0, 160], sizes = [16, 256], strides = [1, 1]} : vector<16x512xf32> to vector<16x256xf32>
    %c33 = arith.constant 33 : index
    %c0_53 = arith.constant 0 : index
    %180 = vector.load %arg2[%c33, %c0_53] : memref<49x256xf32, #tpu.memory_space<vmem>>, vector<1x256xf32>
    %181 = vector.broadcast %180 : vector<1x256xf32> to vector<16x256xf32>
    %182 = arith.mulf %179, %181 : vector<16x256xf32>
    %183 = arith.addf %163, %182 : vector<16x256xf32>
    %184 = vector.extract_strided_slice %153 {offsets = [0, 176], sizes = [16, 256], strides = [1, 1]} : vector<16x512xf32> to vector<16x256xf32>
    %c34 = arith.constant 34 : index
    %c0_54 = arith.constant 0 : index
    %185 = vector.load %arg2[%c34, %c0_54] : memref<49x256xf32, #tpu.memory_space<vmem>>, vector<1x256xf32>
    %186 = vector.broadcast %185 : vector<1x256xf32> to vector<16x256xf32>
    %187 = arith.mulf %184, %186 : vector<16x256xf32>
    %188 = arith.addf %168, %187 : vector<16x256xf32>
    %c10_55 = arith.constant 10 : index
    %c0_56 = arith.constant 0 : index
    %189 = vector.load %arg10[%c10_55, %c0_56] : memref<32x512xf32, #tpu.memory_space<vmem>>, vector<16x512xf32>
    %190 = vector.extract_strided_slice %189 {offsets = [0, 80], sizes = [16, 256], strides = [1, 1]} : vector<16x512xf32> to vector<16x256xf32>
    %c35 = arith.constant 35 : index
    %c0_57 = arith.constant 0 : index
    %191 = vector.load %arg2[%c35, %c0_57] : memref<49x256xf32, #tpu.memory_space<vmem>>, vector<1x256xf32>
    %192 = vector.broadcast %191 : vector<1x256xf32> to vector<16x256xf32>
    %193 = arith.mulf %190, %192 : vector<16x256xf32>
    %194 = arith.addf %173, %193 : vector<16x256xf32>
    %195 = vector.extract_strided_slice %189 {offsets = [0, 96], sizes = [16, 256], strides = [1, 1]} : vector<16x512xf32> to vector<16x256xf32>
    %c36 = arith.constant 36 : index
    %c0_58 = arith.constant 0 : index
    %196 = vector.load %arg2[%c36, %c0_58] : memref<49x256xf32, #tpu.memory_space<vmem>>, vector<1x256xf32>
    %197 = vector.broadcast %196 : vector<1x256xf32> to vector<16x256xf32>
    %198 = arith.mulf %195, %197 : vector<16x256xf32>
    %199 = arith.addf %178, %198 : vector<16x256xf32>
    %200 = vector.extract_strided_slice %189 {offsets = [0, 112], sizes = [16, 256], strides = [1, 1]} : vector<16x512xf32> to vector<16x256xf32>
    %c37 = arith.constant 37 : index
    %c0_59 = arith.constant 0 : index
    %201 = vector.load %arg2[%c37, %c0_59] : memref<49x256xf32, #tpu.memory_space<vmem>>, vector<1x256xf32>
    %202 = vector.broadcast %201 : vector<1x256xf32> to vector<16x256xf32>
    %203 = arith.mulf %200, %202 : vector<16x256xf32>
    %204 = arith.addf %183, %203 : vector<16x256xf32>
    %205 = vector.extract_strided_slice %189 {offsets = [0, 128], sizes = [16, 256], strides = [1, 1]} : vector<16x512xf32> to vector<16x256xf32>
    %c38 = arith.constant 38 : index
    %c0_60 = arith.constant 0 : index
    %206 = vector.load %arg2[%c38, %c0_60] : memref<49x256xf32, #tpu.memory_space<vmem>>, vector<1x256xf32>
    %207 = vector.broadcast %206 : vector<1x256xf32> to vector<16x256xf32>
    %208 = arith.mulf %205, %207 : vector<16x256xf32>
    %209 = arith.addf %188, %208 : vector<16x256xf32>
    %210 = vector.extract_strided_slice %189 {offsets = [0, 144], sizes = [16, 256], strides = [1, 1]} : vector<16x512xf32> to vector<16x256xf32>
    %c39 = arith.constant 39 : index
    %c0_61 = arith.constant 0 : index
    %211 = vector.load %arg2[%c39, %c0_61] : memref<49x256xf32, #tpu.memory_space<vmem>>, vector<1x256xf32>
    %212 = vector.broadcast %211 : vector<1x256xf32> to vector<16x256xf32>
    %213 = arith.mulf %210, %212 : vector<16x256xf32>
    %214 = arith.addf %194, %213 : vector<16x256xf32>
    %215 = vector.extract_strided_slice %189 {offsets = [0, 160], sizes = [16, 256], strides = [1, 1]} : vector<16x512xf32> to vector<16x256xf32>
    %c40 = arith.constant 40 : index
    %c0_62 = arith.constant 0 : index
    %216 = vector.load %arg2[%c40, %c0_62] : memref<49x256xf32, #tpu.memory_space<vmem>>, vector<1x256xf32>
    %217 = vector.broadcast %216 : vector<1x256xf32> to vector<16x256xf32>
    %218 = arith.mulf %215, %217 : vector<16x256xf32>
    %219 = arith.addf %199, %218 : vector<16x256xf32>
    %220 = vector.extract_strided_slice %189 {offsets = [0, 176], sizes = [16, 256], strides = [1, 1]} : vector<16x512xf32> to vector<16x256xf32>
    %c41 = arith.constant 41 : index
    %c0_63 = arith.constant 0 : index
    %221 = vector.load %arg2[%c41, %c0_63] : memref<49x256xf32, #tpu.memory_space<vmem>>, vector<1x256xf32>
    %222 = vector.broadcast %221 : vector<1x256xf32> to vector<16x256xf32>
    %223 = arith.mulf %220, %222 : vector<16x256xf32>
    %224 = arith.addf %204, %223 : vector<16x256xf32>
    %c11_64 = arith.constant 11 : index
    %c0_65 = arith.constant 0 : index
    %225 = vector.load %arg10[%c11_64, %c0_65] : memref<32x512xf32, #tpu.memory_space<vmem>>, vector<16x512xf32>
    %226 = vector.extract_strided_slice %225 {offsets = [0, 80], sizes = [16, 256], strides = [1, 1]} : vector<16x512xf32> to vector<16x256xf32>
    %c42 = arith.constant 42 : index
    %c0_66 = arith.constant 0 : index
    %227 = vector.load %arg2[%c42, %c0_66] : memref<49x256xf32, #tpu.memory_space<vmem>>, vector<1x256xf32>
    %228 = vector.broadcast %227 : vector<1x256xf32> to vector<16x256xf32>
    %229 = arith.mulf %226, %228 : vector<16x256xf32>
    %230 = arith.addf %209, %229 : vector<16x256xf32>
    %231 = vector.extract_strided_slice %225 {offsets = [0, 96], sizes = [16, 256], strides = [1, 1]} : vector<16x512xf32> to vector<16x256xf32>
    %c43 = arith.constant 43 : index
    %c0_67 = arith.constant 0 : index
    %232 = vector.load %arg2[%c43, %c0_67] : memref<49x256xf32, #tpu.memory_space<vmem>>, vector<1x256xf32>
    %233 = vector.broadcast %232 : vector<1x256xf32> to vector<16x256xf32>
    %234 = arith.mulf %231, %233 : vector<16x256xf32>
    %235 = arith.addf %214, %234 : vector<16x256xf32>
    %236 = vector.extract_strided_slice %225 {offsets = [0, 112], sizes = [16, 256], strides = [1, 1]} : vector<16x512xf32> to vector<16x256xf32>
    %c44 = arith.constant 44 : index
    %c0_68 = arith.constant 0 : index
    %237 = vector.load %arg2[%c44, %c0_68] : memref<49x256xf32, #tpu.memory_space<vmem>>, vector<1x256xf32>
    %238 = vector.broadcast %237 : vector<1x256xf32> to vector<16x256xf32>
    %239 = arith.mulf %236, %238 : vector<16x256xf32>
    %240 = arith.addf %219, %239 : vector<16x256xf32>
    %241 = vector.extract_strided_slice %225 {offsets = [0, 128], sizes = [16, 256], strides = [1, 1]} : vector<16x512xf32> to vector<16x256xf32>
    %c45 = arith.constant 45 : index
    %c0_69 = arith.constant 0 : index
    %242 = vector.load %arg2[%c45, %c0_69] : memref<49x256xf32, #tpu.memory_space<vmem>>, vector<1x256xf32>
    %243 = vector.broadcast %242 : vector<1x256xf32> to vector<16x256xf32>
    %244 = arith.mulf %241, %243 : vector<16x256xf32>
    %245 = arith.addf %224, %244 : vector<16x256xf32>
    %246 = vector.extract_strided_slice %225 {offsets = [0, 144], sizes = [16, 256], strides = [1, 1]} : vector<16x512xf32> to vector<16x256xf32>
    %c46 = arith.constant 46 : index
    %c0_70 = arith.constant 0 : index
    %247 = vector.load %arg2[%c46, %c0_70] : memref<49x256xf32, #tpu.memory_space<vmem>>, vector<1x256xf32>
    %248 = vector.broadcast %247 : vector<1x256xf32> to vector<16x256xf32>
    %249 = arith.mulf %246, %248 : vector<16x256xf32>
    %250 = arith.addf %230, %249 : vector<16x256xf32>
    %251 = vector.extract_strided_slice %225 {offsets = [0, 160], sizes = [16, 256], strides = [1, 1]} : vector<16x512xf32> to vector<16x256xf32>
    %c47 = arith.constant 47 : index
    %c0_71 = arith.constant 0 : index
    %252 = vector.load %arg2[%c47, %c0_71] : memref<49x256xf32, #tpu.memory_space<vmem>>, vector<1x256xf32>
    %253 = vector.broadcast %252 : vector<1x256xf32> to vector<16x256xf32>
    %254 = arith.mulf %251, %253 : vector<16x256xf32>
    %255 = arith.addf %235, %254 : vector<16x256xf32>
    %256 = vector.extract_strided_slice %225 {offsets = [0, 176], sizes = [16, 256], strides = [1, 1]} : vector<16x512xf32> to vector<16x256xf32>
    %c48 = arith.constant 48 : index
    %c0_72 = arith.constant 0 : index
    %257 = vector.load %arg2[%c48, %c0_72] : memref<49x256xf32, #tpu.memory_space<vmem>>, vector<1x256xf32>
    %258 = vector.broadcast %257 : vector<1x256xf32> to vector<16x256xf32>
    %259 = arith.mulf %256, %258 : vector<16x256xf32>
    %260 = arith.addf %240, %259 : vector<16x256xf32>
    %261 = arith.addf %260, %245 : vector<16x256xf32>
    %262 = arith.addf %250, %255 : vector<16x256xf32>
    %263 = arith.addf %261, %262 : vector<16x256xf32>
    %c0_73 = arith.constant 0 : index
    %c0_74 = arith.constant 0 : index
    %264 = vector.load %arg3[%c0_73, %c0_74] : memref<8x1024xf32, #tpu.memory_space<vmem>>, vector<1x256xf32>
    %265 = vector.broadcast %264 : vector<1x256xf32> to vector<16x256xf32>
    %266 = arith.addf %263, %265 : vector<16x256xf32>
    %c0_75 = arith.constant 0 : index
    %c0_76 = arith.constant 0 : index
    %267 = vector.load %arg4[%c0_75, %c0_76] : memref<256x256xf32, #tpu.memory_space<vmem>>, vector<256x256xf32>
    %cst_77 = arith.constant dense<0.000000e+00> : vector<16x256xf32>
    %268 = tpu.matmul %266, %267, %cst_77 {dimension_numbers = #tpu.dot_dimension_numbers<[1], [0], [0], [1], [0, 0, 1, 1], [], []>} : vector<16x256xf32>, vector<256x256xf32>, vector<16x256xf32> -> vector<16x256xf32>
    %269 = arith.subf %266, %268 : vector<16x256xf32>
    %270 = arith.mulf %269, %269 : vector<16x256xf32>
    %cst_78 = arith.constant dense<0.000000e+00> : vector<16x256xf32>
    %271 = tpu.matmul %270, %267, %cst_78 {dimension_numbers = #tpu.dot_dimension_numbers<[1], [0], [0], [1], [0, 0, 1, 1], [], []>} : vector<16x256xf32>, vector<256x256xf32>, vector<16x256xf32> -> vector<16x256xf32>
    %cst_79 = arith.constant 9.99999997E-7 : f32
    %272 = vector.broadcast %cst_79 : f32 to vector<16x256xf32>
    %273 = arith.addf %271, %272 : vector<16x256xf32>
    %274 = math.rsqrt %273 : vector<16x256xf32>
    %275 = arith.mulf %269, %274 : vector<16x256xf32>
    %c1_80 = arith.constant 1 : index
    %c0_81 = arith.constant 0 : index
    %276 = vector.load %arg3[%c1_80, %c0_81] : memref<8x1024xf32, #tpu.memory_space<vmem>>, vector<1x256xf32>
    %277 = vector.broadcast %276 : vector<1x256xf32> to vector<16x256xf32>
    %278 = arith.mulf %275, %277 : vector<16x256xf32>
    %c2_82 = arith.constant 2 : index
    %c0_83 = arith.constant 0 : index
    %279 = vector.load %arg3[%c2_82, %c0_83] : memref<8x1024xf32, #tpu.memory_space<vmem>>, vector<1x256xf32>
    %280 = vector.broadcast %279 : vector<1x256xf32> to vector<16x256xf32>
    %281 = arith.addf %278, %280 : vector<16x256xf32>
    %c0_84 = arith.constant 0 : index
    %c0_85 = arith.constant 0 : index
    %282 = vector.load %arg5[%c0_84, %c0_85] : memref<256x1024xf32, #tpu.memory_space<vmem>>, vector<256x1024xf32>
    %cst_86 = arith.constant dense<0.000000e+00> : vector<16x1024xf32>
    %283 = tpu.matmul %281, %282, %cst_86 {dimension_numbers = #tpu.dot_dimension_numbers<[1], [0], [0], [1], [0, 0, 1, 1], [], []>} : vector<16x256xf32>, vector<256x1024xf32>, vector<16x1024xf32> -> vector<16x1024xf32>
    %c3_87 = arith.constant 3 : index
    %c0_88 = arith.constant 0 : index
    %284 = vector.load %arg3[%c3_87, %c0_88] : memref<8x1024xf32, #tpu.memory_space<vmem>>, vector<1x1024xf32>
    %285 = vector.broadcast %284 : vector<1x1024xf32> to vector<16x1024xf32>
    %286 = arith.addf %283, %285 : vector<16x1024xf32>
    %cst_89 = arith.constant 5.000000e-01 : f32
    %287 = vector.broadcast %cst_89 : f32 to vector<16x1024xf32>
    %288 = arith.mulf %287, %286 : vector<16x1024xf32>
    %cst_90 = arith.constant 0.707106769 : f32
    %289 = vector.broadcast %cst_90 : f32 to vector<16x1024xf32>
    %290 = arith.mulf %286, %289 : vector<16x1024xf32>
    %291 = math.erf %290 : vector<16x1024xf32>
    %cst_91 = arith.constant 1.000000e+00 : f32
    %292 = vector.broadcast %cst_91 : f32 to vector<16x1024xf32>
    %293 = arith.addf %292, %291 : vector<16x1024xf32>
    %294 = arith.mulf %288, %293 : vector<16x1024xf32>
    %c0_92 = arith.constant 0 : index
    %c0_93 = arith.constant 0 : index
    %295 = vector.load %arg6[%c0_92, %c0_93] : memref<1024x256xf32, #tpu.memory_space<vmem>>, vector<1024x256xf32>
    %cst_94 = arith.constant dense<0.000000e+00> : vector<16x256xf32>
    %296 = tpu.matmul %294, %295, %cst_94 {dimension_numbers = #tpu.dot_dimension_numbers<[1], [0], [0], [1], [0, 0, 1, 1], [], []>} : vector<16x1024xf32>, vector<1024x256xf32>, vector<16x256xf32> -> vector<16x256xf32>
    %c6_95 = arith.constant 6 : index
    %c0_96 = arith.constant 0 : index
    %297 = vector.load %arg3[%c6_95, %c0_96] : memref<8x1024xf32, #tpu.memory_space<vmem>>, vector<1x256xf32>
    %298 = vector.broadcast %297 : vector<1x256xf32> to vector<16x256xf32>
    %299 = arith.addf %296, %298 : vector<16x256xf32>
    %c7_97 = arith.constant 7 : index
    %c0_98 = arith.constant 0 : index
    %300 = vector.load %arg3[%c7_97, %c0_98] : memref<8x1024xf32, #tpu.memory_space<vmem>>, vector<1x256xf32>
    %301 = vector.broadcast %300 : vector<1x256xf32> to vector<16x256xf32>
    %302 = arith.mulf %299, %301 : vector<16x256xf32>
    %303 = arith.addf %1, %302 : vector<16x256xf32>
    %c0_99 = arith.constant 0 : index
    %c0_100 = arith.constant 0 : index
    %c0_101 = arith.constant 0 : index
    %304 = vector.load %arg9[%c0_99, %c0_100, %c0_101] : memref<1x16x256xf32, #tpu.memory_space<vmem>>, vector<1x16x256xf32>
    %305 = vector.shape_cast %304 : vector<1x16x256xf32> to vector<16x256xf32>
    %306 = vector.shape_cast %303 : vector<16x256xf32> to vector<1x16x256xf32>
    tpu.vector_store %arg9[%c0_99, %c0_100, %c0_101], %306 {strides = array<i32>} : memref<1x16x256xf32, #tpu.memory_space<vmem>>, vector<1x16x256xf32>,
    return
  }
  func.func @transform_0(%arg0: i32) -> (i32, i32, i32) {
    %c0_i32 = arith.constant 0 : i32
    %c0_i32_0 = arith.constant 0 : i32
    %c0_i32_1 = arith.constant 0 : i32
    return %arg0, %c0_i32, %c0_i32_0 : i32, i32, i32
  }
  func.func @transform_1(%arg0: i32) -> (i32, i32) {
    %c0_i32 = arith.constant 0 : i32
    %c0_i32_0 = arith.constant 0 : i32
    %c0_i32_1 = arith.constant 0 : i32
    return %c0_i32, %c0_i32_0 : i32, i32
  }
  func.func @transform_2(%arg0: i32) -> (i32, i32) {
    %c0_i32 = arith.constant 0 : i32
    %c0_i32_0 = arith.constant 0 : i32
    %c0_i32_1 = arith.constant 0 : i32
    return %c0_i32, %c0_i32_0 : i32, i32
  }
  func.func @transform_3(%arg0: i32) -> (i32, i32) {
    %c0_i32 = arith.constant 0 : i32
    %c0_i32_0 = arith.constant 0 : i32
    %c0_i32_1 = arith.constant 0 : i32
    return %c0_i32, %c0_i32_0 : i32, i32
  }
  func.func @transform_4(%arg0: i32) -> (i32, i32) {
    %c0_i32 = arith.constant 0 : i32
    %c0_i32_0 = arith.constant 0 : i32
    %c0_i32_1 = arith.constant 0 : i32
    return %c0_i32, %c0_i32_0 : i32, i32
  }
  func.func @transform_5(%arg0: i32) -> (i32, i32) {
    %c0_i32 = arith.constant 0 : i32
    %c0_i32_0 = arith.constant 0 : i32
    %c0_i32_1 = arith.constant 0 : i32
    return %c0_i32, %c0_i32_0 : i32, i32
  }
  func.func @transform_6(%arg0: i32) -> (i32, i32) {
    %c0_i32 = arith.constant 0 : i32
    %c0_i32_0 = arith.constant 0 : i32
    %c0_i32_1 = arith.constant 0 : i32
    return %c0_i32, %c0_i32_0 : i32, i32
  }
  func.func @transform_7(%arg0: i32) -> (i32, i32) {
    %c0_i32 = arith.constant 0 : i32
    %c0_i32_0 = arith.constant 0 : i32
    %c0_i32_1 = arith.constant 0 : i32
    return %c0_i32, %c0_i32_0 : i32, i32
  }
  func.func @transform_8(%arg0: i32) -> (i32, i32, i32) {
    %c0_i32 = arith.constant 0 : i32
    %c0_i32_0 = arith.constant 0 : i32
    %c0_i32_1 = arith.constant 0 : i32
    return %arg0, %c0_i32, %c0_i32_0 : i32, i32, i32
  }
}

</mosaic_0001>

<bundles_post_ra>
// kernel: tpu_custom_call.1
= control target key start
LH: loop header
LB: loop body
LE: loop exit
PB: predicated region body
PF: predicated region fallthrough
CT: control target
= control target key end

     0   :  { %s12044_s0 = inlined_call_operand.hbm [shape: f32[2,16,256], index: 0, kind: input, shape index: {}]   ;;  %s12045_s1 = inlined_call_operand.hbm [shape: f32[49,256], index: 1, kind: input, shape index: {}]   ;;  %s12046_s2 = inlined_call_operand.hbm [shape: f32[8,1024], index: 2, kind: input, shape index: {}]   ;;  %s12047_s3 = inlined_call_operand.hbm [shape: f32[256,256], index: 3, kind: input, shape index: {}]   ;;  %s12048_s4 = inlined_call_operand.hbm [shape: f32[256,1024], index: 4, kind: input, shape index: {}]   ;;  %s12049_s5 = inlined_call_operand.hbm [shape: f32[1024,256], index: 5, kind: input, shape index: {}]   ;;  %s12050_s6 = inlined_call_operand.vmem [shape: f32[8,128], index: 6, kind: input, shape index: {}]   ;;  %s12051_s7 = inlined_call_operand.hbm [shape: f32[8,128], index: 7, kind: input, shape index: {}]   ;;  %s12052_s8 = inlined_call_operand.hbm [shape: f32[2,16,256], index: 8, kind: output, shape index: {}]  }
   0x1   :  { %12332 = sst [smem:[#allocation236_spill]] %s12045_s1 }
   0x2   :  { %13 = vsyncpa [#allocation4], 0 }
   0x3   :  { %15 = vsyncpa [#allocation4 + $0x1], 0 }
   0x4   :  { %16 = vsyncpa [#allocation7], 0 }
   0x5   :  { %17 = vsyncpa [#allocation10], 0 }
   0x6   :  { %18 = vsyncpa [#allocation13], 0 }
   0x7   :  { %19 = vsyncpa [#allocation5], 0 }
   0x8   :  { %21 = vsyncpa [#allocation5 + $0x1], 0  ;;  %s7207_s27 = smov 0   ;;  %s7209_s28 = smov 0  }
   0x9   :  { %s7211_s29 = smov 0   ;;  %s7213_s6 = smov 0  }
   0xa LB: > { %s7141_s30 = smov [#allocation6]   ;;  %s7228_s10 = sadd.s32 4294967295, %s7139_s6   ;;  %s7139_s6 = sphi %s7213_s6, %s13174_s6   ;;  %s7135_s29 = sphi %s7211_s29, %s13173_s29   ;;  %s7131_s28 = sphi %s7209_s28, %s13172_s28   ;;  %s7127_s27 = sphi %s7207_s27, %s13171_s27  }
   0xb   : > { %s243_s9 = sshll.u32 %s7141_s30, 4  ;;  %p6544_p0 = scmp.ge.s32.totalorder %s7139_s6, 1  ;;  %s244_s9 = int_to_ptr.vmem [resolvable:$true] %s243_s9 }
   0xc   : > { %p12053_p1 = scmp.eq.s32.totalorder %s7228_s10, 0  ;;  %p231_p2 = scmp.lt.s32.totalorder %s7139_s6, 3 }
   0xd   : > { %s7142_s12 = smov [#allocation9]   ;;  %s7143_s15 = smov [#allocation12]  }
   0xe   : > { %p7233_p3 = pnand %p6544_p0, %p231_p2  ;;  %s267_s13 = sshll.u32 %s7142_s12, 4  ;;  %s7246_s13 = int_to_ptr.vmem [resolvable:$true] %s267_s13 }
   0xf   : > { %s293_s16 = sshll.u32 %s7143_s15, 4  ;;  %s6890_s18 = scalar_lea.vmem %s244_s9, 1792  ;;  %s7248_s16 = int_to_ptr.vmem [resolvable:$true] %s293_s16 }
  0x10   : > { %s12333_s11 = scalar_select %p7233_p3, 1, 0 }
  0x11   : > { %p6599_p5 = pneg %p7233_p3  ;;  %p6891_p8 = scmp.ne.s32.totalorder %s244_s9, %s6890_s18 }
  0x12   : > { %p6898_p11 = scmp.lt.s32.totalorder %s244_s9, %s244_s9  ;;  %p6899_p12 = scmp.lt.s32.totalorder %s6890_s18, %s6890_s18 }
  0x13   : > { %p7242_p6 = pnand %p6599_p5, %p12053_p1 }
  0x14   : > { %p6900_p13 = por %p6899_p12, %p6898_p11 }
  0x15   : > { %p7252_p7 = pneg %p7242_p6 }
  0x17   : > { %p6893_p9 = pnand %p6891_p8, %p7252_p7 }
  0x19   : > { %p6894_p10 = pneg %p6893_p9 }
  0x1b   : > { %p6901_p0 = pnand %p6900_p13, %p6894_p10 }
  0x1d   : > { %6904 = shalt.err (!%p6901_p0)
}
  0x1e   : > { %s12055_s19 = smov 256   ;;  %s12056_s20 = smov 16  }
  0x1f   : > { %s12336_s1 = sld [smem:[#allocation236_spill]]  ;;  %s6916_s23 = scalar_lea.vmem %s7246_s13, 8192 }
  0x20   : > { %p6917_p2 = scmp.ne.s32.totalorder %s7246_s13, %s6916_s23  ;;  %p6924_p9 = scmp.lt.s32.totalorder %s7246_s13, %s7246_s13 }
  0x21   : > { %p6925_p10 = scmp.lt.s32.totalorder %s6916_s23, %s6916_s23 }
  0x22   : > { %p6919_p5 = pnand %p6917_p2, %p7252_p7 }
  0x23   : > { %p6926_p11 = por %p6925_p10, %p6924_p9 }
  0x24   : > { %p6920_p8 = pneg %p6919_p5 }
  0x25   : > { %6602 = dma.hbm_to_vmem [thread:$0]  (!%p7242_p6), %s12336_s1, 1792, %s244_s9, [#allocation7], %s12055_s19, %s12055_s19, %s12056_s20  }
  0x26   : > { %p6927_p12 = pnand %p6926_p11, %p6920_p8 }
  0x28   : > { %6930 = shalt.err (!%p6927_p12)
}
  0x29   : > { %6608 = dma.hbm_to_vmem [thread:$0]  (!%p7242_p6), %s12047_s3, 8192, %s7246_s13, [#allocation10], %s12055_s19, %s12055_s19, %s12056_s20  }
  0x2a   : > { %s6942_s26 = scalar_lea.vmem %s7248_s16, 32768  ;;  %p6950_p5 = scmp.lt.s32.totalorder %s7248_s16, %s7248_s16 }
  0x2b   : > { %p6943_p13 = scmp.ne.s32.totalorder %s7248_s16, %s6942_s26  ;;  %p6951_p8 = scmp.lt.s32.totalorder %s6942_s26, %s6942_s26 }
  0x2d   : > { %p6945_p0 = pnand %p6943_p13, %p7252_p7  ;;  %p6952_p9 = por %p6951_p8, %p6950_p5 }
  0x2f   : > { %p6946_p2 = pneg %p6945_p0 }
  0x31   : > { %p6953_p10 = pnand %p6952_p9, %p6946_p2 }
  0x33   : > { %6956 = shalt.err (!%p6953_p10)
}
  0x34   : > { %6614 = dma.hbm_to_vmem [thread:$0]  (!%p7242_p6), %s12049_s5, 32768, %s7248_s16, [#allocation13], %s12055_s19, %s12055_s19, %s12056_s20  }
  0x35   : > { %s7146_s12 = smov [#allocation8]   ;;  %s7147_s15 = smov [#allocation11]  }
  0x36   : > { %s257_s13 = sshll.u32 %s7146_s12, 4  ;;  %s280_s18 = sshll.u32 %s7147_s15, 4  ;;  %s258_s13 = int_to_ptr.vmem [resolvable:$true] %s257_s13  ;;  %s281_s18 = int_to_ptr.vmem [resolvable:$true] %s280_s18 }
  0x37   : > { %s6968_s21 = scalar_lea.vmem %s258_s13, 1024  ;;  %p6976_p0 = scmp.lt.s32.totalorder %s258_s13, %s258_s13 }
  0x38   : > { %p6969_p11 = scmp.ne.s32.totalorder %s258_s13, %s6968_s21  ;;  %p6977_p2 = scmp.lt.s32.totalorder %s6968_s21, %s6968_s21 }
  0x3a   : > { %p6971_p12 = pnand %p6969_p11, %p7252_p7  ;;  %p6978_p5 = por %p6977_p2, %p6976_p0 }
  0x3c   : > { %p6972_p13 = pneg %p6971_p12 }
  0x3e   : > { %p6979_p8 = pnand %p6978_p5, %p6972_p13 }
  0x40   : > { %6982 = shalt.err (!%p6979_p8)
}
  0x41   : > { %6605 = dma.hbm_to_vmem [thread:$0]  (!%p7242_p6), %s12046_s2, 1024, %s258_s13, [#allocation7]  }
  0x42   : > { %s6994_s16 = scalar_lea.vmem %s281_s18, 32768  ;;  %p7002_p11 = scmp.lt.s32.totalorder %s281_s18, %s281_s18 }
  0x43   : > { %p6995_p9 = scmp.ne.s32.totalorder %s281_s18, %s6994_s16  ;;  %p7003_p12 = scmp.lt.s32.totalorder %s6994_s16, %s6994_s16 }
  0x45   : > { %p6997_p10 = pnand %p6995_p9, %p7252_p7  ;;  %p7004_p1 = por %p7003_p12, %p7002_p11 }
  0x47   : > { %p6998_p4 = pneg %p6997_p10 }
  0x49   : > { %p7005_p3 = pnand %p7004_p1, %p6998_p4 }
  0x4b   : > { %7008 = shalt.err (!%p7005_p3)
}
  0x4c   : > { %s7148_s24 = smov 1024   ;;  %s7149_s25 = smov 64  }
  0x4d   : > { %6611 = dma.hbm_to_vmem [thread:$0]  (!%p7242_p6), %s12048_s4, 32768, %s281_s18, [#allocation10], %s7148_s24, %s7148_s24, %s7149_s25  }
  0x4e   : > { %s7150_s9 = smov [#allocation14]  }
  0x4f   : > { %s310_s12 = sshll.u32 %s7150_s9, 4  ;;  %s311_s12 = int_to_ptr.vmem [resolvable:$true] %s310_s12 }
  0x50   : > { %s7020_s13 = scalar_lea.vmem %s311_s12, 128  ;;  %p7028_p5 = scmp.lt.s32.totalorder %s311_s12, %s311_s12 }
  0x51   : > { %p7021_p13 = scmp.ne.s32.totalorder %s311_s12, %s7020_s13  ;;  %p7029_p1 = scmp.lt.s32.totalorder %s7020_s13, %s7020_s13 }
  0x53   : > { %p7023_p0 = pnand %p7021_p13, %p7252_p7  ;;  %p7030_p3 = por %p7029_p1, %p7028_p5 }
  0x55   : > { %p7024_p2 = pneg %p7023_p0 }
  0x57   : > { %p7031_p4 = pnand %p7030_p3, %p7024_p2 }
  0x59   : > { %7034 = shalt.err (!%p7031_p4)
}
  0x5a   : > { %6617 = dma.hbm_to_vmem [thread:$0]  (!%p7242_p6), %s12051_s7, 128, %s311_s12, [#allocation13]  }
  0x5b   : > { %s6543_s17 = sadd.s32 4294967294, %s7139_s6   ;;  %s7319_s14 = sadd.s32 1, %s7139_s6  }
  0x5c   : > { %s31_s18 = ssub.s32 %s7139_s6, %s7319_s14  ;;  %s34_s22 = sadd.s32 1, %s7135_s29 }
  0x5d   : > { %p32_p7 = scmp.eq.s32.totalorder %s31_s18, 0  ;;  %p41_p8 = scmp.ne.s32.totalorder %s7135_s29, %s7131_s28 }
  0x5e   : > { %p42_p9 = scmp.eq.s32.totalorder %s7139_s6, 0  ;;  %p47_p10 = scmp.ne.s32.totalorder %s7131_s28, %s7127_s27 }
  0x5f   : > { %s7330_s23 = scalar_select %p32_p7, %s7135_s29, %s34_s22  }
  0x60   : > { %p7332_p11 = por %p42_p9, %p41_p8  ;;  %p12338_p12 = scmp.eq.s32.totalorder %s7228_s10, 0 }
  0x61   : > { %p218_p13 = scmp.eq.s32.totalorder %s7228_s10, 1  ;;  %p224_p0 = scmp.eq.s32.totalorder %s6543_s17, 1 }
  0x62   : > { %p7338_p6 = por %p12338_p12, %p47_p10  ;;  %p6632_p2 = scmp.lt.s32.totalorder %s7139_s6, 2 }
  0x63   : > { %s321_s25 = sand.u32 1, %s7135_s29   ;;  %p7345_p5 = por %p218_p13, %p41_p8 }
  0x64   : > { %s12339_s24 = scalar_select %p7338_p6, 1, 0 }
  0x65   : > { %s12340_s26 = scalar_select %p7345_p5, 1, 0 }
  0x66   : > { %p7349_p1 = por %p224_p0, %p47_p10  ;;  %s6552_s9 = sshll.u32 %s321_s25, 5 }
  0x67   : > { %s6569_s12 = sshll.u32 %s7139_s6, 9  ;;  %s325_s17 = scalar_lea.vmem [#allocation3], %s6552_s9 }
  0x68   : > { %s12341_s30 = scalar_select %p7349_p1, 1, 0 }
  0x69   : > { %s7357_s21 = scalar_lea.hbm %s12044_s0, %s6569_s12  ;;  %s332_s18 = sshll.u32 %s325_s17, 4  ;;  %s7359_s18 = int_to_ptr.vmem [resolvable:$true] %s332_s18 }
  0x6a   : > { %p7363_p3 = pnand %p6632_p2, %p7332_p11  ;;  %s7367_s19 = scalar_lea.sflag [#allocation4], %s321_s25 }
  0x6b   : > { %s7035_s20 = scalar_lea.hbm %s7357_s21, 512  ;;  %s7040_s9 = scalar_lea.hbm %s12044_s0, 1024 }
  0x6c   : > { %p7036_p4 = scmp.ne.s32.totalorder %s7357_s21, %s7035_s20  ;;  %p7037_p7 = pneg %p7363_p3 }
  0x6d   : > { %p7041_p10 = scmp.lt.s32.totalorder %s7357_s21, %s12044_s0  ;;  %p7042_p11 = scmp.lt.s32.totalorder %s7040_s9, %s7035_s20 }
  0x6e   : > { %p7038_p8 = pnand %p7037_p7, %p7036_p4 }
  0x6f   : > { %p7043_p12 = por %p7042_p11, %p7041_p10 }
  0x70   : > { %p7039_p9 = pneg %p7038_p8 }
  0x72   : > { %p7044_p13 = pnand %p7043_p12, %p7039_p9 }
  0x74   : > { %7047 = shalt.err (!%p7044_p13)
}
  0x75   : > { %s7048_s16 = scalar_lea.vmem %s7359_s18, 512  ;;  %s7151_s25 = smov [#allocation3]  }
  0x76   : > { %p7049_p0 = scmp.ne.s32.totalorder %s7359_s18, %s7048_s16  ;;  %s7053_s1 = sshll.u32 %s7151_s25, 4  ;;  %s7054_s1 = int_to_ptr.vmem [resolvable:$false] %s7053_s1 }
  0x77   : > { %s7055_s12 = scalar_lea.vmem %s7054_s1, 1024  ;;  %p7056_p8 = scmp.lt.s32.totalorder %s7359_s18, %s7054_s1 }
  0x78   : > { %p7051_p2 = pnand %p7049_p0, %p7037_p7  ;;  %p7057_p1 = scmp.lt.s32.totalorder %s7055_s12, %s7048_s16 }
  0x7a   : > { %p7052_p4 = pneg %p7051_p2  ;;  %p7058_p5 = por %p7057_p1, %p7056_p8 }
  0x7c   : > { %p7059_p6 = pnand %p7058_p5, %p7052_p4 }
  0x7e   : > { %7062 = shalt.err (!%p7059_p6)
}
  0x7f   : > { %s12343_s20 = smov 16   ;;  %s12344_s13 = smov 256  }
  0x80   : > { %6621 = dma.hbm_to_vmem [thread:$0]  (!%p7363_p3), %s7357_s21, 512, %s7359_s18, %s7367_s19, %s12344_s13, %s12344_s13, %s12343_s20  }
  0x81   : > { %p12345_p7 = scmp.ne.s32.totalorder %s12333_s11, 0 }
  0x83   : > { %344 = sbr.rel (%p12345_p7) target bundleno = 2794 (0xaea), region = 52 }
  0x88   : > { %s7394_s9 = sand.u32 1, %s7131_s28   ;;  %p12346_p6 = scmp.ne.s32.totalorder %s12339_s24, 0 }
  0x89   : > { %s6556_s1 = sshll.u32 %s7394_s9, 5  ;;  %s347_s15 = scalar_lea.sflag [#allocation4], %s7394_s9 }
  0x8a   : > { %s7400_s22 = scalar_lea.vmem [#allocation3], %s6556_s1 }
  0x8b   : > { %7106 = dma.done.wait (%p12346_p6), %s347_s15, 512  }
  0x8c   : > { %7108 = vsyncadd (%p12346_p6), %s347_s15, 4294966784  ;;  %p12347_p5 = scmp.eq.s32.totalorder %s7228_s10, 0 }
  0x8e   : > { %7110 = dma.done.wait (%p12347_p5), [#allocation7], 2816   ;;  %p12348_p1 = pmov %p12347_p5 }
  0x90   : > { %7112 = vsyncadd (%p12348_p1), [#allocation7], 4294964480  ;;  %p12349_p3 = pmov %p12348_p1 }
  0x91   : > { %p12350_p9 = pmov %p12348_p1 }
  0x92   : > { %7114 = dma.done.wait (%p12349_p3), [#allocation10], 40960  }
  0x93   : > { %7116 = vsyncadd (%p12350_p9), [#allocation10], 4294926336  ;;  %p12351_p10 = pmov %p12348_p1 }
  0x94   : > { %p12352_p11 = pmov %p12348_p1 }
  0x95   : > { %7118 = dma.done.wait (%p12351_p10), [#allocation13], 32896  }
  0x96   : > { %7120 = vsyncadd (%p12352_p11), [#allocation13], 4294934400  ;;  %v445_v0 = vlaneseq  ;;  %v7152_v1 = vmov 0.0   ;;  %v1176_v5 = vld [vmem:[#allocation6 + $0x13] ss:$8 sm:$0x3] }
  0x97   : > { %419 = vst [vmem:[#allocation2 + $0x40] sm:$0xff] %v7152_v1  ;;  %411 = vst [vmem:[#allocation2 + $0x30] sm:$0xff] %v7152_v1  ;;  %v831_v6 = vld [vmem:[#allocation6 + $0x7] ss:$8 sm:$0x3]  ;;  %s7153_s11 = smov 16  }
  0x98   : > { %412 = vst [vmem:[#allocation2] sm:$0xff] %v7152_v1  ;;  %413 = vst [vmem:[#allocation2 + $0x58] sm:$0xff] %v7152_v1  ;;  %v7418_v2 = vshrl.u32 %v445_v0, 7  ;;  %s7154_s19 = smov 80   ;;  %v7437_v15 = vld [vmem:[%s7400_s22] sm:$0xff]  ;;  %v7440_v16 = vld [vmem:[%s7400_s22 + $0x8] sm:$0xff] }
  0x99   : > { %414 = vst [vmem:[#allocation2 + $0x18] sm:$0xff] %v7152_v1  ;;  %415 = vst [vmem:[#allocation2 + $0x50] sm:$0xff] %v7152_v1  ;;  %v1555_v11 = vld [vmem:[#allocation6 + $0x17] ss:$8 sm:$0x3]  ;;  %s7155_s24 = smov 96  }
  0x9a   : > { %418 = vst [vmem:[#allocation2 + $0x48] sm:$0xff] %v7152_v1  ;;  %422 = vst [vmem:[#allocation2 + $0x38] sm:$0xff] %v7152_v1  ;;  %v7421_v3 = vsub.s32 0, %v7418_v2  ;;  %v7424_v4 = vsub.s32 1, %v7418_v2  ;;  %v7449_v19 = vld [vmem:[%s7400_s22 + $0x10] sm:$0xff]  ;;  %v7452_v20 = vld [vmem:[%s7400_s22 + $0x18] sm:$0xff] }
  0x9b   : > { %423 = vst [vmem:[#allocation2 + $0x60] sm:$0xff] %v7152_v1  ;;  %424 = vst [vmem:[#allocation2 + $0x70] sm:$0xff] %v7152_v1  ;;  %v1899_v14 = vld [vmem:[#allocation6 + $0x23] ss:$8 sm:$0x3]  ;;  %s7156_s21 = smov 32  }
  0x9c   : > { %425 = vst [vmem:[#allocation2 + $0x78] sm:$0xff] %v7152_v1  ;;  %426 = vst [vmem:[#allocation2 + $0x28] sm:$0xff] %v7152_v1  ;;  %v1181_v7 = vrot.slane %v1176_v5, %v7421_v3  ;;  %v836_v8 = vrot.slane %v831_v6, %v7421_v3  ;;  %v1185_v9 = vrot.slane %v1176_v5, %v7424_v4  ;;  %v2250_v21 = vld [vmem:[#allocation6 + $0x27] ss:$8 sm:$0x3]  ;;  %s7157_s18 = smov 112  }
  0x9d   : > { %12353 = vst [vmem:[#allocation21_spill] sm:$0xff] %v7418_v2  ;;  %12354 = vst [vmem:[#allocation22_spill] sm:$0xff] %v7421_v3  ;;  %v840_v10 = vrot.slane %v831_v6, %v7424_v4  ;;  %v1564_v12 = vrot.slane %v1555_v11, %v7424_v4  ;;  %v1560_v13 = vrot.slane %v1555_v11, %v7421_v3  ;;  %v2550_v24 = vld [vmem:[#allocation6 + $0x33] ss:$8 sm:$0x3]  ;;  %s7158_s17 = smov 48  }
  0x9e   : > { %12355 = vst [vmem:[#allocation23_spill] sm:$0xff] %v7424_v4  ;;  %1186 = vrot.lane.b32.xlu1 %v1181_v7, %s7153_s11  ;;  %841 = vrot.lane.b32.xlu0 %v836_v8, %s7154_s19  ;;  %v1908_v17 = vrot.slane %v1899_v14, %v7424_v4  ;;  %v1904_v18 = vrot.slane %v1899_v14, %v7421_v3  ;;  %427 = vst [vmem:[#allocation2 + $0x68] sm:$0xff] %v7437_v15  ;;  %v3186_v27 = vld [vmem:[#allocation6 + $0x43] ss:$8 sm:$0x3]  ;;  %vm867_vm0 = vcmask 1046528  }
  0x9f   : > { %428 = vst [vmem:[#allocation2 + $0x8] sm:$0xff] %v7440_v16  ;;  %429 = vst [vmem:[#allocation2 + $0x20] sm:$0xff] %v7449_v19  ;;  %v2259_v22 = vrot.slane %v2250_v21, %v7424_v4  ;;  %v2255_v23 = vrot.slane %v2250_v21, %v7421_v3  ;;  %v2559_v25 = vrot.slane %v2550_v24, %v7424_v4  ;;  %v3531_v30 = vld [vmem:[#allocation6 + $0x47] ss:$8 sm:$0x3]  ;;  %vm457_vm1 = vcmask 654336  }
  0xa0   : > { %430 = vst [vmem:[#allocation2 + $0x10] sm:$0xff] %v7452_v20  ;;  %v2555_v26 = vrot.slane %v2550_v24, %v7421_v3  ;;  %v3195_v28 = vrot.slane %v3186_v27, %v7424_v4  ;;  %v3191_v29 = vrot.slane %v3186_v27, %v7421_v3  ;;  %v3540_v31 = vrot.slane %v3531_v30, %v7424_v4  ;;  %v3910_v33 = vld [vmem:[#allocation6 + $0x53] ss:$8 sm:$0x3]  ;;  %v826_v8 = vld [vmem:[#allocation2 + $0x40] sm:$0x3f] }
  0xa1   : > { %v3536_v32 = vrot.slane %v3531_v30, %v7421_v3  ;;  %v3919_v34 = vrot.slane %v3910_v33, %v7424_v4  ;;  %v3915_v35 = vrot.slane %v3910_v33, %v7421_v3  ;;  %v4254_v36 = vld [vmem:[#allocation6 + $0x57] ss:$8 sm:$0x3]  ;;  %v1014_v39 = vld [vmem:[#allocation6 + $0x11] ss:$8 sm:$0x3] }
  0xa2   : > { %1188 = vrot.lane.b32.xlu1 %v1185_v9, %s7153_s11  ;;  %843 = vrot.lane.b32.xlu0 %v840_v10, %s7154_s19  ;;  %v4263_v37 = vrot.slane %v4254_v36, %v7424_v4  ;;  %v4259_v38 = vrot.slane %v4254_v36, %v7421_v3  ;;  %v1023_v40 = vrot.slane %v1014_v39, %v7424_v4  ;;  %v663_v42 = vld [vmem:[#allocation6 + $0x5] ss:$8 sm:$0x3]  ;;  %v743_v45 = vld [vmem:[#allocation6 + $0x6] ss:$8 sm:$0x3] }
  0xa3   : > { %v1019_v41 = vrot.slane %v1014_v39, %v7421_v3  ;;  %v672_v43 = vrot.slane %v663_v42, %v7424_v4  ;;  %v668_v44 = vrot.slane %v663_v42, %v7421_v3  ;;  %v752_v46 = vrot.slane %v743_v45, %v7424_v4  ;;  %v1358_v48 = vld [vmem:[#allocation6 + $0x15] ss:$8 sm:$0x3]  ;;  %v1460_v51 = vld [vmem:[#allocation6 + $0x16] ss:$8 sm:$0x3] }
  0xa4   : > { %v748_v47 = vrot.slane %v743_v45, %v7421_v3  ;;  %v1367_v49 = vrot.slane %v1358_v48, %v7424_v4  ;;  %v1363_v50 = vrot.slane %v1358_v48, %v7421_v3  ;;  %v1469_v52 = vrot.slane %v1460_v51, %v7424_v4  ;;  %v1805_v54 = vld [vmem:[#allocation6 + $0x22] ss:$8 sm:$0x3]  ;;  %v2085_v57 = vld [vmem:[#allocation6 + $0x25] ss:$8 sm:$0x3] }
  0xa5   : > { %v1465_v53 = vrot.slane %v1460_v51, %v7421_v3  ;;  %v1814_v55 = vrot.slane %v1805_v54, %v7424_v4  ;;  %v1810_v56 = vrot.slane %v1805_v54, %v7421_v3  ;;  %v2094_v58 = vrot.slane %v2085_v57, %v7424_v4  ;;  %v2168_v60 = vld [vmem:[#allocation6 + $0x26] ss:$8 sm:$0x3]  ;;  %v2386_v63 = vld [vmem:[#allocation6 + $0x31] ss:$8 sm:$0x3] }
  0xa6   : > { %1567 = vrot.lane.b32.xlu1 %v1564_v12, %s7155_s24  ;;  %1565 = vrot.lane.b32.xlu0 %v1560_v13, %s7155_s24  ;;  %v2090_v59 = vrot.slane %v2085_v57, %v7421_v3  ;;  %v2177_v61 = vrot.slane %v2168_v60, %v7424_v4  ;;  %v2173_v62 = vrot.slane %v2168_v60, %v7421_v3  ;;  %v2468_v5 = vld [vmem:[#allocation6 + $0x32] ss:$8 sm:$0x3]  ;;  %v7522_v9 = vld [vmem:[#allocation2 + $0x20] sm:$0x3f]  ;;  %vm1496_vm2 = vcmask 1045504  }
  0xa7   : > { %v2391_v0 = vrot.slane %v2386_v63, %v7421_v3  ;;  %v2395_v1 = vrot.slane %v2386_v63, %v7424_v4  ;;  %v2473_v6 = vrot.slane %v2468_v5, %v7421_v3  ;;  %v2477_v7 = vrot.slane %v2468_v5, %v7424_v4  ;;  %v822_v14 = vld [vmem:[#allocation2 + $0x30] sm:$0xc0]  ;;  %v7540_v36 = vld [vmem:[#allocation2] sm:$0xc0]  ;;  %s7159_s16 = smov 64   ;;  %s406_s25 = scalar_lea.vmem [#allocation15], %s6556_s1 }
  0xa8   : > { %v1455_v48 = vld [vmem:[#allocation2 + $0x40] sm:$0x7f]  ;;  %v1451_v63 = vld [vmem:[#allocation2 + $0x30] sm:$0x80]  ;;  %vm596_vm3 = vcmask 130048   ;;  %vm495_vm4 = vcmask 785408  }
  0xa9   : > { %vm677_vm5 = vcmask 261120   ;;  %vm533_vm6 = vcmask 916480   ;;  %vm2115_vm7 = vcmask 1044480   ;;  %vm757_vm8 = vcmask 392192   ;;  %s6413_s12 = sshll.u32 %s406_s25, 4  ;;  %s6570_s20 = sshll.u32 %s7228_s10, 9  ;;  %s11995_s12 = int_to_ptr.vmem [resolvable:$true] %s6413_s12 }
  0xaa   : > { %1911 = vrot.lane.b32.xlu1 %v1908_v17, %s7156_s21  ;;  %1909 = vrot.lane.b32.xlu0 %v1904_v18, %s7156_s21  ;;  %v7528_v17 = vld [vmem:[#allocation2 + $0x10] sm:$0x3f]  ;;  %v829_v18 = vld [vmem:[#allocation2 + $0x38] sm:$0x3f]  ;;  %vm3222_vm9 = vcmask 1042432   ;;  %vm3851_vm10 = vcmask 1041408   ;;  %s12000_s15 = scalar_lea.hbm %s12052_s8, %s6570_s20 }
  0xab   : > { %vm2674_vm11 = vcmask 1043456   ;;  %vm637_vm12 = vcmask 523264   ;;  %s6400_s22 = scalar_lea.sflag [#allocation5], %s7394_s9  ;;  %s7063_s10 = scalar_lea.vmem %s11995_s12, 512 }
  0xac   : > { %p7064_p12 = scmp.ne.s32.totalorder %s11995_s12, %s7063_s10  ;;  %p13168_p13 = scmp.ne.s32.totalorder %s12340_s26, 0 }
  0xae   : > { %2262 = vrot.lane.b32.xlu1 %v2259_v22, %s7157_s18  ;;  %2260 = vrot.lane.b32.xlu0 %v2255_v23, %s7157_s18  ;;  %p7065_p0 = pnand %p7064_p12, %p13168_p13 }
  0xb0   : > { %p7066_p2 = pneg %p7065_p0 }
  0xb2   : > { %2562 = vrot.lane.b32.xlu1 %v2559_v25, %s7158_s17  ;;  %2560 = vrot.lane.b32.xlu0 %v2555_v26, %s7158_s17 }
  0xb6   : > { %3198 = vrot.lane.b32.xlu1 %v3195_v28, %s7154_s19  ;;  %3196 = vrot.lane.b32.xlu0 %v3191_v29, %s7154_s19  ;;  %v7536_v29 = vld [vmem:[#allocation2 + $0x58] sm:$0xc0] }
  0xba   : > { %3543 = vrot.lane.b32.xlu1 %v3540_v31, %s7153_s11  ;;  %3541 = vrot.lane.b32.xlu0 %v3536_v32, %s7153_s11 }
  0xbe   : > { %3922 = vrot.lane.b32.xlu1 %v3919_v34, %s7155_s24  ;;  %3920 = vrot.lane.b32.xlu0 %v3915_v35, %s7155_s24 }
  0xc2   : > { %4266 = vrot.lane.b32.xlu1 %v4263_v37, %s7156_s21  ;;  %4264 = vrot.lane.b32.xlu0 %v4259_v38, %s7156_s21 }
  0xc6   : > { %1026 = vrot.lane.b32.xlu1 %v1023_v40, %s7157_s18  ;;  %1024 = vrot.lane.b32.xlu0 %v1019_v41, %s7157_s18 }
  0xca   : > { %675 = vrot.lane.b32.xlu1 %v672_v43, %s7156_s21  ;;  %673 = vrot.lane.b32.xlu0 %v668_v44, %s7156_s21  ;;  %v825_v43 = vld [vmem:[#allocation2 + $0x18] sm:$0xc0] }
  0xce   : > { %755 = vrot.lane.b32.xlu1 %v752_v46, %s7158_s17  ;;  %753 = vrot.lane.b32.xlu0 %v748_v47, %s7158_s17 }
  0xd2   : > { %1370 = vrot.lane.b32.xlu1 %v1367_v49, %s7158_s17  ;;  %1368 = vrot.lane.b32.xlu0 %v1363_v50, %s7158_s17 }
  0xd6   : > { %1472 = vrot.lane.b32.xlu1 %v1469_v52, %s7154_s19  ;;  %1470 = vrot.lane.b32.xlu0 %v1465_v53, %s7154_s19 }
  0xda   : > { %1817 = vrot.lane.b32.xlu1 %v1814_v55, %s7153_s11  ;;  %1815 = vrot.lane.b32.xlu0 %v1810_v56, %s7153_s11  ;;  %v7567_v56 = vld [vmem:[#allocation2 + $0x10] sm:$0x7f] }
  0xde   : > { %2097 = vrot.lane.b32.xlu1 %v2094_v58, %s7154_s19  ;;  %2095 = vrot.lane.b32.xlu0 %v2090_v59, %s7154_s19 }
  0xe2   : > { %2180 = vrot.lane.b32.xlu1 %v2177_v61, %s7155_s24  ;;  %2178 = vrot.lane.b32.xlu0 %v2173_v62, %s7155_s24 }
  0xe6   : > { %2396 = vrot.lane.b32.xlu1 %v2391_v0, %s7153_s11  ;;  %2398 = vrot.lane.b32.xlu0 %v2395_v1, %s7153_s11 }
  0xea   : > { %2478 = vrot.lane.b32.xlu1 %v2473_v6, %s7156_s21  ;;  %2480 = vrot.lane.b32.xlu0 %v2477_v7, %s7156_s21 }
 0x110   : > { %v7524_v10 = vpop.permute.xlu1 %1186  ;;  %v842_v11 = vpop.permute.xlu0 %841 }
 0x111   : > { %v855_v12 = vmul.f32 %v842_v11, %v826_v8  ;;  %v1200_v13 = vmul.f32 %v7524_v10, %v7522_v9  ;;  %v849_v25 = vmul.f32 %v842_v11, %v822_v14  ;;  %v852_v26 = vmul.f32 0.0, %v842_v11 }
 0x112   : > { %v1197_v37 = vmul.f32 %v7524_v10, %v7437_v15  ;;  %v1194_v38 = vmul.f32 %v7524_v10, %v7540_v36 }
 0x113   : > { %v877_v21 = vrot.slane %v855_v12, 1  ;;  %v1221_v22 = vrot.slane %v1200_v13, 1  ;;  %v868_v32 = vrot.slane %v849_v25, 1  ;;  %v869_v33 = vrot.slane %v852_v26, 1 }
 0x114   : > { %v7530_v23 = vpop.permute.xlu1 %1188  ;;  %v844_v24 = vpop.permute.xlu0 %843  ;;  %v1213_v44 = vrot.slane %v1197_v37, 1  ;;  %v1212_v45 = vrot.slane %v1194_v38, 1 }
 0x115   : > { %895 = vrot.lane.b32.xlu0 %v877_v21, %s7158_s17  ;;  %1239 = vrot.lane.b32.xlu1 %v1221_v22, %s7157_s18  ;;  %v857_v27 = vmul.f32 %v844_v24, %v7528_v17  ;;  %v1202_v28 = vmul.f32 %v7530_v23, %v829_v18  ;;  %v854_v34 = vmul.f32 %v844_v24, %v7440_v16  ;;  %v1199_v51 = vmul.f32 0.0, %v7530_v23  ;;  %v1453_v18 = vld [vmem:[#allocation2 + $0x58] sm:$0x80] }
 0x116   : > { %v851_v35 = vmul.f32 %v844_v24, %v7536_v29  ;;  %v870_v39 = vsel %vm867_vm0, %v868_v32, %v869_v33  ;;  %v878_v40 = vsel %vm867_vm0, %v869_v33, %v877_v21  ;;  %v1196_v52 = vmul.f32 %v7530_v23, %v825_v43 }
 0x117   : > { %v881_v30 = vrot.slane %v857_v27, 1  ;;  %v1225_v31 = vrot.slane %v1202_v28, 1  ;;  %v875_v41 = vrot.slane %v854_v34, 1  ;;  %v1222_v55 = vsel %vm867_vm0, %v1213_v44, %v1221_v22  ;;  %v1452_v28 = vld [vmem:[#allocation2] sm:$0x80] }
 0x118   : > { %v874_v42 = vrot.slane %v851_v35, 1  ;;  %v7552_v46 = vpop.permute.xlu1 %1567  ;;  %v7554_v47 = vpop.permute.xlu0 %1565  ;;  %v1214_v59 = vsel %vm867_vm0, %v1212_v45, %v1213_v44  ;;  %v1219_v60 = vrot.slane %v1199_v51, 1  ;;  %v1218_v61 = vrot.slane %v1196_v52, 1 }
 0x119   : > { %899 = vrot.lane.b32.xlu0 %v881_v30, %s7158_s17  ;;  %1243 = vrot.lane.b32.xlu1 %v1225_v31, %s7157_s18  ;;  %v882_v49 = vsel %vm867_vm0, %v875_v41, %v881_v30  ;;  %v1576_v53 = vmul.f32 0.0, %v7554_v47  ;;  %v7564_v54 = vmul.f32 %v7554_v47, %v1455_v48  ;;  %v845_v62 = vsel %vm457_vm1, %v842_v11, %v844_v24 }
 0x11a   : > { %v876_v50 = vsel %vm867_vm0, %v874_v42, %v875_v41  ;;  %v1578_v5 = vmul.f32 %v7552_v46, %v7440_v16  ;;  %v7582_v6 = vmul.f32 %v7552_v46, %v7567_v56  ;;  %v7585_v7 = vmul.f32 %v845_v62, %v7522_v9 }
 0x11b   : > { %v1592_v0 = vrot.slane %v1576_v53, 2  ;;  %v1600_v1 = vrot.slane %v7564_v54, 2  ;;  %v1226_v12 = vsel %vm867_vm0, %v1219_v60, %v1225_v31  ;;  %v1220_v13 = vsel %vm867_vm0, %v1218_v61, %v1219_v60 }
 0x11c   : > { %v7569_v57 = vpop.permute.xlu1 %1911  ;;  %v7571_v58 = vpop.permute.xlu0 %1909  ;;  %v1573_v14 = vmul.f32 %v7554_v47, %v1451_v63  ;;  %v1598_v21 = vrot.slane %v1578_v5, 2  ;;  %v1604_v22 = vrot.slane %v7582_v6, 2  ;;  %v879_v24 = vrot.slane %v7585_v7, 1  ;;  %v2990_v6 = vld [vmem:[#allocation6 + $0x41] ss:$8 sm:$0x3] }
 0x11d   : > { %883 = vrot.lane.b32.xlu0 %v870_v39, %s7158_s17  ;;  %889 = vrot.lane.b32.xlu1 %v878_v40, %s7158_s17  ;;  %v1601_v9 = vsel %vm1496_vm2, %v1592_v0, %v1600_v1  ;;  %v1575_v25 = vmul.f32 %v7552_v46, %v1453_v18  ;;  %v1190_v27 = vsel %vm596_vm3, %v7524_v10, %v7530_v23 }
 0x11e   : > { %v1591_v26 = vrot.slane %v1573_v14, 2  ;;  %v1605_v32 = vsel %vm1496_vm2, %v1598_v21, %v1604_v22  ;;  %v1917_v33 = vmul.f32 %v7571_v58, %v1452_v28  ;;  %v7617_v34 = vmul.f32 %v7571_v58, %v7437_v15 }
 0x11f   : > { %v1597_v10 = vrot.slane %v1575_v25, 2  ;;  %v1201_v23 = vmul.f32 %v1190_v27, %v7528_v17  ;;  %v850_v37 = vmul.f32 %v845_v62, %v7540_v36  ;;  %v853_v38 = vmul.f32 %v845_v62, %v7437_v15 }
 0x120   : > { %v7587_v8 = vpop.permute.xlu1 %2262  ;;  %v7589_v11 = vpop.permute.xlu0 %2260  ;;  %v1593_v35 = vsel %vm1496_vm2, %v1591_v26, %v1592_v0  ;;  %v1935_v39 = vrot.slane %v1917_v33, 2  ;;  %v1936_v40 = vrot.slane %v7617_v34, 2  ;;  %v1569_v41 = vsel %vm495_vm4, %v7554_v47, %v7552_v46  ;;  %v1458_v33 = vld [vmem:[#allocation2 + $0x38] sm:$0x7f] }
 0x121   : > { %893 = vrot.lane.b32.xlu1 %v882_v49, %s7158_s17  ;;  %887 = vrot.lane.b32.xlu0 %v876_v50, %s7158_s17  ;;  %v1599_v17 = vsel %vm1496_vm2, %v1597_v10, %v1598_v21  ;;  %v1223_v42 = vrot.slane %v1201_v23, 1  ;;  %v871_v44 = vrot.slane %v850_v37, 1  ;;  %v872_v45 = vrot.slane %v853_v38, 1  ;;  %v1456_v50 = vld [vmem:[#allocation2 + $0x20] sm:$0x7f] }
 0x122   : > { %v1195_v48 = vmul.f32 %v1190_v27, %v7536_v29  ;;  %v1198_v49 = vmul.f32 %v1190_v27, %v7440_v16  ;;  %v1937_v46 = vsel %vm1496_vm2, %v1935_v39, %v1936_v40  ;;  %v1913_v47 = vsel %vm677_vm5, %v7571_v58, %v7569_v57 }
 0x123   : > { %v1577_v51 = vmul.f32 %v1569_v41, %v7437_v15  ;;  %v873_v52 = vsel %vm867_vm0, %v871_v44, %v872_v45  ;;  %v1580_v29 = vmul.f32 %v1569_v41, %v1456_v50  ;;  %v1574_v61 = vmul.f32 %v1569_v41, %v1452_v28 }
 0x124   : > { %v7607_v30 = vpop.permute.xlu1 %2562  ;;  %v7609_v31 = vpop.permute.xlu0 %2560  ;;  %v1215_v53 = vrot.slane %v1195_v48, 1  ;;  %v1918_v62 = vmul.f32 %v1913_v47, %v1453_v18  ;;  %v1921_v63 = vmul.f32 %v1913_v47, %v7440_v16  ;;  %v880_v0 = vsel %vm867_vm0, %v872_v45, %v879_v24 }
 0x125   : > { %1233 = vrot.lane.b32.xlu1 %v1222_v55, %s7157_s18  ;;  %1227 = vrot.lane.b32.xlu0 %v1214_v59, %s7157_s18  ;;  %v1216_v55 = vrot.slane %v1198_v49, 1  ;;  %v1595_v7 = vrot.slane %v1577_v51, 2  ;;  %v1922_v28 = vmul.f32 0.0, %v7569_v57  ;;  %v7671_v23 = vmul.f32 %v1913_v47, %v7567_v56 }
 0x126   : > { %v1938_v21 = vrot.slane %v1918_v62, 2  ;;  %v1939_v25 = vrot.slane %v1921_v63, 2  ;;  %v7675_v39 = vmul.f32 %v7569_v57, %v1458_v33 }
 0x127   : > { %v1217_v5 = vsel %vm867_vm0, %v1215_v53, %v1216_v55  ;;  %v1224_v14 = vsel %vm867_vm0, %v1216_v55, %v1223_v42  ;;  %v1942_v37 = vrot.slane %v1922_v28, 2  ;;  %v2270_v53 = vmul.f32 %v7587_v8, %v7440_v16 }
 0x128   : > { %v7630_v43 = vpop.permute.xlu1 %3198  ;;  %v7632_v36 = vpop.permute.xlu0 %3196  ;;  %v1940_v10 = vsel %vm1496_vm2, %v1938_v21, %v1939_v25  ;;  %v1948_v44 = vrot.slane %v7675_v39, 2 }
 0x129   : > { %1237 = vrot.lane.b32.xlu1 %v1226_v12, %s7157_s18  ;;  %1231 = vrot.lane.b32.xlu0 %v1220_v13, %s7157_s18  ;;  %v1602_v12 = vrot.slane %v1580_v29, 2  ;;  %v1454_v13 = vld [vmem:[#allocation2 + $0x18] sm:$0x80] }
 0x12a   : > { %v1919_v27 = vmul.f32 %v7569_v57, %v1454_v13  ;;  %v1949_v49 = vsel %vm1496_vm2, %v1942_v37, %v1948_v44 }
 0x12c   : > { %v7646_v59 = vpop.permute.xlu1 %3543  ;;  %v7648_v60 = vpop.permute.xlu0 %3541 }
 0x12d   : > { %897 = vrot.lane.b32.xlu1 %v879_v24, %s7158_s17  ;;  %1612 = vrot.lane.b32.xlu0 %v1601_v9, %s7156_s21  ;;  %v1594_v9 = vrot.slane %v1574_v61, 2  ;;  %v1603_v24 = vsel %vm1496_vm2, %v1595_v7, %v1602_v12  ;;  %v7730_v61 = vmul.f32 %v7587_v8, %v7452_v20 }
 0x12f   : > { %v1596_v34 = vsel %vm1496_vm2, %v1594_v9, %v1595_v7 }
 0x130   : > { %v7656_v26 = vpop.permute.xlu1 %3922  ;;  %v7658_v18 = vpop.permute.xlu0 %3920 }
 0x131   : > { %1606 = vrot.lane.b32.xlu1 %v1593_v35, %s7156_s21  ;;  %1616 = vrot.lane.b32.xlu0 %v1605_v32, %s7156_s21  ;;  %v7664_v32 = vmul.f32 %v7571_v58, %v1456_v50  ;;  %v1941_v35 = vrot.slane %v1919_v27, 2  ;;  %v2264_v50 = vsel %vm533_vm6, %v7589_v11, %v7587_v8  ;;  %v2995_v8 = vrot.slane %v2990_v6, %v7421_v3 }
 0x132   : > { %v7717_v55 = vmul.f32 %v2264_v50, %v7449_v19  ;;  %v2564_v27 = vsel %vm757_vm8, %v7609_v31, %v7607_v30 }
 0x133   : > { %v1944_v38 = vrot.slane %v7664_v32, 2 }
 0x134   : > { %v7679_v58 = vpop.permute.xlu1 %4266  ;;  %v7681_v41 = vpop.permute.xlu0 %4264  ;;  %v2285_v62 = vrot.slane %v7717_v55, 3 }
 0x135   : > { %1610 = vrot.lane.b32.xlu1 %v1599_v17, %s7156_s21  ;;  %1241 = vrot.lane.b32.xlu0 %v1223_v42, %s7157_s18  ;;  %v1943_v17 = vsel %vm1496_vm2, %v1941_v35, %v1942_v37  ;;  %v1945_v56 = vsel %vm1496_vm2, %v1936_v40, %v1944_v38  ;;  %v1946_v42 = vrot.slane %v7671_v23, 2  ;;  %v2271_v40 = vmul.f32 0.0, %v7589_v11 }
 0x136   : > { %v2571_v23 = vmul.f32 %v7609_v31, %v7449_v19  ;;  %v2573_v35 = vmul.f32 0.0, %v7607_v30 }
 0x137   : > { %v1947_v48 = vsel %vm1496_vm2, %v1939_v25, %v1946_v42  ;;  %v7711_v51 = vrot.slane %v2271_v40, 3 }
 0x138   : > { %v7691_v57 = vpop.permute.xlu1 %1026  ;;  %v7693_v45 = vpop.permute.xlu0 %1024 }
 0x139   : > { %1950 = vrot.lane.b32.xlu0 %v1937_v46, %s7155_s24  ;;  %885 = vrot.lane.b32.xlu1 %v873_v52, %s7158_s17  ;;  %v2269_v52 = vmul.f32 %v2264_v50, %v7437_v15 }
 0x13b   : > { %v2281_v54 = vrot.slane %v2269_v52, 3 }
 0x13c   : > { %v7707_v46 = vpop.permute.xlu1 %675  ;;  %v7709_v47 = vpop.permute.xlu0 %673 }
 0x13d   : > { %891 = vrot.lane.b32.xlu0 %v880_v0, %s7158_s17  ;;  %1229 = vrot.lane.b32.xlu1 %v1217_v5, %s7157_s18  ;;  %v2286_v63 = vsel %vm2115_vm7, %v2281_v54, %v2285_v62  ;;  %v2287_v0 = vrot.slane %v7730_v61, 3 }
 0x140   : > { %v7724_v11 = vpop.permute.xlu1 %755  ;;  %v7726_v29 = vpop.permute.xlu0 %753 }
 0x141   : > { %1235 = vrot.lane.b32.xlu0 %v1224_v14, %s7157_s18  ;;  %1614 = vrot.lane.b32.xlu1 %v1603_v24, %s7156_s21  ;;  %v2999_v14 = vrot.slane %v2990_v6, %v7424_v4 }
 0x144   : > { %v7745_v5 = vpop.permute.xlu1 %1370  ;;  %v7747_v7 = vpop.permute.xlu0 %1368 }
 0x145   : > { %1608 = vrot.lane.b32.xlu0 %v1596_v34, %s7156_s21  ;;  %1952 = vrot.lane.b32.xlu1 %v1940_v10, %s7155_s24  ;;  %v2568_v34 = vmul.f32 %v7609_v31, %v7437_v15  ;;  %v2569_v10 = vmul.f32 %v2564_v27, %v7440_v16  ;;  %v2583_v15 = vrot.slane %v2571_v23, 3  ;;  %v2582_v16 = vrot.slane %v2573_v35, 3  ;;  %v3179_v23 = vld [vmem:[#allocation2 + $0x8] sm:$0xfc] }
 0x146   : > { %v7845_v35 = vmul.f32 0.0, %v7632_v36 }
 0x147   : > { %v2580_v32 = vrot.slane %v2568_v34, 3  ;;  %v2581_v37 = vrot.slane %v2569_v10, 3 }
 0x148   : > { %v7754_v21 = vpop.permute.xlu1 %1472  ;;  %v7756_v25 = vpop.permute.xlu0 %1470 }
 0x149   : > { %1954 = vrot.lane.b32.xlu0 %v1943_v17, %s7155_s24  ;;  %1956 = vrot.lane.b32.xlu1 %v1945_v56, %s7155_s24  ;;  %v2572_v17 = vmul.f32 %v2564_v27, %v7452_v20  ;;  %v2584_v31 = vsel %vm2115_vm7, %v2580_v32, %v2583_v15 }
 0x14b   : > { %v2585_v56 = vrot.slane %v2572_v17, 3 }
 0x14c   : > { %v7768_v28 = vpop.permute.xlu1 %1817  ;;  %v7770_v33 = vpop.permute.xlu0 %1815 }
 0x14d   : > { %1958 = vrot.lane.b32.xlu0 %v1947_v48, %s7155_s24  ;;  %1960 = vrot.lane.b32.xlu1 %v1949_v49, %s7155_s24  ;;  %v2586_v48 = vsel %vm2115_vm7, %v2581_v37, %v2585_v56  ;;  %v2588_v49 = vsel %vm2115_vm7, %v2582_v16, %v2582_v16 }
 0x150   : > { %v7782_v39 = vpop.permute.xlu0 %2095 }
 0x151   : > { %1618 = vrot.lane.b32.xlu0 %v1600_v1, %s7156_s21  ;;  %1620 = vrot.lane.b32.xlu1 %v1602_v12, %s7156_s21  ;;  %v2282_v1 = vrot.slane %v2270_v53, 3  ;;  %v3084_v12 = vld [vmem:[#allocation6 + $0x42] ss:$8 sm:$0x3] }
 0x152   : > { %v3089_v9 = vrot.slane %v3084_v12, %v7421_v3  ;;  %v3093_v24 = vrot.slane %v3084_v12, %v7424_v4 }
 0x153   : > { %v2288_v13 = vsel %vm2115_vm7, %v2282_v1, %v2287_v0 }
 0x155   : > { %1622 = vrot.lane.b32.xlu0 %v1604_v22, %s7156_s21  ;;  %2289 = vrot.lane.b32.xlu1 %v7711_v51, %s7153_s11  ;;  %v2284_v22 = vsel %vm2115_vm7, %v7711_v51, %v7711_v51 }
 0x159   : > { %2291 = vrot.lane.b32.xlu0 %v2281_v54, %s7153_s11  ;;  %2293 = vrot.lane.b32.xlu1 %v2282_v1, %s7153_s11  ;;  %v3713_v54 = vld [vmem:[#allocation6 + $0x51] ss:$8 sm:$0x3] }
 0x15a   : > { %v3718_v6 = vrot.slane %v3713_v54, %v7421_v3 }
 0x15d   : > { %2295 = vrot.lane.b32.xlu0 %v2284_v22, %s7153_s11  ;;  %2297 = vrot.lane.b32.xlu1 %v2286_v63, %s7153_s11  ;;  %v3815_v22 = vld [vmem:[#allocation6 + $0x52] ss:$8 sm:$0x3]  ;;  %v3722_v63 = vrot.slane %v3713_v54, %v7424_v4 }
 0x15e   : > { %v3824_v55 = vrot.slane %v3815_v22, %v7424_v4 }
 0x161   : > { %2299 = vrot.lane.b32.xlu0 %v2288_v13, %s7153_s11  ;;  %3000 = vrot.lane.b32.xlu1 %v2995_v8, %s7156_s21  ;;  %v3820_v8 = vrot.slane %v3815_v22, %v7421_v3  ;;  %v4160_v22 = vld [vmem:[#allocation6 + $0x56] ss:$8 sm:$0x3] }
 0x165   : > { %3002 = vrot.lane.b32.xlu0 %v2999_v14, %s7156_s21  ;;  %3094 = vrot.lane.b32.xlu1 %v3089_v9, %s7158_s17  ;;  %v3177_v14 = vld [vmem:[#allocation2 + $0x50] sm:$0xfc]  ;;  %v3178_v9 = vld [vmem:[#allocation2 + $0x68] sm:$0xfc] }
 0x166   : > { %v3204_v34 = vmul.f32 %v7632_v36, %v3177_v14 }
 0x168   : > { %v3223_v17 = vrot.slane %v3204_v34, 5 }
 0x169   : > { %3096 = vrot.lane.b32.xlu0 %v3093_v24, %s7158_s17  ;;  %1962 = vrot.lane.b32.xlu1 %v1944_v38, %s7155_s24  ;;  %v7780_v38 = vpop.permute.xlu1 %2097 }
 0x16d   : > { %1964 = vrot.lane.b32.xlu0 %v1946_v42, %s7155_s24  ;;  %1966 = vrot.lane.b32.xlu1 %v1948_v44, %s7155_s24  ;;  %v7790_v30 = vpop.permute.xlu1 %2180  ;;  %v7792_v42 = vpop.permute.xlu0 %2178  ;;  %v3369_v44 = vld [vmem:[#allocation6 + $0x45] ss:$8 sm:$0x3] }
 0x16e   : > { %v3374_v40 = vrot.slane %v3369_v44, %v7421_v3  ;;  %v3378_v50 = vrot.slane %v3369_v44, %v7424_v4  ;;  %v12059_v44 = vrot.slane %v7845_v35, 5 }
 0x171   : > { %2589 = vrot.lane.b32.xlu0 %v2580_v32, %s7154_s19  ;;  %2591 = vrot.lane.b32.xlu1 %v2581_v37, %s7154_s19  ;;  %v7800_v52 = vpop.permute.xlu1 %2396  ;;  %v7802_v53 = vpop.permute.xlu0 %2398 }
 0x175   : > { %2593 = vrot.lane.b32.xlu0 %v2582_v16, %s7154_s19  ;;  %2595 = vrot.lane.b32.xlu1 %v2584_v31, %s7154_s19  ;;  %v7811_v1 = vpop.permute.xlu1 %2478  ;;  %v7813_v61 = vpop.permute.xlu0 %2480  ;;  %v3206_v31 = vmul.f32 %v7630_v43, %v3179_v23 }
 0x179   : > { %2597 = vrot.lane.b32.xlu0 %v2586_v48, %s7154_s19  ;;  %2599 = vrot.lane.b32.xlu1 %v2588_v49, %s7154_s19  ;;  %v7861_v49 = vmul.f32 %v7630_v43, %v7452_v20 }
 0x17d   : > { %3379 = vrot.lane.b32.xlu0 %v3374_v40, %s7157_s18  ;;  %3381 = vrot.lane.b32.xlu1 %v3378_v50, %s7157_s18  ;;  %v3225_v40 = vrot.slane %v3206_v31, 5  ;;  %v3227_v50 = vsel %vm3222_vm9, %v3223_v17, %v12059_v44  ;;  %v3549_v44 = vmul.f32 %v7648_v60, %v3178_v9 }
 0x181   : > { %2301 = vrot.lane.b32.xlu0 %v7711_v51, %s7153_s11  ;;  %2303 = vrot.lane.b32.xlu1 %v2285_v62, %s7153_s11 }
 0x185   : > { %2305 = vrot.lane.b32.xlu0 %v2287_v0, %s7153_s11  ;;  %3723 = vrot.lane.b32.xlu1 %v3718_v6, %s7158_s17  ;;  %v7834_v0 = vsel %vm457_vm1, %v7632_v36, %v7630_v43  ;;  %v12061_v6 = vrot.slane %v7861_v49, 5 }
 0x186   : > { %v3205_v10 = vmul.f32 %v7834_v0, %v3178_v9  ;;  %v7857_v48 = vmul.f32 %v7834_v0, %v7449_v19 }
 0x187   : > { %v7820_v51 = vpop.permute.xlu0 %895  ;;  %v7822_v12 = vpop.permute.xlu1 %1239  ;;  %v3231_v34 = vsel %vm3222_vm9, %v3225_v40, %v12061_v6 }
 0x188   : > { %12356 = vst [vmem:[#allocation24_spill] sm:$0xff] %v7822_v12  ;;  %v12060_v54 = vrot.slane %v7857_v48, 5 }
 0x189   : > { %3725 = vrot.lane.b32.xlu0 %v3722_v63, %s7158_s17  ;;  %3825 = vrot.lane.b32.xlu1 %v3820_v8, %s7154_s19 }
 0x18b   : > { %v7827_v62 = vpop.permute.xlu0 %899  ;;  %v7829_v13 = vpop.permute.xlu1 %1243 }
 0x18c   : > { %12357 = vst [vmem:[#allocation25_spill] sm:$0xff] %v7827_v62  ;;  %12358 = vst [vmem:[#allocation26_spill] sm:$0xff] %v7829_v13 }
 0x18d   : > { %3827 = vrot.lane.b32.xlu0 %v3824_v55, %s7154_s19  ;;  %2601 = vrot.lane.b32.xlu1 %v2583_v15, %s7154_s19  ;;  %v3224_v15 = vrot.slane %v3205_v10, 5  ;;  %v7883_v55 = vsel %vm596_vm3, %v7648_v60, %v7646_v59  ;;  %v4165_v10 = vrot.slane %v4160_v22, %v7421_v3 }
 0x18f   : > { %v7838_v24 = vpop.permute.xlu0 %883  ;;  %v7840_v27 = vpop.permute.xlu1 %889  ;;  %v3229_v14 = vsel %vm3222_vm9, %v3224_v15, %v12060_v54  ;;  %v3180_v54 = vld [vmem:[#allocation2 + $0x48] sm:$0xfc] }
 0x190   : > { %12359 = vst [vmem:[#allocation27_spill] sm:$0xff] %v7838_v24  ;;  %12360 = vst [vmem:[#allocation28_spill] sm:$0xff] %v7840_v27  ;;  %v3551_v2 = vmul.f32 %v7646_v59, %v3180_v54  ;;  %v8241_v24 = vld [vmem:[#allocation2 + $0x20] sm:$0x3f] }
 0x191   : > { %2603 = vrot.lane.b32.xlu0 %v2585_v56, %s7154_s19  ;;  %2605 = vrot.lane.b32.xlu1 %v2582_v16, %s7154_s19 }
 0x192   : > { %v3569_v54 = vrot.slane %v3551_v2, 5 }
 0x193   : > { %v7849_v32 = vpop.permute.xlu1 %893  ;;  %v7851_v37 = vpop.permute.xlu0 %887 }
 0x194   : > { %12361 = vst [vmem:[#allocation29_spill] sm:$0xff] %v7849_v32  ;;  %12362 = vst [vmem:[#allocation30_spill] sm:$0xff] %v7851_v37 }
 0x195   : > { %3238 = vrot.lane.b32.xlu0 %v3223_v17, %s7158_s17  ;;  %3240 = vrot.lane.b32.xlu1 %v3224_v15, %s7158_s17  ;;  %v4169_v17 = vrot.slane %v4160_v22, %v7424_v4  ;;  %v3550_v15 = vmul.f32 %v7883_v55, %v3179_v23  ;;  %v7915_v23 = vmul.f32 %v7883_v55, %v7452_v20 }
 0x197   : > { %v7865_v16 = vpop.permute.xlu1 %1233  ;;  %v7867_v56 = vpop.permute.xlu0 %1227  ;;  %v3568_v6 = vrot.slane %v3550_v15, 5 }
 0x198   : > { %12363 = vst [vmem:[#allocation31_spill] sm:$0xff] %v7865_v16  ;;  %12364 = vst [vmem:[#allocation32_spill] sm:$0xff] %v7867_v56 }
 0x199   : > { %3242 = vrot.lane.b32.xlu0 %v3225_v40, %s7158_s17  ;;  %3244 = vrot.lane.b32.xlu1 %v3227_v50, %s7158_s17  ;;  %v7903_v40 = vmul.f32 %v7648_v60, %v7449_v19 }
 0x19b   : > { %v7876_v63 = vpop.permute.xlu1 %1237  ;;  %v7878_v8 = vpop.permute.xlu0 %1231  ;;  %v12064_v9 = vrot.slane %v7903_v40, 5 }
 0x19c   : > { %12365 = vst [vmem:[#allocation33_spill] sm:$0xff] %v7876_v63  ;;  %12366 = vst [vmem:[#allocation34_spill] sm:$0xff] %v7878_v8 }
 0x19d   : > { %3246 = vrot.lane.b32.xlu0 %v3229_v14, %s7158_s17  ;;  %3248 = vrot.lane.b32.xlu1 %v3231_v34, %s7158_s17  ;;  %v3567_v34 = vrot.slane %v3549_v44, 5 }
 0x19f   : > { %v7895_v31 = vpop.permute.xlu1 %897  ;;  %v7897_v50 = vpop.permute.xlu0 %1612  ;;  %v3571_v15 = vsel %vm3222_vm9, %v3567_v34, %v12064_v9 }
 0x1a0   : > { %12367 = vst [vmem:[#allocation35_spill] sm:$0xff] %v7897_v50  ;;  %v7918_v50 = vmul.f32 0.0, %v7646_v59 }
 0x1a1   : > { %4170 = vrot.lane.b32.xlu0 %v4165_v10, %s7153_s11  ;;  %4172 = vrot.lane.b32.xlu1 %v4169_v17, %s7153_s11  ;;  %v3181_v10 = vld [vmem:[#allocation2 + $0x60] sm:$0x3]  ;;  %v3182_v17 = vld [vmem:[#allocation2 + $0x70] sm:$0x3] }
 0x1a2   : > { %v12065_v63 = vrot.slane %v7918_v50, 5  ;;  %v3210_v8 = vmul.f32 %v7632_v36, %v3181_v10  ;;  %v3211_v56 = vmul.f32 %v7834_v0, %v3182_v17 }
 0x1a3   : > { %v7907_v14 = vpop.permute.xlu1 %1606  ;;  %v7909_v22 = vpop.permute.xlu0 %1616 }
 0x1a4   : > { %12368 = vst [vmem:[#allocation36_spill] sm:$0xff] %v7907_v14  ;;  %12369 = vst [vmem:[#allocation37_spill] sm:$0xff] %v7909_v22  ;;  %v12066_v14 = vrot.slane %v7915_v23, 5  ;;  %v3575_v9 = vsel %vm3222_vm9, %v3569_v54, %v12065_v63  ;;  %v3232_v36 = vrot.slane %v3210_v8, 5  ;;  %v3234_v0 = vrot.slane %v3211_v56, 5 }
 0x1a5   : > { %3582 = vrot.lane.b32.xlu0 %v3567_v34, %s7157_s18  ;;  %3584 = vrot.lane.b32.xlu1 %v3568_v6, %s7157_s18  ;;  %v3807_v63 = vld [vmem:[#allocation2 + $0x68] sm:$0xf8]  ;;  %v12377_v56 = vrot.slane %v7857_v48, 5  ;;  %v7976_v48 = vmul.f32 0.0, %v7658_v18 }
 0x1a6   : > { %v3573_v34 = vsel %vm3222_vm9, %v3568_v6, %v12066_v14  ;;  %v7955_v6 = vsel %vm495_vm4, %v7658_v18, %v7656_v26  ;;  %v3808_v14 = vld [vmem:[#allocation2 + $0x8] sm:$0xf8] }
 0x1a7   : > { %v7922_v22 = vpop.permute.xlu1 %1610  ;;  %v7924_v44 = vpop.permute.xlu0 %1241 }
 0x1a8   : > { %12370 = vst [vmem:[#allocation38_spill] sm:$0xff] %v7922_v22  ;;  %12371 = vst [vmem:[#allocation39_spill] sm:$0xff] %v7924_v44  ;;  %v3183_v22 = vld [vmem:[#allocation2 + $0x78] sm:$0x3] }
 0x1a9   : > { %3586 = vrot.lane.b32.xlu0 %v3569_v54, %s7157_s18  ;;  %3588 = vrot.lane.b32.xlu1 %v3571_v15, %s7157_s18  ;;  %v3212_v10 = vmul.f32 %v7630_v43, %v3183_v22  ;;  %v3806_v15 = vld [vmem:[#allocation2 + $0x50] sm:$0xf8]  ;;  %v12376_v54 = vrot.slane %v7845_v35, 5  ;;  %v3929_v35 = vmul.f32 %v7955_v6, %v3807_v63 }
 0x1ab   : > { %v7935_v32 = vpop.permute.xlu0 %1950  ;;  %v7937_v2 = vpop.permute.xlu1 %885  ;;  %v3233_v8 = vsel %vm3222_vm9, %v12376_v54, %v3232_v36  ;;  %v3236_v43 = vrot.slane %v3212_v10, 5  ;;  %v12380_v36 = vrot.slane %v7861_v49, 5  ;;  %v3930_v54 = vmul.f32 %v7656_v26, %v3808_v14 }
 0x1ac   : > { %12372 = vst [vmem:[#allocation40_spill] sm:$0xff] %v7935_v32  ;;  %12373 = vst [vmem:[#allocation41_spill] sm:$0xff] %v7937_v2  ;;  %v3947_v49 = vrot.slane %v3929_v35, 6 }
 0x1ad   : > { %3590 = vrot.lane.b32.xlu0 %v3573_v34, %s7157_s18  ;;  %3592 = vrot.lane.b32.xlu1 %v3575_v9, %s7157_s18  ;;  %v3928_v34 = vmul.f32 %v7658_v18, %v3806_v15  ;;  %v3235_v9 = vsel %vm3222_vm9, %v12377_v56, %v3234_v0  ;;  %v3237_v10 = vsel %vm3222_vm9, %v12380_v36, %v3236_v43  ;;  %v3948_v43 = vrot.slane %v3930_v54, 6 }
 0x1ae   : > { %v7981_v0 = vmul.f32 %v7955_v6, %v7449_v19 }
 0x1af   : > { %v7948_v32 = vpop.permute.xlu0 %891  ;;  %v7950_v16 = vpop.permute.xlu1 %1229  ;;  %v3946_v15 = vrot.slane %v3928_v34, 6  ;;  %v12074_v34 = vrot.slane %v7976_v48, 6 }
 0x1b0   : > { %12374 = vst [vmem:[#allocation42_spill] sm:$0xff] %v7948_v32  ;;  %12375 = vst [vmem:[#allocation43_spill] sm:$0xff] %v7950_v16  ;;  %v12073_v36 = vrot.slane %v7981_v0, 6 }
 0x1b1   : > { %3250 = vrot.lane.b32.xlu0 %v3233_v8, %s7158_s17  ;;  %3252 = vrot.lane.b32.xlu1 %v3235_v9, %s7158_s17  ;;  %v7991_v9 = vmul.f32 %v7656_v26, %v7452_v20  ;;  %v3950_v54 = vsel %vm3851_vm10, %v3946_v15, %v12074_v34  ;;  %v3812_v34 = vld [vmem:[#allocation2 + $0x78] sm:$0x7] }
 0x1b3   : > { %v7966_v16 = vpop.permute.xlu0 %1235  ;;  %v7968_v13 = vpop.permute.xlu1 %1614 }
 0x1b4   : > { %12378 = vst [vmem:[#allocation44_spill] sm:$0xff] %v7966_v16  ;;  %12379 = vst [vmem:[#allocation45_spill] sm:$0xff] %v7968_v13  ;;  %v3184_v13 = vld [vmem:[#allocation2 + $0x28] sm:$0x3]  ;;  %v3556_v16 = vmul.f32 %v7883_v55, %v3183_v22  ;;  %v4268_v22 = vsel %vm677_vm5, %v7681_v41, %v7679_v58 }
 0x1b5   : > { %3254 = vrot.lane.b32.xlu0 %v3237_v10, %s7158_s17  ;;  %3961 = vrot.lane.b32.xlu1 %v3946_v15, %s7156_s21  ;;  %v3555_v10 = vmul.f32 %v7648_v60, %v3182_v17  ;;  %v3952_v60 = vsel %vm3851_vm10, %v3947_v49, %v12073_v36  ;;  %v3557_v37 = vmul.f32 %v7646_v59, %v3184_v13  ;;  %v3809_v36 = vld [vmem:[#allocation2 + $0x48] sm:$0xf8] }
 0x1b6   : > { %v3578_v55 = vrot.slane %v3556_v16, 5  ;;  %v12390_v16 = vrot.slane %v7915_v23, 5 }
 0x1b7   : > { %v7984_v8 = vpop.permute.xlu0 %1608  ;;  %v7986_v56 = vpop.permute.xlu1 %1952  ;;  %v3576_v17 = vrot.slane %v3555_v10, 5  ;;  %v3580_v13 = vrot.slane %v3557_v37, 5 }
 0x1b8   : > { %12381 = vst [vmem:[#allocation46_spill] sm:$0xff] %v7984_v8  ;;  %12382 = vst [vmem:[#allocation47_spill] sm:$0xff] %v7986_v56  ;;  %v12072_v56 = vrot.slane %v7991_v9, 6 }
 0x1b9   : > { %3963 = vrot.lane.b32.xlu0 %v3947_v49, %s7156_s21  ;;  %3965 = vrot.lane.b32.xlu1 %v3948_v43, %s7156_s21  ;;  %v12387_v49 = vrot.slane %v7903_v40, 5  ;;  %v12391_v40 = vrot.slane %v7918_v50, 5 }
 0x1ba   : > { %v3954_v15 = vsel %vm3851_vm10, %v3948_v43, %v12072_v56  ;;  %v4272_v43 = vmul.f32 %v7681_v41, %v3807_v63  ;;  %v4273_v56 = vmul.f32 %v4268_v22, %v3808_v14 }
 0x1bb   : > { %v7997_v8 = vpop.permute.xlu0 %1954  ;;  %v7999_v35 = vpop.permute.xlu1 %1956  ;;  %v3577_v59 = vsel %vm3222_vm9, %v12387_v49, %v3576_v17  ;;  %v3581_v37 = vsel %vm3222_vm9, %v12391_v40, %v3580_v13  ;;  %v4275_v17 = vmul.f32 %v7681_v41, %v7449_v19  ;;  %v4276_v49 = vmul.f32 %v4268_v22, %v7452_v20  ;;  %v3810_v13 = vld [vmem:[#allocation2 + $0x60] sm:$0x7] }
 0x1bc   : > { %12383 = vst [vmem:[#allocation48_spill] sm:$0xff] %v7997_v8  ;;  %12384 = vst [vmem:[#allocation49_spill] sm:$0xff] %v7999_v35  ;;  %v4290_v23 = vrot.slane %v4272_v43, 6  ;;  %v4291_v14 = vrot.slane %v4273_v56, 6  ;;  %v3934_v20 = vmul.f32 %v7658_v18, %v3810_v13 }
 0x1bd   : > { %3967 = vrot.lane.b32.xlu0 %v3950_v54, %s7156_s21  ;;  %3969 = vrot.lane.b32.xlu1 %v3952_v60, %s7156_s21  ;;  %v3579_v60 = vsel %vm3222_vm9, %v12390_v16, %v3578_v55  ;;  %v4274_v55 = vmul.f32 %v7679_v58, %v3809_v36  ;;  %v4293_v50 = vrot.slane %v4275_v17, 6  ;;  %v3811_v16 = vld [vmem:[#allocation2 + $0x70] sm:$0x7]  ;;  %v4295_v56 = vrot.slane %v4276_v49, 6 }
 0x1be   : > { %v3935_v17 = vmul.f32 %v7955_v6, %v3811_v16  ;;  %v3936_v49 = vmul.f32 %v7656_v26, %v3812_v34  ;;  %v3813_v6 = vld [vmem:[#allocation2 + $0x28] sm:$0x7]  ;;  %v4279_v26 = vmul.f32 %v4268_v22, %v3812_v34 }
 0x1bf   : > { %v8012_v35 = vpop.permute.xlu0 %1958  ;;  %v8014_v8 = vpop.permute.xlu1 %1960  ;;  %v4292_v36 = vrot.slane %v4274_v55, 6  ;;  %v4294_v40 = vsel %vm3851_vm10, %v4290_v23, %v4293_v50  ;;  %v3955_v55 = vrot.slane %v3934_v20, 6 }
 0x1c0   : > { %12385 = vst [vmem:[#allocation50_spill] sm:$0xff] %v8012_v35  ;;  %12386 = vst [vmem:[#allocation51_spill] sm:$0xff] %v8014_v8  ;;  %v3959_v20 = vrot.slane %v3936_v49, 6  ;;  %v4301_v34 = vrot.slane %v4279_v26, 6 }
 0x1c1   : > { %3971 = vrot.lane.b32.xlu0 %v3954_v15, %s7156_s21  ;;  %3594 = vrot.lane.b32.xlu1 %v3577_v59, %s7157_s18  ;;  %v8049_v59 = vld [vmem:[#allocation2 + $0x40] sm:$0xff] }
 0x1c2   : > { %v4277_v19 = vmul.f32 %v8049_v59, %v7679_v58 }
 0x1c3   : > { %v8027_v10 = vpop.permute.xlu0 %1618  ;;  %v8029_v54 = vpop.permute.xlu1 %1620 }
 0x1c4   : > { %12388 = vst [vmem:[#allocation52_spill] sm:$0xff] %v8027_v10  ;;  %12389 = vst [vmem:[#allocation53_spill] sm:$0xff] %v8029_v54  ;;  %v4296_v54 = vsel %vm3851_vm10, %v4291_v14, %v4295_v56 }
 0x1c5   : > { %3596 = vrot.lane.b32.xlu0 %v3579_v60, %s7157_s18  ;;  %3598 = vrot.lane.b32.xlu1 %v3581_v37, %s7157_s18  ;;  %v4297_v37 = vrot.slane %v4277_v19, 6  ;;  %v4278_v19 = vmul.f32 %v7681_v41, %v3811_v16  ;;  %v4280_v16 = vmul.f32 %v7679_v58, %v3813_v6  ;;  %v582_v6 = vld [vmem:[#allocation6 + $0x4] ss:$8 sm:$0x3] }
 0x1c6   : > { %v587_v26 = vrot.slane %v582_v6, %v7421_v3 }
 0x1c7   : > { %v8042_v15 = vpop.permute.xlu0 %1622  ;;  %v8044_v63 = vpop.permute.xlu1 %2289  ;;  %v4298_v18 = vsel %vm3851_vm10, %v4292_v36, %v4297_v37  ;;  %v4299_v41 = vrot.slane %v4278_v19, 6  ;;  %v4303_v22 = vrot.slane %v4280_v16, 6 }
 0x1c8   : > { %12392 = vst [vmem:[#allocation54_spill] sm:$0xff] %v8042_v15  ;;  %12393 = vst [vmem:[#allocation55_spill] sm:$0xff] %v8044_v63 }
 0x1c9   : > { %4305 = vrot.lane.b32.xlu0 %v4290_v23, %s7155_s24  ;;  %4307 = vrot.lane.b32.xlu1 %v4291_v14, %s7155_s24  ;;  %v3957_v23 = vrot.slane %v3935_v17, 6 }
 0x1cb   : > { %v8054_v60 = vpop.permute.xlu0 %2291  ;;  %v8056_v43 = vpop.permute.xlu1 %2293 }
 0x1cc   : > { %12394 = vst [vmem:[#allocation56_spill] sm:$0xff] %v8054_v60  ;;  %12395 = vst [vmem:[#allocation57_spill] sm:$0xff] %v8056_v43 }
 0x1cd   : > { %4309 = vrot.lane.b32.xlu0 %v4292_v36, %s7155_s24  ;;  %4311 = vrot.lane.b32.xlu1 %v4294_v40, %s7155_s24 }
 0x1cf   : > { %v8063_v15 = vpop.permute.xlu0 %2295  ;;  %v8065_v10 = vpop.permute.xlu1 %2297 }
 0x1d0   : > { %12396 = vst [vmem:[#allocation58_spill] sm:$0xff] %v8063_v15  ;;  %12397 = vst [vmem:[#allocation59_spill] sm:$0xff] %v8065_v10  ;;  %v12399_v15 = vrot.slane %v7976_v48, 6  ;;  %v12401_v48 = vrot.slane %v7991_v9, 6  ;;  %v4304_v9 = vsel %vm3851_vm10, %v4297_v37, %v4303_v22 }
 0x1d1   : > { %4313 = vrot.lane.b32.xlu0 %v4296_v54, %s7155_s24  ;;  %4315 = vrot.lane.b32.xlu1 %v4298_v18, %s7155_s24  ;;  %v12400_v54 = vrot.slane %v7981_v0, 6  ;;  %v4300_v0 = vsel %vm3851_vm10, %v4293_v50, %v4299_v41  ;;  %v1264_v37 = vld [vmem:[#allocation6 + $0x14] ss:$8 sm:$0x3] }
 0x1d2   : > { %v3956_v14 = vsel %vm3851_vm10, %v12399_v15, %v3955_v55  ;;  %v3960_v15 = vsel %vm3851_vm10, %v12401_v48, %v3959_v20  ;;  %v920_v55 = vld [vmem:[#allocation6 + $0x10] ss:$8 sm:$0x3]  ;;  %v1269_v41 = vrot.slane %v1264_v37, %v7421_v3  ;;  %v1273_v16 = vrot.slane %v1264_v37, %v7424_v4  ;;  %v481_v48 = vld [vmem:[#allocation6 + $0x1] ss:$8 sm:$0x3] }
 0x1d3   : > { %v8073_v13 = vpop.permute.xlu0 %2299  ;;  %v8075_v40 = vpop.permute.xlu1 %3000  ;;  %v3958_v36 = vsel %vm3851_vm10, %v12400_v54, %v3957_v23  ;;  %v4302_v23 = vsel %vm3851_vm10, %v4295_v56, %v4301_v34  ;;  %v925_v19 = vrot.slane %v920_v55, %v7421_v3  ;;  %v929_v50 = vrot.slane %v920_v55, %v7424_v4  ;;  %v519_v55 = vld [vmem:[#allocation6 + $0x2] ss:$8 sm:$0x3] }
 0x1d4   : > { %12398 = vst [vmem:[#allocation60_spill] sm:$0xff] %v8073_v13  ;;  %v591_v56 = vrot.slane %v582_v6, %v7424_v4  ;;  %v490_v22 = vrot.slane %v481_v48, %v7424_v4  ;;  %v1643_v6 = vld [vmem:[#allocation6 + $0x20] ss:$8 sm:$0x3] }
 0x1d5   : > { %3973 = vrot.lane.b32.xlu0 %v3956_v14, %s7156_s21  ;;  %3975 = vrot.lane.b32.xlu1 %v3958_v36, %s7156_s21  ;;  %v1648_v37 = vrot.slane %v1643_v6, %v7421_v3 }
 0x1d7   : > { %v8086_v17 = vpop.permute.xlu0 %3002  ;;  %v8088_v18 = vpop.permute.xlu1 %3094 }
 0x1d9   : > { %3977 = vrot.lane.b32.xlu0 %v3960_v15, %s7156_s21  ;;  %4317 = vrot.lane.b32.xlu1 %v4300_v0, %s7155_s24  ;;  %v486_v0 = vrot.slane %v481_v48, %v7421_v3 }
 0x1db   : > { %v8096_v58 = vpop.permute.xlu0 %3096  ;;  %v8098_v49 = vpop.permute.xlu1 %1962 }
 0x1dc   : > { %12402 = vst [vmem:[#allocation61_spill] sm:$0xff] %v8098_v49 }
 0x1dd   : > { %4319 = vrot.lane.b32.xlu0 %v4302_v23, %s7155_s24  ;;  %4321 = vrot.lane.b32.xlu1 %v4304_v9, %s7155_s24 }
 0x1df   : > { %v8106_v14 = vpop.permute.xlu0 %1964  ;;  %v8108_v20 = vpop.permute.xlu1 %1966 }
 0x1e0   : > { %12403 = vst [vmem:[#allocation62_spill] sm:$0xff] %v8106_v14  ;;  %12404 = vst [vmem:[#allocation63_spill] sm:$0xff] %v8108_v20 }
 0x1e1   : > { %930 = vrot.lane.b32.xlu0 %v925_v19, %s7155_s24  ;;  %932 = vrot.lane.b32.xlu1 %v929_v50, %s7155_s24  ;;  %v524_v19 = vrot.slane %v519_v55, %v7421_v3  ;;  %v528_v50 = vrot.slane %v519_v55, %v7424_v4  ;;  %v433_v55 = vld [vmem:[#allocation2 + $0x58] sm:$0xe0] }
 0x1e3   : > { %v8114_v54 = vpop.permute.xlu0 %2589  ;;  %v8116_v36 = vpop.permute.xlu1 %2591 }
 0x1e4   : > { %12405 = vst [vmem:[#allocation64_spill] sm:$0xff] %v8114_v54  ;;  %12406 = vst [vmem:[#allocation65_spill] sm:$0xff] %v8116_v36 }
 0x1e5   : > { %592 = vrot.lane.b32.xlu0 %v587_v26, %s7153_s11  ;;  %594 = vrot.lane.b32.xlu1 %v591_v56, %s7153_s11 }
 0x1e7   : > { %v8122_v15 = vpop.permute.xlu0 %2593  ;;  %v8124_v34 = vpop.permute.xlu1 %2595 }
 0x1e8   : > { %12407 = vst [vmem:[#allocation66_spill] sm:$0xff] %v8122_v15  ;;  %12408 = vst [vmem:[#allocation67_spill] sm:$0xff] %v8124_v34  ;;  %v687_v34 = vmul.f32 %v8049_v59, %v7707_v46 }
 0x1e9   : > { %1274 = vrot.lane.b32.xlu0 %v1269_v41, %s7156_s21  ;;  %1276 = vrot.lane.b32.xlu1 %v1273_v16, %s7156_s21  ;;  %v1652_v41 = vrot.slane %v1643_v6, %v7424_v4 }
 0x1eb   : > { %v8130_v23 = vpop.permute.xlu0 %2597  ;;  %v8132_v9 = vpop.permute.xlu1 %2599 }
 0x1ec   : > { %12409 = vst [vmem:[#allocation68_spill] sm:$0xff] %v8130_v23  ;;  %12410 = vst [vmem:[#allocation69_spill] sm:$0xff] %v8132_v9  ;;  %v8189_v23 = vsel %vm757_vm8, %v7726_v29, %v7724_v11 }
 0x1ed   : > { %491 = vrot.lane.b32.xlu0 %v486_v0, %s7155_s24  ;;  %493 = vrot.lane.b32.xlu1 %v490_v22, %s7155_s24  ;;  %v432_v0 = vld [vmem:[#allocation2] sm:$0xe0]  ;;  %v8153_v22 = vsel %vm677_vm5, %v7709_v47, %v7707_v46  ;;  %v763_v15 = vmul.f32 %v8189_v23, %v433_v55 }
 0x1ee   : > { %v682_v6 = vmul.f32 %v7709_v47, %v432_v0 }
 0x1ef   : > { %v8138_v26 = vpop.permute.xlu0 %3379  ;;  %v8140_v56 = vpop.permute.xlu1 %3381 }
 0x1f1   : > { %529 = vrot.lane.b32.xlu0 %v524_v19, %s7157_s18  ;;  %531 = vrot.lane.b32.xlu1 %v528_v50, %s7157_s18 }
 0x1f3   : > { %v8146_v16 = vpop.permute.xlu0 %2301  ;;  %v8148_v48 = vpop.permute.xlu1 %2303 }
 0x1f4   : > { %12411 = vst [vmem:[#allocation70_spill] sm:$0xff] %v8146_v16  ;;  %12412 = vst [vmem:[#allocation71_spill] sm:$0xff] %v8148_v48  ;;  %v683_v16 = vmul.f32 %v8153_v22, %v433_v55  ;;  %v434_v48 = vld [vmem:[#allocation2 + $0x18] sm:$0xe0] }
 0x1f5   : > { %1653 = vrot.lane.b32.xlu0 %v1648_v37, %s7157_s18  ;;  %1655 = vrot.lane.b32.xlu1 %v1652_v41, %s7157_s18  ;;  %v684_v37 = vmul.f32 %v7707_v46, %v434_v48  ;;  %v8170_v41 = vld [vmem:[#allocation2 + $0x68] sm:$0xff] }
 0x1f7   : > { %v8157_v19 = vpop.permute.xlu0 %2305  ;;  %v8159_v50 = vpop.permute.xlu1 %3723 }
 0x1f8   : > { %12413 = vst [vmem:[#allocation72_spill] sm:$0xff] %v8157_v19  ;;  %v685_v19 = vmul.f32 %v8170_v41, %v7709_v47 }
 0x1f9   : > { %700 = vrot.lane.b32.xlu0 %v682_v6, %s7159_s16  ;;  %702 = vrot.lane.b32.xlu1 %v683_v16, %s7159_s16  ;;  %v8180_v16 = vld [vmem:[#allocation2 + $0x8] sm:$0xff] }
 0x1fa   : > { %v686_v9 = vmul.f32 %v8180_v16, %v8153_v22  ;;  %v1037_v36 = vmul.f32 %v8180_v16, %v7691_v57 }
 0x1fb   : > { %v8165_v20 = vpop.permute.xlu0 %3725  ;;  %v8167_v49 = vpop.permute.xlu1 %3825 }
 0x1fc   : > { %v1057_v27 = vrot.slane %v1037_v36, 1 }
 0x1fd   : > { %704 = vrot.lane.b32.xlu0 %v684_v37, %s7159_s16  ;;  %706 = vrot.lane.b32.xlu1 %v685_v19, %s7159_s16 }
 0x1ff   : > { %v8176_v14 = vpop.permute.xlu0 %3827  ;;  %v8178_v6 = vpop.permute.xlu1 %2601 }
 0x200   : > { %12414 = vst [vmem:[#allocation73_spill] sm:$0xff] %v8178_v6  ;;  %v762_v6 = vmul.f32 %v7726_v29, %v432_v0  ;;  %v1987_v0 = vld [vmem:[#allocation6 + $0x24] ss:$8 sm:$0x3] }
 0x201   : > { %708 = vrot.lane.b32.xlu0 %v686_v9, %s7159_s16  ;;  %710 = vrot.lane.b32.xlu1 %v687_v34, %s7159_s16  ;;  %v764_v9 = vmul.f32 %v7724_v11, %v434_v48  ;;  %v765_v34 = vmul.f32 %v8170_v41, %v7726_v29  ;;  %v1108_v48 = vld [vmem:[#allocation6 + $0x12] ss:$8 sm:$0x3]  ;;  %v1996_v10 = vrot.slane %v1987_v0, %v7424_v4 }
 0x202   : > { %v1113_v43 = vrot.slane %v1108_v48, %v7421_v3 }
 0x203   : > { %v8193_v19 = vpop.permute.xlu0 %2603  ;;  %v8195_v37 = vpop.permute.xlu1 %2605 }
 0x204   : > { %12415 = vst [vmem:[#allocation74_spill] sm:$0xff] %v8193_v19  ;;  %12416 = vst [vmem:[#allocation75_spill] sm:$0xff] %v8195_v37  ;;  %v1028_v37 = vsel %vm533_vm6, %v7693_v45, %v7691_v57  ;;  %v767_v19 = vmul.f32 %v8049_v59, %v7724_v11 }
 0x205   : > { %780 = vrot.lane.b32.xlu0 %v762_v6, %s7159_s16  ;;  %782 = vrot.lane.b32.xlu1 %v763_v15, %s7159_s16  ;;  %v766_v6 = vmul.f32 %v8180_v16, %v8189_v23  ;;  %v8244_v2 = vmul.f32 %v8241_v24, %v1028_v37 }
 0x207   : > { %v8201_v13 = vpop.permute.xlu0 %3238  ;;  %v8203_v54 = vpop.permute.xlu1 %3240 }
 0x208   : > { %12417 = vst [vmem:[#allocation76_spill] sm:$0xff] %v8201_v13  ;;  %12418 = vst [vmem:[#allocation77_spill] sm:$0xff] %v8203_v54  ;;  %v8221_v13 = vld [vmem:[#allocation2] sm:$0xc0] }
 0x209   : > { %784 = vrot.lane.b32.xlu0 %v764_v9, %s7159_s16  ;;  %786 = vrot.lane.b32.xlu1 %v765_v34, %s7159_s16  ;;  %v1033_v54 = vmul.f32 %v8221_v13, %v1028_v37  ;;  %v1036_v9 = vmul.f32 %v8170_v41, %v1028_v37  ;;  %v1992_v34 = vrot.slane %v1987_v0, %v7421_v3  ;;  %v8247_v0 = vld [vmem:[#allocation2 + $0x10] sm:$0x3f] }
 0x20b   : > { %v8213_v55 = vpop.permute.xlu0 %3242  ;;  %v8215_v15 = vpop.permute.xlu1 %3244  ;;  %v1053_v60 = vrot.slane %v1033_v54, 1  ;;  %v1054_v35 = vrot.slane %v1036_v9, 1  ;;  %v1120_v54 = vmul.f32 %v8221_v13, %v1113_v43 }
 0x20c   : > { %12419 = vst [vmem:[#allocation78_spill] sm:$0xff] %v8213_v55  ;;  %12420 = vst [vmem:[#allocation79_spill] sm:$0xff] %v8215_v15  ;;  %v8227_v55 = vld [vmem:[#allocation2 + $0x58] sm:$0xc0] }
 0x20d   : > { %788 = vrot.lane.b32.xlu0 %v766_v6, %s7159_s16  ;;  %v1034_v15 = vmul.f32 %v8227_v55, %v7691_v57  ;;  %790 = vrot.lane.b32.xlu1 %v767_v19, %s7159_s16  ;;  %v1117_v6 = vrot.slane %v1108_v48, %v7424_v4  ;;  %v1122_v48 = vmul.f32 %v8170_v41, %v1113_v43  ;;  %v1132_v32 = vrot.slane %v1120_v54, 1 }
 0x20f   : > { %v8236_v8 = vpop.permute.xlu0 %3246  ;;  %v8238_v63 = vpop.permute.xlu1 %3248  ;;  %v1056_v19 = vrot.slane %v1034_v15, 1  ;;  %v1123_v36 = vmul.f32 %v8180_v16, %v1117_v6  ;;  %v1055_v15 = vsel %vm867_vm0, %v1053_v60, %v1054_v35 }
 0x210   : > { %12421 = vst [vmem:[#allocation80_spill] sm:$0xff] %v8236_v8  ;;  %12422 = vst [vmem:[#allocation81_spill] sm:$0xff] %v8238_v63  ;;  %v8251_v8 = vmul.f32 %v8247_v0, %v7691_v57  ;;  %v8276_v63 = vmul.f32 %v8247_v0, %v1117_v6 }
 0x211   : > { %1997 = vrot.lane.b32.xlu0 %v1992_v34, %s7158_s17  ;;  %1999 = vrot.lane.b32.xlu1 %v1996_v10, %s7158_s17  ;;  %v1121_v34 = vmul.f32 %v8227_v55, %v1117_v6  ;;  %v1058_v57 = vsel %vm867_vm0, %v1056_v19, %v1057_v27  ;;  %v1136_v62 = vrot.slane %v1123_v36, 1  ;;  %v12425_v19 = vrot.slane %v8244_v2, 1 }
 0x212   : > { %v12091_v10 = vrot.slane %v8251_v8, 1 }
 0x213   : > { %v8256_v9 = vpop.permute.xlu0 %4170  ;;  %v8258_v37 = vpop.permute.xlu1 %4172  ;;  %v1135_v60 = vrot.slane %v1121_v34, 1 }
 0x214   : > { %12423 = vst [vmem:[#allocation82_spill] sm:$0xff] %v8256_v9  ;;  %12424 = vst [vmem:[#allocation83_spill] sm:$0xff] %v8258_v37  ;;  %v1133_v9 = vrot.slane %v1122_v48, 1  ;;  %v8269_v37 = vmul.f32 %v8241_v24, %v1113_v43  ;;  %v1064_v43 = vsel %vm867_vm0, %v1057_v27, %v12091_v10  ;;  %v1035_v27 = vmul.f32 %v8049_v59, %v7693_v45 }
 0x215   : > { %1067 = vrot.lane.b32.xlu0 %v1055_v15, %s7157_s18  ;;  %1069 = vrot.lane.b32.xlu1 %v1058_v57, %s7157_s18  ;;  %v1062_v15 = vsel %vm867_vm0, %v1054_v35, %v12425_v19  ;;  %v1137_v36 = vsel %vm867_vm0, %v1135_v60, %v1136_v62  ;;  %v12093_v35 = vrot.slane %v8276_v63, 1  ;;  %v6778_v57 = vld [vmem:[#allocation2 + $0x30] sm:$0xc0] }
 0x216   : > { %v1134_v54 = vsel %vm867_vm0, %v1132_v32, %v1133_v9  ;;  %v12092_v48 = vrot.slane %v8269_v37, 1  ;;  %v1032_v19 = vmul.f32 %v6778_v57, %v7693_v45 }
 0x217   : > { %v8271_v12 = vpop.permute.xlu0 %3582  ;;  %v8273_v44 = vpop.permute.xlu1 %3584  ;;  %v1141_v57 = vsel %vm867_vm0, %v1136_v62, %v12093_v35  ;;  %v442_v35 = vld [vmem:[#allocation2 + $0x38] sm:$0x1f] }
 0x218   : > { %v1139_v60 = vsel %vm867_vm0, %v1133_v9, %v12092_v48 }
 0x219   : > { %1073 = vrot.lane.b32.xlu0 %v1062_v15, %s7157_s18  ;;  %1075 = vrot.lane.b32.xlu1 %v1064_v43, %s7157_s18  ;;  %v6779_v15 = vld [vmem:[#allocation2 + $0x40] sm:$0x3f] }
 0x21a   : > { %v8299_v32 = vmul.f32 %v6779_v15, %v7693_v45  ;;  %v440_v15 = vld [vmem:[#allocation2 + $0x20] sm:$0x1f] }
 0x21b   : > { %v8288_v34 = vpop.permute.xlu0 %3586  ;;  %v8290_v6 = vpop.permute.xlu1 %3588 }
 0x21c   : > { %12426 = vst [vmem:[#allocation84_spill] sm:$0xff] %v8290_v6  ;;  %v1050_v6 = vrot.slane %v1032_v19, 1  ;;  %v12094_v45 = vrot.slane %v8299_v32, 1 }
 0x21d   : > { %1142 = vrot.lane.b32.xlu0 %v1134_v54, %s7157_s18  ;;  %1144 = vrot.lane.b32.xlu1 %v1137_v36, %s7157_s18  ;;  %v1051_v54 = vrot.slane %v1035_v27, 1  ;;  %v688_v27 = vmul.f32 %v7709_v47, %v440_v15  ;;  %v768_v47 = vmul.f32 %v7726_v29, %v440_v15  ;;  %v770_v29 = vmul.f32 %v7724_v11, %v442_v35 }
 0x21f   : > { %v8305_v43 = vpop.permute.xlu0 %3590  ;;  %v8307_v10 = vpop.permute.xlu1 %3592  ;;  %v1052_v48 = vsel %vm867_vm0, %v1050_v6, %v1051_v54  ;;  %v1060_v62 = vsel %vm867_vm0, %v1051_v54, %v12094_v45  ;;  %v690_v54 = vmul.f32 %v7707_v46, %v442_v35 }
 0x220   : > { %12427 = vst [vmem:[#allocation85_spill] sm:$0xff] %v8305_v43  ;;  %12428 = vst [vmem:[#allocation86_spill] sm:$0xff] %v8307_v10  ;;  %v441_v10 = vld [vmem:[#allocation2 + $0x10] sm:$0x1f]  ;;  %v8428_v43 = vld [vmem:[#allocation2 + $0x20] sm:$0x7f] }
 0x221   : > { %1146 = vrot.lane.b32.xlu0 %v1139_v60, %s7157_s18  ;;  %1148 = vrot.lane.b32.xlu1 %v1141_v57, %s7157_s18  ;;  %v689_v57 = vmul.f32 %v8153_v22, %v441_v10  ;;  %v1376_v22 = vmul.f32 %v8221_v13, %v7747_v7  ;;  %v769_v46 = vmul.f32 %v8189_v23, %v441_v10 }
 0x223   : > { %v8315_v36 = vpop.permute.xlu0 %3250  ;;  %v8317_v9 = vpop.permute.xlu1 %3252  ;;  %v1394_v13 = vrot.slane %v1376_v22, 1 }
 0x224   : > { %12429 = vst [vmem:[#allocation87_spill] sm:$0xff] %v8315_v36  ;;  %12430 = vst [vmem:[#allocation88_spill] sm:$0xff] %v8317_v9  ;;  %v6780_v9 = vld [vmem:[#allocation2 + $0x18] sm:$0xc0] }
 0x225   : > { %1065 = vrot.lane.b32.xlu0 %v1052_v48, %s7157_s18  ;;  %1071 = vrot.lane.b32.xlu1 %v1060_v62, %s7157_s18  ;;  %v1372_v48 = vsel %vm757_vm8, %v7747_v7, %v7745_v5 }
 0x226   : > { %v1377_v45 = vmul.f32 %v8227_v55, %v1372_v48  ;;  %v1381_v55 = vmul.f32 %v8049_v59, %v7745_v5  ;;  %v8368_v23 = vmul.f32 %v8247_v0, %v1372_v48  ;;  %v1474_v0 = vsel %vm457_vm1, %v7756_v25, %v7754_v21 }
 0x227   : > { %v8325_v19 = vpop.permute.xlu0 %3254  ;;  %v8328_v60 = vpop.permute.xlu1 %3961 }
 0x228   : > { %12431 = vst [vmem:[#allocation89_spill] sm:$0xff] %v8325_v19  ;;  %v1401_v22 = vrot.slane %v1381_v55, 1 }
 0x229   : > { %712 = vrot.lane.b32.xlu0 %v688_v27, %s7159_s16  ;;  %714 = vrot.lane.b32.xlu1 %v689_v57, %s7159_s16  ;;  %v1379_v27 = vmul.f32 %v8170_v41, %v7747_v7  ;;  %v1380_v57 = vmul.f32 %v8180_v16, %v1372_v48 }
 0x22b   : > { %v8336_v6 = vpop.permute.xlu0 %3963  ;;  %v8339_v62 = vpop.permute.xlu1 %3965  ;;  %v1395_v36 = vrot.slane %v1379_v27, 1 }
 0x22c   : > { %12432 = vst [vmem:[#allocation90_spill] sm:$0xff] %v8339_v62  ;;  %v1378_v62 = vmul.f32 %v6780_v9, %v7745_v5 }
 0x22d   : > { %716 = vrot.lane.b32.xlu0 %v690_v54, %s7159_s16  ;;  %792 = vrot.lane.b32.xlu1 %v768_v47, %s7159_s16  ;;  %v1397_v54 = vrot.slane %v1377_v45, 1  ;;  %v1398_v47 = vrot.slane %v1380_v57, 1  ;;  %v1396_v35 = vsel %vm867_vm0, %v1394_v13, %v1395_v36 }
 0x22e   : > { %v1400_v9 = vrot.slane %v1378_v62, 1  ;;  %v12098_v62 = vrot.slane %v8368_v23, 1 }
 0x22f   : > { %v8350_v19 = vpop.permute.xlu0 %3967  ;;  %v8354_v15 = vpop.permute.xlu1 %3969  ;;  %v1399_v45 = vsel %vm867_vm0, %v1397_v54, %v1398_v47 }
 0x230   : > { %12433 = vst [vmem:[#allocation91_spill] sm:$0xff] %v8350_v19  ;;  %12434 = vst [vmem:[#allocation92_spill] sm:$0xff] %v8354_v15  ;;  %v8362_v19 = vmul.f32 %v8241_v24, %v7747_v7  ;;  %v6781_v24 = vld [vmem:[#allocation2 + $0x38] sm:$0x3f] }
 0x231   : > { %794 = vrot.lane.b32.xlu0 %v769_v46, %s7159_s16  ;;  %796 = vrot.lane.b32.xlu1 %v770_v29, %s7159_s16  ;;  %v8377_v27 = vmul.f32 %v6781_v24, %v7745_v5  ;;  %v1402_v46 = vsel %vm867_vm0, %v1400_v9, %v1401_v22  ;;  %v6782_v29 = vld [vmem:[#allocation2 + $0x30] sm:$0x80]  ;;  %v1481_v5 = vmul.f32 %v8049_v59, %v7756_v25 }
 0x232   : > { %v12096_v7 = vrot.slane %v8362_v19, 1  ;;  %v1478_v13 = vmul.f32 %v6782_v29, %v7756_v25  ;;  %v1482_v9 = vmul.f32 %v8170_v41, %v1474_v0 }
 0x233   : > { %v8365_v11 = vpop.permute.xlu0 %3971  ;;  %v8370_v10 = vpop.permute.xlu1 %3594 }
 0x234   : > { %12435 = vst [vmem:[#allocation93_spill] sm:$0xff] %v8365_v11  ;;  %12436 = vst [vmem:[#allocation94_spill] sm:$0xff] %v8370_v10  ;;  %v1404_v55 = vsel %vm867_vm0, %v1395_v36, %v12096_v7  ;;  %v1498_v36 = vrot.slane %v1481_v5, 2  ;;  %v8409_v7 = vld [vmem:[#allocation2 + $0x58] sm:$0x80]  ;;  %v1483_v10 = vmul.f32 %v8180_v16, %v7754_v21 }
 0x235   : > { %1409 = vrot.lane.b32.xlu0 %v1396_v35, %s7158_s17  ;;  %1411 = vrot.lane.b32.xlu1 %v1399_v45, %s7158_s17  ;;  %v8397_v35 = vld [vmem:[#allocation2] sm:$0x80]  ;;  %v1480_v54 = vmul.f32 %v8409_v7, %v7754_v21 }
 0x236   : > { %v1479_v45 = vmul.f32 %v8397_v35, %v1474_v0 }
 0x237   : > { %v8383_v48 = vpop.permute.xlu0 %3596  ;;  %v8386_v57 = vpop.permute.xlu1 %3598 }
 0x238   : > { %12437 = vst [vmem:[#allocation95_spill] sm:$0xff] %v8383_v48  ;;  %12438 = vst [vmem:[#allocation96_spill] sm:$0xff] %v8386_v57  ;;  %v1497_v57 = vrot.slane %v1478_v13, 2  ;;  %v1500_v11 = vrot.slane %v1479_v45, 2 }
 0x239   : > { %1413 = vrot.lane.b32.xlu0 %v1402_v46, %s7158_s17  ;;  %1415 = vrot.lane.b32.xlu1 %v1404_v55, %s7158_s17  ;;  %v1406_v46 = vsel %vm867_vm0, %v1398_v47, %v12098_v62  ;;  %v12441_v55 = vrot.slane %v8377_v27, 1  ;;  %v1501_v47 = vrot.slane %v1482_v9, 2  ;;  %v6785_v62 = vld [vmem:[#allocation2 + $0x40] sm:$0x7f] }
 0x23a   : > { %v8420_v13 = vmul.f32 %v6785_v62, %v7756_v25 }
 0x23b   : > { %v8402_v24 = vpop.permute.xlu0 %4305  ;;  %v8407_v29 = vpop.permute.xlu1 %4307  ;;  %v1408_v48 = vsel %vm867_vm0, %v1401_v22, %v12441_v55  ;;  %v8431_v22 = vmul.f32 %v8428_v43, %v1474_v0  ;;  %v1502_v25 = vsel %vm1496_vm2, %v1500_v11, %v1501_v47 }
 0x23c   : > { %12439 = vst [vmem:[#allocation97_spill] sm:$0xff] %v8402_v24  ;;  %12440 = vst [vmem:[#allocation98_spill] sm:$0xff] %v8407_v29  ;;  %v1499_v24 = vsel %vm1496_vm2, %v1497_v57, %v1498_v36  ;;  %v1503_v29 = vrot.slane %v1480_v54, 2  ;;  %v12102_v62 = vrot.slane %v8420_v13, 2 }
 0x23d   : > { %1417 = vrot.lane.b32.xlu0 %v1406_v46, %s7158_s17  ;;  %1419 = vrot.lane.b32.xlu1 %v1408_v48, %s7158_s17  ;;  %v1504_v46 = vrot.slane %v1483_v10, 2  ;;  %v8436_v48 = vld [vmem:[#allocation2 + $0x10] sm:$0x7f]  ;;  %v1737_v57 = vld [vmem:[#allocation6 + $0x21] ss:$8 sm:$0x3] }
 0x23e   : > { %v8440_v45 = vmul.f32 %v8436_v48, %v7754_v21  ;;  %v12105_v9 = vrot.slane %v8431_v22, 2  ;;  %v1507_v11 = vsel %vm1496_vm2, %v1498_v36, %v12102_v62 }
 0x23f   : > { %v8423_v5 = vpop.permute.xlu0 %4309  ;;  %v8425_v15 = vpop.permute.xlu1 %4311  ;;  %v1505_v0 = vsel %vm1496_vm2, %v1503_v29, %v1504_v46 }
 0x240   : > { %12442 = vst [vmem:[#allocation99_spill] sm:$0xff] %v8425_v15  ;;  %v12104_v21 = vrot.slane %v8440_v45, 2  ;;  %v1509_v29 = vsel %vm1496_vm2, %v1501_v47, %v12105_v9  ;;  %v12449_v47 = vrot.slane %v8244_v2, 1  ;;  %v12453_v2 = vrot.slane %v8269_v37, 1 }
 0x241   : > { %1512 = vrot.lane.b32.xlu0 %v1499_v24, %s7156_s21  ;;  %1514 = vrot.lane.b32.xlu1 %v1502_v25, %s7156_s21  ;;  %v1742_v24 = vrot.slane %v1737_v57, %v7421_v3  ;;  %v1746_v25 = vrot.slane %v1737_v57, %v7424_v4 }
 0x242   : > { %v1511_v36 = vsel %vm1496_vm2, %v1504_v46, %v12104_v21  ;;  %v12450_v46 = vrot.slane %v8251_v8, 1  ;;  %v1819_v8 = vsel %vm596_vm3, %v7770_v33, %v7768_v28 }
 0x243   : > { %v8443_v10 = vpop.permute.xlu0 %4313  ;;  %v8445_v54 = vpop.permute.xlu1 %4315  ;;  %v1750_v57 = vmul.f32 %v8409_v7, %v1746_v25  ;;  %v8484_v21 = vmul.f32 %v8428_v43, %v1742_v24 }
 0x244   : > { %12443 = vst [vmem:[#allocation100_spill] sm:$0xff] %v8443_v10  ;;  %12444 = vst [vmem:[#allocation101_spill] sm:$0xff] %v8445_v54  ;;  %v8489_v10 = vmul.f32 %v8436_v48, %v1746_v25 }
 0x245   : > { %1516 = vrot.lane.b32.xlu0 %v1505_v0, %s7156_s21  ;;  %1518 = vrot.lane.b32.xlu1 %v1507_v11, %s7156_s21  ;;  %v1749_v0 = vmul.f32 %v8397_v35, %v1742_v24  ;;  %v1751_v11 = vmul.f32 %v8170_v41, %v1742_v24  ;;  %v12454_v24 = vrot.slane %v8276_v63, 1  ;;  %v1824_v63 = vmul.f32 %v8409_v7, %v1819_v8 }
 0x247   : > { %v8456_v55 = vpop.permute.xlu0 %3973  ;;  %v8459_v54 = vpop.permute.xlu1 %3975 }
 0x248   : > { %12445 = vst [vmem:[#allocation102_spill] sm:$0xff] %v8456_v55  ;;  %12446 = vst [vmem:[#allocation103_spill] sm:$0xff] %v8459_v54  ;;  %v1752_v55 = vmul.f32 %v8180_v16, %v1746_v25 }
 0x249   : > { %1520 = vrot.lane.b32.xlu0 %v1509_v29, %s7156_s21  ;;  %1522 = vrot.lane.b32.xlu1 %v1511_v36, %s7156_s21  ;;  %v1761_v29 = vrot.slane %v1749_v0, 2  ;;  %v1762_v36 = vrot.slane %v1751_v11, 2 }
 0x24a   : > { %v1765_v15 = vrot.slane %v1752_v55, 2  ;;  %v12109_v55 = vrot.slane %v8484_v21, 2 }
 0x24b   : > { %v8471_v62 = vpop.permute.xlu0 %3977  ;;  %v8475_v54 = vpop.permute.xlu1 %4317  ;;  %v1763_v0 = vsel %vm1496_vm2, %v1761_v29, %v1762_v36  ;;  %v1827_v29 = vmul.f32 %v8180_v16, %v1819_v8 }
 0x24c   : > { %12447 = vst [vmem:[#allocation104_spill] sm:$0xff] %v8471_v62  ;;  %12448 = vst [vmem:[#allocation105_spill] sm:$0xff] %v8475_v54  ;;  %v1764_v62 = vrot.slane %v1750_v57, 2  ;;  %v12110_v57 = vrot.slane %v8489_v10, 2 }
 0x24d   : > { %1079 = vrot.lane.b32.xlu0 %v12449_v47, %s7157_s18  ;;  %1081 = vrot.lane.b32.xlu1 %v12450_v46, %s7157_s18  ;;  %v1823_v47 = vmul.f32 %v8397_v35, %v7770_v33  ;;  %v1826_v46 = vmul.f32 %v8170_v41, %v7770_v33 }
 0x24e   : > { %v1766_v11 = vsel %vm1496_vm2, %v1764_v62, %v1765_v15  ;;  %v1768_v62 = vsel %vm1496_vm2, %v1762_v36, %v12109_v55  ;;  %v1770_v35 = vsel %vm1496_vm2, %v1765_v15, %v12110_v57  ;;  %v1845_v36 = vrot.slane %v1827_v29, 2 }
 0x24f   : > { %v8486_v9 = vpop.permute.xlu0 %4319  ;;  %v8491_v54 = vpop.permute.xlu1 %4321  ;;  %v8534_v55 = vmul.f32 %v8428_v43, %v7770_v33  ;;  %v6789_v43 = vld [vmem:[#allocation2 + $0x38] sm:$0x7f] }
 0x250   : > { %12451 = vst [vmem:[#allocation106_spill] sm:$0xff] %v8486_v9  ;;  %12452 = vst [vmem:[#allocation107_spill] sm:$0xff] %v8491_v54  ;;  %v1844_v54 = vrot.slane %v1824_v63, 2  ;;  %v8549_v29 = vmul.f32 %v6789_v43, %v7768_v28  ;;  %v2779_v43 = vld [vmem:[#allocation6 + $0x36] ss:$8 sm:$0x3] }
 0x251   : > { %1150 = vrot.lane.b32.xlu0 %v12453_v2, %s7157_s18  ;;  %1152 = vrot.lane.b32.xlu1 %v12454_v24, %s7157_s18  ;;  %v12114_v33 = vrot.slane %v8534_v55, 2 }
 0x252   : > { %v1846_v63 = vsel %vm1496_vm2, %v1844_v54, %v1845_v36 }
 0x253   : > { %v8504_v25 = vpop.permute.xlu0 %930  ;;  %v8508_v37 = vpop.permute.xlu1 %932 }
 0x254   : > { %12455 = vst [vmem:[#allocation108_spill] sm:$0xff] %v8504_v25  ;;  %12456 = vst [vmem:[#allocation109_spill] sm:$0xff] %v8508_v37  ;;  %v1841_v25 = vrot.slane %v1823_v47, 2  ;;  %v6788_v37 = vld [vmem:[#allocation2 + $0x18] sm:$0x80] }
 0x255   : > { %1771 = vrot.lane.b32.xlu0 %v1763_v0, %s7155_s24  ;;  %1773 = vrot.lane.b32.xlu1 %v1766_v11, %s7155_s24  ;;  %v1842_v0 = vrot.slane %v1826_v46, 2  ;;  %v1825_v7 = vmul.f32 %v6788_v37, %v7768_v28  ;;  %v1828_v11 = vmul.f32 %v8049_v59, %v7768_v28 }
 0x257   : > { %v8521_v2 = vpop.permute.xlu0 %592  ;;  %v8526_v24 = vpop.permute.xlu1 %594  ;;  %v1843_v46 = vsel %vm1496_vm2, %v1841_v25, %v1842_v0  ;;  %v1847_v37 = vrot.slane %v1825_v7, 2  ;;  %v1848_v57 = vrot.slane %v1828_v11, 2  ;;  %v1851_v54 = vsel %vm1496_vm2, %v1842_v0, %v12114_v33  ;;  %v2709_v7 = vld [vmem:[#allocation6 + $0x35] ss:$8 sm:$0x3] }
 0x258   : > { %12457 = vst [vmem:[#allocation110_spill] sm:$0xff] %v8521_v2  ;;  %12458 = vst [vmem:[#allocation111_spill] sm:$0xff] %v8526_v24  ;;  %v8543_v2 = vmul.f32 %v8436_v48, %v1819_v8  ;;  %v12112_v8 = vrot.slane %v8549_v29, 2  ;;  %v2714_v0 = vrot.slane %v2709_v7, %v7421_v3 }
 0x259   : > { %1775 = vrot.lane.b32.xlu0 %v1768_v62, %s7155_s24  ;;  %1777 = vrot.lane.b32.xlu1 %v1770_v35, %s7155_s24  ;;  %v1849_v35 = vsel %vm1496_vm2, %v1847_v37, %v1848_v57 }
 0x25a   : > { %v12113_v48 = vrot.slane %v8543_v2, 2  ;;  %v1855_v37 = vsel %vm1496_vm2, %v1848_v57, %v12112_v8 }
 0x25b   : > { %v8537_v15 = vpop.permute.xlu0 %1274  ;;  %v8539_v47 = vpop.permute.xlu1 %1276 }
 0x25c   : > { %12459 = vst [vmem:[#allocation112_spill] sm:$0xff] %v8537_v15  ;;  %12460 = vst [vmem:[#allocation113_spill] sm:$0xff] %v8539_v47  ;;  %v12615_v15 = vld [vmem:[#allocation25_spill] sm:$0xff] }
 0x25d   : > { %1856 = vrot.lane.b32.xlu0 %v1843_v46, %s7155_s24  ;;  %1858 = vrot.lane.b32.xlu1 %v1846_v63, %s7155_s24  ;;  %v1853_v46 = vsel %vm1496_vm2, %v1845_v36, %v12113_v48  ;;  %v2718_v36 = vrot.slane %v2709_v7, %v7424_v4  ;;  %v2788_v48 = vrot.slane %v2779_v43, %v7424_v4 }
 0x25f   : > { %v8552_v62 = vpop.permute.xlu0 %491  ;;  %v8554_v25 = vpop.permute.xlu1 %493 }
 0x260   : > { %12461 = vst [vmem:[#allocation114_spill] sm:$0xff] %v8552_v62  ;;  %12462 = vst [vmem:[#allocation115_spill] sm:$0xff] %v8554_v25 }
 0x261   : > { %1860 = vrot.lane.b32.xlu0 %v1849_v35, %s7155_s24  ;;  %1862 = vrot.lane.b32.xlu1 %v1851_v54, %s7155_s24  ;;  %v12467_v54 = vrot.slane %v8299_v32, 1 }
 0x263   : > { %v8564_v28 = vpop.permute.xlu0 %529  ;;  %v8566_v11 = vpop.permute.xlu1 %531 }
 0x264   : > { %12463 = vst [vmem:[#allocation116_spill] sm:$0xff] %v8564_v28  ;;  %12464 = vst [vmem:[#allocation117_spill] sm:$0xff] %v8566_v11 }
 0x265   : > { %1864 = vrot.lane.b32.xlu0 %v1853_v46, %s7155_s24  ;;  %1866 = vrot.lane.b32.xlu1 %v1855_v37, %s7155_s24  ;;  %v2784_v46 = vrot.slane %v2779_v43, %v7421_v3  ;;  %v2896_v37 = vld [vmem:[#allocation6 + $0x40] ss:$8 sm:$0x3]  ;;  %v12474_v43 = vrot.slane %v8362_v19, 1  ;;  %v2103_v19 = vmul.f32 %v8049_v59, %v7782_v39 }
 0x266   : > { %v2901_v32 = vrot.slane %v2896_v37, %v7421_v3 }
 0x267   : > { %v8577_v63 = vpop.permute.xlu0 %1653  ;;  %v8579_v35 = vpop.permute.xlu1 %1655 }
 0x268   : > { %12465 = vst [vmem:[#allocation118_spill] sm:$0xff] %v8577_v63  ;;  %12466 = vst [vmem:[#allocation119_spill] sm:$0xff] %v8579_v35 }
 0x269   : > { %1077 = vrot.lane.b32.xlu0 %v12467_v54, %s7157_s18  ;;  %2719 = vrot.lane.b32.xlu1 %v2714_v0, %s7155_s24  ;;  %v2905_v0 = vrot.slane %v2896_v37, %v7424_v4  ;;  %v12478_v37 = vrot.slane %v8377_v27, 1 }
 0x26b   : > { %v8587_v57 = vpop.permute.xlu0 %700  ;;  %v8589_v8 = vpop.permute.xlu1 %702 }
 0x26c   : > { %12468 = vst [vmem:[#allocation120_spill] sm:$0xff] %v8587_v57  ;;  %12469 = vst [vmem:[#allocation121_spill] sm:$0xff] %v8589_v8 }
 0x26d   : > { %2721 = vrot.lane.b32.xlu0 %v2718_v36, %s7155_s24  ;;  %2789 = vrot.lane.b32.xlu1 %v2784_v46, %s7157_s18 }
 0x26f   : > { %v8595_v54 = vpop.permute.xlu0 %704  ;;  %v8597_v7 = vpop.permute.xlu1 %706 }
 0x270   : > { %12470 = vst [vmem:[#allocation122_spill] sm:$0xff] %v8595_v54  ;;  %12471 = vst [vmem:[#allocation123_spill] sm:$0xff] %v8597_v7  ;;  %v2188_v7 = vmul.f32 %v8180_v16, %v7790_v30 }
 0x271   : > { %2791 = vrot.lane.b32.xlu0 %v2788_v48, %s7157_s18  ;;  %2906 = vrot.lane.b32.xlu1 %v2901_v32, %s7153_s11  ;;  %v12477_v48 = vrot.slane %v8368_v23, 1  ;;  %v12482_v23 = vrot.slane %v8431_v22, 2  ;;  %v12485_v22 = vrot.slane %v8440_v45, 2 }
 0x273   : > { %v8602_v33 = vpop.permute.xlu0 %708  ;;  %v8604_v57 = vpop.permute.xlu1 %710 }
 0x274   : > { %12472 = vst [vmem:[#allocation124_spill] sm:$0xff] %v8602_v33  ;;  %12473 = vst [vmem:[#allocation125_spill] sm:$0xff] %v8604_v57 }
 0x275   : > { %2908 = vrot.lane.b32.xlu0 %v2905_v0, %s7153_s11  ;;  %1421 = vrot.lane.b32.xlu1 %v12474_v43, %s7158_s17  ;;  %v2099_v0 = vsel %vm457_vm1, %v7782_v39, %v7780_v38 }
 0x276   : > { %v2104_v27 = vmul.f32 %v8170_v41, %v2099_v0 }
 0x277   : > { %v8610_v36 = vpop.permute.xlu0 %780  ;;  %v8612_v46 = vpop.permute.xlu1 %782 }
 0x278   : > { %12475 = vst [vmem:[#allocation126_spill] sm:$0xff] %v8610_v36  ;;  %12476 = vst [vmem:[#allocation127_spill] sm:$0xff] %v8612_v46  ;;  %v12481_v36 = vrot.slane %v8420_v13, 2 }
 0x279   : > { %1423 = vrot.lane.b32.xlu0 %v12477_v48, %s7158_s17  ;;  %1425 = vrot.lane.b32.xlu1 %v12478_v37, %s7158_s17  ;;  %v2105_v37 = vmul.f32 %v8180_v16, %v7780_v38 }
 0x27b   : > { %v8620_v32 = vpop.permute.xlu0 %784  ;;  %v8627_v43 = vpop.permute.xlu1 %786 }
 0x27c   : > { %12479 = vst [vmem:[#allocation128_spill] sm:$0xff] %v8620_v32  ;;  %12480 = vst [vmem:[#allocation129_spill] sm:$0xff] %v8627_v43  ;;  %v8640_v32 = vrot.slane %v2103_v19, 3  ;;  %v8644_v43 = vld [vmem:[#allocation2 + $0x20] sm:$0xff] }
 0x27d   : > { %1524 = vrot.lane.b32.xlu0 %v12481_v36, %s7156_s21  ;;  %1526 = vrot.lane.b32.xlu1 %v12482_v23, %s7156_s21  ;;  %v8647_v13 = vmul.f32 %v8644_v43, %v2099_v0  ;;  %v2117_v36 = vrot.slane %v2104_v27, 3 }
 0x27f   : > { %v8636_v48 = vpop.permute.xlu0 %788  ;;  %v8642_v39 = vpop.permute.xlu1 %790  ;;  %v12125_v0 = vrot.slane %v8647_v13, 3 }
 0x280   : > { %12483 = vst [vmem:[#allocation130_spill] sm:$0xff] %v8636_v48  ;;  %12484 = vst [vmem:[#allocation131_spill] sm:$0xff] %v8642_v39  ;;  %v8656_v48 = vld [vmem:[#allocation2 + $0x10] sm:$0xff]  ;;  %v2118_v39 = vrot.slane %v2105_v37, 3 }
 0x281   : > { %1528 = vrot.lane.b32.xlu0 %v12485_v22, %s7156_s21  ;;  %2125 = vrot.lane.b32.xlu1 %v8640_v32, %s7153_s11  ;;  %v8660_v19 = vmul.f32 %v8656_v48, %v7780_v38  ;;  %v2182_v22 = vsel %vm495_vm4, %v7792_v42, %v7790_v30  ;;  %v2186_v38 = vmul.f32 %v8049_v59, %v7792_v42 }
 0x282   : > { %v2122_v57 = vsel %vm2115_vm7, %v2117_v36, %v12125_v0  ;;  %v2187_v27 = vmul.f32 %v8170_v41, %v2182_v22  ;;  %v8696_v8 = vmul.f32 %v8644_v43, %v2182_v22  ;;  %v2200_v0 = vrot.slane %v2188_v7, 3  ;;  %v3275_v22 = vld [vmem:[#allocation6 + $0x44] ss:$8 sm:$0x3] }
 0x283   : > { %v8654_v23 = vpop.permute.xlu0 %1997  ;;  %v8662_v46 = vpop.permute.xlu1 %1999  ;;  %v8688_v33 = vrot.slane %v2186_v38, 3  ;;  %v8705_v38 = vmul.f32 %v8656_v48, %v7790_v30  ;;  %v3280_v7 = vrot.slane %v3275_v22, %v7421_v3 }
 0x284   : > { %12486 = vst [vmem:[#allocation132_spill] sm:$0xff] %v8654_v23  ;;  %12487 = vst [vmem:[#allocation133_spill] sm:$0xff] %v8662_v46  ;;  %v9088_v23 = vld [vmem:[#allocation2 + $0x70] sm:$0x1] }
 0x285   : > { %2127 = vrot.lane.b32.xlu0 %v2117_v36, %s7153_s11  ;;  %2129 = vrot.lane.b32.xlu1 %v2118_v39, %s7153_s11 }
 0x287   : > { %v8667_v45 = vpop.permute.xlu0 %1067  ;;  %v8675_v37 = vpop.permute.xlu1 %1069 }
 0x288   : > { %12488 = vst [vmem:[#allocation134_spill] sm:$0xff] %v8667_v45  ;;  %12489 = vst [vmem:[#allocation135_spill] sm:$0xff] %v8675_v37  ;;  %v12492_v37 = vrot.slane %v8660_v19, 3 }
 0x289   : > { %2131 = vrot.lane.b32.xlu0 %v8640_v32, %s7153_s11  ;;  %2133 = vrot.lane.b32.xlu1 %v2122_v57, %s7153_s11  ;;  %v2199_v57 = vrot.slane %v2187_v27, 3  ;;  %v12133_v27 = vrot.slane %v8705_v38, 3 }
 0x28a   : > { %v2124_v54 = vsel %vm2115_vm7, %v2118_v39, %v12492_v37  ;;  %v12132_v39 = vrot.slane %v8696_v8, 3 }
 0x28b   : > { %v8684_v45 = vpop.permute.xlu0 %1073  ;;  %v8690_v42 = vpop.permute.xlu1 %1075 }
 0x28c   : > { %12490 = vst [vmem:[#allocation136_spill] sm:$0xff] %v8684_v45  ;;  %12491 = vst [vmem:[#allocation137_spill] sm:$0xff] %v8690_v42  ;;  %v2204_v30 = vsel %vm2115_vm7, %v2199_v57, %v12132_v39 }
 0x28d   : > { %2135 = vrot.lane.b32.xlu0 %v2124_v54, %s7153_s11  ;;  %2207 = vrot.lane.b32.xlu1 %v8688_v33, %s7153_s11 }
 0x28f   : > { %v8701_v36 = vpop.permute.xlu0 %1142  ;;  %v8707_v45 = vpop.permute.xlu1 %1144 }
 0x290   : > { %12493 = vst [vmem:[#allocation138_spill] sm:$0xff] %v8701_v36  ;;  %12494 = vst [vmem:[#allocation139_spill] sm:$0xff] %v8707_v45 }
 0x291   : > { %2209 = vrot.lane.b32.xlu0 %v2199_v57, %s7153_s11  ;;  %2211 = vrot.lane.b32.xlu1 %v2200_v0, %s7153_s11 }
 0x293   : > { %v8712_v54 = vpop.permute.xlu0 %1146  ;;  %v8715_v37 = vpop.permute.xlu1 %1148 }
 0x294   : > { %12495 = vst [vmem:[#allocation140_spill] sm:$0xff] %v8712_v54  ;;  %12496 = vst [vmem:[#allocation141_spill] sm:$0xff] %v8715_v37  ;;  %v2206_v54 = vsel %vm2115_vm7, %v2200_v0, %v12133_v27  ;;  %v3284_v37 = vrot.slane %v3275_v22, %v7424_v4  ;;  %v2400_v0 = vsel %vm596_vm3, %v7800_v52, %v7802_v53  ;;  %v12505_v22 = vrot.slane %v8534_v55, 2 }
 0x295   : > { %2213 = vrot.lane.b32.xlu0 %v8688_v33, %s7153_s11  ;;  %2215 = vrot.lane.b32.xlu1 %v2204_v30, %s7153_s11  ;;  %v12501_v30 = vrot.slane %v8484_v21, 2  ;;  %v2404_v21 = vmul.f32 %v8170_v41, %v7800_v52  ;;  %v8764_v27 = vmul.f32 %v8644_v43, %v7800_v52  ;;  %v12509_v55 = vrot.slane %v8549_v29, 2 }
 0x297   : > { %v8724_v36 = vpop.permute.xlu0 %1065  ;;  %v8726_v45 = vpop.permute.xlu1 %1071 }
 0x298   : > { %12497 = vst [vmem:[#allocation142_spill] sm:$0xff] %v8724_v36  ;;  %12498 = vst [vmem:[#allocation143_spill] sm:$0xff] %v8726_v45 }
 0x299   : > { %2217 = vrot.lane.b32.xlu0 %v2206_v54, %s7153_s11  ;;  %3285 = vrot.lane.b32.xlu1 %v3280_v7, %s7155_s24  ;;  %v12504_v54 = vrot.slane %v8489_v10, 2  ;;  %v2405_v7 = vmul.f32 %v8180_v16, %v2400_v0  ;;  %v12508_v10 = vrot.slane %v8543_v2, 2 }
 0x29b   : > { %v8734_v42 = vpop.permute.xlu0 %712  ;;  %v8736_v57 = vpop.permute.xlu1 %714 }
 0x29c   : > { %12499 = vst [vmem:[#allocation144_spill] sm:$0xff] %v8734_v42  ;;  %12500 = vst [vmem:[#allocation145_spill] sm:$0xff] %v8736_v57 }
 0x29d   : > { %3287 = vrot.lane.b32.xlu0 %v3284_v37, %s7155_s24  ;;  %1779 = vrot.lane.b32.xlu1 %v12501_v30, %s7155_s24 }
 0x29f   : > { %v8742_v39 = vpop.permute.xlu0 %716  ;;  %v8744_v45 = vpop.permute.xlu1 %792 }
 0x2a0   : > { %12502 = vst [vmem:[#allocation146_spill] sm:$0xff] %v8742_v39  ;;  %12503 = vst [vmem:[#allocation147_spill] sm:$0xff] %v8744_v45  ;;  %v12138_v39 = vrot.slane %v8764_v27, 3 }
 0x2a1   : > { %1781 = vrot.lane.b32.xlu0 %v12504_v54, %s7155_s24  ;;  %1868 = vrot.lane.b32.xlu1 %v12505_v22, %s7155_s24  ;;  %v2416_v54 = vrot.slane %v2404_v21, 3  ;;  %v2406_v22 = vmul.f32 %v8049_v59, %v7802_v53 }
 0x2a3   : > { %v8757_v37 = vpop.permute.xlu0 %794  ;;  %v8760_v30 = vpop.permute.xlu1 %796  ;;  %v8784_v2 = vrot.slane %v2406_v22, 3 }
 0x2a4   : > { %12506 = vst [vmem:[#allocation148_spill] sm:$0xff] %v8757_v37  ;;  %12507 = vst [vmem:[#allocation149_spill] sm:$0xff] %v8760_v30  ;;  %v8777_v30 = vmul.f32 %v8656_v48, %v2400_v0  ;;  %v2417_v37 = vrot.slane %v2405_v7, 3  ;;  %v2482_v0 = vsel %vm677_vm5, %v7811_v1, %v7813_v61  ;;  %v2420_v7 = vsel %vm2115_vm7, %v2416_v54, %v12138_v39 }
 0x2a5   : > { %1870 = vrot.lane.b32.xlu0 %v12508_v10, %s7155_s24  ;;  %1872 = vrot.lane.b32.xlu1 %v12509_v55, %s7155_s24  ;;  %v2486_v10 = vmul.f32 %v8170_v41, %v7811_v1  ;;  %v2487_v22 = vmul.f32 %v8180_v16, %v2482_v0  ;;  %v2488_v41 = vmul.f32 %v8049_v59, %v7813_v61  ;;  %v3619_v59 = vld [vmem:[#allocation6 + $0x50] ss:$8 sm:$0x3] }
 0x2a6   : > { %v2490_v16 = vmul.f32 %v8656_v48, %v2482_v0 }
 0x2a7   : > { %v8774_v45 = vpop.permute.xlu0 %1409  ;;  %v8779_v52 = vpop.permute.xlu1 %1411  ;;  %v2499_v39 = vrot.slane %v2487_v22, 3 }
 0x2a8   : > { %12510 = vst [vmem:[#allocation150_spill] sm:$0xff] %v8774_v45  ;;  %12511 = vst [vmem:[#allocation151_spill] sm:$0xff] %v8779_v52  ;;  %v2489_v45 = vmul.f32 %v8644_v43, %v7811_v1  ;;  %v2500_v1 = vrot.slane %v2488_v41, 3  ;;  %v3624_v41 = vrot.slane %v3619_v59, %v7421_v3 }
 0x2a9   : > { %2425 = vrot.lane.b32.xlu0 %v2416_v54, %s7154_s19  ;;  %2427 = vrot.lane.b32.xlu1 %v2417_v37, %s7154_s19  ;;  %v2498_v54 = vrot.slane %v2486_v10, 3 }
 0x2ab   : > { %v8786_v29 = vpop.permute.xlu0 %1413  ;;  %v8789_v21 = vpop.permute.xlu1 %1415 }
 0x2ac   : > { %12512 = vst [vmem:[#allocation152_spill] sm:$0xff] %v8786_v29  ;;  %12513 = vst [vmem:[#allocation153_spill] sm:$0xff] %v8789_v21  ;;  %v12516_v21 = vrot.slane %v8777_v30, 3 }
 0x2ad   : > { %2429 = vrot.lane.b32.xlu0 %v8784_v2, %s7154_s19  ;;  %2431 = vrot.lane.b32.xlu1 %v2420_v7, %s7154_s19 }
 0x2ae   : > { %v2422_v29 = vsel %vm2115_vm7, %v2417_v37, %v12516_v21  ;;  %v2501_v37 = vrot.slane %v2489_v45, 3  ;;  %v2503_v21 = vrot.slane %v2490_v16, 3  ;;  %v3628_v16 = vrot.slane %v3619_v59, %v7424_v4 }
 0x2af   : > { %v8802_v55 = vpop.permute.xlu0 %1417  ;;  %v8805_v53 = vpop.permute.xlu1 %1419 }
 0x2b0   : > { %12514 = vst [vmem:[#allocation154_spill] sm:$0xff] %v8802_v55  ;;  %12515 = vst [vmem:[#allocation155_spill] sm:$0xff] %v8805_v53  ;;  %v2502_v61 = vsel %vm2115_vm7, %v2498_v54, %v2501_v37  ;;  %v2504_v22 = vsel %vm2115_vm7, %v2499_v39, %v2503_v21 }
 0x2b1   : > { %2433 = vrot.lane.b32.xlu0 %v2422_v29, %s7154_s19  ;;  %2435 = vrot.lane.b32.xlu1 %v8784_v2, %s7154_s19 }
 0x2b3   : > { %v8817_v7 = vpop.permute.xlu0 %1512  ;;  %v8820_v53 = vpop.permute.xlu1 %1514 }
 0x2b4   : > { %12517 = vst [vmem:[#allocation156_spill] sm:$0xff] %v8817_v7  ;;  %12518 = vst [vmem:[#allocation157_spill] sm:$0xff] %v8820_v53 }
 0x2b5   : > { %2507 = vrot.lane.b32.xlu0 %v2498_v54, %s7154_s19  ;;  %2509 = vrot.lane.b32.xlu1 %v2499_v39, %s7154_s19  ;;  %v12527_v39 = vrot.slane %v8647_v13, 3 }
 0x2b7   : > { %v8824_v29 = vpop.permute.xlu0 %1516  ;;  %v8826_v10 = vpop.permute.xlu1 %1518 }
 0x2b8   : > { %12519 = vst [vmem:[#allocation158_spill] sm:$0xff] %v8824_v29  ;;  %12520 = vst [vmem:[#allocation159_spill] sm:$0xff] %v8826_v10 }
 0x2b9   : > { %2511 = vrot.lane.b32.xlu0 %v2500_v1, %s7154_s19  ;;  %2513 = vrot.lane.b32.xlu1 %v2502_v61, %s7154_s19 }
 0x2bb   : > { %v8831_v0 = vpop.permute.xlu0 %1520  ;;  %v8833_v45 = vpop.permute.xlu1 %1522 }
 0x2bc   : > { %12521 = vst [vmem:[#allocation160_spill] sm:$0xff] %v8831_v0  ;;  %12522 = vst [vmem:[#allocation161_spill] sm:$0xff] %v8833_v45  ;;  %v4342_v0 = vld [vmem:[#allocation6 + $0x60] ss:$8 sm:$0x3] }
 0x2bd   : > { %2515 = vrot.lane.b32.xlu0 %v2504_v22, %s7154_s19  ;;  %2517 = vrot.lane.b32.xlu1 %v2500_v1, %s7154_s19 }
 0x2bf   : > { %v8840_v10 = vpop.permute.xlu0 %1079  ;;  %v8842_v54 = vpop.permute.xlu1 %1081 }
 0x2c0   : > { %12523 = vst [vmem:[#allocation162_spill] sm:$0xff] %v8840_v10  ;;  %12524 = vst [vmem:[#allocation163_spill] sm:$0xff] %v8842_v54 }
 0x2c1   : > { %3629 = vrot.lane.b32.xlu0 %v3624_v41, %s7156_s21  ;;  %3631 = vrot.lane.b32.xlu1 %v3628_v16, %s7156_s21  ;;  %v12530_v41 = vrot.slane %v8660_v19, 3  ;;  %v3998_v16 = vld [vmem:[#allocation6 + $0x54] ss:$8 sm:$0x3] }
 0x2c2   : > { %v4003_v13 = vrot.slane %v3998_v16, %v7421_v3  ;;  %v4007_v19 = vrot.slane %v3998_v16, %v7424_v4 }
 0x2c3   : > { %v8846_v61 = vpop.permute.xlu0 %1150  ;;  %v8848_v45 = vpop.permute.xlu1 %1152 }
 0x2c4   : > { %12525 = vst [vmem:[#allocation164_spill] sm:$0xff] %v8846_v61  ;;  %12526 = vst [vmem:[#allocation165_spill] sm:$0xff] %v8848_v45 }
 0x2c5   : > { %2137 = vrot.lane.b32.xlu0 %v8640_v32, %s7153_s11  ;;  %2139 = vrot.lane.b32.xlu1 %v12527_v39, %s7153_s11  ;;  %v12533_v32 = vrot.slane %v8696_v8, 3  ;;  %v12534_v39 = vrot.slane %v8705_v38, 3  ;;  %v12540_v38 = vrot.slane %v8777_v30, 3 }
 0x2c7   : > { %v8855_v59 = vpop.permute.xlu0 %1771  ;;  %v8857_v22 = vpop.permute.xlu1 %1773 }
 0x2c8   : > { %12528 = vst [vmem:[#allocation166_spill] sm:$0xff] %v8855_v59  ;;  %12529 = vst [vmem:[#allocation167_spill] sm:$0xff] %v8857_v22 }
 0x2c9   : > { %2141 = vrot.lane.b32.xlu0 %v12530_v41, %s7153_s11  ;;  %2219 = vrot.lane.b32.xlu1 %v8688_v33, %s7153_s11 }
 0x2cb   : > { %v8864_v61 = vpop.permute.xlu0 %1775  ;;  %v8866_v45 = vpop.permute.xlu1 %1777 }
 0x2cc   : > { %12531 = vst [vmem:[#allocation168_spill] sm:$0xff] %v8864_v61  ;;  %12532 = vst [vmem:[#allocation169_spill] sm:$0xff] %v8866_v45 }
 0x2cd   : > { %2221 = vrot.lane.b32.xlu0 %v12533_v32, %s7153_s11  ;;  %2223 = vrot.lane.b32.xlu1 %v12534_v39, %s7153_s11  ;;  %v12539_v32 = vrot.slane %v8764_v27, 3  ;;  %v8894_v39 = vld [vmem:[#allocation2 + $0x68] sm:$0xfe] }
 0x2ce   : > { %v3008_v30 = vmul.f32 %v8075_v40, %v8894_v39 }
 0x2cf   : > { %v8876_v41 = vpop.permute.xlu0 %1856  ;;  %v8878_v33 = vpop.permute.xlu1 %1858 }
 0x2d0   : > { %12535 = vst [vmem:[#allocation170_spill] sm:$0xff] %v8876_v41  ;;  %12536 = vst [vmem:[#allocation171_spill] sm:$0xff] %v8878_v33  ;;  %v8933_v33 = vld [vmem:[#allocation2 + $0x40] sm:$0xff] }
 0x2d1   : > { %4008 = vrot.lane.b32.xlu0 %v4003_v13, %s7157_s18  ;;  %4010 = vrot.lane.b32.xlu1 %v4007_v19, %s7157_s18  ;;  %v8901_v13 = vsel %vm677_vm5, %v8075_v40, %v8086_v17  ;;  %v8903_v19 = vld [vmem:[#allocation2 + $0x8] sm:$0xfe] }
 0x2d3   : > { %v8882_v61 = vpop.permute.xlu0 %1860  ;;  %v8884_v8 = vpop.permute.xlu1 %1862 }
 0x2d4   : > { %12537 = vst [vmem:[#allocation172_spill] sm:$0xff] %v8882_v61  ;;  %12538 = vst [vmem:[#allocation173_spill] sm:$0xff] %v8884_v8  ;;  %v8919_v8 = vmul.f32 %v8644_v43, %v8075_v40  ;;  %v8929_v61 = vmul.f32 %v8656_v48, %v8901_v13 }
 0x2d5   : > { %2437 = vrot.lane.b32.xlu0 %v12539_v32, %s7154_s19  ;;  %2439 = vrot.lane.b32.xlu1 %v12540_v38, %s7154_s19  ;;  %v3009_v38 = vmul.f32 %v8901_v13, %v8903_v19 }
 0x2d6   : > { %v12549_v45 = vrot.slane %v8919_v8, 4 }
 0x2d7   : > { %v8892_v16 = vpop.permute.xlu0 %1864  ;;  %v8896_v41 = vpop.permute.xlu1 %1866 }
 0x2d8   : > { %12541 = vst [vmem:[#allocation174_spill] sm:$0xff] %v8892_v16  ;;  %12542 = vst [vmem:[#allocation175_spill] sm:$0xff] %v8896_v41  ;;  %v2628_v41 = vld [vmem:[#allocation2 + $0x48] sm:$0xfe] }
 0x2d9   : > { %2441 = vrot.lane.b32.xlu0 %v8784_v2, %s7154_s19  ;;  %2519 = vrot.lane.b32.xlu1 %v2501_v37, %s7154_s19  ;;  %v3026_v37 = vrot.slane %v3008_v30, 4 }
 0x2db   : > { %v8908_v27 = vpop.permute.xlu0 %1077  ;;  %v8912_v32 = vpop.permute.xlu1 %2719  ;;  %v3030_v59 = vsel %vm2674_vm11, %v3026_v37, %v12549_v45 }
 0x2dc   : > { %12543 = vst [vmem:[#allocation176_spill] sm:$0xff] %v8908_v27  ;;  %12544 = vst [vmem:[#allocation177_spill] sm:$0xff] %v8912_v32  ;;  %v3010_v27 = vmul.f32 %v8086_v17, %v2628_v41  ;;  %v3027_v32 = vrot.slane %v3009_v38, 4 }
 0x2dd   : > { %2521 = vrot.lane.b32.xlu0 %v2503_v21, %s7154_s19  ;;  %2523 = vrot.lane.b32.xlu1 %v2500_v1, %s7154_s19  ;;  %v8937_v1 = vmul.f32 %v8933_v33, %v8086_v17  ;;  %v8948_v21 = vsel %vm757_vm8, %v8088_v18, %v8096_v58 }
 0x2de   : > { %v3028_v38 = vrot.slane %v3010_v27, 4  ;;  %v3103_v54 = vmul.f32 %v8948_v21, %v8903_v19 }
 0x2df   : > { %v8922_v2 = vpop.permute.xlu0 %2721  ;;  %v8925_v16 = vpop.permute.xlu1 %2789  ;;  %v12159_v22 = vrot.slane %v8937_v1, 4 }
 0x2e0   : > { %12545 = vst [vmem:[#allocation178_spill] sm:$0xff] %v8922_v2  ;;  %12546 = vst [vmem:[#allocation179_spill] sm:$0xff] %v8925_v16  ;;  %v3102_v2 = vmul.f32 %v8088_v18, %v8894_v39 }
 0x2e1   : > { %3041 = vrot.lane.b32.xlu0 %v3026_v37, %s7159_s16  ;;  %3043 = vrot.lane.b32.xlu1 %v3027_v32, %s7159_s16  ;;  %v3034_v45 = vsel %vm2674_vm11, %v3028_v38, %v12159_v22  ;;  %v8989_v22 = vmul.f32 %v8933_v33, %v8096_v58 }
 0x2e3   : > { %v8940_v30 = vpop.permute.xlu0 %2791  ;;  %v8942_v16 = vpop.permute.xlu1 %2906 }
 0x2e4   : > { %12547 = vst [vmem:[#allocation180_spill] sm:$0xff] %v8940_v30  ;;  %12548 = vst [vmem:[#allocation181_spill] sm:$0xff] %v8942_v16  ;;  %v12552_v16 = vrot.slane %v8929_v61, 4 }
 0x2e5   : > { %3045 = vrot.lane.b32.xlu0 %v3028_v38, %s7159_s16  ;;  %3047 = vrot.lane.b32.xlu1 %v3030_v59, %s7159_s16  ;;  %v8973_v59 = vmul.f32 %v8644_v43, %v8088_v18 }
 0x2e6   : > { %v3032_v10 = vsel %vm2674_vm11, %v3027_v32, %v12552_v16  ;;  %v3104_v16 = vmul.f32 %v8096_v58, %v2628_v41 }
 0x2e7   : > { %v8956_v27 = vpop.permute.xlu0 %2908  ;;  %v8960_v30 = vpop.permute.xlu1 %1421  ;;  %v12164_v38 = vrot.slane %v8973_v59, 4 }
 0x2e8   : > { %12550 = vst [vmem:[#allocation182_spill] sm:$0xff] %v8956_v27  ;;  %12551 = vst [vmem:[#allocation183_spill] sm:$0xff] %v8960_v30  ;;  %v3120_v30 = vrot.slane %v3102_v2, 4  ;;  %v3121_v27 = vrot.slane %v3103_v54, 4  ;;  %v3122_v41 = vrot.slane %v3104_v16, 4  ;;  %v9008_v16 = vsel %vm533_vm6, %v8138_v26, %v8140_v56 }
 0x2e9   : > { %3049 = vrot.lane.b32.xlu0 %v3032_v10, %s7159_s16  ;;  %3051 = vrot.lane.b32.xlu1 %v3034_v45, %s7159_s16  ;;  %v8983_v10 = vmul.f32 %v8656_v48, %v8948_v21 }
 0x2eb   : > { %v8976_v37 = vpop.permute.xlu0 %1423  ;;  %v8979_v32 = vpop.permute.xlu1 %1425  ;;  %v12167_v54 = vrot.slane %v8983_v10, 4 }
 0x2ec   : > { %12553 = vst [vmem:[#allocation184_spill] sm:$0xff] %v8976_v37  ;;  %12554 = vst [vmem:[#allocation185_spill] sm:$0xff] %v8979_v32  ;;  %v3124_v32 = vsel %vm2674_vm11, %v3120_v30, %v12164_v38  ;;  %v12168_v37 = vrot.slane %v8989_v22, 4  ;;  %v4351_v38 = vrot.slane %v4342_v0, %v7424_v4 }
 0x2ed   : > { %3135 = vrot.lane.b32.xlu0 %v3120_v30, %s7159_s16  ;;  %3137 = vrot.lane.b32.xlu1 %v3121_v27, %s7159_s16 }
 0x2ee   : > { %v3128_v30 = vsel %vm2674_vm11, %v3122_v41, %v12168_v37 }
 0x2ef   : > { %v8992_v2 = vpop.permute.xlu0 %1524  ;;  %v8994_v45 = vpop.permute.xlu1 %1526 }
 0x2f0   : > { %12555 = vst [vmem:[#allocation186_spill] sm:$0xff] %v8992_v2  ;;  %12556 = vst [vmem:[#allocation187_spill] sm:$0xff] %v8994_v45  ;;  %v3126_v45 = vsel %vm2674_vm11, %v3121_v27, %v12167_v54 }
 0x2f1   : > { %3139 = vrot.lane.b32.xlu0 %v3122_v41, %s7159_s16  ;;  %3141 = vrot.lane.b32.xlu1 %v3124_v32, %s7159_s16  ;;  %v4347_v32 = vrot.slane %v4342_v0, %v7421_v3  ;;  %v9041_v0 = vmul.f32 %v8656_v48, %v8140_v56 }
 0x2f3   : > { %v9003_v29 = vpop.permute.xlu0 %1528  ;;  %v9010_v2 = vpop.permute.xlu1 %2125 }
 0x2f4   : > { %12557 = vst [vmem:[#allocation188_spill] sm:$0xff] %v9003_v29  ;;  %12558 = vst [vmem:[#allocation189_spill] sm:$0xff] %v9010_v2  ;;  %v3463_v29 = vld [vmem:[#allocation6 + $0x46] ss:$8 sm:$0x3] }
 0x2f5   : > { %3143 = vrot.lane.b32.xlu0 %v3126_v45, %s7159_s16  ;;  %3145 = vrot.lane.b32.xlu1 %v3128_v30, %s7159_s16  ;;  %v9024_v2 = vld [vmem:[#allocation2 + $0x68] sm:$0xfc]  ;;  %v9036_v30 = vmul.f32 %v8644_v43, %v9008_v16  ;;  %v9044_v37 = vrot.slane %v3463_v29, %v7421_v3 }
 0x2f6   : > { %v3388_v27 = vmul.f32 %v9024_v2, %v9008_v16  ;;  %v9030_v45 = vld [vmem:[#allocation2 + $0x8] sm:$0xfc] }
 0x2f7   : > { %v9022_v7 = vpop.permute.xlu0 %2127  ;;  %v9028_v54 = vpop.permute.xlu1 %2129  ;;  %v3389_v41 = vmul.f32 %v9030_v45, %v8140_v56  ;;  %v3475_v57 = vmul.f32 %v9024_v2, %v9044_v37  ;;  %v12565_v42 = vrot.slane %v9036_v30, 5 }
 0x2f8   : > { %12559 = vst [vmem:[#allocation190_spill] sm:$0xff] %v9022_v7  ;;  %12560 = vst [vmem:[#allocation191_spill] sm:$0xff] %v9028_v54  ;;  %v9048_v54 = vrot.slane %v3463_v29, %v7424_v4  ;;  %v3406_v53 = vrot.slane %v3388_v27, 5 }
 0x2f9   : > { %4352 = vrot.lane.b32.xlu0 %v4347_v32, %s7158_s17  ;;  %4354 = vrot.lane.b32.xlu1 %v4351_v38, %s7158_s17  ;;  %v3407_v52 = vrot.slane %v3389_v41, 5  ;;  %v9064_v38 = vmul.f32 %v8644_v43, %v9044_v37  ;;  %v3487_v28 = vrot.slane %v3475_v57, 5  ;;  %v9094_v57 = vmul.f32 %v8933_v33, %v8138_v26 }
 0x2fa   : > { %v3476_v29 = vmul.f32 %v9030_v45, %v9048_v54  ;;  %v9070_v41 = vmul.f32 %v8656_v48, %v9048_v54 }
 0x2fb   : > { %v9050_v7 = vpop.permute.xlu0 %2131  ;;  %v9052_v55 = vpop.permute.xlu1 %2133  ;;  %v12185_v11 = vrot.slane %v9064_v38, 5 }
 0x2fc   : > { %12561 = vst [vmem:[#allocation192_spill] sm:$0xff] %v9050_v7  ;;  %12562 = vst [vmem:[#allocation193_spill] sm:$0xff] %v9052_v55  ;;  %v3411_v7 = vsel %vm3222_vm9, %v3406_v53, %v12565_v42  ;;  %v12566_v55 = vrot.slane %v9041_v0, 5  ;;  %v6795_v42 = vld [vmem:[#allocation2 + $0x50] sm:$0xfc] }
 0x2fd   : > { %3422 = vrot.lane.b32.xlu0 %v3406_v53, %s7157_s18  ;;  %3424 = vrot.lane.b32.xlu1 %v3407_v52, %s7157_s18  ;;  %v3387_v53 = vmul.f32 %v6795_v42, %v8138_v26  ;;  %v3014_v42 = vmul.f32 %v8075_v40, %v9088_v23 }
 0x2fe   : > { %v3413_v36 = vsel %vm3222_vm9, %v3407_v52, %v12566_v55  ;;  %v3490_v52 = vsel %vm3222_vm9, %v3487_v28, %v12185_v11 }
 0x2ff   : > { %v9066_v27 = vpop.permute.xlu0 %2135  ;;  %v9072_v32 = vpop.permute.xlu1 %2207 }
 0x300   : > { %12563 = vst [vmem:[#allocation194_spill] sm:$0xff] %v9066_v27  ;;  %12564 = vst [vmem:[#allocation195_spill] sm:$0xff] %v9072_v32  ;;  %v3488_v27 = vrot.slane %v3476_v29, 5  ;;  %v12187_v32 = vrot.slane %v9070_v41, 5 }
 0x301   : > { %3428 = vrot.lane.b32.xlu0 %v3411_v7, %s7157_s18  ;;  %3430 = vrot.lane.b32.xlu1 %v3413_v36, %s7157_s18  ;;  %v9096_v36 = vld [vmem:[#allocation2 + $0x78] sm:$0x1] }
 0x302   : > { %v3492_v7 = vsel %vm3222_vm9, %v3488_v27, %v12187_v32  ;;  %v3015_v46 = vmul.f32 %v8901_v13, %v9096_v36  ;;  %v3108_v13 = vmul.f32 %v8088_v18, %v9088_v23 }
 0x303   : > { %v9083_v62 = vpop.permute.xlu0 %2209  ;;  %v9086_v25 = vpop.permute.xlu1 %2211 }
 0x304   : > { %12567 = vst [vmem:[#allocation196_spill] sm:$0xff] %v9083_v62  ;;  %12568 = vst [vmem:[#allocation197_spill] sm:$0xff] %v9086_v25  ;;  %v3405_v25 = vrot.slane %v3387_v53, 5  ;;  %v12189_v62 = vrot.slane %v9094_v57, 5  ;;  %v3037_v53 = vrot.slane %v3015_v46, 4  ;;  %v3129_v46 = vrot.slane %v3108_v13, 4 }
 0x305   : > { %3497 = vrot.lane.b32.xlu0 %v3487_v28, %s7157_s18  ;;  %3499 = vrot.lane.b32.xlu1 %v3488_v27, %s7157_s18  ;;  %v2636_v28 = vld [vmem:[#allocation2 + $0x28] sm:$0x1]  ;;  %v3035_v27 = vrot.slane %v3014_v42, 4  ;;  %v12575_v42 = vrot.slane %v8919_v8, 4 }
 0x306   : > { %v3016_v32 = vmul.f32 %v8086_v17, %v2636_v28  ;;  %v3409_v40 = vsel %vm3222_vm9, %v3405_v25, %v12189_v62 }
 0x307   : > { %v9102_v55 = vpop.permute.xlu0 %2213  ;;  %v9107_v29 = vpop.permute.xlu1 %2215  ;;  %v3036_v17 = vsel %vm2674_vm11, %v12575_v42, %v3035_v27 }
 0x308   : > { %12569 = vst [vmem:[#allocation198_spill] sm:$0xff] %v9102_v55  ;;  %12570 = vst [vmem:[#allocation199_spill] sm:$0xff] %v9107_v29  ;;  %v3109_v29 = vmul.f32 %v8948_v21, %v9096_v36 }
 0x309   : > { %3501 = vrot.lane.b32.xlu0 %v3490_v52, %s7157_s18  ;;  %3503 = vrot.lane.b32.xlu1 %v3492_v7, %s7157_s18 }
 0x30a   : > { %v3131_v21 = vrot.slane %v3109_v29, 4  ;;  %v12583_v29 = vrot.slane %v8983_v10, 4 }
 0x30b   : > { %v9116_v11 = vpop.permute.xlu0 %2217  ;;  %v9118_v55 = vpop.permute.xlu1 %3285 }
 0x30c   : > { %12571 = vst [vmem:[#allocation200_spill] sm:$0xff] %v9116_v11  ;;  %12572 = vst [vmem:[#allocation201_spill] sm:$0xff] %v9118_v55  ;;  %v3039_v11 = vrot.slane %v3016_v32, 4  ;;  %v12579_v32 = vrot.slane %v8937_v1, 4  ;;  %v3132_v42 = vsel %vm2674_vm11, %v12583_v29, %v3131_v21  ;;  %v9193_v21 = vmul.f32 %v8933_v33, %v8165_v20 }
 0x30d   : > { %3420 = vrot.lane.b32.xlu0 %v3405_v25, %s7157_s18  ;;  %3426 = vrot.lane.b32.xlu1 %v3409_v40, %s7157_s18  ;;  %v12576_v25 = vrot.slane %v8929_v61, 4  ;;  %v3110_v40 = vmul.f32 %v8096_v58, %v2636_v28  ;;  %v9153_v61 = vsel %vm757_vm8, %v8159_v50, %v8165_v20  ;;  %v12580_v58 = vrot.slane %v8973_v59, 4 }
 0x30e   : > { %v3040_v27 = vsel %vm2674_vm11, %v12579_v32, %v3039_v11  ;;  %v3731_v11 = vmul.f32 %v9024_v2, %v8159_v50  ;;  %v12584_v59 = vrot.slane %v8989_v22, 4  ;;  %v9187_v22 = vmul.f32 %v8656_v48, %v9153_v61 }
 0x30f   : > { %v9128_v52 = vpop.permute.xlu0 %3287  ;;  %v9130_v7 = vpop.permute.xlu1 %1779  ;;  %v3038_v18 = vsel %vm2674_vm11, %v12576_v25, %v3037_v53  ;;  %v3130_v28 = vsel %vm2674_vm11, %v12580_v58, %v3129_v46  ;;  %v3133_v53 = vrot.slane %v3110_v40, 4  ;;  %v6796_v46 = vld [vmem:[#allocation2 + $0x48] sm:$0xfc]  ;;  %v9204_v29 = vsel %vm457_vm1, %v8167_v49, %v8176_v14 }
 0x310   : > { %12573 = vst [vmem:[#allocation202_spill] sm:$0xff] %v9128_v52  ;;  %12574 = vst [vmem:[#allocation203_spill] sm:$0xff] %v9130_v7  ;;  %v3749_v10 = vrot.slane %v3731_v11, 5  ;;  %v3733_v40 = vmul.f32 %v6796_v46, %v8165_v20  ;;  %v12192_v11 = vrot.slane %v9187_v22, 5 }
 0x311   : > { %3053 = vrot.lane.b32.xlu0 %v3036_v17, %s7159_s16  ;;  %3055 = vrot.lane.b32.xlu1 %v3038_v18, %s7159_s16  ;;  %v3732_v17 = vmul.f32 %v9030_v45, %v9153_v61  ;;  %v3134_v25 = vsel %vm2674_vm11, %v12584_v59, %v3133_v53  ;;  %v9177_v18 = vmul.f32 %v8644_v43, %v8159_v50 }
 0x313   : > { %v9143_v62 = vpop.permute.xlu0 %1781  ;;  %v9145_v8 = vpop.permute.xlu1 %1868  ;;  %v3750_v45 = vrot.slane %v3732_v17, 5  ;;  %v12194_v17 = vrot.slane %v9193_v21, 5 }
 0x314   : > { %12577 = vst [vmem:[#allocation204_spill] sm:$0xff] %v9143_v62  ;;  %12578 = vst [vmem:[#allocation205_spill] sm:$0xff] %v9145_v8 }
 0x315   : > { %3057 = vrot.lane.b32.xlu0 %v3040_v27, %s7159_s16  ;;  %3147 = vrot.lane.b32.xlu1 %v3130_v28, %s7159_s16  ;;  %v12191_v27 = vrot.slane %v9177_v18, 5  ;;  %v3751_v28 = vrot.slane %v3733_v40, 5 }
 0x317   : > { %v9160_v13 = vpop.permute.xlu0 %1870  ;;  %v9164_v1 = vpop.permute.xlu1 %1872 }
 0x318   : > { %12581 = vst [vmem:[#allocation206_spill] sm:$0xff] %v9160_v13  ;;  %12582 = vst [vmem:[#allocation207_spill] sm:$0xff] %v9164_v1  ;;  %v9220_v1 = vld [vmem:[#allocation2 + $0x68] sm:$0xf8] }
 0x319   : > { %3149 = vrot.lane.b32.xlu0 %v3132_v42, %s7159_s16  ;;  %3151 = vrot.lane.b32.xlu1 %v3134_v25, %s7159_s16  ;;  %v3753_v42 = vsel %vm3222_vm9, %v3749_v10, %v12191_v27  ;;  %v6797_v25 = vld [vmem:[#allocation2 + $0x50] sm:$0xf8] }
 0x31a   : > { %v3833_v46 = vmul.f32 %v6797_v25, %v8167_v49  ;;  %v9230_v25 = vmul.f32 %v8933_v33, %v8167_v49 }
 0x31b   : > { %v9180_v2 = vpop.permute.xlu0 %2425  ;;  %v9183_v32 = vpop.permute.xlu1 %2427 }
 0x31c   : > { %12585 = vst [vmem:[#allocation208_spill] sm:$0xff] %v9180_v2  ;;  %12586 = vst [vmem:[#allocation209_spill] sm:$0xff] %v9183_v32  ;;  %v9266_v32 = vld [vmem:[#allocation2 + $0x78] sm:$0x3] }
 0x31d   : > { %3764 = vrot.lane.b32.xlu0 %v3749_v10, %s7158_s17  ;;  %3766 = vrot.lane.b32.xlu1 %v3750_v45, %s7158_s17  ;;  %v3834_v10 = vmul.f32 %v9220_v1, %v9204_v29  ;;  %v3480_v7 = vmul.f32 %v9266_v32, %v9048_v54 }
 0x31f   : > { %v9196_v58 = vpop.permute.xlu0 %2429  ;;  %v9198_v53 = vpop.permute.xlu1 %2431 }
 0x320   : > { %12587 = vst [vmem:[#allocation210_spill] sm:$0xff] %v9196_v58  ;;  %12588 = vst [vmem:[#allocation211_spill] sm:$0xff] %v9198_v53  ;;  %v3755_v53 = vsel %vm3222_vm9, %v3750_v45, %v12192_v11  ;;  %v3852_v45 = vrot.slane %v3833_v46, 6  ;;  %v9235_v11 = vld [vmem:[#allocation2 + $0x8] sm:$0xf8] }
 0x321   : > { %3768 = vrot.lane.b32.xlu0 %v3751_v28, %s7158_s17  ;;  %3770 = vrot.lane.b32.xlu1 %v3753_v42, %s7158_s17  ;;  %v3757_v42 = vsel %vm3222_vm9, %v3751_v28, %v12194_v17  ;;  %v9243_v28 = vmul.f32 %v8644_v43, %v9204_v29  ;;  %v12203_v17 = vrot.slane %v9230_v25, 6 }
 0x323   : > { %v9212_v59 = vpop.permute.xlu0 %2433  ;;  %v9215_v40 = vpop.permute.xlu1 %2435  ;;  %v3856_v13 = vsel %vm3851_vm10, %v3852_v45, %v12203_v17  ;;  %v12597_v17 = vrot.slane %v9243_v28, 6 }
 0x324   : > { %12589 = vst [vmem:[#allocation212_spill] sm:$0xff] %v9212_v59  ;;  %12590 = vst [vmem:[#allocation213_spill] sm:$0xff] %v9215_v40  ;;  %v3835_v40 = vmul.f32 %v9235_v11, %v8176_v14 }
 0x325   : > { %3772 = vrot.lane.b32.xlu0 %v3755_v53, %s7158_s17  ;;  %3774 = vrot.lane.b32.xlu1 %v3757_v42, %s7158_s17  ;;  %v3853_v53 = vrot.slane %v3834_v10, 6  ;;  %v9249_v42 = vmul.f32 %v8656_v48, %v8176_v14 }
 0x327   : > { %v9233_v27 = vpop.permute.xlu0 %2507  ;;  %v9239_v59 = vpop.permute.xlu1 %2509  ;;  %v3858_v2 = vsel %vm3851_vm10, %v3853_v53, %v12597_v17 }
 0x328   : > { %12591 = vst [vmem:[#allocation214_spill] sm:$0xff] %v9233_v27  ;;  %12592 = vst [vmem:[#allocation215_spill] sm:$0xff] %v9239_v59  ;;  %v3854_v27 = vrot.slane %v3835_v40, 6  ;;  %v9257_v59 = vld [vmem:[#allocation2 + $0x70] sm:$0x3]  ;;  %v3395_v40 = vmul.f32 %v9266_v32, %v8140_v56 }
 0x329   : > { %3867 = vrot.lane.b32.xlu0 %v3852_v45, %s7156_s21  ;;  %3869 = vrot.lane.b32.xlu1 %v3853_v53, %s7156_s21  ;;  %v3394_v8 = vmul.f32 %v9257_v59, %v9008_v16  ;;  %v3479_v10 = vmul.f32 %v9257_v59, %v9044_v37  ;;  %v4092_v16 = vld [vmem:[#allocation6 + $0x55] ss:$8 sm:$0x3]  ;;  %v557_v56 = vld [vmem:[#allocation6 + $0x3] ss:$8 sm:$0x3] }
 0x32a   : > { %v12598_v37 = vrot.slane %v9249_v42, 6  ;;  %v9288_v52 = vrot.slane %v4092_v16, %v7421_v3  ;;  %v3495_v53 = vrot.slane %v3480_v7, 5  ;;  %v12604_v7 = vrot.slane %v9041_v0, 5 }
 0x32b   : > { %v9252_v46 = vpop.permute.xlu0 %2511  ;;  %v9254_v58 = vpop.permute.xlu1 %2513  ;;  %v3416_v62 = vrot.slane %v3394_v8, 5  ;;  %v9293_v8 = vrot.slane %v4092_v16, %v7424_v4  ;;  %v566_v16 = vrot.slane %v557_v56, %v7424_v4 }
 0x32c   : > { %12593 = vst [vmem:[#allocation216_spill] sm:$0xff] %v9252_v46  ;;  %12594 = vst [vmem:[#allocation217_spill] sm:$0xff] %v9254_v58  ;;  %v2849_v58 = vld [vmem:[#allocation6 + $0x37] ss:$8 sm:$0x3]  ;;  %v9330_v0 = vmul.f32 %v8644_v43, %v9288_v52 }
 0x32d   : > { %3871 = vrot.lane.b32.xlu0 %v3854_v27, %s7156_s21  ;;  %3873 = vrot.lane.b32.xlu1 %v3856_v13, %s7156_s21  ;;  %v2854_v55 = vrot.slane %v2849_v58, %v7421_v3  ;;  %v3860_v13 = vsel %vm3851_vm10, %v3854_v27, %v12598_v37  ;;  %v2858_v54 = vrot.slane %v2849_v58, %v7424_v4  ;;  %v12603_v58 = vrot.slane %v9036_v30, 5  ;;  %v12629_v4 = vld [vmem:[#allocation42_spill] sm:$0xff] }
 0x32e   : > { %12606 = vst [vmem:[#allocation224_spill] sm:$0xff] %v9330_v0 }
 0x32f   : > { %v9273_v46 = vpop.permute.xlu0 %2515  ;;  %v9277_v45 = vpop.permute.xlu1 %2517  ;;  %v9299_v63 = vmul.f32 %v8644_v43, %v2854_v55  ;;  %v9302_v27 = vmul.f32 %v8656_v48, %v2858_v54  ;;  %v9311_v37 = vmul.f32 %v2854_v55, %v8894_v39  ;;  %v4105_v39 = vmul.f32 %v9235_v11, %v9293_v8 }
 0x330   : > { %12595 = vst [vmem:[#allocation218_spill] sm:$0xff] %v9273_v46  ;;  %12596 = vst [vmem:[#allocation219_spill] sm:$0xff] %v9277_v45  ;;  %v3418_v46 = vrot.slane %v3395_v40, 5  ;;  %v3493_v45 = vrot.slane %v3479_v10, 5  ;;  %v3417_v10 = vsel %vm3222_vm9, %v12603_v58, %v3416_v62  ;;  %v12605_v62 = vrot.slane %v9064_v38, 5 }
 0x331   : > { %3875 = vrot.lane.b32.xlu0 %v3858_v2, %s7156_s21  ;;  %3877 = vrot.lane.b32.xlu1 %v3860_v13, %s7156_s21  ;;  %v562_v2 = vrot.slane %v557_v56, %v7421_v3  ;;  %12600 = vst [vmem:[#allocation221_spill] sm:$0xff] %v9299_v63  ;;  %12601 = vst [vmem:[#allocation222_spill] sm:$0xff] %v9302_v27  ;;  %v12608_v56 = vrot.slane %v9070_v41, 5  ;;  %v9339_v58 = vmul.f32 %v8656_v48, %v9293_v8  ;;  %v9341_v38 = vld [vmem:[#allocation2 + $0x20] sm:$0x1f] }
 0x332   : > { %v3419_v13 = vsel %vm3222_vm9, %v12604_v7, %v3418_v46  ;;  %v3494_v30 = vsel %vm3222_vm9, %v12605_v62, %v3493_v45  ;;  %12610 = vst [vmem:[#allocation227_spill] sm:$0xff] %v9341_v38  ;;  %v9348_v62 = vld [vmem:[#allocation2 + $0x10] sm:$0x1f]  ;;  %v12622_v47 = vrot.slane %v9302_v27, 4  ;;  %v12632_v27 = vld [vmem:[#allocation41_spill] sm:$0xff] }
 0x333   : > { %v9295_v17 = vpop.permute.xlu0 %3629  ;;  %v9304_v40 = vpop.permute.xlu1 %3631  ;;  %12609 = vst [vmem:[#allocation226_spill] sm:$0xff] %v9339_v58  ;;  %v573_v45 = vmul.f32 %v9341_v38, %v562_v2  ;;  %12612 = vst [vmem:[#allocation229_spill] sm:$0xff] %v9348_v62  ;;  %v574_v41 = vmul.f32 %v9348_v62, %v566_v16  ;;  %v905_v62 = vsel %vm757_vm8, %v7820_v51, %v7895_v31  ;;  %v9377_v38 = vld [vmem:[#allocation2 + $0x68] sm:$0xff] }
 0x334   : > { %12599 = vst [vmem:[#allocation220_spill] sm:$0xff] %v9295_v17  ;;  %12602 = vst [vmem:[#allocation223_spill] sm:$0xff] %v9304_v40  ;;  %v4104_v17 = vmul.f32 %v9220_v1, %v9288_v52  ;;  %v9320_v40 = vmul.f32 %v2858_v54, %v8903_v19  ;;  %v3496_v19 = vsel %vm3222_vm9, %v12608_v56, %v3495_v53 }
 0x335   : > { %3434 = vrot.lane.b32.xlu0 %v3417_v10, %s7157_s18  ;;  %3436 = vrot.lane.b32.xlu1 %v3419_v13, %s7157_s18  ;;  %v9355_v56 = vmul.f32 %v2854_v55, %v9088_v23  ;;  %v906_v23 = vsel %vm757_vm8, %v7895_v31, %v12615_v15  ;;  %v9368_v55 = vld [vmem:[#allocation2 + $0x58] sm:$0xe0]  ;;  %12619 = vst [vmem:[#allocation234_spill] sm:$0xff] %v9377_v38  ;;  %v12620_v10 = vrot.slane %v9299_v63, 4  ;;  %v12621_v31 = vrot.slane %v9311_v37, 4  ;;  %v12633_v63 = vld [vmem:[#allocation27_spill] sm:$0xff] }
 0x336   : > { %v4116_v35 = vrot.slane %v4104_v17, 6  ;;  %12616 = vst [vmem:[#allocation25_spill] sm:$0xff] %v9368_v55  ;;  %v570_v17 = vmul.f32 %v9368_v55, %v566_v16  ;;  %v571_v51 = vmul.f32 %v9377_v38, %v562_v2  ;;  %v12627_v38 = vld [vmem:[#allocation83_spill] sm:$0xff] }
 0x337   : > { %v9332_v46 = vpop.permute.xlu0 %2137  ;;  %v9346_v13 = vpop.permute.xlu1 %2139  ;;  %12614 = vst [vmem:[#allocation231_spill] sm:$0xff] %v9355_v56  ;;  %v9385_v15 = vsel %vm2674_vm11, %v12621_v31, %v12620_v10  ;;  %v9406_v31 = vmul.f32 %v2858_v54, %v9096_v36  ;;  %v901_v10 = vsel %vm757_vm8, %v12633_v63, %v12632_v27  ;;  %v12634_v36 = vld [vmem:[#allocation30_spill] sm:$0xff]  ;;  %v12638_v63 = vld [vmem:[#allocation44_spill] sm:$0xff]  ;;  %v12639_v56 = vld [vmem:[#allocation31_spill] sm:$0xff] }
 0x338   : > { %12607 = vst [vmem:[#allocation225_spill] sm:$0xff] %v9332_v46  ;;  %12611 = vst [vmem:[#allocation228_spill] sm:$0xff] %v9346_v13  ;;  %v9351_v46 = vld [vmem:[#allocation2] sm:$0xe0]  ;;  %v4117_v13 = vrot.slane %v4105_v39, 6  ;;  %v902_v54 = vsel %vm757_vm8, %v12632_v27, %v12634_v36 }
 0x339   : > { %12613 = vst [vmem:[#allocation230_spill] sm:$0xff] %v9351_v46  ;;  %v569_v53 = vmul.f32 %v9351_v46, %v562_v2  ;;  %3505 = vrot.lane.b32.xlu0 %v3494_v30, %s7157_s18  ;;  %3507 = vrot.lane.b32.xlu1 %v3496_v19, %s7157_s18  ;;  %v9374_v19 = vld [vmem:[#allocation2 + $0x8] sm:$0xff]  ;;  %v12628_v46 = vld [vmem:[#allocation82_spill] sm:$0xff] }
 0x33a   : > { %12618 = vst [vmem:[#allocation233_spill] sm:$0xff] %v9374_v19  ;;  %v572_v39 = vmul.f32 %v9374_v19, %v566_v16  ;;  %v12625_v16 = vld [vmem:[#allocation39_spill] sm:$0xff]  ;;  %v12626_v19 = vld [vmem:[#allocation24_spill] sm:$0xff]  ;;  %v9402_v24 = vsel %vm596_vm3, %v12628_v46, %v12627_v38 }
 0x33b   : > { %v9371_v30 = vpop.permute.xlu0 %2141  ;;  %v9394_v55 = vpop.permute.xlu1 %2219  ;;  %v1249_v2 = vsel %vm533_vm6, %v12626_v19, %v12625_v16  ;;  %v12631_v19 = vrot.slane %v9330_v0, 6  ;;  %v1247_v0 = vsel %vm533_vm6, %v12639_v56, %v12638_v63  ;;  %v4179_v36 = vmul.f32 %v9235_v11, %v9402_v24 }
 0x33c   : > { %12617 = vst [vmem:[#allocation232_spill] sm:$0xff] %v9371_v30  ;;  %v12623_v30 = vrot.slane %v9320_v40, 4  ;;  %12624 = vst [vmem:[#allocation235_spill] sm:$0xff] %v9394_v55  ;;  %v12630_v55 = vld [vmem:[#allocation28_spill] sm:$0xff]  ;;  %v913_v56 = vadd.f32 %v901_v10, %v569_v53  ;;  %v6808_v53 = vld [vmem:[#allocation2 + $0x48] sm:$0xf8] }
 0x33d   : > { %4126 = vrot.lane.b32.xlu0 %v4116_v35, %s7155_s24  ;;  %v903_v3 = vsel %vm757_vm8, %v12630_v55, %v12629_v4  ;;  %4128 = vrot.lane.b32.xlu1 %v4117_v13, %s7155_s24  ;;  %v4119_v9 = vsel %vm3851_vm10, %v4116_v35, %v12631_v19  ;;  %v12637_v55 = vld [vmem:[#allocation26_spill] sm:$0xff] }
 0x33e   : > { %v9392_v7 = vsel %vm2674_vm11, %v12623_v30, %v12622_v47  ;;  %v917_v47 = vadd.f32 %v905_v62, %v573_v45  ;;  %v918_v30 = vadd.f32 %v906_v23, %v574_v41  ;;  %v12636_v62 = vrot.slane %v9339_v58, 6  ;;  %v12643_v58 = vld [vmem:[#allocation32_spill] sm:$0xff] }
 0x33f   : > { %v9422_v45 = vpop.permute.xlu0 %2221  ;;  %v4178_v23 = vmul.f32 %v9220_v1, %v12628_v46  ;;  %v1250_v35 = vsel %vm533_vm6, %v12625_v16, %v12637_v55  ;;  %v9437_v27 = vpop.permute.xlu1 %2223  ;;  %v915_v1 = vadd.f32 %v903_v3, %v571_v51  ;;  %v12644_v55 = vld [vmem:[#allocation34_spill] sm:$0xff]  ;;  %v12647_v51 = vld [vmem:[#allocation36_spill] sm:$0xff] }
 0x340   : > { %12635 = vst [vmem:[#allocation39_spill] sm:$0xff] %v9422_v45  ;;  %v4121_v41 = vsel %vm3851_vm10, %v4117_v13, %v12636_v62  ;;  %v9432_v19 = vadd.f32 %v1249_v2, %v917_v47  ;;  %12640 = vst [vmem:[#allocation24_spill] sm:$0xff] %v9437_v27  ;;  %v12641_v45 = vld [vmem:[#allocation29_spill] sm:$0xff]  ;;  %v12642_v62 = vld [vmem:[#allocation43_spill] sm:$0xff]  ;;  %v9450_v2 = vmul.f32 %v8644_v43, %v12628_v46 }
 0x341   : > { %v904_v13 = vsel %vm757_vm8, %v12629_v4, %v12641_v45  ;;  %v1245_v16 = vsel %vm533_vm6, %v12643_v58, %v12642_v62  ;;  %4130 = vrot.lane.b32.xlu0 %v4119_v9, %s7155_s24  ;;  %v914_v47 = vadd.f32 %v902_v54, %v570_v17  ;;  %v1246_v11 = vsel %vm533_vm6, %v12642_v62, %v12644_v55  ;;  %v12645_v27 = vld [vmem:[#allocation33_spill] sm:$0xff]  ;;  %v12646_v58 = vld [vmem:[#allocation46_spill] sm:$0xff] }
 0x342   : > { %v1248_v3 = vsel %vm533_vm6, %v12638_v63, %v12645_v27  ;;  %4132 = vrot.lane.b32.xlu1 %v4121_v41, %s7155_s24  ;;  %v1259_v4 = vadd.f32 %v1247_v0, %v915_v1  ;;  %v1624_v9 = vsel %vm677_vm5, %v12647_v51, %v12646_v58  ;;  %v4196_v43 = vrot.slane %v4178_v23, 6  ;;  %v12650_v41 = vld [vmem:[#allocation38_spill] sm:$0xff]  ;;  %v12651_v1 = vld [vmem:[#allocation45_spill] sm:$0xff]  ;;  %v12654_v51 = vld [vmem:[#allocation48_spill] sm:$0xff] }
 0x343   : > { %v9462_v45 = vpop.permute.xlu0 %4008  ;;  %v4180_v17 = vmul.f32 %v6808_v53, %v12627_v38  ;;  %v916_v10 = vadd.f32 %v904_v13, %v572_v39  ;;  %v1257_v54 = vadd.f32 %v1245_v16, %v913_v56  ;;  %v9465_v62 = vpop.permute.xlu1 %4010  ;;  %v4197_v55 = vrot.slane %v4179_v36, 6  ;;  %v12652_v16 = vld [vmem:[#allocation35_spill] sm:$0xff]  ;;  %v6809_v23 = vld [vmem:[#allocation2 + $0x60] sm:$0x3] }
 0x344   : > { %12648 = vst [vmem:[#allocation83_spill] sm:$0xff] %v9462_v45  ;;  %12649 = vst [vmem:[#allocation82_spill] sm:$0xff] %v9465_v62  ;;  %v9469_v63 = vmul.f32 %v8656_v48, %v9402_v24  ;;  %v9471_v0 = vadd.f32 %v1250_v35, %v918_v30  ;;  %v1625_v27 = vsel %vm677_vm5, %v12646_v58, %v12650_v41  ;;  %v12653_v35 = vld [vmem:[#allocation37_spill] sm:$0xff]  ;;  %v12655_v53 = vld [vmem:[#allocation47_spill] sm:$0xff] }
 0x345   : > { %4211 = vrot.lane.b32.xlu0 %v4196_v43, %s7155_s24  ;;  %v9480_v39 = vmul.f32 %v8933_v33, %v12627_v38  ;;  %v1258_v13 = vadd.f32 %v1246_v11, %v914_v47  ;;  %v1260_v36 = vadd.f32 %v1248_v3, %v916_v10  ;;  %v1626_v48 = vsel %vm677_vm5, %v12652_v16, %v12651_v1  ;;  %v12657_v3 = vld [vmem:[#allocation50_spill] sm:$0xff]  ;;  %v12658_v10 = vld [vmem:[#allocation49_spill] sm:$0xff] }
 0x346   : > { %v1636_v30 = vadd.f32 %v1624_v9, %v1257_v54  ;;  %4213 = vrot.lane.b32.xlu1 %v4197_v55, %s7155_s24  ;;  %v1627_v56 = vsel %vm677_vm5, %v12651_v1, %v12653_v35  ;;  %v1638_v58 = vadd.f32 %v1626_v48, %v1259_v4  ;;  %v1969_v41 = vsel %vm495_vm4, %v12655_v53, %v12654_v51  ;;  %v12660_v4 = vld [vmem:[#allocation40_spill] sm:$0xff] }
 0x347   : > { %v9492_v33 = vpop.permute.xlu0 %2437  ;;  %v4198_v47 = vrot.slane %v4180_v17, 6  ;;  %v1637_v11 = vadd.f32 %v1625_v27, %v1258_v13  ;;  %v1970_v16 = vsel %vm495_vm4, %v12658_v10, %v12657_v3  ;;  %v9497_v9 = vpop.permute.xlu1 %2439  ;;  %v3393_v1 = vmul.f32 %v6809_v23, %v8138_v26  ;;  %v12663_v26 = vld [vmem:[#allocation55_spill] sm:$0xff] }
 0x348   : > { %12656 = vst [vmem:[#allocation42_spill] sm:$0xff] %v9492_v33  ;;  %12659 = vst [vmem:[#allocation28_spill] sm:$0xff] %v9497_v9  ;;  %v1968_v48 = vsel %vm495_vm4, %v12660_v4, %v12655_v53  ;;  %v12661_v17 = vrot.slane %v9450_v2, 6  ;;  %v3737_v35 = vmul.f32 %v9257_v59, %v8159_v50  ;;  %v1639_v51 = vadd.f32 %v1627_v56, %v1260_v36  ;;  %v12662_v33 = vld [vmem:[#allocation56_spill] sm:$0xff]  ;;  %v12664_v4 = vld [vmem:[#allocation51_spill] sm:$0xff] }
 0x349   : > { %4215 = vrot.lane.b32.xlu0 %v4198_v47, %s7155_s24  ;;  %v1980_v10 = vadd.f32 %v1968_v48, %v1636_v30  ;;  %v1981_v54 = vadd.f32 %v1969_v41, %v1637_v11  ;;  %v2307_v23 = vsel %vm596_vm3, %v12663_v26, %v12662_v33  ;;  %v1982_v53 = vadd.f32 %v1970_v16, %v1638_v58  ;;  %v12666_v13 = vld [vmem:[#allocation59_spill] sm:$0xff]  ;;  %v12667_v50 = vld [vmem:[#allocation58_spill] sm:$0xff]  ;;  %v12669_v30 = vld [vmem:[#allocation65_spill] sm:$0xff] }
 0x34a   : > { %v4200_v27 = vsel %vm3851_vm10, %v4196_v43, %v12661_v17  ;;  %v1971_v9 = vsel %vm495_vm4, %v12657_v3, %v12664_v4  ;;  %v12665_v43 = vld [vmem:[#allocation57_spill] sm:$0xff]  ;;  %v2309_v59 = vsel %vm596_vm3, %v12667_v50, %v12666_v13  ;;  %v12670_v56 = vld [vmem:[#allocation64_spill] sm:$0xff]  ;;  %v12672_v58 = vrot.slane %v9469_v63, 6 }
 0x34b   : > { %4217 = vrot.lane.b32.xlu1 %v4200_v27, %s7155_s24  ;;  %v2308_v17 = vsel %vm596_vm3, %v12662_v33, %v12665_v43  ;;  %v9524_v36 = vpop.permute.xlu0 %2441  ;;  %v2607_v41 = vsel %vm457_vm1, %v12670_v56, %v12669_v30  ;;  %v9529_v11 = vpop.permute.xlu1 %2519  ;;  %v3414_v16 = vrot.slane %v3393_v1, 5  ;;  %v3738_v33 = vmul.f32 %v9266_v32, %v9153_v61  ;;  %v6810_v43 = vld [vmem:[#allocation2 + $0x28] sm:$0x3]  ;;  %v12676_v1 = vld [vmem:[#allocation54_spill] sm:$0xff] }
 0x34c   : > { %12668 = vst [vmem:[#allocation41_spill] sm:$0xff] %v9524_v36  ;;  %12671 = vst [vmem:[#allocation27_spill] sm:$0xff] %v9529_v11  ;;  %v4202_v3 = vsel %vm3851_vm10, %v4197_v55, %v12672_v58  ;;  %v2319_v48 = vadd.f32 %v2307_v23, %v1980_v10  ;;  %v12673_v27 = vrot.slane %v9480_v39, 6  ;;  %v3758_v4 = vrot.slane %v3737_v35, 5  ;;  %v12674_v11 = vld [vmem:[#allocation53_spill] sm:$0xff]  ;;  %v12675_v36 = vld [vmem:[#allocation52_spill] sm:$0xff] }
 0x34d   : > { %4219 = vrot.lane.b32.xlu0 %v4202_v3, %s7155_s24  ;;  %v3739_v50 = vmul.f32 %v6810_v43, %v8165_v20  ;;  %v1983_v56 = vadd.f32 %v1971_v9, %v1639_v51  ;;  %v1628_v55 = vsel %vm677_vm5, %v12675_v36, %v12674_v11  ;;  %v1629_v61 = vsel %vm677_vm5, %v12674_v11, %v12676_v1  ;;  %v12677_v23 = vld [vmem:[#allocation60_spill] sm:$0xff]  ;;  %v12678_v58 = vld [vmem:[#allocation66_spill] sm:$0xff]  ;;  %v12681_v36 = vld [vmem:[#allocation67_spill] sm:$0xff] }
 0x34e   : > { %v4204_v26 = vsel %vm3851_vm10, %v4198_v47, %v12673_v27  ;;  %v2320_v32 = vadd.f32 %v2308_v17, %v1981_v54  ;;  %v2321_v10 = vadd.f32 %v2309_v59, %v1982_v53  ;;  %v2310_v47 = vsel %vm596_vm3, %v12666_v13, %v12677_v23  ;;  %v12680_v51 = vld [vmem:[#allocation68_spill] sm:$0xff]  ;;  %v6811_v59 = vld [vmem:[#allocation2 + $0x60] sm:$0x7] }
 0x34f   : > { %4221 = vrot.lane.b32.xlu1 %v4204_v26, %s7155_s24  ;;  %v2619_v35 = vadd.f32 %v2607_v41, %v2319_v48  ;;  %v2608_v20 = vsel %vm457_vm1, %v12669_v30, %v12678_v58  ;;  %v9554_v9 = vpop.permute.xlu0 %2521  ;;  %v2609_v3 = vsel %vm457_vm1, %v12681_v36, %v12680_v51  ;;  %v9559_v11 = vpop.permute.xlu1 %2523  ;;  %v12683_v54 = vrot.slane %v9094_v57, 5  ;;  %v12684_v41 = vld [vmem:[#allocation69_spill] sm:$0xff]  ;;  %v9572_v43 = vld [vmem:[#allocation2 + $0x70] sm:$0x7] }
 0x350   : > { %12679 = vst [vmem:[#allocation30_spill] sm:$0xff] %v9554_v9  ;;  %12682 = vst [vmem:[#allocation26_spill] sm:$0xff] %v9559_v11  ;;  %v3760_v17 = vrot.slane %v3738_v33, 5  ;;  %v3839_v13 = vmul.f32 %v6811_v59, %v8167_v49  ;;  %v2610_v30 = vsel %vm457_vm1, %v12680_v51, %v12684_v41  ;;  %v12685_v48 = vrot.slane %v9177_v18, 5  ;;  %v12686_v58 = vld [vmem:[#allocation77_spill] sm:$0xff]  ;;  %v12697_v41 = vld [vmem:[#allocation78_spill] sm:$0xff] }
 0x351   : > { %v3415_v53 = vsel %vm3222_vm9, %v12683_v54, %v3414_v16  ;;  %v3762_v26 = vrot.slane %v3739_v50, 5  ;;  %v3840_v57 = vmul.f32 %v9572_v43, %v9204_v29  ;;  %v1640_v16 = vadd.f32 %v1628_v55, %v9432_v19  ;;  %v9587_v36 = vld [vmem:[#allocation2 + $0x78] sm:$0x7]  ;;  %v10526_v9 = vld [vmem:[#allocation2 + $0x8] sm:$0xfc] }
 0x352   : > { %3432 = vrot.lane.b32.xlu0 %v3415_v53, %s7157_s18  ;;  %v3759_v27 = vsel %vm3222_vm9, %v12685_v48, %v3758_v4  ;;  %v2322_v33 = vadd.f32 %v2310_v47, %v1983_v56  ;;  %v2620_v49 = vadd.f32 %v2608_v20, %v2320_v32  ;;  %v2881_v1 = vrot.slane %v9406_v31, 4  ;;  %v12687_v4 = vld [vmem:[#allocation76_spill] sm:$0xff]  ;;  %v12692_v47 = vld [vmem:[#allocation62_spill] sm:$0xff]  ;;  %v12693_v20 = vld [vmem:[#allocation61_spill] sm:$0xff] }
 0x353   : > { %3776 = vrot.lane.b32.xlu1 %v3759_v27, %s7158_s17  ;;  %v9580_v23 = vadd.f32 %v1629_v61, %v9471_v0  ;;  %v2621_v18 = vadd.f32 %v2609_v3, %v2321_v10  ;;  %v3256_v50 = vsel %vm757_vm8, %v12687_v4, %v12686_v58  ;;  %v9585_v51 = vpop.permute.xlu0 %3041  ;;  %v3841_v29 = vmul.f32 %v9587_v36, %v8176_v14  ;;  %v9593_v32 = vpop.permute.xlu1 %3043  ;;  %v12695_v53 = vld [vmem:[#allocation63_spill] sm:$0xff] }
 0x354   : > { %12688 = vst [vmem:[#allocation44_spill] sm:$0xff] %v9585_v51  ;;  %v2622_v19 = vadd.f32 %v2610_v30, %v2322_v33  ;;  %v12689_v56 = vrot.slane %v9311_v37, 4  ;;  %12690 = vst [vmem:[#allocation31_spill] sm:$0xff] %v9593_v32  ;;  %v12691_v0 = vrot.slane %v9187_v22, 5  ;;  %v3861_v10 = vrot.slane %v3839_v13, 6  ;;  %v12699_v48 = vld [vmem:[#allocation79_spill] sm:$0xff] }
 0x355   : > { %v1972_v3 = vsel %vm495_vm4, %v12693_v20, %v12692_v47  ;;  %v3600_v54 = vsel %vm533_vm6, %v8271_v12, %v8273_v44  ;;  %v12694_v14 = vrot.slane %v9193_v21, 5  ;;  %v1973_v22 = vsel %vm495_vm4, %v12692_v47, %v12695_v53  ;;  %v12698_v21 = vld [vmem:[#allocation80_spill] sm:$0xff]  ;;  %v12709_v47 = vld [vmem:[#allocation90_spill] sm:$0xff] }
 0x356   : > { %v2889_v55 = vadd.f32 %v12689_v56, %v2619_v35  ;;  %v3761_v61 = vsel %vm3222_vm9, %v12691_v0, %v3760_v17  ;;  %v3863_v35 = vrot.slane %v3840_v57, 6  ;;  %v12696_v59 = vrot.slane %v9320_v40, 4  ;;  %v12703_v56 = vld [vmem:[#allocation85_spill] sm:$0xff]  ;;  %v12705_v0 = vld [vmem:[#allocation98_spill] sm:$0xff] }
 0x357   : > { %3778 = vrot.lane.b32.xlu0 %v3761_v61, %s7158_s17  ;;  %v3763_v37 = vsel %vm3222_vm9, %v12694_v14, %v3762_v26  ;;  %v3257_v30 = vsel %vm757_vm8, %v12686_v58, %v12697_v41  ;;  %v2891_v12 = vadd.f32 %v9385_v15, %v2621_v18  ;;  %v3258_v27 = vsel %vm757_vm8, %v12699_v48, %v12698_v21  ;;  %v9624_v57 = vpop.permute.xlu0 %3045  ;;  %v9630_v4 = vpop.permute.xlu1 %3047  ;;  %v12708_v61 = vld [vmem:[#allocation81_spill] sm:$0xff]  ;;  %v12710_v14 = vld [vmem:[#allocation92_spill] sm:$0xff]  ;;  %v12714_v41 = vld [vmem:[#allocation86_spill] sm:$0xff] }
 0x358   : > { %v3268_v17 = vadd.f32 %v3256_v50, %v2889_v55  ;;  %v2890_v13 = vadd.f32 %v12696_v59, %v2620_v49  ;;  %3780 = vrot.lane.b32.xlu1 %v3763_v37, %s7158_s17  ;;  %v3979_v26 = vsel %vm677_vm5, %v8328_v60, %v8336_v6  ;;  %12700 = vst [vmem:[#allocation29_spill] sm:$0xff] %v9624_v57  ;;  %v3865_v40 = vrot.slane %v3841_v29, 6  ;;  %v12704_v55 = vld [vmem:[#allocation84_spill] sm:$0xff]  ;;  %v12706_v29 = vld [vmem:[#allocation97_spill] sm:$0xff]  ;;  %v12711_v37 = vld [vmem:[#allocation91_spill] sm:$0xff] }
 0x359   : > { %v2892_v33 = vadd.f32 %v9392_v7, %v2622_v19  ;;  %v3601_v58 = vsel %vm533_vm6, %v8273_v44, %v8288_v34  ;;  %12701 = vst [vmem:[#allocation43_spill] sm:$0xff] %v9630_v4  ;;  %v12702_v15 = vrot.slane %v9230_v25, 6  ;;  %v3602_v60 = vsel %vm533_vm6, %v12704_v55, %v12703_v56  ;;  %v12927_v57 = vld [vmem:[#allocation180_spill] sm:$0xff] }
 0x35a   : > { %v3612_v49 = vadd.f32 %v3600_v54, %v3268_v17  ;;  %v3269_v50 = vadd.f32 %v3257_v30, %v2890_v13  ;;  %v4323_v7 = vsel %vm495_vm4, %v12706_v29, %v12705_v0  ;;  %v12707_v19 = vrot.slane %v9243_v28, 6 }
 0x35b   : > { %v3862_v18 = vsel %vm3851_vm10, %v12702_v15, %v3861_v10  ;;  %v3270_v34 = vadd.f32 %v3258_v27, %v2891_v12  ;;  %v3259_v25 = vsel %vm757_vm8, %v12698_v21, %v12708_v61  ;;  %v3980_v20 = vsel %vm677_vm5, %v8336_v6, %v12709_v47  ;;  %v9655_v28 = vpop.permute.xlu0 %3049  ;;  %v9668_v21 = vpop.permute.xlu1 %3051  ;;  %v12725_v61 = vld [vmem:[#allocation101_spill] sm:$0xff]  ;;  %v12727_v47 = vld [vmem:[#allocation75_spill] sm:$0xff] }
 0x35c   : > { %3879 = vrot.lane.b32.xlu0 %v3862_v18, %s7156_s21  ;;  %v3864_v44 = vsel %vm3851_vm10, %v12707_v19, %v3863_v35  ;;  %v3991_v10 = vadd.f32 %v3979_v26, %v3612_v49  ;;  %v3613_v54 = vadd.f32 %v3601_v58, %v3269_v50  ;;  %v3981_v53 = vsel %vm677_vm5, %v12711_v37, %v12710_v14  ;;  %v12716_v26 = vld [vmem:[#allocation100_spill] sm:$0xff]  ;;  %v12719_v58 = vld [vmem:[#allocation70_spill] sm:$0xff]  ;;  %v12720_v50 = vld [vmem:[#allocation93_spill] sm:$0xff] }
 0x35d   : > { %3881 = vrot.lane.b32.xlu1 %v3864_v44, %s7156_s21  ;;  %12712 = vst [vmem:[#allocation32_spill] sm:$0xff] %v9655_v28  ;;  %v12713_v35 = vrot.slane %v9249_v42, 6  ;;  %v4108_v59 = vmul.f32 %v9572_v43, %v9288_v52  ;;  %v3614_v13 = vadd.f32 %v3602_v60, %v3270_v34  ;;  %v3603_v6 = vsel %vm533_vm6, %v12703_v56, %v12714_v41  ;;  %v12718_v52 = vld [vmem:[#allocation71_spill] sm:$0xff]  ;;  %v12724_v19 = vld [vmem:[#allocation73_spill] sm:$0xff] }
 0x35e   : > { %v4335_v30 = vadd.f32 %v4323_v7, %v3991_v10  ;;  %v4324_v12 = vsel %vm495_vm4, %v12705_v0, %v8423_v5  ;;  %12715 = vst [vmem:[#allocation34_spill] sm:$0xff] %v9668_v21  ;;  %v1984_v48 = vadd.f32 %v1972_v3, %v1640_v16  ;;  %v3271_v27 = vadd.f32 %v3259_v25, %v2892_v33  ;;  %v12721_v3 = vld [vmem:[#allocation72_spill] sm:$0xff]  ;;  %v12723_v7 = vld [vmem:[#allocation74_spill] sm:$0xff] }
 0x35f   : > { %v3866_v17 = vsel %vm3851_vm10, %v12713_v35, %v3865_v40  ;;  %v3992_v42 = vadd.f32 %v3980_v20, %v3613_v54  ;;  %v12717_v40 = vld [vmem:[#allocation99_spill] sm:$0xff]  ;;  %v2311_v15 = vsel %vm596_vm3, %v12719_v58, %v12718_v52  ;;  %v3993_v18 = vadd.f32 %v3981_v53, %v3614_v13  ;;  %v9686_v60 = vpop.permute.xlu0 %3135  ;;  %v9695_v25 = vpop.permute.xlu1 %3137 }
 0x360   : > { %v4325_v49 = vsel %vm495_vm4, %v12717_v40, %v12716_v26  ;;  %3883 = vrot.lane.b32.xlu0 %v3866_v17, %s7156_s21  ;;  %v3982_v5 = vsel %vm677_vm5, %v12710_v14, %v12720_v50  ;;  %v4109_v16 = vmul.f32 %v9587_v36, %v9293_v8  ;;  %v2312_v33 = vsel %vm596_vm3, %v12718_v52, %v12721_v3  ;;  %v12729_v17 = vld [vmem:[#allocation224_spill] sm:$0xff]  ;;  %v6814_v52 = vld [vmem:[#allocation2 + $0x28] sm:$0x7] }
 0x361   : > { %4492 = vrot.lane.b32.xlu1 %v4335_v30, %s7157_s18  ;;  %v3615_v56 = vadd.f32 %v3603_v6, %v3271_v27  ;;  %v4336_v55 = vadd.f32 %v4324_v12, %v3992_v42  ;;  %12722 = vst [vmem:[#allocation33_spill] sm:$0xff] %v9686_v60  ;;  %v4122_v0 = vrot.slane %v4108_v59, 6  ;;  %v1985_v29 = vadd.f32 %v1973_v22, %v9580_v23  ;;  %v12731_v6 = vld [vmem:[#allocation231_spill] sm:$0xff]  ;;  %v12733_v12 = vld [vmem:[#allocation221_spill] sm:$0xff]  ;;  %v12736_v42 = vld [vmem:[#allocation222_spill] sm:$0xff] }
 0x362   : > { %v2611_v44 = vsel %vm457_vm1, %v12724_v19, %v12723_v7  ;;  %v4337_v34 = vadd.f32 %v4325_v49, %v3993_v18  ;;  %v4326_v8 = vsel %vm495_vm4, %v12716_v26, %v12725_v61  ;;  %12726 = vst [vmem:[#allocation46_spill] sm:$0xff] %v9695_v25  ;;  %v2323_v10 = vadd.f32 %v2311_v15, %v1984_v48  ;;  %v12738_v15 = vld [vmem:[#allocation88_spill] sm:$0xff]  ;;  %v12739_v18 = vld [vmem:[#allocation87_spill] sm:$0xff] }
 0x363   : > { %v2612_v20 = vsel %vm457_vm1, %v12723_v7, %v12727_v47  ;;  %v3994_v54 = vadd.f32 %v3982_v5, %v3615_v56  ;;  %v4184_v23 = vmul.f32 %v9572_v43, %v12628_v46  ;;  %v2324_v22 = vadd.f32 %v2312_v33, %v1985_v29  ;;  %v9704_v35 = vpop.permute.xlu0 %3139  ;;  %v9714_v46 = vpop.permute.xlu1 %3141  ;;  %v12740_v5 = vld [vmem:[#allocation226_spill] sm:$0xff]  ;;  %v12744_v56 = vld [vmem:[#allocation95_spill] sm:$0xff]  ;;  %v12747_v19 = vld [vmem:[#allocation96_spill] sm:$0xff] }
 0x364   : > { %4494 = vrot.lane.b32.xlu0 %v4336_v55, %s7157_s18  ;;  %v4124_v14 = vrot.slane %v4109_v16, 6  ;;  %v2623_v37 = vadd.f32 %v2611_v44, %v2323_v10  ;;  %12728 = vst [vmem:[#allocation36_spill] sm:$0xff] %v9704_v35  ;;  %v12730_v59 = vrot.slane %v12729_v17, 6  ;;  %v12732_v30 = vrot.slane %v12731_v6, 4  ;;  %12735 = vst [vmem:[#allocation38_spill] sm:$0xff] %v9714_v46  ;;  %v12742_v16 = vld [vmem:[#allocation89_spill] sm:$0xff] }
 0x365   : > { %4496 = vrot.lane.b32.xlu1 %v4337_v34, %s7157_s18  ;;  %v4338_v53 = vadd.f32 %v4326_v8, %v3994_v54  ;;  %v2624_v41 = vadd.f32 %v2612_v20, %v2324_v22  ;;  %v12734_v48 = vrot.slane %v12733_v12, 4  ;;  %v4185_v43 = vmul.f32 %v9587_v36, %v9402_v24  ;;  %v12749_v47 = vld [vmem:[#allocation103_spill] sm:$0xff]  ;;  %v12750_v20 = vld [vmem:[#allocation102_spill] sm:$0xff]  ;;  %v12751_v22 = vld [vmem:[#allocation104_spill] sm:$0xff] }
 0x366   : > { %v4123_v13 = vsel %vm3851_vm10, %v12730_v59, %v4122_v0  ;;  %v12737_v26 = vrot.slane %v12736_v42, 4  ;;  %v4205_v49 = vrot.slane %v4184_v23, 6  ;;  %v4186_v58 = vmul.f32 %v6814_v52, %v12627_v38  ;;  %v12745_v38 = vld [vmem:[#allocation94_spill] sm:$0xff]  ;;  %v12757_v12 = vld [vmem:[#allocation107_spill] sm:$0xff] }
 0x367   : > { %v2880_v27 = vsel %vm2674_vm11, %v12734_v48, %v12732_v30  ;;  %v3260_v50 = vsel %vm757_vm8, %v12739_v18, %v12738_v15  ;;  %v12741_v24 = vrot.slane %v12740_v5, 6  ;;  %v9735_v3 = vpop.permute.xlu0 %3143  ;;  %v3604_v55 = vsel %vm533_vm6, %v12745_v38, %v12744_v56  ;;  %v9740_v0 = vpop.permute.xlu1 %3145  ;;  %v12753_v17 = vld [vmem:[#allocation106_spill] sm:$0xff]  ;;  %v12762_v18 = vld [vmem:[#allocation23_spill] sm:$0xff]  ;;  %v12770_v38 = vld [vmem:[#allocation25_spill] sm:$0xff] }
 0x368   : > { %v2882_v40 = vsel %vm2674_vm11, %v12737_v26, %v2881_v1  ;;  %4498 = vrot.lane.b32.xlu0 %v4338_v53, %s7157_s18  ;;  %v2893_v36 = vadd.f32 %v2880_v27, %v2623_v37  ;;  %v3261_v1 = vsel %vm757_vm8, %v12738_v15, %v12742_v16  ;;  %12743 = vst [vmem:[#allocation45_spill] sm:$0xff] %v9735_v3  ;;  %12746 = vst [vmem:[#allocation35_spill] sm:$0xff] %v9740_v0  ;;  %v443_v26 = vld [vmem:[#allocation6] ss:$8 sm:$0x3] }
 0x369   : > { %4134 = vrot.lane.b32.xlu1 %v4123_v13, %s7155_s24  ;;  %v4125_v31 = vsel %vm3851_vm10, %v12741_v24, %v4124_v14  ;;  %v2894_v33 = vadd.f32 %v2882_v40, %v2624_v41  ;;  %v4207_v29 = vrot.slane %v4185_v43, 6  ;;  %v3605_v44 = vsel %vm533_vm6, %v12744_v56, %v12747_v19  ;;  %v12765_v24 = vld [vmem:[#allocation111_spill] sm:$0xff] }
 0x36a   : > { %v3272_v7 = vadd.f32 %v3260_v50, %v2893_v36  ;;  %v12748_v34 = vrot.slane %v9450_v2, 6  ;;  %v4209_v8 = vrot.slane %v4186_v58, 6  ;;  %v3983_v54 = vsel %vm677_vm5, %v12750_v20, %v12749_v47  ;;  %v12754_v2 = vld [vmem:[#allocation105_spill] sm:$0xff]  ;;  %v12761_v58 = vld [vmem:[#allocation22_spill] sm:$0xff] }
 0x36b   : > { %v3273_v10 = vadd.f32 %v3261_v1, %v2894_v33  ;;  %v3984_v14 = vsel %vm677_vm5, %v12749_v47, %v12751_v22  ;;  %v9756_v37 = vpop.permute.xlu0 %4352  ;;  %v4327_v59 = vsel %vm495_vm4, %v12754_v2, %v12753_v17  ;;  %v9761_v13 = vpop.permute.xlu1 %4354  ;;  %v12756_v41 = vrot.slane %v9469_v63, 6  ;;  %v12768_v1 = vld [vmem:[#allocation230_spill] sm:$0xff]  ;;  %v6817_v22 = vld [vmem:[#allocation2 + $0x58] sm:$0xc0] }
 0x36c   : > { %4136 = vrot.lane.b32.xlu0 %v4125_v31, %s7155_s24  ;;  %v4206_v61 = vsel %vm3851_vm10, %v12748_v34, %v4205_v49  ;;  %v3616_v23 = vadd.f32 %v3604_v55, %v3272_v7  ;;  %12752 = vst [vmem:[#allocation37_spill] sm:$0xff] %v9756_v37  ;;  %12755 = vst [vmem:[#allocation48_spill] sm:$0xff] %v9761_v13  ;;  %v4328_v48 = vsel %vm495_vm4, %v12753_v17, %v12757_v12  ;;  %v12766_v31 = vld [vmem:[#allocation110_spill] sm:$0xff]  ;;  %v12772_v7 = vld [vmem:[#allocation108_spill] sm:$0xff] }
 0x36d   : > { %4223 = vrot.lane.b32.xlu1 %v4206_v61, %s7155_s24  ;;  %v3617_v53 = vadd.f32 %v3605_v44, %v3273_v10  ;;  %v4208_v6 = vsel %vm3851_vm10, %v12756_v41, %v4207_v29  ;;  %v12758_v27 = vrot.slane %v9480_v39, 6  ;;  %v448_v15 = vrot.slane %v443_v26, %v12761_v58  ;;  %v12771_v29 = vld [vmem:[#allocation109_spill] sm:$0xff]  ;;  %v12775_v10 = vld [vmem:[#allocation234_spill] sm:$0xff]  ;;  %v10494_v37 = vld [vmem:[#allocation2 + $0x68] sm:$0xfc] }
 0x36e   : > { %v3995_v30 = vadd.f32 %v3983_v54, %v3616_v23  ;;  %v452_v39 = vrot.slane %v443_v26, %v12762_v18  ;;  %v9789_v36 = vsel %vm596_vm3, %v12766_v31, %v12765_v24  ;;  %v601_v33 = vmul.f32 %v12768_v1, %v12766_v31  ;;  %v6815_v34 = vld [vmem:[#allocation2 + $0x18] sm:$0xe0]  ;;  %v6816_v20 = vld [vmem:[#allocation2] sm:$0xc0] }
 0x36f   : > { %v4210_v43 = vsel %vm3851_vm10, %v12758_v27, %v4209_v8  ;;  %v3996_v42 = vadd.f32 %v3984_v14, %v3617_v53  ;;  %v9774_v49 = vpop.permute.xlu0 %3422  ;;  %v9776_v52 = vpop.permute.xlu1 %3424  ;;  %v602_v55 = vmul.f32 %v12770_v38, %v9789_v36  ;;  %v934_v19 = vsel %vm495_vm4, %v12772_v7, %v12771_v29  ;;  %v12776_v53 = vld [vmem:[#allocation233_spill] sm:$0xff]  ;;  %v6819_v27 = vld [vmem:[#allocation2 + $0x20] sm:$0x3f] }
 0x370   : > { %4225 = vrot.lane.b32.xlu0 %v4208_v6, %s7155_s24  ;;  %v4339_v40 = vadd.f32 %v4327_v59, %v3995_v30  ;;  %12759 = vst [vmem:[#allocation47_spill] sm:$0xff] %v9774_v49  ;;  %12760 = vst [vmem:[#allocation50_spill] sm:$0xff] %v9776_v52  ;;  %v603_v61 = vmul.f32 %v6815_v34, %v12765_v24  ;;  %v604_v47 = vmul.f32 %v12775_v10, %v12766_v31  ;;  %v9825_v6 = vld [vmem:[#allocation2 + $0x40] sm:$0xff] }
 0x371   : > { %4227 = vrot.lane.b32.xlu1 %v4210_v43, %s7155_s24  ;;  %v4340_v63 = vadd.f32 %v4328_v48, %v3996_v42  ;;  %v939_v54 = vmul.f32 %v6816_v20, %v934_v19  ;;  %v942_v23 = vmul.f32 %v12775_v10, %v934_v19  ;;  %v940_v14 = vmul.f32 %v6817_v22, %v12771_v29 }
 0x372   : > { %v943_v17 = vmul.f32 %v12776_v53, %v12771_v29  ;;  %v605_v59 = vmul.f32 %v12776_v53, %v9789_v36  ;;  %v606_v30 = vmul.f32 %v9825_v6, %v12765_v24  ;;  %v9829_v43 = vmul.f32 %v6819_v27, %v934_v19  ;;  %v6821_v19 = vld [vmem:[#allocation2 + $0x30] sm:$0xc0] }
 0x373   : > { %v9782_v50 = vpop.permute.xlu0 %3428  ;;  %v9784_v5 = vpop.permute.xlu1 %3430  ;;  %v959_v12 = vrot.slane %v939_v54, 1  ;;  %v960_v48 = vrot.slane %v942_v23, 1  ;;  %v962_v42 = vrot.slane %v940_v14, 1  ;;  %v938_v34 = vmul.f32 %v6821_v19, %v12772_v7  ;;  %v6822_v54 = vld [vmem:[#allocation2 + $0x40] sm:$0x3f] }
 0x374   : > { %4500 = vrot.lane.b32.xlu0 %v4339_v40, %s7157_s18  ;;  %12763 = vst [vmem:[#allocation49_spill] sm:$0xff] %v9782_v50  ;;  %12764 = vst [vmem:[#allocation40_spill] sm:$0xff] %v9784_v5  ;;  %v963_v26 = vrot.slane %v943_v17, 1  ;;  %v6820_v40 = vld [vmem:[#allocation2 + $0x10] sm:$0x3f]  ;;  %v9849_v23 = vmul.f32 %v6822_v54, %v12772_v7  ;;  %v12785_v54 = vld [vmem:[#allocation113_spill] sm:$0xff] }
 0x375   : > { %4502 = vrot.lane.b32.xlu1 %v4340_v63, %s7157_s18  ;;  %v9833_v63 = vmul.f32 %v6820_v40, %v12771_v29  ;;  %v12832_v50 = vld [vmem:[#allocation120_spill] sm:$0xff] }
 0x376   : > { %v964_v29 = vsel %vm867_vm0, %v962_v42, %v963_v26 }
 0x377   : > { %v9793_v16 = vpop.permute.xlu0 %3497  ;;  %v9797_v56 = vpop.permute.xlu1 %3499 }
 0x378   : > { %453 = vrot.lane.b32.xlu0 %v448_v15, %s7154_s19  ;;  %12767 = vst [vmem:[#allocation56_spill] sm:$0xff] %v9793_v16  ;;  %12769 = vst [vmem:[#allocation55_spill] sm:$0xff] %v9797_v56  ;;  %v12829_v16 = vld [vmem:[#allocation116_spill] sm:$0xff]  ;;  %v12831_v56 = vld [vmem:[#allocation121_spill] sm:$0xff] }
 0x379   : > { %455 = vrot.lane.b32.xlu1 %v452_v39, %s7154_s19 }
 0x37b   : > { %v9806_v44 = vpop.permute.xlu0 %3501  ;;  %v9809_v8 = vpop.permute.xlu1 %3503 }
 0x37c   : > { %619 = vrot.lane.b32.xlu0 %v601_v33, %s7159_s16  ;;  %12773 = vst [vmem:[#allocation51_spill] sm:$0xff] %v9806_v44  ;;  %12774 = vst [vmem:[#allocation57_spill] sm:$0xff] %v9809_v8  ;;  %v961_v33 = vsel %vm867_vm0, %v959_v12, %v960_v48 }
 0x37d   : > { %621 = vrot.lane.b32.xlu1 %v602_v55, %s7159_s16  ;;  %v12245_v55 = vrot.slane %v9829_v43, 1 }
 0x37f   : > { %v9819_v2 = vpop.permute.xlu0 %3420  ;;  %v9823_v41 = vpop.permute.xlu1 %3426 }
 0x380   : > { %623 = vrot.lane.b32.xlu0 %v603_v61, %s7159_s16  ;;  %12777 = vst [vmem:[#allocation59_spill] sm:$0xff] %v9819_v2  ;;  %12778 = vst [vmem:[#allocation58_spill] sm:$0xff] %v9823_v41  ;;  %v941_v61 = vmul.f32 %v9825_v6, %v12772_v7  ;;  %v12247_v7 = vrot.slane %v9849_v23, 1 }
 0x381   : > { %625 = vrot.lane.b32.xlu1 %v604_v47, %s7159_s16  ;;  %v12244_v47 = vrot.slane %v9833_v63, 1 }
 0x382   : > { %v957_v12 = vrot.slane %v941_v61, 1 }
 0x383   : > { %v9836_v15 = vpop.permute.xlu0 %3053  ;;  %v9838_v39 = vpop.permute.xlu1 %3055  ;;  %v970_v42 = vsel %vm867_vm0, %v963_v26, %v12244_v47 }
 0x384   : > { %627 = vrot.lane.b32.xlu0 %v605_v59, %s7159_s16  ;;  %12779 = vst [vmem:[#allocation65_spill] sm:$0xff] %v9836_v15  ;;  %12780 = vst [vmem:[#allocation64_spill] sm:$0xff] %v9838_v39  ;;  %v968_v59 = vsel %vm867_vm0, %v960_v48, %v12245_v55  ;;  %v12786_v48 = vld [vmem:[#allocation112_spill] sm:$0xff]  ;;  %v966_v26 = vsel %vm867_vm0, %v957_v12, %v12247_v7 }
 0x385   : > { %629 = vrot.lane.b32.xlu1 %v606_v30, %s7159_s16  ;;  %v956_v30 = vrot.slane %v938_v34, 1  ;;  %v1278_v34 = vsel %vm677_vm5, %v12786_v48, %v12785_v54  ;;  %v1282_v61 = vmul.f32 %v6816_v20, %v12786_v48 }
 0x386   : > { %v9905_v39 = vmul.f32 %v6820_v40, %v1278_v34 }
 0x387   : > { %v9852_v14 = vpop.permute.xlu0 %3057  ;;  %v9854_v17 = vpop.permute.xlu1 %3147  ;;  %v1300_v20 = vrot.slane %v1282_v61, 1 }
 0x388   : > { %973 = vrot.lane.b32.xlu0 %v961_v33, %s7157_s18  ;;  %12781 = vst [vmem:[#allocation53_spill] sm:$0xff] %v9852_v14  ;;  %12782 = vst [vmem:[#allocation52_spill] sm:$0xff] %v9854_v17  ;;  %v1283_v17 = vmul.f32 %v6817_v22, %v1278_v34  ;;  %v12255_v40 = vrot.slane %v9905_v39, 1 }
 0x389   : > { %975 = vrot.lane.b32.xlu1 %v964_v29, %s7157_s18  ;;  %v958_v29 = vsel %vm867_vm0, %v956_v30, %v957_v12  ;;  %v12788_v30 = vld [vmem:[#allocation227_spill] sm:$0xff]  ;;  %v1286_v12 = vmul.f32 %v12776_v53, %v1278_v34 }
 0x38a   : > { %v607_v47 = vmul.f32 %v12788_v30, %v12766_v31  ;;  %v1303_v14 = vrot.slane %v1283_v17, 1  ;;  %v12795_v34 = vld [vmem:[#allocation119_spill] sm:$0xff] }
 0x38b   : > { %v9865_v33 = vpop.permute.xlu0 %3149  ;;  %v9867_v19 = vpop.permute.xlu1 %3151  ;;  %v1304_v15 = vrot.slane %v1286_v12, 1  ;;  %v12796_v12 = vld [vmem:[#allocation118_spill] sm:$0xff] }
 0x38c   : > { %979 = vrot.lane.b32.xlu0 %v968_v59, %s7157_s18  ;;  %12783 = vst [vmem:[#allocation54_spill] sm:$0xff] %v9865_v33  ;;  %12784 = vst [vmem:[#allocation60_spill] sm:$0xff] %v9867_v19  ;;  %v1285_v59 = vmul.f32 %v12775_v10, %v12786_v48  ;;  %v6823_v33 = vld [vmem:[#allocation2 + $0x18] sm:$0xc0] }
 0x38d   : > { %981 = vrot.lane.b32.xlu1 %v970_v42, %s7157_s18 }
 0x38e   : > { %v1301_v7 = vrot.slane %v1285_v59, 1 }
 0x38f   : > { %v9881_v42 = vpop.permute.xlu0 %3764  ;;  %v9885_v55 = vpop.permute.xlu1 %3766 }
 0x390   : > { %971 = vrot.lane.b32.xlu0 %v958_v29, %s7157_s18  ;;  %12787 = vst [vmem:[#allocation66_spill] sm:$0xff] %v9881_v42  ;;  %12789 = vst [vmem:[#allocation68_spill] sm:$0xff] %v9885_v55  ;;  %v12790_v29 = vld [vmem:[#allocation229_spill] sm:$0xff]  ;;  %v1287_v42 = vmul.f32 %v9825_v6, %v12785_v54 }
 0x391   : > { %977 = vrot.lane.b32.xlu1 %v966_v26, %s7157_s18  ;;  %v608_v19 = vmul.f32 %v12790_v29, %v9789_v36  ;;  %v1284_v26 = vmul.f32 %v6823_v33, %v12785_v54  ;;  %v6824_v55 = vld [vmem:[#allocation2 + $0x38] sm:$0x1f]  ;;  %v1302_v33 = vsel %vm867_vm0, %v1300_v20, %v1301_v7  ;;  %v1657_v20 = vsel %vm533_vm6, %v12796_v12, %v12795_v34 }
 0x392   : > { %v609_v36 = vmul.f32 %v6824_v55, %v12765_v24  ;;  %v1307_v59 = vrot.slane %v1287_v42, 1  ;;  %v1305_v55 = vsel %vm867_vm0, %v1303_v14, %v1304_v15 }
 0x393   : > { %v9895_v31 = vpop.permute.xlu0 %3768  ;;  %v9898_v22 = vpop.permute.xlu1 %3770  ;;  %v1306_v61 = vrot.slane %v1284_v26, 1 }
 0x394   : > { %631 = vrot.lane.b32.xlu0 %v607_v47, %s7159_s16  ;;  %12791 = vst [vmem:[#allocation67_spill] sm:$0xff] %v9895_v31  ;;  %12792 = vst [vmem:[#allocation69_spill] sm:$0xff] %v9898_v22  ;;  %v9901_v47 = vmul.f32 %v6819_v27, %v12786_v48  ;;  %v6825_v27 = vld [vmem:[#allocation2 + $0x38] sm:$0x3f] }
 0x395   : > { %633 = vrot.lane.b32.xlu1 %v608_v19, %s7159_s16  ;;  %v9915_v48 = vmul.f32 %v6825_v27, %v12785_v54  ;;  %v1308_v42 = vsel %vm867_vm0, %v1306_v61, %v1307_v59  ;;  %v6826_v61 = vld [vmem:[#allocation2] sm:$0x80]  ;;  %v1665_v27 = vmul.f32 %v12775_v10, %v1657_v20 }
 0x396   : > { %v12254_v17 = vrot.slane %v9901_v47, 1 }
 0x397   : > { %v9908_v19 = vpop.permute.xlu0 %3772  ;;  %v9910_v24 = vpop.permute.xlu1 %3774 }
 0x398   : > { %635 = vrot.lane.b32.xlu0 %v609_v36, %s7159_s16  ;;  %12793 = vst [vmem:[#allocation77_spill] sm:$0xff] %v9908_v19  ;;  %12794 = vst [vmem:[#allocation76_spill] sm:$0xff] %v9910_v24  ;;  %v1310_v54 = vsel %vm867_vm0, %v1301_v7, %v12254_v17  ;;  %v12258_v36 = vrot.slane %v9915_v48, 1  ;;  %v6827_v17 = vld [vmem:[#allocation2 + $0x58] sm:$0x80] }
 0x399   : > { %1315 = vrot.lane.b32.xlu1 %v1302_v33, %s7158_s17  ;;  %v1312_v33 = vsel %vm867_vm0, %v1304_v15, %v12255_v40  ;;  %v1666_v15 = vmul.f32 %v12776_v53, %v12795_v34  ;;  %v9949_v24 = vld [vmem:[#allocation2 + $0x20] sm:$0x7f]  ;;  %v9961_v19 = vld [vmem:[#allocation2 + $0x10] sm:$0x7f] }
 0x39a   : > { %v1314_v7 = vsel %vm867_vm0, %v1307_v59, %v12258_v36 }
 0x39b   : > { %v9924_v26 = vpop.permute.xlu0 %3867  ;;  %v9926_v14 = vpop.permute.xlu1 %3869  ;;  %v1686_v22 = vrot.slane %v1666_v15, 2 }
 0x39c   : > { %1317 = vrot.lane.b32.xlu0 %v1305_v55, %s7158_s17  ;;  %12797 = vst [vmem:[#allocation62_spill] sm:$0xff] %v9924_v26  ;;  %12798 = vst [vmem:[#allocation61_spill] sm:$0xff] %v9926_v14  ;;  %v1662_v55 = vmul.f32 %v6826_v61, %v1657_v20  ;;  %v1683_v14 = vrot.slane %v1665_v27, 2 }
 0x39d   : > { %1319 = vrot.lane.b32.xlu1 %v1308_v42, %s7158_s17 }
 0x39e   : > { %v1682_v40 = vrot.slane %v1662_v55, 2  ;;  %v9965_v55 = vmul.f32 %v9961_v19, %v12795_v34 }
 0x39f   : > { %v9938_v42 = vpop.permute.xlu0 %3871  ;;  %v9940_v26 = vpop.permute.xlu1 %3873 }
 0x3a0   : > { %1321 = vrot.lane.b32.xlu0 %v1310_v54, %s7158_s17  ;;  %12799 = vst [vmem:[#allocation63_spill] sm:$0xff] %v9938_v42  ;;  %12800 = vst [vmem:[#allocation78_spill] sm:$0xff] %v9940_v26  ;;  %v1663_v54 = vmul.f32 %v6827_v17, %v12795_v34  ;;  %v12801_v26 = vrot.slane %v9829_v43, 1  ;;  %v1684_v27 = vsel %vm1496_vm2, %v1682_v40, %v1683_v14  ;;  %v6830_v34 = vld [vmem:[#allocation2 + $0x30] sm:$0x80] }
 0x3a1   : > { %1323 = vrot.lane.b32.xlu1 %v1312_v33, %s7158_s17  ;;  %v9952_v33 = vmul.f32 %v9949_v24, %v1657_v20  ;;  %v12804_v20 = vrot.slane %v9833_v63, 1  ;;  %v1664_v63 = vmul.f32 %v9825_v6, %v12796_v12 }
 0x3a2   : > { %v1685_v42 = vrot.slane %v1663_v54, 2 }
 0x3a3   : > { %v9957_v59 = vpop.permute.xlu0 %3875  ;;  %v9959_v36 = vpop.permute.xlu1 %3877  ;;  %v12263_v43 = vrot.slane %v9952_v33, 2 }
 0x3a4   : > { %1325 = vrot.lane.b32.xlu0 %v1314_v7, %s7158_s17  ;;  %12802 = vst [vmem:[#allocation80_spill] sm:$0xff] %v9957_v59  ;;  %12803 = vst [vmem:[#allocation79_spill] sm:$0xff] %v9959_v36  ;;  %v1687_v54 = vsel %vm1496_vm2, %v1685_v42, %v1686_v22  ;;  %v1661_v36 = vmul.f32 %v6830_v34, %v12796_v12  ;;  %v12809_v34 = vrot.slane %v9965_v55, 2  ;;  %v6832_v59 = vld [vmem:[#allocation2 + $0x18] sm:$0x80] }
 0x3a5   : > { %985 = vrot.lane.b32.xlu1 %v12801_v26, %s7157_s18  ;;  %v1691_v40 = vsel %vm1496_vm2, %v1683_v14, %v12263_v43 }
 0x3a7   : > { %v9973_v26 = vpop.permute.xlu0 %3434  ;;  %v9975_v7 = vpop.permute.xlu1 %3436 }
 0x3a8   : > { %987 = vrot.lane.b32.xlu0 %v12804_v20, %s7157_s18  ;;  %12805 = vst [vmem:[#allocation85_spill] sm:$0xff] %v9973_v26  ;;  %12806 = vst [vmem:[#allocation84_spill] sm:$0xff] %v9975_v7  ;;  %v6831_v20 = vld [vmem:[#allocation2 + $0x40] sm:$0x7f]  ;;  %v1693_v26 = vsel %vm1496_vm2, %v1686_v22, %v12809_v34  ;;  %v1679_v7 = vrot.slane %v1661_v36, 2  ;;  %v12815_v34 = vld [vmem:[#allocation133_spill] sm:$0xff] }
 0x3a9   : > { %1696 = vrot.lane.b32.xlu1 %v1684_v27, %s7155_s24  ;;  %v9987_v27 = vmul.f32 %v6831_v20, %v12796_v12  ;;  %v12810_v12 = vrot.slane %v9849_v23, 1  ;;  %v2638_v20 = vld [vmem:[#allocation6 + $0x34] ss:$8 sm:$0x3] }
 0x3aa   : > { %v2643_v36 = vrot.slane %v2638_v20, %v12761_v58  ;;  %v2647_v23 = vrot.slane %v2638_v20, %v12762_v18 }
 0x3ab   : > { %v9990_v42 = vpop.permute.xlu0 %3505  ;;  %v9992_v15 = vpop.permute.xlu1 %3507  ;;  %v12265_v14 = vrot.slane %v9987_v27, 2 }
 0x3ac   : > { %1698 = vrot.lane.b32.xlu0 %v1687_v54, %s7155_s24  ;;  %12807 = vst [vmem:[#allocation98_spill] sm:$0xff] %v9990_v42  ;;  %12808 = vst [vmem:[#allocation97_spill] sm:$0xff] %v9992_v15  ;;  %v1680_v54 = vrot.slane %v1664_v63, 2 }
 0x3ad   : > { %1702 = vrot.lane.b32.xlu1 %v1691_v40, %s7155_s24 }
 0x3ae   : > { %v1681_v42 = vsel %vm1496_vm2, %v1679_v7, %v1680_v54  ;;  %v1689_v22 = vsel %vm1496_vm2, %v1680_v54, %v12265_v14 }
 0x3af   : > { %v10002_v40 = vpop.permute.xlu0 %4126  ;;  %v10004_v43 = vpop.permute.xlu1 %4128 }
 0x3b0   : > { %1704 = vrot.lane.b32.xlu0 %v1693_v26, %s7155_s24  ;;  %12811 = vst [vmem:[#allocation81_spill] sm:$0xff] %v10002_v40  ;;  %12812 = vst [vmem:[#allocation90_spill] sm:$0xff] %v10004_v43  ;;  %v10037_v40 = vmul.f32 %v9825_v6, %v12815_v34  ;;  %v12823_v43 = vld [vmem:[#allocation114_spill] sm:$0xff] }
 0x3b1   : > { %983 = vrot.lane.b32.xlu1 %v12810_v12, %s7157_s18  ;;  %v12816_v12 = vld [vmem:[#allocation132_spill] sm:$0xff] }
 0x3b2   : > { %v2001_v7 = vsel %vm757_vm8, %v12816_v12, %v12815_v34  ;;  %v2008_v54 = vmul.f32 %v12775_v10, %v12816_v12  ;;  %v10051_v31 = vmul.f32 %v9949_v24, %v12816_v12  ;;  %v2030_v41 = vrot.slane %v10037_v40, 2 }
 0x3b3   : > { %v10014_v26 = vpop.permute.xlu0 %4130  ;;  %v2006_v14 = vmul.f32 %v6827_v17, %v2001_v7  ;;  %v2009_v15 = vmul.f32 %v12776_v53, %v2001_v7  ;;  %v431_v17 = vld [vmem:[#allocation2 + $0x30] sm:$0xe0]  ;;  %v10059_v2 = vmul.f32 %v9961_v19, %v2001_v7 }
 0x3b4   : > { %1694 = vrot.lane.b32.xlu0 %v1681_v42, %s7155_s24  ;;  %12813 = vst [vmem:[#allocation92_spill] sm:$0xff] %v10014_v26  ;;  %v10016_v63 = vpop.permute.xlu1 %4132  ;;  %v2005_v42 = vmul.f32 %v6826_v61, %v12816_v12  ;;  %v12819_v26 = vrot.slane %v9901_v47, 1  ;;  %v2007_v61 = vmul.f32 %v6832_v59, %v12815_v34  ;;  %v12835_v49 = vrot.slane %v10051_v31, 2 }
 0x3b5   : > { %1700 = vrot.lane.b32.xlu1 %v1689_v22, %s7155_s24  ;;  %12814 = vst [vmem:[#allocation91_spill] sm:$0xff] %v10016_v63  ;;  %v2027_v59 = vrot.slane %v2009_v15, 2  ;;  %v503_v15 = vmul.f32 %v9825_v6, %v12823_v43  ;;  %v12838_v0 = vrot.slane %v10059_v2, 2 }
 0x3b6   : > { %v2023_v63 = vrot.slane %v2005_v42, 2 }
 0x3b7   : > { %v10026_v22 = vpop.permute.xlu0 %4211 }
 0x3b8   : > { %2648 = vrot.lane.b32.xlu0 %v2643_v36, %s7154_s19  ;;  %12817 = vst [vmem:[#allocation86_spill] sm:$0xff] %v10026_v22  ;;  %v10028_v20 = vpop.permute.xlu1 %4213  ;;  %v2024_v36 = vrot.slane %v2008_v54, 2  ;;  %v2026_v54 = vrot.slane %v2006_v14, 2 }
 0x3b9   : > { %2650 = vrot.lane.b32.xlu1 %v2647_v23, %s7154_s19  ;;  %12818 = vst [vmem:[#allocation100_spill] sm:$0xff] %v10028_v20  ;;  %v12820_v23 = vrot.slane %v9905_v39, 1  ;;  %v12822_v20 = vld [vmem:[#allocation115_spill] sm:$0xff]  ;;  %v12825_v39 = vrot.slane %v9915_v48, 1 }
 0x3ba   : > { %v496_v47 = vsel %vm495_vm4, %v12823_v43, %v12822_v20  ;;  %v502_v24 = vmul.f32 %v12770_v38, %v12822_v20  ;;  %v505_v48 = vmul.f32 %v12776_v53, %v12822_v20  ;;  %v10074_v19 = vmul.f32 %v12790_v29, %v12822_v20 }
 0x3bb   : > { %v10042_v22 = vpop.permute.xlu0 %4215  ;;  %v501_v12 = vmul.f32 %v12768_v1, %v496_v47  ;;  %v10088_v20 = vmul.f32 %v12788_v30, %v496_v47 }
 0x3bc   : > { %1327 = vrot.lane.b32.xlu0 %v12819_v26, %s7158_s17  ;;  %12821 = vst [vmem:[#allocation99_spill] sm:$0xff] %v10042_v22  ;;  %v439_v26 = vld [vmem:[#allocation2 + $0x40] sm:$0x1f]  ;;  %v2029_v22 = vrot.slane %v2007_v61, 2  ;;  %v2028_v61 = vsel %vm1496_vm2, %v2026_v54, %v2027_v59 }
 0x3bd   : > { %1329 = vrot.lane.b32.xlu1 %v12820_v23, %s7158_s17  ;;  %v10047_v42 = vpop.permute.xlu1 %4217  ;;  %v2025_v23 = vsel %vm1496_vm2, %v2023_v63, %v2024_v36  ;;  %v10070_v14 = vmul.f32 %v12823_v43, %v439_v26  ;;  %v2326_v63 = vld [vmem:[#allocation6 + $0x30] ss:$8 sm:$0x3] }
 0x3be   : > { %12824 = vst [vmem:[#allocation71_spill] sm:$0xff] %v10047_v42  ;;  %v500_v42 = vmul.f32 %v12823_v43, %v431_v17  ;;  %v504_v43 = vmul.f32 %v12775_v10, %v496_v47  ;;  %v2331_v47 = vrot.slane %v2326_v63, %v12761_v58  ;;  %v12833_v58 = vld [vmem:[#allocation122_spill] sm:$0xff] }
 0x3bf   : > { %v10076_v40 = vpop.permute.xlu0 %4219 }
 0x3c0   : > { %1331 = vrot.lane.b32.xlu0 %v12825_v39, %s7158_s17  ;;  %12826 = vst [vmem:[#allocation70_spill] sm:$0xff] %v10076_v40  ;;  %v2031_v40 = vsel %vm1496_vm2, %v2029_v22, %v2030_v41  ;;  %v538_v39 = vmul.f32 %v12829_v16, %v431_v17 }
 0x3c1   : > { %2038 = vrot.lane.b32.xlu1 %v2025_v23, %s7156_s21  ;;  %v10079_v7 = vpop.permute.xlu1 %4221  ;;  %v6833_v23 = vld [vmem:[#allocation2 + $0x38] sm:$0x7f] }
 0x3c2   : > { %12827 = vst [vmem:[#allocation93_spill] sm:$0xff] %v10079_v7  ;;  %v10084_v44 = vmul.f32 %v6833_v23, %v12815_v34  ;;  %v12828_v7 = vld [vmem:[#allocation117_spill] sm:$0xff]  ;;  %v541_v34 = vmul.f32 %v9825_v6, %v12829_v16  ;;  %v10106_v23 = vmul.f32 %v12829_v16, %v439_v26  ;;  %v2338_v26 = vmul.f32 %v12775_v10, %v2331_v47 }
 0x3c3   : > { %v534_v54 = vsel %vm533_vm6, %v12829_v16, %v12828_v7  ;;  %v543_v22 = vmul.f32 %v12776_v53, %v12828_v7  ;;  %v10110_v8 = vmul.f32 %v12790_v29, %v12828_v7  ;;  %v2033_v16 = vsel %vm1496_vm2, %v2024_v36, %v12835_v49  ;;  %v12836_v29 = vld [vmem:[#allocation124_spill] sm:$0xff] }
 0x3c4   : > { %2040 = vrot.lane.b32.xlu0 %v2028_v61, %s7156_s21  ;;  %v540_v61 = vmul.f32 %v12770_v38, %v12828_v7  ;;  %v10112_v17 = vpop.permute.xlu0 %3432  ;;  %v719_v38 = vsel %vm637_vm12, %v12831_v56, %v12833_v58  ;;  %v12837_v7 = vld [vmem:[#allocation123_spill] sm:$0xff]  ;;  %v539_v52 = vmul.f32 %v12768_v1, %v534_v54  ;;  %v2035_v58 = vsel %vm1496_vm2, %v2027_v59, %v12838_v0  ;;  %v10147_v59 = vld [vmem:[#allocation2 + $0x20] sm:$0xff] }
 0x3c5   : > { %2042 = vrot.lane.b32.xlu1 %v2031_v40, %s7156_s21  ;;  %12830 = vst [vmem:[#allocation72_spill] sm:$0xff] %v10112_v17  ;;  %v718_v40 = vsel %vm637_vm12, %v12832_v50, %v12831_v56  ;;  %v10120_v5 = vpop.permute.xlu1 %3776  ;;  %v720_v17 = vsel %vm637_vm12, %v12837_v7, %v12836_v29  ;;  %v2335_v56 = vrot.slane %v2326_v63, %v12762_v18  ;;  %v12841_v63 = vld [vmem:[#allocation127_spill] sm:$0xff] }
 0x3c6   : > { %12834 = vst [vmem:[#allocation74_spill] sm:$0xff] %v10120_v5  ;;  %v733_v5 = vadd.f32 %v12832_v50, %v500_v42  ;;  %v542_v49 = vmul.f32 %v12775_v10, %v534_v54  ;;  %v10138_v36 = vmul.f32 %v12788_v30, %v534_v54  ;;  %v734_v1 = vadd.f32 %v718_v40, %v501_v12  ;;  %v12842_v54 = vld [vmem:[#allocation126_spill] sm:$0xff]  ;;  %v12849_v18 = vld [vmem:[#allocation135_spill] sm:$0xff] }
 0x3c7   : > { %v735_v46 = vadd.f32 %v719_v38, %v502_v24  ;;  %v10150_v50 = vmul.f32 %v10147_v59, %v2331_v47  ;;  %v736_v30 = vadd.f32 %v12837_v7, %v503_v15  ;;  %v737_v42 = vadd.f32 %v720_v17, %v504_v43  ;;  %v12845_v38 = vld [vmem:[#allocation128_spill] sm:$0xff]  ;;  %v12847_v47 = vld [vmem:[#allocation129_spill] sm:$0xff]  ;;  %v12848_v15 = vld [vmem:[#allocation131_spill] sm:$0xff] }
 0x3c8   : > { %2044 = vrot.lane.b32.xlu0 %v2033_v16, %s7156_s21  ;;  %v12839_v16 = vld [vmem:[#allocation125_spill] sm:$0xff]  ;;  %v798_v10 = vsel %vm637_vm12, %v12842_v54, %v12841_v63  ;;  %v12844_v24 = vrot.slane %v10084_v44, 2  ;;  %v2339_v17 = vmul.f32 %v12776_v53, %v2335_v56  ;;  %v12853_v53 = vld [vmem:[#allocation136_spill] sm:$0xff] }
 0x3c9   : > { %2046 = vrot.lane.b32.xlu1 %v2035_v58, %s7156_s21  ;;  %v721_v3 = vsel %vm637_vm12, %v12836_v29, %v12839_v16  ;;  %v10145_v0 = vpop.permute.xlu0 %3778  ;;  %v799_v29 = vsel %vm637_vm12, %v12841_v63, %v12845_v38  ;;  %v12846_v58 = vld [vmem:[#allocation130_spill] sm:$0xff]  ;;  %v12851_v63 = vrot.slane %v9952_v33, 2  ;;  %v10178_v38 = vld [vmem:[#allocation2 + $0x10] sm:$0xff]  ;;  %v816_v33 = vadd.f32 %v12847_v47, %v541_v34  ;;  %v12859_v34 = vld [vmem:[#allocation141_spill] sm:$0xff] }
 0x3ca   : > { %12840 = vst [vmem:[#allocation73_spill] sm:$0xff] %v10145_v0  ;;  %v10156_v12 = vpop.permute.xlu1 %3780  ;;  %v2037_v40 = vsel %vm1496_vm2, %v2030_v41, %v12844_v24  ;;  %v800_v16 = vsel %vm637_vm12, %v12847_v47, %v12846_v58  ;;  %v801_v43 = vsel %vm637_vm12, %v12846_v58, %v12848_v15  ;;  %v738_v7 = vadd.f32 %v721_v3, %v505_v48  ;;  %v12852_v15 = vld [vmem:[#allocation137_spill] sm:$0xff] }
 0x3cb   : > { %12843 = vst [vmem:[#allocation101_spill] sm:$0xff] %v10156_v12  ;;  %v12850_v12 = vld [vmem:[#allocation134_spill] sm:$0xff]  ;;  %v2346_v24 = vrot.slane %v2338_v26, 3  ;;  %v10181_v0 = vmul.f32 %v10178_v38, %v2335_v56  ;;  %v813_v58 = vadd.f32 %v12842_v54, %v538_v39  ;;  %v1086_v3 = vsel %vm533_vm6, %v12853_v53, %v12852_v15  ;;  %v12856_v39 = vld [vmem:[#allocation139_spill] sm:$0xff] }
 0x3cc   : > { %2048 = vrot.lane.b32.xlu0 %v2037_v40, %s7156_s21  ;;  %v1084_v41 = vsel %vm533_vm6, %v12850_v12, %v12849_v18  ;;  %v814_v40 = vadd.f32 %v798_v10, %v539_v52  ;;  %v815_v60 = vadd.f32 %v799_v29, %v540_v61  ;;  %v817_v26 = vadd.f32 %v800_v16, %v542_v49  ;;  %v12857_v52 = vld [vmem:[#allocation138_spill] sm:$0xff]  ;;  %v12860_v49 = vld [vmem:[#allocation140_spill] sm:$0xff] }
 0x3cd   : > { %1708 = vrot.lane.b32.xlu1 %v12851_v63, %s7155_s24  ;;  %v818_v63 = vadd.f32 %v801_v43, %v543_v22  ;;  %v1099_v56 = vadd.f32 %v1084_v41, %v734_v1  ;;  %v1100_v21 = vadd.f32 %v12849_v18, %v735_v46  ;;  %v1154_v54 = vsel %vm533_vm6, %v12857_v52, %v12856_v39  ;;  %v12861_v1 = vld [vmem:[#allocation142_spill] sm:$0xff]  ;;  %v12865_v41 = vld [vmem:[#allocation145_spill] sm:$0xff] }
 0x3ce   : > { %v10187_v48 = vpop.permute.xlu0 %3879  ;;  %v12858_v10 = vrot.slane %v9965_v55, 2  ;;  %v1102_v35 = vadd.f32 %v1086_v3, %v737_v42  ;;  %v1103_v61 = vadd.f32 %v12852_v15, %v738_v7  ;;  %v1155_v22 = vsel %vm533_vm6, %v12860_v49, %v12859_v34  ;;  %v12862_v55 = vld [vmem:[#allocation143_spill] sm:$0xff]  ;;  %v12866_v15 = vld [vmem:[#allocation144_spill] sm:$0xff]  ;;  %v12867_v3 = vld [vmem:[#allocation146_spill] sm:$0xff] }
 0x3cf   : > { %12854 = vst [vmem:[#allocation75_spill] sm:$0xff] %v10187_v48  ;;  %v10191_v25 = vpop.permute.xlu1 %3881  ;;  %v2347_v48 = vrot.slane %v2339_v17, 3  ;;  %v12293_v46 = vrot.slane %v10181_v0, 3  ;;  %v1166_v18 = vadd.f32 %v12857_v52, %v813_v58  ;;  %v1083_v29 = vsel %vm533_vm6, %v12861_v1, %v12850_v12 }
 0x3d0   : > { %12855 = vst [vmem:[#allocation224_spill] sm:$0xff] %v10191_v25  ;;  %1710 = vrot.lane.b32.xlu0 %v12858_v10, %s7155_s24  ;;  %v1085_v42 = vsel %vm533_vm6, %v12862_v55, %v12853_v53  ;;  %v12864_v16 = vrot.slane %v10150_v50, 3  ;;  %v1167_v17 = vadd.f32 %v1154_v54, %v814_v40  ;;  %v1168_v7 = vadd.f32 %v12856_v39, %v815_v60  ;;  %v12869_v55 = vld [vmem:[#allocation148_spill] sm:$0xff]  ;;  %v12871_v54 = vld [vmem:[#allocation149_spill] sm:$0xff] }
 0x3d1   : > { %2352 = vrot.lane.b32.xlu1 %v2346_v24, %s7154_s19  ;;  %v722_v58 = vsel %vm637_vm12, %v12866_v15, %v12865_v41  ;;  %v723_v12 = vsel %vm637_vm12, %v12865_v41, %v12867_v3  ;;  %v1169_v53 = vadd.f32 %v12860_v49, %v816_v33  ;;  %v1170_v10 = vadd.f32 %v1155_v22, %v817_v26  ;;  %v12877_v41 = vld [vmem:[#allocation153_spill] sm:$0xff]  ;;  %v12879_v3 = vld [vmem:[#allocation155_spill] sm:$0xff] }
 0x3d2   : > { %v10213_v47 = vpop.permute.xlu0 %3883  ;;  %v2349_v43 = vsel %vm2115_vm7, %v2346_v24, %v12864_v16  ;;  %v1171_v1 = vadd.f32 %v12859_v34, %v818_v63  ;;  %v12870_v24 = vld [vmem:[#allocation147_spill] sm:$0xff]  ;;  %v1098_v60 = vadd.f32 %v1083_v29, %v733_v5  ;;  %v1101_v39 = vadd.f32 %v1085_v42, %v736_v30  ;;  %v12873_v30 = vld [vmem:[#allocation150_spill] sm:$0xff] }
 0x3d3   : > { %12863 = vst [vmem:[#allocation231_spill] sm:$0xff] %v10213_v47  ;;  %v10225_v52 = vpop.permute.xlu1 %4492  ;;  %v802_v40 = vsel %vm637_vm12, %v12870_v24, %v12869_v55  ;;  %v803_v16 = vsel %vm637_vm12, %v12869_v55, %v12871_v54  ;;  %v2351_v33 = vsel %vm2115_vm7, %v2347_v48, %v12293_v46  ;;  %v10242_v26 = vadd.f32 %v12866_v15, %v10070_v14  ;;  %v12872_v5 = vld [vmem:[#allocation151_spill] sm:$0xff] }
 0x3d4   : > { %12868 = vst [vmem:[#allocation221_spill] sm:$0xff] %v10225_v52  ;;  %2354 = vrot.lane.b32.xlu0 %v2347_v48, %s7154_s19  ;;  %v740_v63 = vadd.f32 %v722_v58, %v10088_v20  ;;  %v741_v34 = vadd.f32 %v723_v12, %v10074_v19  ;;  %v1427_v49 = vsel %vm757_vm8, %v12873_v30, %v12872_v5  ;;  %v12875_v48 = vld [vmem:[#allocation152_spill] sm:$0xff]  ;;  %v12880_v12 = vld [vmem:[#allocation157_spill] sm:$0xff] }
 0x3d5   : > { %2356 = vrot.lane.b32.xlu1 %v2349_v43, %s7154_s19  ;;  %v819_v29 = vadd.f32 %v12870_v24, %v10106_v23  ;;  %v820_v42 = vadd.f32 %v802_v40, %v10138_v36  ;;  %v1428_v14 = vsel %vm757_vm8, %v12872_v5, %v12875_v48  ;;  %v12876_v43 = vld [vmem:[#allocation154_spill] sm:$0xff]  ;;  %v821_v15 = vadd.f32 %v803_v16, %v10110_v8  ;;  %v12881_v36 = vld [vmem:[#allocation156_spill] sm:$0xff]  ;;  %v12884_v48 = vld [vmem:[#allocation159_spill] sm:$0xff] }
 0x3d6   : > { %v10249_v22 = vpop.permute.xlu0 %4494  ;;  %v1429_v20 = vsel %vm757_vm8, %v12877_v41, %v12876_v43  ;;  %v1442_v58 = vadd.f32 %v12873_v30, %v1098_v60  ;;  %v1430_v23 = vsel %vm757_vm8, %v12876_v43, %v12879_v3  ;;  %v1530_v55 = vsel %vm677_vm5, %v12881_v36, %v12880_v12  ;;  %v12882_v40 = vld [vmem:[#allocation158_spill] sm:$0xff]  ;;  %v12883_v5 = vld [vmem:[#allocation160_spill] sm:$0xff]  ;;  %v12885_v60 = vld [vmem:[#allocation161_spill] sm:$0xff] }
 0x3d7   : > { %12874 = vst [vmem:[#allocation222_spill] sm:$0xff] %v10249_v22  ;;  %v10260_v19 = vpop.permute.xlu1 %4496  ;;  %v1443_v24 = vadd.f32 %v1427_v49, %v1099_v56  ;;  %v1531_v54 = vsel %vm677_vm5, %v12880_v12, %v12882_v40  ;;  %v1532_v8 = vsel %vm677_vm5, %v12884_v48, %v12883_v5  ;;  %v1533_v16 = vsel %vm677_vm5, %v12883_v5, %v12885_v60  ;;  %v12887_v49 = vld [vmem:[#allocation163_spill] sm:$0xff]  ;;  %v12888_v3 = vld [vmem:[#allocation162_spill] sm:$0xff]  ;;  %v12890_v22 = vld [vmem:[#allocation165_spill] sm:$0xff] }
 0x3d8   : > { %12878 = vst [vmem:[#allocation88_spill] sm:$0xff] %v10260_v19  ;;  %2358 = vrot.lane.b32.xlu0 %v2351_v33, %s7154_s19  ;;  %v12886_v30 = vrot.slane %v9987_v27, 2  ;;  %v1444_v43 = vadd.f32 %v1428_v14, %v1100_v21  ;;  %v1445_v33 = vadd.f32 %v12877_v41, %v1101_v39  ;;  %v1446_v56 = vadd.f32 %v1429_v20, %v1102_v35  ;;  %v12891_v5 = vld [vmem:[#allocation164_spill] sm:$0xff] }
 0x3d9   : > { %v1088_v12 = vsel %vm533_vm6, %v12888_v3, %v12887_v49  ;;  %v1447_v46 = vadd.f32 %v1430_v23, %v1103_v61  ;;  %v1545_v19 = vadd.f32 %v12881_v36, %v1166_v18  ;;  %v1546_v52 = vadd.f32 %v1530_v55, %v1167_v17  ;;  %v12894_v17 = vld [vmem:[#allocation167_spill] sm:$0xff]  ;;  %v12895_v23 = vld [vmem:[#allocation166_spill] sm:$0xff] }
 0x3da   : > { %1706 = vrot.lane.b32.xlu1 %v12886_v30, %s7155_s24  ;;  %v10287_v40 = vpop.permute.xlu0 %4498  ;;  %v1156_v60 = vsel %vm533_vm6, %v12891_v5, %v12890_v22  ;;  %v1547_v21 = vadd.f32 %v1531_v54, %v1168_v7  ;;  %v1548_v39 = vadd.f32 %v12884_v48, %v1169_v53  ;;  %v1549_v35 = vadd.f32 %v1532_v8, %v1170_v10  ;;  %v12900_v55 = vld [vmem:[#allocation171_spill] sm:$0xff]  ;;  %v12901_v54 = vld [vmem:[#allocation170_spill] sm:$0xff] }
 0x3db   : > { %12889 = vst [vmem:[#allocation87_spill] sm:$0xff] %v10287_v40  ;;  %v10293_v27 = vpop.permute.xlu1 %4134  ;;  %v1550_v14 = vadd.f32 %v1533_v16, %v1171_v1  ;;  %v12893_v41 = vrot.slane %v10051_v31, 2  ;;  %v10299_v20 = vadd.f32 %v1088_v12, %v740_v63  ;;  %v10302_v61 = vadd.f32 %v12887_v49, %v741_v34  ;;  %v12897_v63 = vld [vmem:[#allocation169_spill] sm:$0xff]  ;;  %v12898_v34 = vld [vmem:[#allocation168_spill] sm:$0xff]  ;;  %v12903_v8 = vld [vmem:[#allocation182_spill] sm:$0xff] }
 0x3dc   : > { %12892 = vst [vmem:[#allocation226_spill] sm:$0xff] %v10293_v27  ;;  %v10305_v18 = vadd.f32 %v12891_v5, %v819_v29  ;;  %v1783_v7 = vsel %vm495_vm4, %v12895_v23, %v12894_v17  ;;  %v12896_v53 = vrot.slane %v10059_v2, 2  ;;  %v10313_v10 = vadd.f32 %v1156_v60, %v820_v42  ;;  %v12902_v2 = vld [vmem:[#allocation172_spill] sm:$0xff]  ;;  %v10339_v16 = vld [vmem:[#allocation2 + $0x68] sm:$0xfe] }
 0x3dd   : > { %2050 = vrot.lane.b32.xlu0 %v12893_v41, %s7156_s21  ;;  %v10316_v31 = vadd.f32 %v12890_v22, %v821_v15  ;;  %v10319_v1 = vadd.f32 %v12895_v23, %v1442_v58  ;;  %v1784_v29 = vsel %vm495_vm4, %v12898_v34, %v12897_v63  ;;  %v1874_v48 = vsel %vm495_vm4, %v12901_v54, %v12900_v55  ;;  %v12904_v22 = vld [vmem:[#allocation181_spill] sm:$0xff] }
 0x3de   : > { %2052 = vrot.lane.b32.xlu1 %v12896_v53, %s7156_s21  ;;  %v10324_v36 = vpop.permute.xlu0 %4136  ;;  %v1875_v42 = vsel %vm495_vm4, %v12900_v55, %v12902_v2  ;;  %v10335_v15 = vsel %vm596_vm3, %v12904_v22, %v12903_v8  ;;  %v10343_v30 = vmul.f32 %v10339_v16, %v12904_v22  ;;  %v10345_v49 = vadd.f32 %v1783_v7, %v1443_v24  ;;  %v12907_v24 = vld [vmem:[#allocation174_spill] sm:$0xff]  ;;  %v12908_v7 = vld [vmem:[#allocation173_spill] sm:$0xff] }
 0x3df   : > { %12899 = vst [vmem:[#allocation89_spill] sm:$0xff] %v10324_v36  ;;  %v10337_v58 = vpop.permute.xlu1 %4223  ;;  %v10348_v12 = vadd.f32 %v12894_v17, %v1444_v43  ;;  %v10351_v5 = vadd.f32 %v12898_v34, %v1445_v33  ;;  %v10354_v60 = vadd.f32 %v12897_v63, %v1447_v46  ;;  %v12906_v41 = vrot.slane %v10084_v44, 2  ;;  %v12909_v17 = vld [vmem:[#allocation175_spill] sm:$0xff]  ;;  %v2633_v34 = vld [vmem:[#allocation2 + $0x60] sm:$0x1] }
 0x3e0   : > { %12905 = vst [vmem:[#allocation95_spill] sm:$0xff] %v10337_v58  ;;  %v10359_v23 = vadd.f32 %v1784_v29, %v1446_v56  ;;  %v10362_v53 = vadd.f32 %v12901_v54, %v1545_v19  ;;  %v1876_v43 = vsel %vm495_vm4, %v12908_v7, %v12907_v24  ;;  %v1877_v33 = vsel %vm495_vm4, %v12907_v24, %v12909_v17  ;;  %v12911_v56 = vld [vmem:[#allocation176_spill] sm:$0xff]  ;;  %v10384_v54 = vld [vmem:[#allocation2 + $0x8] sm:$0xfe] }
 0x3e1   : > { %2054 = vrot.lane.b32.xlu0 %v12906_v41, %s7156_s21  ;;  %v12910_v46 = vrot.slane %v10150_v50, 3  ;;  %v10373_v63 = vadd.f32 %v1874_v48, %v1546_v52  ;;  %v10375_v44 = vadd.f32 %v1875_v42, %v1547_v21  ;;  %v1087_v19 = vsel %vm533_vm6, %v12911_v56, %v12888_v3  ;;  %v10380_v29 = vld [vmem:[#allocation2 + $0x50] sm:$0xfe]  ;;  %v12913_v50 = vld [vmem:[#allocation177_spill] sm:$0xff]  ;;  %v6838_v42 = vld [vmem:[#allocation2 + $0x48] sm:$0xfe] }
 0x3e2   : > { %v10382_v55 = vpop.permute.xlu0 %4225  ;;  %v2915_v2 = vmul.f32 %v10384_v54, %v10335_v15  ;;  %v10390_v52 = vmul.f32 %v9825_v6, %v12913_v50  ;;  %v2932_v48 = vrot.slane %v10343_v30, 4  ;;  %v10396_v3 = vmul.f32 %v6838_v42, %v12903_v8 }
 0x3e3   : > { %2360 = vrot.lane.b32.xlu1 %v12910_v46, %s7154_s19  ;;  %12912 = vst [vmem:[#allocation94_spill] sm:$0xff] %v10382_v55  ;;  %v10392_v21 = vpop.permute.xlu1 %4227  ;;  %v10400_v41 = vmul.f32 %v10147_v59, %v12904_v22  ;;  %v10403_v24 = vadd.f32 %v12908_v7, %v1548_v39  ;;  %v10405_v17 = vadd.f32 %v1876_v43, %v1549_v35  ;;  %v12918_v56 = vrot.slane %v10181_v0, 3  ;;  %v12919_v39 = vld [vmem:[#allocation178_spill] sm:$0xff]  ;;  %v10434_v7 = vld [vmem:[#allocation2 + $0x78] sm:$0x1] }
 0x3e4   : > { %12914 = vst [vmem:[#allocation96_spill] sm:$0xff] %v10392_v21  ;;  %v10407_v46 = vadd.f32 %v1877_v33, %v1550_v14  ;;  %v10414_v30 = vmul.f32 %v10178_v38, %v10335_v15  ;;  %v10417_v42 = vadd.f32 %v1087_v19, %v10242_v26  ;;  %v10420_v21 = vmul.f32 %v12913_v50, %v2633_v34 }
 0x3e5   : > { %12915 = vst [vmem:[#allocation103_spill] sm:$0xff] %v10403_v24  ;;  %12916 = vst [vmem:[#allocation102_spill] sm:$0xff] %v10405_v17  ;;  %2362 = vrot.lane.b32.xlu0 %v12918_v56, %s7154_s19  ;;  %v2723_v35 = vsel %vm495_vm4, %v12913_v50, %v12919_v39  ;;  %v10427_v14 = vmul.f32 %v12913_v50, %v10380_v29  ;;  %v10432_v0 = vmul.f32 %v10178_v38, %v12919_v39 }
 0x3e6   : > { %12917 = vst [vmem:[#allocation104_spill] sm:$0xff] %v10407_v46  ;;  %v10438_v26 = vmul.f32 %v10434_v7, %v12919_v39  ;;  %v10442_v43 = vmul.f32 %v10384_v54, %v12919_v39  ;;  %v10444_v33 = vpop.permute.xlu0 %4500  ;;  %v2933_v19 = vrot.slane %v2915_v2, 4  ;;  %v2934_v58 = vrot.slane %v10396_v3, 4  ;;  %v6840_v39 = vld [vmem:[#allocation2 + $0x70] sm:$0x1]  ;;  %v12924_v2 = vld [vmem:[#allocation201_spill] sm:$0xff] }
 0x3e7   : > { %12920 = vst [vmem:[#allocation106_spill] sm:$0xff] %v10427_v14  ;;  %2947 = vrot.lane.b32.xlu1 %v2932_v48, %s7159_s16  ;;  %12921 = vst [vmem:[#allocation105_spill] sm:$0xff] %v10444_v33  ;;  %v10447_v56 = vpop.permute.xlu1 %4502  ;;  %v10453_v27 = vmul.f32 %v9825_v6, %v12903_v8  ;;  %v10456_v36 = vmul.f32 %v10147_v59, %v2723_v35  ;;  %v10458_v40 = vmul.f32 %v6840_v39, %v2723_v35  ;;  %v12923_v33 = vld [vmem:[#allocation202_spill] sm:$0xff] }
 0x3e8   : > { %12922 = vst [vmem:[#allocation107_spill] sm:$0xff] %v10447_v56  ;;  %v10463_v50 = vsel %vm495_vm4, %v12924_v2, %v12923_v33  ;;  %v2754_v55 = vrot.slane %v10420_v21, 4  ;;  %v12925_v56 = vld [vmem:[#allocation179_spill] sm:$0xff]  ;;  %v10474_v4 = vmul.f32 %v10339_v16, %v2723_v35  ;;  %v12929_v35 = vrot.slane %v10400_v41, 4 }
 0x3e9   : > { %2949 = vrot.lane.b32.xlu0 %v2933_v19, %s7159_s16  ;;  %v10470_v47 = vmul.f32 %v9825_v6, %v12925_v56  ;;  %v10480_v13 = vmul.f32 %v12925_v56, %v2633_v34  ;;  %v2793_v25 = vsel %vm533_vm6, %v12925_v56, %v12927_v57  ;;  %v3294_v34 = vmul.f32 %v10494_v37, %v10463_v50 }
 0x3ea   : > { %v10483_v3 = vpop.permute.xlu0 %453  ;;  %v2936_v32 = vsel %vm2674_vm11, %v2932_v48, %v12929_v35  ;;  %v2750_v21 = vrot.slane %v10456_v36, 4  ;;  %v12930_v11 = vrot.slane %v10414_v30, 4  ;;  %v10506_v48 = vmul.f32 %v10147_v59, %v10463_v50 }
 0x3eb   : > { %2951 = vrot.lane.b32.xlu1 %v2934_v58, %s7159_s16  ;;  %12926 = vst [vmem:[#allocation111_spill] sm:$0xff] %v10483_v3  ;;  %v10488_v51 = vpop.permute.xlu1 %455  ;;  %v2756_v3 = vrot.slane %v10458_v40, 4  ;;  %v2818_v35 = vrot.slane %v10470_v47, 4  ;;  %v10511_v28 = vmul.f32 %v10178_v38, %v12927_v57  ;;  %v10515_v36 = vmul.f32 %v10434_v7, %v12927_v57 }
 0x3ec   : > { %12928 = vst [vmem:[#allocation110_spill] sm:$0xff] %v10488_v51  ;;  %v2938_v51 = vsel %vm2674_vm11, %v2933_v19, %v12930_v11  ;;  %v2801_v11 = vmul.f32 %v10147_v59, %v2793_v25  ;;  %v2804_v40 = vmul.f32 %v6840_v39, %v2793_v25  ;;  %v10522_v19 = vmul.f32 %v12925_v56, %v10380_v29 }
 0x3ed   : > { %2953 = vrot.lane.b32.xlu0 %v2936_v32, %s7159_s16  ;;  %v3295_v45 = vmul.f32 %v10526_v9, %v12923_v33  ;;  %v2824_v62 = vrot.slane %v10480_v13, 4  ;;  %v3312_v17 = vrot.slane %v3294_v34, 5  ;;  %v10538_v29 = vmul.f32 %v10178_v38, %v12923_v33 }
 0x3ee   : > { %v10524_v47 = vpop.permute.xlu0 %619  ;;  %v12934_v56 = vrot.slane %v10390_v52, 4  ;;  %v10548_v13 = vmul.f32 %v10339_v16, %v2793_v25  ;;  %v2822_v34 = vrot.slane %v10511_v28, 4  ;;  %v12939_v25 = vrot.slane %v10432_v0, 4 }
 0x3ef   : > { %2955 = vrot.lane.b32.xlu1 %v2938_v51, %s7159_s16  ;;  %12931 = vst [vmem:[#allocation230_spill] sm:$0xff] %v10524_v47  ;;  %v10531_v46 = vpop.permute.xlu1 %621  ;;  %v12933_v51 = vrot.slane %v10453_v27, 4  ;;  %v12935_v47 = vrot.slane %v10427_v14, 4  ;;  %v12937_v14 = vrot.slane %v10474_v4, 4  ;;  %v12940_v16 = vrot.slane %v10442_v43, 4 }
 0x3f0   : > { %12932 = vst [vmem:[#allocation25_spill] sm:$0xff] %v10531_v46  ;;  %v10552_v46 = vmul.f32 %v10384_v54, %v12927_v57  ;;  %v2820_v54 = vrot.slane %v2801_v11, 4  ;;  %v12943_v28 = vrot.slane %v10390_v52, 4  ;;  %v2921_v52 = vmul.f32 %v10434_v7, %v10335_v15  ;;  %v12955_v11 = vld [vmem:[#allocation187_spill] sm:$0xff] }
 0x3f1   : > { %v2940_v32 = vsel %vm2674_vm11, %v2934_v58, %v12933_v51  ;;  %v10545_v24 = vsel %vm2674_vm11, %v12935_v47, %v12934_v56  ;;  %v2828_v51 = vrot.slane %v10515_v36, 4  ;;  %v10561_v47 = vsel %vm2674_vm11, %v12937_v14, %v2750_v21 }
 0x3f2   : > { %12936 = vst [vmem:[#allocation109_spill] sm:$0xff] %v10545_v24  ;;  %2957 = vrot.lane.b32.xlu0 %v2940_v32, %s7159_s16  ;;  %12938 = vst [vmem:[#allocation108_spill] sm:$0xff] %v10561_v47  ;;  %v10568_v57 = vsel %vm2674_vm11, %v12940_v16, %v12939_v25  ;;  %v2826_v32 = vrot.slane %v2804_v40, 4  ;;  %v10572_v56 = vpop.permute.xlu0 %623  ;;  %v3313_v36 = vrot.slane %v3295_v45, 5  ;;  %v6843_v47 = vld [vmem:[#allocation2 + $0x50] sm:$0xfc]  ;;  %v10580_v25 = vmul.f32 %v9825_v6, %v12924_v2 }
 0x3f3   : > { %3328 = vrot.lane.b32.xlu1 %v3312_v17, %s7157_s18  ;;  %12941 = vst [vmem:[#allocation234_spill] sm:$0xff] %v10572_v56  ;;  %v10574_v58 = vpop.permute.xlu1 %625  ;;  %v3293_v24 = vmul.f32 %v6843_v47, %v12924_v2  ;;  %v2920_v16 = vmul.f32 %v6840_v39, %v12904_v22  ;;  %v10588_v45 = vsel %vm2674_vm11, %v12943_v28, %v2754_v55  ;;  %v12944_v14 = vrot.slane %v10506_v48, 5  ;;  %v6844_v55 = vld [vmem:[#allocation2 + $0x28] sm:$0x1]  ;;  %v12947_v28 = vld [vmem:[#allocation184_spill] sm:$0xff] }
 0x3f4   : > { %12942 = vst [vmem:[#allocation233_spill] sm:$0xff] %v10574_v58  ;;  %v12945_v58 = vld [vmem:[#allocation183_spill] sm:$0xff]  ;;  %v10599_v22 = vsel %vm2674_vm11, %v2750_v21, %v2756_v3  ;;  %v2922_v39 = vmul.f32 %v6844_v55, %v12903_v8  ;;  %v12950_v21 = vrot.slane %v10438_v26, 4  ;;  %v12951_v15 = vrot.slane %v10432_v0, 4 }
 0x3f5   : > { %v3317_v47 = vsel %vm3222_vm9, %v3312_v17, %v12944_v14  ;;  %v10596_v56 = vadd.f32 %v12945_v58, %v10417_v42  ;;  %12946 = vst [vmem:[#allocation113_spill] sm:$0xff] %v10599_v22  ;;  %v1431_v40 = vsel %vm757_vm8, %v12945_v58, %v12947_v28  ;;  %v12948_v17 = vld [vmem:[#allocation185_spill] sm:$0xff]  ;;  %v12949_v14 = vrot.slane %v10522_v19, 4  ;;  %v12956_v22 = vld [vmem:[#allocation186_spill] sm:$0xff] }
 0x3f6   : > { %3330 = vrot.lane.b32.xlu0 %v3313_v36, %s7157_s18  ;;  %v1432_v42 = vsel %vm757_vm8, %v12947_v28, %v12948_v17  ;;  %v10621_v7 = vsel %vm2674_vm11, %v12951_v15, %v12950_v21  ;;  %v10623_v8 = vpop.permute.xlu0 %627  ;;  %v12954_v58 = vrot.slane %v10538_v29, 5  ;;  %v3311_v28 = vrot.slane %v3293_v24, 5  ;;  %v12960_v24 = vld [vmem:[#allocation188_spill] sm:$0xff] }
 0x3f7   : > { %3334 = vrot.lane.b32.xlu1 %v3317_v47, %s7157_s18  ;;  %v10614_v3 = vsel %vm2674_vm11, %v12949_v14, %v2818_v35  ;;  %12952 = vst [vmem:[#allocation112_spill] sm:$0xff] %v10623_v8  ;;  %v10625_v47 = vpop.permute.xlu1 %629  ;;  %v2941_v14 = vrot.slane %v2920_v16, 4  ;;  %v1534_v26 = vsel %vm677_vm5, %v12956_v22, %v12955_v11  ;;  %v12957_v0 = vrot.slane %v10548_v13, 4 }
 0x3f8   : > { %12953 = vst [vmem:[#allocation227_spill] sm:$0xff] %v10625_v47  ;;  %v3319_v55 = vsel %vm3222_vm9, %v3313_v36, %v12954_v58  ;;  %v12958_v15 = vrot.slane %v10552_v46, 4  ;;  %v10645_v36 = vsel %vm2674_vm11, %v2818_v35, %v2824_v62  ;;  %v1535_v16 = vsel %vm677_vm5, %v12955_v11, %v12960_v24  ;;  %v12972_v24 = vld [vmem:[#allocation223_spill] sm:$0xff] }
 0x3f9   : > { %v10637_v21 = vsel %vm2674_vm11, %v12957_v0, %v2820_v54  ;;  %12959 = vst [vmem:[#allocation229_spill] sm:$0xff] %v10645_v36  ;;  %v10652_v58 = vsel %vm2674_vm11, %v2820_v54, %v2826_v32  ;;  %v2943_v0 = vrot.slane %v2921_v52, 4  ;;  %v2945_v17 = vrot.slane %v2922_v39, 4  ;;  %v12964_v32 = vld [vmem:[#allocation190_spill] sm:$0xff]  ;;  %v12965_v52 = vld [vmem:[#allocation189_spill] sm:$0xff] }
 0x3fa   : > { %v10642_v47 = vsel %vm2674_vm11, %v12958_v15, %v2822_v34  ;;  %3336 = vrot.lane.b32.xlu0 %v3319_v55, %s7157_s18  ;;  %12961 = vst [vmem:[#allocation119_spill] sm:$0xff] %v10652_v58  ;;  %v10656_v8 = vadd.f32 %v1431_v40, %v10299_v20  ;;  %v10659_v15 = vadd.f32 %v1432_v42, %v10302_v61  ;;  %v10668_v11 = vpop.permute.xlu0 %973  ;;  %v12967_v61 = vrot.slane %v10580_v25, 5  ;;  %v12970_v42 = vld [vmem:[#allocation193_spill] sm:$0xff]  ;;  %v12971_v55 = vld [vmem:[#allocation192_spill] sm:$0xff] }
 0x3fb   : > { %3326 = vrot.lane.b32.xlu1 %v3311_v28, %s7157_s18  ;;  %v10663_v62 = vadd.f32 %v12956_v22, %v10305_v18  ;;  %v10666_v35 = vsel %vm2674_vm11, %v2822_v34, %v2828_v51  ;;  %12963 = vst [vmem:[#allocation133_spill] sm:$0xff] %v10668_v11  ;;  %v10671_v54 = vadd.f32 %v1534_v26, %v10313_v10  ;;  %v10676_v40 = vpop.permute.xlu1 %975  ;;  %v12968_v18 = vrot.slane %v10400_v41, 4  ;;  %v12969_v22 = vld [vmem:[#allocation191_spill] sm:$0xff]  ;;  %v12973_v11 = vld [vmem:[#allocation220_spill] sm:$0xff] }
 0x3fc   : > { %12962 = vst [vmem:[#allocation118_spill] sm:$0xff] %v10666_v35  ;;  %v2143_v20 = vsel %vm596_vm3, %v12965_v52, %v12964_v32  ;;  %12966 = vst [vmem:[#allocation132_spill] sm:$0xff] %v10676_v40  ;;  %v3315_v39 = vsel %vm3222_vm9, %v3311_v28, %v12967_v61  ;;  %v10685_v51 = vadd.f32 %v1535_v16, %v10316_v31  ;;  %v12974_v31 = vld [vmem:[#allocation194_spill] sm:$0xff] }
 0x3fd   : > { %v2942_v34 = vsel %vm2674_vm11, %v12968_v18, %v2941_v14  ;;  %v2144_v10 = vsel %vm596_vm3, %v12964_v32, %v12969_v22  ;;  %v2145_v26 = vsel %vm596_vm3, %v12971_v55, %v12970_v42  ;;  %v10696_v40 = vsel %vm677_vm5, %v12973_v11, %v12972_v24  ;;  %v12978_v22 = vld [vmem:[#allocation195_spill] sm:$0xff] }
 0x3fe   : > { %3332 = vrot.lane.b32.xlu0 %v3315_v39, %s7157_s18  ;;  %v2158_v41 = vadd.f32 %v12965_v52, %v10319_v1  ;;  %v2146_v28 = vsel %vm596_vm3, %v12970_v42, %v12974_v31  ;;  %v12975_v14 = vrot.slane %v10414_v30, 4  ;;  %v12976_v32 = vrot.slane %v10453_v27, 4  ;;  %v12977_v39 = vld [vmem:[#allocation196_spill] sm:$0xff]  ;;  %v10715_v52 = vpop.permute.xlu0 %979 }
 0x3ff   : > { %2959 = vrot.lane.b32.xlu1 %v2942_v34, %s7159_s16  ;;  %v2159_v18 = vadd.f32 %v2143_v20, %v10345_v49  ;;  %v2225_v1 = vsel %vm596_vm3, %v12978_v22, %v12977_v39  ;;  %12979 = vst [vmem:[#allocation115_spill] sm:$0xff] %v10715_v52  ;;  %v3637_v42 = vmul.f32 %v10494_v37, %v12973_v11  ;;  %v6845_v34 = vld [vmem:[#allocation2 + $0x60] sm:$0x3]  ;;  %v10726_v49 = vpop.permute.xlu1 %981 }
 0x400   : > { %v2944_v16 = vsel %vm2674_vm11, %v12975_v14, %v2943_v0  ;;  %v2946_v61 = vsel %vm2674_vm11, %v12976_v32, %v2945_v17  ;;  %v3299_v30 = vmul.f32 %v6845_v34, %v12924_v2  ;;  %v2160_v0 = vadd.f32 %v2144_v10, %v10348_v12  ;;  %12980 = vst [vmem:[#allocation114_spill] sm:$0xff] %v10726_v49  ;;  %v12981_v12 = vld [vmem:[#allocation197_spill] sm:$0xff]  ;;  %v12982_v2 = vld [vmem:[#allocation199_spill] sm:$0xff]  ;;  %v12984_v14 = vld [vmem:[#allocation200_spill] sm:$0xff] }
 0x401   : > { %v2161_v27 = vadd.f32 %v12971_v55, %v10351_v5  ;;  %v10724_v17 = vadd.f32 %v2145_v26, %v10359_v23  ;;  %v10730_v20 = vmul.f32 %v10526_v9, %v10696_v40  ;;  %v10733_v31 = vadd.f32 %v2146_v28, %v10354_v60  ;;  %v12983_v60 = vld [vmem:[#allocation198_spill] sm:$0xff]  ;;  %v10758_v26 = vld [vmem:[#allocation2 + $0x78] sm:$0x3] }
 0x402   : > { %v10737_v37 = vadd.f32 %v12978_v22, %v10362_v53  ;;  %v2226_v5 = vsel %vm596_vm3, %v12977_v39, %v12981_v12  ;;  %2961 = vrot.lane.b32.xlu0 %v2944_v16, %s7159_s16  ;;  %v10745_v23 = vmul.f32 %v10147_v59, %v12973_v11  ;;  %v10748_v9 = vadd.f32 %v2225_v1, %v10373_v63  ;;  %v10754_v53 = vld [vmem:[#allocation2 + $0x70] sm:$0x3]  ;;  %v10765_v16 = vpop.permute.xlu0 %971  ;;  %v6848_v39 = vld [vmem:[#allocation2 + $0x48] sm:$0xfc] }
 0x403   : > { %v2227_v10 = vsel %vm596_vm3, %v12983_v60, %v12982_v2  ;;  %2963 = vrot.lane.b32.xlu1 %v2946_v61, %s7159_s16  ;;  %v3300_v55 = vmul.f32 %v10754_v53, %v10463_v50  ;;  %v3301_v28 = vmul.f32 %v10758_v26, %v12923_v33  ;;  %v2228_v63 = vsel %vm596_vm3, %v12982_v2, %v12984_v14  ;;  %v12986_v50 = vld [vmem:[#allocation103_spill] sm:$0xff]  ;;  %v10775_v12 = vpop.permute.xlu1 %977 }
 0x404   : > { %12985 = vst [vmem:[#allocation117_spill] sm:$0xff] %v10765_v16  ;;  %v3655_v32 = vrot.slane %v3637_v42, 5  ;;  %v3639_v61 = vmul.f32 %v6848_v39, %v12972_v24  ;;  %v3320_v22 = vrot.slane %v3299_v30, 5  ;;  %v10769_v1 = vadd.f32 %v2226_v5, %v10375_v44  ;;  %12987 = vst [vmem:[#allocation116_spill] sm:$0xff] %v10775_v12  ;;  %v12988_v42 = vld [vmem:[#allocation102_spill] sm:$0xff]  ;;  %v12989_v39 = vld [vmem:[#allocation204_spill] sm:$0xff] }
 0x405   : > { %v10773_v34 = vadd.f32 %v12983_v60, %v12986_v50  ;;  %v3656_v33 = vrot.slane %v10730_v20, 5  ;;  %v10780_v2 = vmul.f32 %v10178_v38, %v10696_v40  ;;  %v10783_v14 = vadd.f32 %v2227_v10, %v12988_v42  ;;  %v12990_v30 = vld [vmem:[#allocation203_spill] sm:$0xff]  ;;  %v12991_v20 = vld [vmem:[#allocation104_spill] sm:$0xff]  ;;  %v12992_v12 = vld [vmem:[#allocation209_spill] sm:$0xff] }
 0x406   : > { %v1785_v44 = vsel %vm495_vm4, %v12990_v30, %v12989_v39  ;;  %3670 = vrot.lane.b32.xlu0 %v3655_v32, %s7158_s17  ;;  %v10792_v60 = vmul.f32 %v9825_v6, %v12972_v24  ;;  %v2245_v50 = vadd.f32 %v2228_v63, %v12991_v20  ;;  %v12993_v16 = vld [vmem:[#allocation208_spill] sm:$0xff]  ;;  %v3322_v10 = vrot.slane %v3300_v55, 5  ;;  %v10807_v6 = vpop.permute.xlu0 %631  ;;  %v12996_v55 = vld [vmem:[#allocation206_spill] sm:$0xff] }
 0x407   : > { %v2443_v52 = vsel %vm457_vm1, %v12993_v16, %v12992_v12  ;;  %3672 = vrot.lane.b32.xlu1 %v3656_v33, %s7158_s17  ;;  %v3324_v42 = vrot.slane %v3301_v28, 5  ;;  %v10801_v49 = vadd.f32 %v12990_v30, %v10596_v56  ;;  %v10805_v5 = vadd.f32 %v12989_v39, %v10659_v15  ;;  %12994 = vst [vmem:[#allocation121_spill] sm:$0xff] %v10807_v6  ;;  %v12997_v28 = vld [vmem:[#allocation205_spill] sm:$0xff]  ;;  %v12998_v30 = vld [vmem:[#allocation210_spill] sm:$0xff]  ;;  %v10823_v39 = vpop.permute.xlu1 %633 }
 0x408   : > { %v3657_v35 = vrot.slane %v3639_v61, 5  ;;  %v12995_v63 = vrot.slane %v10580_v25, 5  ;;  %v10815_v58 = vadd.f32 %v1785_v44, %v10656_v8  ;;  %v1878_v56 = vsel %vm495_vm4, %v12997_v28, %v12996_v55  ;;  %12999 = vst [vmem:[#allocation120_spill] sm:$0xff] %v10823_v39  ;;  %v13006_v61 = vld [vmem:[#allocation213_spill] sm:$0xff] }
 0x409   : > { %v2444_v15 = vsel %vm457_vm1, %v12992_v12, %v12998_v30  ;;  %v2458_v25 = vadd.f32 %v12993_v16, %v2158_v41  ;;  %v2459_v6 = vadd.f32 %v2443_v52, %v2159_v18  ;;  %v13000_v8 = vrot.slane %v10745_v23, 5  ;;  %v13001_v12 = vld [vmem:[#allocation207_spill] sm:$0xff] }
 0x40a   : > { %v10812_v20 = vsel %vm3222_vm9, %v12995_v63, %v3320_v22  ;;  %3674 = vrot.lane.b32.xlu0 %v3657_v35, %s7158_s17  ;;  %v10834_v63 = vadd.f32 %v12997_v28, %v10663_v62  ;;  %v1879_v30 = vsel %vm495_vm4, %v12996_v55, %v13001_v12  ;;  %v13002_v41 = vrot.slane %v10506_v48, 5  ;;  %v13004_v62 = vld [vmem:[#allocation212_spill] sm:$0xff]  ;;  %v13005_v28 = vld [vmem:[#allocation211_spill] sm:$0xff]  ;;  %v13010_v12 = vld [vmem:[#allocation82_spill] sm:$0xff] }
 0x40b   : > { %v3659_v22 = vsel %vm3222_vm9, %v3655_v32, %v13000_v8  ;;  %v13003_v52 = vrot.slane %v10538_v29, 5  ;;  %v10847_v32 = vadd.f32 %v1878_v56, %v10671_v54  ;;  %v2460_v8 = vadd.f32 %v2444_v15, %v2160_v0  ;;  %v13009_v29 = vld [vmem:[#allocation214_spill] sm:$0xff]  ;;  %v13011_v54 = vld [vmem:[#allocation83_spill] sm:$0xff]  ;;  %v10866_v56 = vpop.permute.xlu1 %1315 }
 0x40c   : > { %3676 = vrot.lane.b32.xlu1 %v3659_v22, %s7158_s17  ;;  %v3323_v18 = vsel %vm3222_vm9, %v13002_v41, %v3322_v10  ;;  %v2445_v44 = vsel %vm457_vm1, %v13005_v28, %v13004_v62  ;;  %v2446_v55 = vsel %vm457_vm1, %v13004_v62, %v13006_v61  ;;  %v10855_v22 = vpop.permute.xlu0 %635  ;;  %v2461_v48 = vadd.f32 %v13005_v28, %v2161_v27  ;;  %v13008_v10 = vld [vmem:[#allocation215_spill] sm:$0xff] }
 0x40d   : > { %v3325_v16 = vsel %vm3222_vm9, %v13003_v52, %v3324_v42  ;;  %13007 = vst [vmem:[#allocation122_spill] sm:$0xff] %v10855_v22  ;;  %v2525_v42 = vsel %vm457_vm1, %v13009_v29, %v13008_v10  ;;  %v10864_v0 = vsel %vm533_vm6, %v13011_v54, %v13010_v12  ;;  %13012 = vst [vmem:[#allocation124_spill] sm:$0xff] %v10866_v56  ;;  %v13013_v15 = vrot.slane %v10780_v2, 5  ;;  %v13014_v52 = vld [vmem:[#allocation106_spill] sm:$0xff] }
 0x40e   : > { %v10872_v61 = vadd.f32 %v1879_v30, %v10685_v51  ;;  %v13015_v27 = vrot.slane %v13014_v52, 4  ;;  %v13016_v28 = vrot.slane %v10474_v4, 4  ;;  %v13017_v22 = vrot.slane %v10792_v60, 5  ;;  %v13018_v51 = vld [vmem:[#allocation216_spill] sm:$0xff] }
 0x40f   : > { %v3661_v41 = vsel %vm3222_vm9, %v3656_v33, %v13013_v15  ;;  %v2462_v36 = vadd.f32 %v2445_v44, %v10724_v17  ;;  %v2463_v33 = vadd.f32 %v2446_v55, %v10733_v31  ;;  %v2526_v30 = vsel %vm457_vm1, %v13008_v10, %v13018_v51  ;;  %v13020_v15 = vld [vmem:[#allocation217_spill] sm:$0xff]  ;;  %v10903_v44 = vld [vmem:[#allocation2 + $0x68] sm:$0xf8]  ;;  %v13025_v51 = vld [vmem:[#allocation108_spill] sm:$0xff] }
 0x410   : > { %v10876_v62 = vadd.f32 %v13015_v27, %v2458_v25  ;;  %v10880_v39 = vadd.f32 %v13016_v28, %v2459_v6  ;;  %3678 = vrot.lane.b32.xlu0 %v3661_v41, %s7158_s17  ;;  %v3663_v56 = vsel %vm3222_vm9, %v3657_v35, %v13017_v22  ;;  %v13019_v25 = vld [vmem:[#allocation218_spill] sm:$0xff]  ;;  %v2540_v6 = vadd.f32 %v13009_v29, %v10737_v37  ;;  %v13021_v35 = vld [vmem:[#allocation219_spill] sm:$0xff]  ;;  %v10901_v31 = vpop.permute.xlu0 %1317  ;;  %v10914_v37 = vpop.permute.xlu1 %1319 }
 0x411   : > { %v2527_v4 = vsel %vm457_vm1, %v13020_v15, %v13019_v25  ;;  %3680 = vrot.lane.b32.xlu1 %v3663_v56, %s7158_s17  ;;  %v2541_v41 = vadd.f32 %v2525_v42, %v10748_v9  ;;  %v2528_v17 = vsel %vm457_vm1, %v13019_v25, %v13021_v35  ;;  %v4017_v55 = vmul.f32 %v10903_v44, %v10864_v0  ;;  %v13023_v56 = vld [vmem:[#allocation109_spill] sm:$0xff]  ;;  %v10916_v9 = vld [vmem:[#allocation2 + $0x8] sm:$0xf8] }
 0x412   : > { %v13022_v22 = vrot.slane %v10442_v43, 4  ;;  %v10912_v52 = vadd.f32 %v13023_v56, %v2461_v48  ;;  %13024 = vst [vmem:[#allocation123_spill] sm:$0xff] %v10914_v37  ;;  %v4018_v29 = vmul.f32 %v10916_v9, %v13010_v12  ;;  %v10922_v42 = vmul.f32 %v10147_v59, %v10864_v0  ;;  %v13033_v56 = vld [vmem:[#allocation232_spill] sm:$0xff] }
 0x413   : > { %v2542_v27 = vadd.f32 %v2526_v30, %v10769_v1  ;;  %v2543_v43 = vadd.f32 %v13020_v15, %v10773_v34  ;;  %v10931_v48 = vmul.f32 %v10178_v38, %v13010_v12  ;;  %v2545_v28 = vadd.f32 %v2528_v17, %v2245_v50  ;;  %v6851_v15 = vld [vmem:[#allocation2 + $0x28] sm:$0x3] }
 0x414   : > { %v10909_v10 = vadd.f32 %v13022_v22, %v2460_v8  ;;  %v2544_v8 = vadd.f32 %v2527_v4, %v10783_v14  ;;  %3340 = vrot.lane.b32.xlu0 %v3323_v18, %s7157_s18  ;;  %v10934_v25 = vadd.f32 %v13025_v51, %v2462_v36  ;;  %v10937_v35 = vadd.f32 %v10568_v57, %v2463_v33  ;;  %v10952_v50 = vpop.permute.xlu0 %1321  ;;  %v13029_v33 = vld [vmem:[#allocation228_spill] sm:$0xff] }
 0x415   : > { %3342 = vrot.lane.b32.xlu1 %v3325_v16, %s7157_s18  ;;  %v10942_v1 = vmul.f32 %v10754_v53, %v12973_v11  ;;  %v13026_v34 = vrot.slane %v10522_v19, 4  ;;  %v13027_v18 = vrot.slane %v10548_v13, 4  ;;  %13028 = vst [vmem:[#allocation125_spill] sm:$0xff] %v10952_v50  ;;  %v4035_v36 = vrot.slane %v4017_v55, 6  ;;  %v13030_v16 = vld [vmem:[#allocation225_spill] sm:$0xff]  ;;  %v10958_v11 = vpop.permute.xlu1 %1323 }
 0x416   : > { %v3645_v57 = vmul.f32 %v6851_v15, %v12972_v24  ;;  %v2147_v4 = vsel %vm596_vm3, %v13030_v16, %v13029_v33  ;;  %13031 = vst [vmem:[#allocation127_spill] sm:$0xff] %v10958_v11  ;;  %v4036_v53 = vrot.slane %v4018_v29, 6  ;;  %v12328_v19 = vrot.slane %v10922_v42, 6  ;;  %v6852_v29 = vld [vmem:[#allocation2 + $0x50] sm:$0xf8]  ;;  %v13036_v15 = vld [vmem:[#allocation39_spill] sm:$0xff] }
 0x417   : > { %v10946_v14 = vadd.f32 %v13026_v34, %v2540_v6  ;;  %v10950_v30 = vadd.f32 %v13027_v18, %v2541_v41  ;;  %v3644_v13 = vmul.f32 %v10758_v26, %v10696_v40  ;;  %v13032_v6 = vrot.slane %v10552_v46, 4 }
 0x418   : > { %v10968_v17 = vadd.f32 %v10614_v3, %v2543_v43  ;;  %v10971_v24 = vadd.f32 %v10637_v21, %v2544_v8  ;;  %4051 = vrot.lane.b32.xlu0 %v4035_v36, %s7155_s24  ;;  %v4041_v55 = vrot.slane %v10931_v48, 6  ;;  %v2164_v22 = vadd.f32 %v13030_v16, %v10801_v49  ;;  %v10986_v26 = vpop.permute.xlu0 %1325  ;;  %v10989_v43 = vld [vmem:[#allocation2 + $0x40] sm:$0xff]  ;;  %v10993_v8 = vld [vmem:[#allocation2 + $0x78] sm:$0x7] }
 0x419   : > { %v10965_v41 = vadd.f32 %v13032_v6, %v2542_v27  ;;  %v2148_v40 = vsel %vm596_vm3, %v13029_v33, %v13033_v56  ;;  %v10981_v46 = vadd.f32 %v10642_v47, %v2545_v28  ;;  %4053 = vrot.lane.b32.xlu1 %v4036_v53, %s7155_s24  ;;  %v3664_v3 = vrot.slane %v10942_v1, 5  ;;  %13034 = vst [vmem:[#allocation126_spill] sm:$0xff] %v10986_v26  ;;  %v10997_v48 = vpop.permute.xlu1 %985  ;;  %v11002_v1 = vld [vmem:[#allocation2 + $0x70] sm:$0x7]  ;;  %v13037_v33 = vld [vmem:[#allocation235_spill] sm:$0xff]  ;;  %v13044_v26 = vld [vmem:[#allocation26_spill] sm:$0xff] }
 0x41a   : > { %v2165_v21 = vadd.f32 %v2147_v4, %v10815_v58  ;;  %v4016_v27 = vmul.f32 %v6852_v29, %v13011_v54  ;;  %13035 = vst [vmem:[#allocation128_spill] sm:$0xff] %v10989_v43  ;;  %v4019_v49 = vmul.f32 %v10989_v43, %v13011_v54  ;;  %v4024_v47 = vmul.f32 %v10993_v8, %v13010_v12  ;;  %v6856_v4 = vld [vmem:[#allocation2 + $0x60] sm:$0x7]  ;;  %v13039_v6 = vld [vmem:[#allocation28_spill] sm:$0xff] }
 0x41b   : > { %v4040_v58 = vsel %vm3851_vm10, %v4035_v36, %v12328_v19  ;;  %v3666_v28 = vrot.slane %v3644_v13, 5  ;;  %v3668_v51 = vrot.slane %v3645_v57, 5  ;;  %v4023_v34 = vmul.f32 %v11002_v1, %v10864_v0  ;;  %v13038_v13 = vld [vmem:[#allocation24_spill] sm:$0xff] }
 0x41c   : > { %v2166_v18 = vadd.f32 %v2148_v40, %v10805_v5  ;;  %v2229_v16 = vsel %vm596_vm3, %v13037_v33, %v13036_v15  ;;  %4057 = vrot.lane.b32.xlu0 %v4040_v58, %s7155_s24  ;;  %v4042_v12 = vsel %vm3851_vm10, %v4036_v53, %v4041_v55  ;;  %v4022_v36 = vmul.f32 %v6856_v4, %v13011_v54  ;;  %v13040_v5 = vld [vmem:[#allocation42_spill] sm:$0xff]  ;;  %v13041_v40 = vld [vmem:[#allocation41_spill] sm:$0xff]  ;;  %v13043_v58 = vld [vmem:[#allocation27_spill] sm:$0xff]  ;;  %v11028_v4 = vpop.permute.xlu0 %987 }
 0x41d   : > { %v2246_v57 = vadd.f32 %v13037_v33, %v10834_v63  ;;  %v2230_v0 = vsel %vm596_vm3, %v13036_v15, %v13038_v13  ;;  %v2447_v56 = vsel %vm457_vm1, %v13040_v5, %v13039_v6  ;;  %v2448_v29 = vsel %vm457_vm1, %v13039_v6, %v13041_v40  ;;  %4059 = vrot.lane.b32.xlu1 %v4042_v12, %s7155_s24  ;;  %v13042_v53 = vld [vmem:[#allocation30_spill] sm:$0xff]  ;;  %v11035_v6 = vpop.permute.xlu1 %1696 }
 0x41e   : > { %v2529_v54 = vsel %vm457_vm1, %v13043_v58, %v13042_v53  ;;  %v4034_v63 = vrot.slane %v4016_v27, 6  ;;  %v4037_v33 = vrot.slane %v4019_v49, 6  ;;  %v4047_v19 = vrot.slane %v4024_v47, 6 }
 0x41f   : > { %v2247_v15 = vadd.f32 %v2229_v16, %v10847_v32  ;;  %v2464_v13 = vadd.f32 %v13040_v5, %v2164_v22  ;;  %v2530_v37 = vsel %vm457_vm1, %v13042_v53, %v13044_v26  ;;  %v4045_v12 = vrot.slane %v4023_v34, 6 }
 0x420   : > { %v2248_v40 = vadd.f32 %v2230_v0, %v10872_v61  ;;  %v2465_v50 = vadd.f32 %v2447_v56, %v2165_v21  ;;  %v2466_v11 = vadd.f32 %v2448_v29, %v2166_v18  ;;  %3338 = vrot.lane.b32.xlu0 %v10812_v20, %s7157_s18  ;;  %v4043_v27 = vrot.slane %v4022_v36, 6  ;;  %v11048_v21 = vpop.permute.xlu0 %1698  ;;  %v13050_v0 = vld [vmem:[#allocation29_spill] sm:$0xff] }
 0x421   : > { %v2546_v49 = vadd.f32 %v13043_v58, %v2246_v57  ;;  %v2547_v32 = vadd.f32 %v2529_v54, %v2247_v15  ;;  %4049 = vrot.lane.b32.xlu1 %v4034_v63, %s7155_s24  ;;  %v13045_v22 = vrot.slane %v10745_v23, 5  ;;  %v13046_v47 = vrot.slane %v10792_v60, 5  ;;  %v13048_v57 = vld [vmem:[#allocation31_spill] sm:$0xff]  ;;  %v13049_v23 = vld [vmem:[#allocation44_spill] sm:$0xff]  ;;  %v13054_v56 = vld [vmem:[#allocation113_spill] sm:$0xff] }
 0x422   : > { %v2548_v61 = vadd.f32 %v2530_v37, %v2248_v40  ;;  %v4038_v18 = vsel %vm3851_vm10, %v4034_v63, %v4037_v33  ;;  %v13047_v20 = vrot.slane %v10780_v2, 5  ;;  %v11055_v36 = vsel %vm3851_vm10, %v4041_v55, %v4047_v19  ;;  %v13052_v19 = vld [vmem:[#allocation48_spill] sm:$0xff]  ;;  %v13053_v55 = vld [vmem:[#allocation37_spill] sm:$0xff]  ;;  %v13056_v54 = vld [vmem:[#allocation43_spill] sm:$0xff] }
 0x423   : > { %v3665_v26 = vsel %vm3222_vm9, %v13045_v22, %v3664_v3  ;;  %v3669_v34 = vsel %vm3222_vm9, %v13046_v47, %v3668_v51  ;;  %v3059_v3 = vsel %vm637_vm12, %v13049_v23, %v13048_v57  ;;  %v3060_v60 = vsel %vm637_vm12, %v13048_v57, %v13050_v0  ;;  %v11066_v51 = vpop.permute.xlu1 %1702  ;;  %v13055_v58 = vld [vmem:[#allocation32_spill] sm:$0xff]  ;;  %v13057_v15 = vld [vmem:[#allocation229_spill] sm:$0xff]  ;;  %v13065_v0 = vld [vmem:[#allocation38_spill] sm:$0xff] }
 0x424   : > { %v3667_v16 = vsel %vm3222_vm9, %v13047_v20, %v3666_v28  ;;  %v11064_v37 = vadd.f32 %v10588_v45, %v2464_v13  ;;  %v13051_v2 = vrot.slane %v10922_v42, 6  ;;  %v4356_v5 = vsel %vm757_vm8, %v13053_v55, %v13052_v19  ;;  %4055 = vrot.lane.b32.xlu0 %v4038_v18, %s7155_s24  ;;  %v13060_v18 = vld [vmem:[#allocation34_spill] sm:$0xff]  ;;  %v13062_v57 = vld [vmem:[#allocation33_spill] sm:$0xff] }
 0x425   : > { %v11077_v29 = vadd.f32 %v13054_v56, %v2465_v50  ;;  %v11080_v53 = vadd.f32 %v10621_v7, %v2466_v11  ;;  %v11084_v45 = vsel %vm3851_vm10, %v4037_v33, %v4043_v27  ;;  %v11088_v42 = vadd.f32 %v13049_v23, %v10876_v62  ;;  %v13058_v50 = vld [vmem:[#allocation119_spill] sm:$0xff]  ;;  %3682 = vrot.lane.b32.xlu1 %v3665_v26, %s7158_s17  ;;  %v13059_v33 = vld [vmem:[#allocation118_spill] sm:$0xff]  ;;  %v11105_v62 = vpop.permute.xlu0 %1704 }
 0x426   : > { %v11071_v28 = vsel %vm3851_vm10, %v13051_v2, %v4045_v12  ;;  %v3061_v63 = vsel %vm637_vm12, %v13056_v54, %v13055_v58  ;;  %v11094_v13 = vadd.f32 %v13057_v15, %v2546_v49  ;;  %v11097_v12 = vadd.f32 %v13058_v50, %v2547_v32  ;;  %v6857_v32 = vld [vmem:[#allocation2 + $0x48] sm:$0xf8]  ;;  %v13061_v20 = vld [vmem:[#allocation46_spill] sm:$0xff] }
 0x427   : > { %v3075_v7 = vadd.f32 %v3059_v3, %v10880_v39  ;;  %v3076_v11 = vadd.f32 %v3060_v60, %v10909_v10  ;;  %v11103_v40 = vadd.f32 %v13059_v33, %v2548_v61  ;;  %v4360_v27 = vmul.f32 %v10903_v44, %v13053_v55  ;;  %v11109_v22 = vpop.permute.xlu1 %983  ;;  %v13063_v3 = vld [vmem:[#allocation36_spill] sm:$0xff]  ;;  %v13066_v2 = vld [vmem:[#allocation35_spill] sm:$0xff] }
 0x428   : > { %v4361_v49 = vmul.f32 %v10916_v9, %v4356_v5  ;;  %v4362_v47 = vmul.f32 %v6857_v32, %v13052_v19  ;;  %v4363_v39 = vmul.f32 %v10147_v59, %v13053_v55  ;;  %v4365_v10 = vmul.f32 %v10989_v43, %v13052_v19  ;;  %3684 = vrot.lane.b32.xlu0 %v3667_v16, %s7158_s17 }
 0x429   : > { %v11119_v26 = vadd.f32 %v13056_v54, %v10912_v52  ;;  %v3078_v61 = vadd.f32 %v3061_v63, %v10934_v25  ;;  %v4364_v44 = vmul.f32 %v10178_v38, %v4356_v5  ;;  %v4366_v9 = vmul.f32 %v11002_v1, %v13053_v55  ;;  %3686 = vrot.lane.b32.xlu1 %v3669_v34, %s7158_s17  ;;  %v6858_v25 = vld [vmem:[#allocation2 + $0x28] sm:$0x7]  ;;  %v13064_v1 = vld [vmem:[#allocation45_spill] sm:$0xff]  ;;  %v11144_v56 = vpop.permute.xlu0 %1694 }
 0x42a   : > { %v3062_v59 = vsel %vm637_vm12, %v13055_v58, %v13060_v18  ;;  %v3153_v23 = vsel %vm637_vm12, %v13062_v57, %v13061_v20  ;;  %v4367_v52 = vmul.f32 %v10993_v8, %v4356_v5  ;;  %v4368_v16 = vmul.f32 %v6858_v25, %v13052_v19  ;;  %13067 = vst [vmem:[#allocation130_spill] sm:$0xff] %v11144_v56  ;;  %v13069_v18 = vld [vmem:[#allocation50_spill] sm:$0xff] }
 0x42b   : > { %v3154_v38 = vsel %vm637_vm12, %v13061_v20, %v13063_v3  ;;  %v3155_v60 = vsel %vm637_vm12, %v13065_v0, %v13064_v1  ;;  %v3156_v55 = vsel %vm637_vm12, %v13064_v1, %v13066_v2  ;;  %v4378_v34 = vrot.slane %v4360_v27, 6  ;;  %v11146_v58 = vpop.permute.xlu1 %1700  ;;  %v13070_v20 = vld [vmem:[#allocation47_spill] sm:$0xff] }
 0x42c   : > { %13068 = vst [vmem:[#allocation129_spill] sm:$0xff] %v11146_v58  ;;  %v4379_v8 = vrot.slane %v4361_v49, 6  ;;  %v4380_v5 = vrot.slane %v4362_v47, 6  ;;  %v4381_v19 = vrot.slane %v4363_v39, 6  ;;  %v4385_v54 = vrot.slane %v4365_v10, 6  ;;  %v13076_v1 = vld [vmem:[#allocation51_spill] sm:$0xff] }
 0x42d   : > { %v3079_v63 = vadd.f32 %v3062_v59, %v10937_v35  ;;  %v3168_v15 = vadd.f32 %v13062_v57, %v10946_v14  ;;  %4393 = vrot.lane.b32.xlu0 %v4378_v34, %s7156_s21  ;;  %v4383_v50 = vrot.slane %v4364_v44, 6  ;;  %v4387_v33 = vrot.slane %v4366_v9, 6  ;;  %v11162_v44 = vpop.permute.xlu0 %2648  ;;  %v13071_v9 = vld [vmem:[#allocation40_spill] sm:$0xff]  ;;  %v13072_v59 = vld [vmem:[#allocation49_spill] sm:$0xff] }
 0x42e   : > { %v3169_v32 = vadd.f32 %v3153_v23, %v10950_v30  ;;  %v3439_v27 = vsel %vm533_vm6, %v13070_v20, %v13069_v18  ;;  %4395 = vrot.lane.b32.xlu1 %v4379_v8, %s7156_s21  ;;  %v4389_v49 = vrot.slane %v4367_v52, 6  ;;  %v4391_v47 = vrot.slane %v4368_v16, 6  ;;  %v13074_v16 = vld [vmem:[#allocation56_spill] sm:$0xff] }
 0x42f   : > { %v3170_v39 = vadd.f32 %v3154_v38, %v10965_v41  ;;  %v3171_v35 = vadd.f32 %v13065_v0, %v10968_v17  ;;  %v3172_v14 = vadd.f32 %v3155_v60, %v10971_v24  ;;  %v3173_v10 = vadd.f32 %v3156_v55, %v10981_v46  ;;  %v11168_v23 = vpop.permute.xlu1 %2650  ;;  %v13073_v17 = vld [vmem:[#allocation55_spill] sm:$0xff]  ;;  %v13075_v38 = vld [vmem:[#allocation57_spill] sm:$0xff] }
 0x430   : > { %v3455_v30 = vadd.f32 %v13069_v18, %v3076_v11  ;;  %v3441_v57 = vsel %vm533_vm6, %v13072_v59, %v13071_v9  ;;  %v4382_v52 = vsel %vm3851_vm10, %v4378_v34, %v4381_v19  ;;  %v4386_v41 = vsel %vm3851_vm10, %v4380_v5, %v4385_v54  ;;  %v13077_v34 = vld [vmem:[#allocation59_spill] sm:$0xff]  ;;  %v13079_v18 = vld [vmem:[#allocation64_spill] sm:$0xff] }
 0x431   : > { %v3454_v25 = vadd.f32 %v3439_v27, %v3075_v7  ;;  %v3509_v24 = vsel %vm533_vm6, %v13074_v16, %v13073_v17  ;;  %4397 = vrot.lane.b32.xlu0 %v4380_v5, %s7156_s21  ;;  %v4384_v46 = vsel %vm3851_vm10, %v4379_v8, %v4383_v50  ;;  %v11178_v11 = vsel %vm3851_vm10, %v4381_v19, %v4387_v33  ;;  %v13078_v5 = vld [vmem:[#allocation58_spill] sm:$0xff]  ;;  %v13080_v27 = vld [vmem:[#allocation65_spill] sm:$0xff] }
 0x432   : > { %v3458_v3 = vadd.f32 %v13071_v9, %v3079_v63  ;;  %v3510_v0 = vsel %vm533_vm6, %v13076_v1, %v13075_v38  ;;  %4399 = vrot.lane.b32.xlu1 %v4382_v52, %s7156_s21  ;;  %v11186_v7 = vsel %vm3851_vm10, %v4383_v50, %v4389_v49  ;;  %v11189_v60 = vsel %vm3851_vm10, %v4385_v54, %v4391_v47  ;;  %v11198_v63 = vpop.permute.xlu0 %1327 }
 0x433   : > { %v3457_v2 = vadd.f32 %v3441_v57, %v3078_v61  ;;  %v3521_v55 = vadd.f32 %v13074_v16, %v3168_v15  ;;  %v3438_v8 = vsel %vm533_vm6, %v13077_v34, %v13070_v20  ;;  %v3440_v19 = vsel %vm533_vm6, %v13078_v5, %v13072_v59  ;;  %v13081_v61 = vld [vmem:[#allocation53_spill] sm:$0xff]  ;;  %v11207_v49 = vpop.permute.xlu1 %1329  ;;  %v13082_v59 = vld [vmem:[#allocation54_spill] sm:$0xff]  ;;  %v13083_v57 = vld [vmem:[#allocation52_spill] sm:$0xff] }
 0x434   : > { %v3522_v33 = vadd.f32 %v3509_v24, %v3169_v32  ;;  %v3523_v50 = vadd.f32 %v13073_v17, %v3170_v39  ;;  %v3063_v54 = vsel %vm637_vm12, %v13080_v27, %v13079_v18  ;;  %v3064_v15 = vsel %vm637_vm12, %v13079_v18, %v13081_v61  ;;  %v13084_v17 = vld [vmem:[#allocation60_spill] sm:$0xff]  ;;  %v13086_v34 = vld [vmem:[#allocation66_spill] sm:$0xff] }
 0x435   : > { %v3524_v20 = vadd.f32 %v13076_v1, %v3171_v35  ;;  %v3525_v47 = vadd.f32 %v3510_v0, %v3172_v14  ;;  %v3526_v9 = vadd.f32 %v13075_v38, %v3173_v10  ;;  %v3157_v32 = vsel %vm637_vm12, %v13083_v57, %v13082_v59  ;;  %4401 = vrot.lane.b32.xlu0 %v4384_v46, %s7156_s21  ;;  %v13085_v24 = vld [vmem:[#allocation68_spill] sm:$0xff] }
 0x436   : > { %v3453_v39 = vadd.f32 %v3438_v8, %v11088_v42  ;;  %v3456_v52 = vadd.f32 %v3440_v19, %v11119_v26  ;;  %v3158_v16 = vsel %vm637_vm12, %v13082_v59, %v13084_v17  ;;  %v3782_v35 = vsel %vm757_vm8, %v13086_v34, %v13085_v24  ;;  %4403 = vrot.lane.b32.xlu1 %v4386_v41, %s7156_s21  ;;  %v13087_v42 = vld [vmem:[#allocation67_spill] sm:$0xff]  ;;  %v11231_v38 = vpop.permute.xlu0 %1331  ;;  %v13088_v8 = vld [vmem:[#allocation77_spill] sm:$0xff]  ;;  %v13092_v61 = vld [vmem:[#allocation76_spill] sm:$0xff] }
 0x437   : > { %v3080_v14 = vadd.f32 %v13080_v27, %v11064_v37  ;;  %v3081_v10 = vadd.f32 %v3063_v54, %v11077_v29  ;;  %v3082_v46 = vadd.f32 %v3064_v15, %v11080_v53  ;;  %v3783_v26 = vsel %vm757_vm8, %v13085_v24, %v13087_v42  ;;  %v13089_v41 = vld [vmem:[#allocation69_spill] sm:$0xff]  ;;  %v13090_v37 = vld [vmem:[#allocation90_spill] sm:$0xff]  ;;  %v11242_v53 = vpop.permute.xlu1 %2038  ;;  %v13095_v17 = vld [vmem:[#allocation63_spill] sm:$0xff] }
 0x438   : > { %v3174_v1 = vadd.f32 %v13083_v57, %v11094_v13  ;;  %v3175_v0 = vadd.f32 %v3157_v32, %v11097_v12  ;;  %v3784_v5 = vsel %vm757_vm8, %v13089_v41, %v13088_v8  ;;  %v13091_v19 = vld [vmem:[#allocation81_spill] sm:$0xff]  ;;  %v3176_v18 = vadd.f32 %v3158_v16, %v11103_v40  ;;  %v13094_v57 = vld [vmem:[#allocation62_spill] sm:$0xff]  ;;  %v13099_v42 = vld [vmem:[#allocation84_spill] sm:$0xff] }
 0x439   : > { %v4138_v29 = vsel %vm495_vm4, %v13091_v19, %v13090_v37  ;;  %v3797_v27 = vadd.f32 %v13086_v34, %v3453_v39  ;;  %v3798_v54 = vadd.f32 %v3782_v35, %v3454_v25  ;;  %v3785_v13 = vsel %vm757_vm8, %v13088_v8, %v13092_v61  ;;  %4063 = vrot.lane.b32.xlu0 %v11071_v28, %s7155_s24  ;;  %v13093_v59 = vld [vmem:[#allocation61_spill] sm:$0xff]  ;;  %v13096_v39 = vld [vmem:[#allocation80_spill] sm:$0xff]  ;;  %v13097_v16 = vld [vmem:[#allocation78_spill] sm:$0xff] }
 0x43a   : > { %v3799_v12 = vadd.f32 %v3783_v26, %v3455_v30  ;;  %v3800_v15 = vadd.f32 %v13089_v41, %v3456_v52  ;;  %v3885_v32 = vsel %vm677_vm5, %v13094_v57, %v13093_v59  ;;  %v3886_v40 = vsel %vm677_vm5, %v13093_v59, %v13095_v17  ;;  %4065 = vrot.lane.b32.xlu1 %v11055_v36, %s7155_s24  ;;  %v13098_v28 = vld [vmem:[#allocation79_spill] sm:$0xff]  ;;  %v11266_v34 = vpop.permute.xlu0 %2040  ;;  %v13100_v26 = vld [vmem:[#allocation85_spill] sm:$0xff] }
 0x43b   : > { %v3801_v25 = vadd.f32 %v3784_v5, %v3457_v2  ;;  %v3887_v24 = vsel %vm677_vm5, %v13097_v16, %v13096_v39  ;;  %v3888_v30 = vsel %vm677_vm5, %v13096_v39, %v13098_v28  ;;  %v4151_v52 = vadd.f32 %v4138_v29, %v3798_v54  ;;  %v13101_v36 = vld [vmem:[#allocation91_spill] sm:$0xff]  ;;  %v13102_v2 = vld [vmem:[#allocation92_spill] sm:$0xff]  ;;  %v11275_v61 = vpop.permute.xlu1 %2042  ;;  %v13103_v29 = vld [vmem:[#allocation97_spill] sm:$0xff] }
 0x43c   : > { %v3802_v35 = vadd.f32 %v3785_v13, %v3458_v3  ;;  %v3443_v8 = vsel %vm533_vm6, %v13100_v26, %v13099_v42  ;;  %v4152_v41 = vadd.f32 %v13090_v37, %v3799_v12  ;;  %v4139_v5 = vsel %vm495_vm4, %v13102_v2, %v13101_v36  ;;  %v13104_v54 = vld [vmem:[#allocation98_spill] sm:$0xff]  ;;  %v13105_v12 = vld [vmem:[#allocation72_spill] sm:$0xff] }
 0x43d   : > { %v3900_v59 = vadd.f32 %v13094_v57, %v3521_v55  ;;  %v3901_v17 = vadd.f32 %v3885_v32, %v3522_v33  ;;  %v3902_v39 = vadd.f32 %v3886_v40, %v3523_v50  ;;  %v3511_v3 = vsel %vm533_vm6, %v13104_v54, %v13103_v29  ;;  %4446 = vrot.lane.b32.xlu0 %v4151_v52, %s7157_s18 }
 0x43e   : > { %v3903_v13 = vadd.f32 %v13097_v16, %v3524_v20  ;;  %v3904_v28 = vadd.f32 %v3887_v24, %v3525_v47  ;;  %v3905_v37 = vadd.f32 %v3888_v30, %v3526_v9  ;;  %v3442_v58 = vsel %vm533_vm6, %v13105_v12, %v13100_v26  ;;  %4448 = vrot.lane.b32.xlu1 %v4152_v41, %s7157_s18  ;;  %v11289_v57 = vpop.permute.xlu0 %2044  ;;  %v13106_v47 = vld [vmem:[#allocation100_spill] sm:$0xff]  ;;  %v13107_v9 = vld [vmem:[#allocation86_spill] sm:$0xff]  ;;  %v13108_v30 = vld [vmem:[#allocation99_spill] sm:$0xff] }
 0x43f   : > { %v3460_v56 = vadd.f32 %v3443_v8, %v3081_v10  ;;  %v3461_v55 = vadd.f32 %v13099_v42, %v3082_v46  ;;  %v3527_v33 = vadd.f32 %v13104_v54, %v3174_v1  ;;  %v4154_v50 = vadd.f32 %v4139_v5, %v3801_v25  ;;  %v11296_v24 = vpop.permute.xlu1 %2046  ;;  %v13109_v1 = vld [vmem:[#allocation70_spill] sm:$0xff]  ;;  %v13110_v25 = vld [vmem:[#allocation71_spill] sm:$0xff]  ;;  %v13112_v26 = vld [vmem:[#allocation73_spill] sm:$0xff] }
 0x440   : > { %v3528_v32 = vadd.f32 %v3511_v3, %v3175_v0  ;;  %v3529_v40 = vadd.f32 %v13103_v29, %v3176_v18  ;;  %v4155_v20 = vadd.f32 %v13101_v36, %v3802_v35  ;;  %v4229_v16 = vsel %vm495_vm4, %v13107_v9, %v13106_v47  ;;  %v13111_v35 = vld [vmem:[#allocation93_spill] sm:$0xff]  ;;  %v13113_v8 = vld [vmem:[#allocation74_spill] sm:$0xff]  ;;  %v13115_v36 = vld [vmem:[#allocation224_spill] sm:$0xff] }
 0x441   : > { %v4150_v10 = vadd.f32 %v13091_v19, %v3797_v27  ;;  %v4230_v46 = vsel %vm495_vm4, %v13106_v47, %v13108_v30  ;;  %v4231_v0 = vsel %vm495_vm4, %v13110_v25, %v13109_v1  ;;  %v3459_v52 = vadd.f32 %v3442_v58, %v3080_v14  ;;  %4452 = vrot.lane.b32.xlu0 %v4154_v50, %s7157_s18  ;;  %v13114_v27 = vld [vmem:[#allocation101_spill] sm:$0xff]  ;;  %v13116_v5 = vld [vmem:[#allocation75_spill] sm:$0xff]  ;;  %v13118_v47 = vld [vmem:[#allocation222_spill] sm:$0xff] }
 0x442   : > { %v4153_v18 = vadd.f32 %v13102_v2, %v3800_v15  ;;  %v4232_v42 = vsel %vm495_vm4, %v13109_v1, %v13111_v35  ;;  %v3786_v19 = vsel %vm757_vm8, %v13113_v8, %v13112_v26  ;;  %v3787_v41 = vsel %vm757_vm8, %v13112_v26, %v13114_v27  ;;  %4454 = vrot.lane.b32.xlu1 %v4155_v20, %s7157_s18  ;;  %v13117_v2 = vld [vmem:[#allocation231_spill] sm:$0xff]  ;;  %v11324_v54 = vpop.permute.xlu0 %2048  ;;  %v13119_v30 = vld [vmem:[#allocation221_spill] sm:$0xff] }
 0x443   : > { %v4244_v58 = vadd.f32 %v13107_v9, %v3900_v59  ;;  %v4245_v14 = vadd.f32 %v4229_v16, %v3901_v17  ;;  %v3889_v15 = vsel %vm677_vm5, %v13116_v5, %v13115_v36  ;;  %v3890_v29 = vsel %vm677_vm5, %v13115_v36, %v13117_v2  ;;  %v11330_v59 = vpop.permute.xlu1 %1708  ;;  %v13125_v26 = vld [vmem:[#allocation95_spill] sm:$0xff]  ;;  %v13128_v36 = vld [vmem:[#allocation22_spill] sm:$0xff] }
 0x444   : > { %v4246_v3 = vadd.f32 %v4230_v46, %v3902_v39  ;;  %v4247_v12 = vadd.f32 %v13110_v25, %v3903_v13  ;;  %v4248_v50 = vadd.f32 %v4231_v0, %v3904_v28  ;;  %v4504_v20 = vsel %vm533_vm6, %v13119_v30, %v13118_v47  ;;  %v13120_v13 = vld [vmem:[#allocation87_spill] sm:$0xff]  ;;  %v13121_v28 = vld [vmem:[#allocation88_spill] sm:$0xff]  ;;  %v13141_v2 = vld [vmem:[#allocation122_spill] sm:$0xff] }
 0x445   : > { %v4249_v17 = vadd.f32 %v4232_v42, %v3905_v37  ;;  %v3803_v9 = vadd.f32 %v13113_v8, %v3459_v52  ;;  %v3804_v16 = vadd.f32 %v3786_v19, %v3460_v56  ;;  %v3805_v1 = vadd.f32 %v3787_v41, %v3461_v55  ;;  %4061 = vrot.lane.b32.xlu0 %v11084_v45, %s7155_s24  ;;  %v11340_v0 = vld [vmem:[#allocation8] ss:$8 sm:$0x3]  ;;  %v13123_v52 = vld [vmem:[#allocation226_spill] sm:$0xff] }
 0x446   : > { %v3906_v35 = vadd.f32 %v13116_v5, %v3527_v33  ;;  %v3907_v39 = vadd.f32 %v3889_v15, %v3528_v32  ;;  %v3908_v46 = vadd.f32 %v3890_v29, %v3529_v40  ;;  %v4505_v25 = vsel %vm533_vm6, %v13121_v28, %v13120_v13  ;;  %4444 = vrot.lane.b32.xlu1 %v4150_v10, %s7157_s18  ;;  %v13122_v45 = vld [vmem:[#allocation89_spill] sm:$0xff]  ;;  %v11351_v32 = vpop.permute.xlu0 %1710  ;;  %v13124_v42 = vld [vmem:[#allocation94_spill] sm:$0xff]  ;;  %v13126_v19 = vld [vmem:[#allocation96_spill] sm:$0xff] }
 0x447   : > { %v11343_v37 = vadd.f32 %v13119_v30, %v4244_v58  ;;  %v4517_v56 = vadd.f32 %v4504_v20, %v4245_v14  ;;  %v11346_v55 = vadd.f32 %v13118_v47, %v4246_v3  ;;  %v4140_v33 = vsel %vm495_vm4, %v13123_v52, %v13122_v45  ;;  %v11365_v41 = vpop.permute.xlu1 %2352  ;;  %v13129_v15 = vld [vmem:[#allocation23_spill] sm:$0xff]  ;;  %v13142_v5 = vld [vmem:[#allocation120_spill] sm:$0xff] }
 0x448   : > { %v11354_v40 = vadd.f32 %v13121_v28, %v4247_v12  ;;  %v11357_v10 = vadd.f32 %v13120_v13, %v4249_v17  ;;  %v4233_v8 = vsel %vm495_vm4, %v13125_v26, %v13124_v42  ;;  %v4234_v27 = vsel %vm495_vm4, %v13124_v42, %v13126_v19  ;;  %v13130_v47 = vld [vmem:[#allocation111_spill] sm:$0xff]  ;;  %v13132_v17 = vld [vmem:[#allocation110_spill] sm:$0xff] }
 0x449   : > { %v11367_v58 = vadd.f32 %v4505_v25, %v4248_v50  ;;  %v11370_v14 = vadd.f32 %v13123_v52, %v3803_v9  ;;  %4450 = vrot.lane.b32.xlu0 %v4153_v18, %s7157_s18  ;;  %v11377_v29 = vadd.f32 %v4140_v33, %v3804_v16  ;;  %v11380_v3 = vadd.f32 %v13122_v45, %v3805_v1  ;;  %v6859_v50 = vld [vmem:[#allocation2 + $0x40] sm:$0x1f]  ;;  %v13135_v28 = vld [vmem:[#allocation107_spill] sm:$0xff]  ;;  %v13137_v25 = vld [vmem:[#allocation121_spill] sm:$0xff] }
 0x44a   : > { %v4250_v12 = vadd.f32 %v13125_v26, %v3906_v35  ;;  %v468_v30 = vmul.f32 %v6859_v50, %v13130_v47  ;;  %4405 = vrot.lane.b32.xlu1 %v11178_v11, %s7156_s21  ;;  %v11386_v18 = vadd.f32 %v4233_v8, %v3907_v39  ;;  %v11388_v20 = vadd.f32 %v4234_v27, %v3908_v46  ;;  %v11396_v1 = vpop.permute.xlu0 %2354  ;;  %v13133_v35 = vld [vmem:[#allocation105_spill] sm:$0xff]  ;;  %v6860_v39 = vld [vmem:[#allocation2 + $0x30] sm:$0xe0]  ;;  %v13139_v42 = vld [vmem:[#allocation230_spill] sm:$0xff] }
 0x44b   : > { %13127 = vst [vmem:[#allocation131_spill] sm:$0xff] %v11370_v14  ;;  %v458_v9 = vsel %vm457_vm1, %v13130_v47, %v13132_v17  ;;  %v993_v16 = vsel %vm533_vm6, %v11109_v22, %v10997_v48  ;;  %v11404_v11 = vsel %vm533_vm6, %v13133_v35, %v13135_v28  ;;  %v462_v46 = vmul.f32 %v6860_v39, %v13130_v47  ;;  %v11408_v52 = vpop.permute.xlu1 %2356  ;;  %v13138_v33 = vld [vmem:[#allocation25_spill] sm:$0xff]  ;;  %v6862_v27 = vld [vmem:[#allocation2 + $0x8] sm:$0xff]  ;;  %v6863_v50 = vld [vmem:[#allocation2] sm:$0xe0] }
 0x44c   : > { %13131 = vst [vmem:[#allocation135_spill] sm:$0xff] %v11388_v20  ;;  %v11399_v13 = vadd.f32 %v13133_v35, %v4250_v12  ;;  %13136 = vst [vmem:[#allocation137_spill] sm:$0xff] %v11404_v11  ;;  %v659_v45 = vadd.f32 %v13137_v25, %v468_v30  ;;  %v638_v22 = vsel %vm637_vm12, %v13139_v42, %v13138_v33  ;;  %v6861_v26 = vld [vmem:[#allocation2 + $0x58] sm:$0xe0]  ;;  %v13140_v35 = vld [vmem:[#allocation234_spill] sm:$0xff] }
 0x44d   : > { %v464_v8 = vmul.f32 %v6861_v26, %v13132_v17  ;;  %v465_v19 = vmul.f32 %v10989_v43, %v13130_v47  ;;  %v467_v12 = vmul.f32 %v6862_v27, %v13132_v17  ;;  %4407 = vrot.lane.b32.xlu0 %v11186_v7, %s7156_s21  ;;  %v463_v30 = vmul.f32 %v6863_v50, %v458_v9  ;;  %v6864_v27 = vld [vmem:[#allocation2 + $0x68] sm:$0xff]  ;;  %v6865_v14 = vld [vmem:[#allocation2 + $0x20] sm:$0x1f]  ;;  %v6866_v28 = vld [vmem:[#allocation2 + $0x10] sm:$0x1f] }
 0x44e   : > { %13134 = vst [vmem:[#allocation134_spill] sm:$0xff] %v11399_v13  ;;  %v639_v39 = vsel %vm637_vm12, %v13138_v33, %v13140_v35  ;;  %v643_v13 = vsel %vm637_vm12, %v13142_v5, %v13141_v2  ;;  %v1010_v26 = vadd.f32 %v993_v16, %v659_v45  ;;  %4409 = vrot.lane.b32.xlu1 %v11189_v60, %s7156_s21  ;;  %v11429_v20 = vpop.permute.xlu0 %2358  ;;  %v13143_v35 = vld [vmem:[#allocation112_spill] sm:$0xff]  ;;  %v13144_v11 = vld [vmem:[#allocation233_spill] sm:$0xff] }
 0x44f   : > { %v653_v47 = vadd.f32 %v13139_v42, %v462_v46  ;;  %v466_v43 = vmul.f32 %v6864_v27, %v458_v9  ;;  %v469_v7 = vmul.f32 %v6865_v14, %v458_v9  ;;  %v470_v50 = vmul.f32 %v6866_v28, %v13132_v17  ;;  %v1707_v46 = vpop.permute.xlu1 %1706  ;;  %v13145_v42 = vld [vmem:[#allocation227_spill] sm:$0xff] }
 0x450   : > { %v654_v33 = vadd.f32 %v638_v22, %v463_v30  ;;  %v640_v2 = vsel %vm637_vm12, %v13144_v11, %v13143_v35  ;;  %v642_v60 = vsel %vm637_vm12, %v13137_v25, %v13142_v5  ;;  %v1354_v16 = vadd.f32 %v11198_v63, %v1010_v26  ;;  %v13147_v30 = vld [vmem:[#allocation133_spill] sm:$0xff] }
 0x451   : > { %v655_v45 = vadd.f32 %v639_v39, %v464_v8  ;;  %v641_v14 = vsel %vm637_vm12, %v13143_v35, %v13145_v42  ;;  %v661_v17 = vadd.f32 %v643_v13, %v470_v50  ;;  %v1716_v9 = vsel %vm495_vm4, %v1707_v46, %v11330_v59  ;;  %4536 = vrot.lane.b32.xlu0 %v4517_v56, %s7155_s24  ;;  %v13146_v8 = vld [vmem:[#allocation132_spill] sm:$0xff]  ;;  %v13148_v35 = vld [vmem:[#allocation114_spill] sm:$0xff]  ;;  %v13152_v42 = vld [vmem:[#allocation127_spill] sm:$0xff] }
 0x452   : > { %v11445_v28 = vadd.f32 %v13144_v11, %v465_v19  ;;  %v994_v5 = vsel %vm533_vm6, %v10997_v48, %v11028_v4  ;;  %v1338_v25 = vsel %vm757_vm8, %v11207_v49, %v11231_v38  ;;  %v1733_v22 = vadd.f32 %v1716_v9, %v1354_v16  ;;  %4538 = vrot.lane.b32.xlu1 %v11346_v55, %s7155_s24  ;;  %v2051_v19 = vpop.permute.xlu0 %2050  ;;  %v13149_v55 = vld [vmem:[#allocation115_spill] sm:$0xff]  ;;  %v13151_v46 = vld [vmem:[#allocation124_spill] sm:$0xff] }
 0x453   : > { %v657_v13 = vadd.f32 %v640_v2, %v466_v43  ;;  %v990_v56 = vsel %vm533_vm6, %v13147_v30, %v13146_v8  ;;  %v660_v39 = vadd.f32 %v642_v60, %v469_v7  ;;  %v1012_v11 = vadd.f32 %v11028_v4, %v661_v17  ;;  %v2053_v50 = vpop.permute.xlu1 %2052  ;;  %v13150_v60 = vld [vmem:[#allocation117_spill] sm:$0xff] }
 0x454   : > { %v658_v26 = vadd.f32 %v641_v14, %v467_v12  ;;  %v1006_v48 = vadd.f32 %v13146_v8, %v655_v45  ;;  %v1337_v38 = vsel %vm757_vm8, %v11198_v63, %v11207_v49  ;;  %v2077_v27 = vadd.f32 %v2051_v19, %v1733_v22 }
 0x455   : > { %v992_v43 = vsel %vm533_vm6, %v13149_v55, %v13148_v35  ;;  %v1011_v2 = vadd.f32 %v994_v5, %v660_v39  ;;  %v1356_v16 = vadd.f32 %v1338_v25, %v1012_v11  ;;  %v2060_v7 = vsel %vm677_vm5, %v2051_v19, %v2053_v50  ;;  %4542 = vrot.lane.b32.xlu0 %v11367_v58, %s7155_s24  ;;  %v13153_v58 = vld [vmem:[#allocation125_spill] sm:$0xff]  ;;  %v13154_v25 = vld [vmem:[#allocation123_spill] sm:$0xff]  ;;  %v13155_v19 = vld [vmem:[#allocation126_spill] sm:$0xff] }
 0x456   : > { %v1005_v4 = vadd.f32 %v990_v56, %v654_v33  ;;  %v1009_v12 = vadd.f32 %v13148_v35, %v658_v26  ;;  %v989_v63 = vsel %vm533_vm6, %v13150_v60, %v13147_v30  ;;  %v1717_v49 = vsel %vm495_vm4, %v11330_v59, %v11351_v32  ;;  %4544 = vrot.lane.b32.xlu1 %v11357_v10, %s7155_s24  ;;  %v2055_v9 = vpop.permute.xlu0 %2054  ;;  %v6867_v35 = vld [vmem:[#allocation2 + $0x68] sm:$0xfe] }
 0x457   : > { %v1333_v45 = vsel %vm757_vm8, %v13151_v46, %v10901_v31  ;;  %v1335_v33 = vsel %vm757_vm8, %v13153_v58, %v13152_v42  ;;  %v1355_v14 = vadd.f32 %v1337_v38, %v1011_v2  ;;  %v1735_v17 = vadd.f32 %v11351_v32, %v1356_v16  ;;  %v2361_v8 = vpop.permute.xlu1 %2360 }
 0x458   : > { %v1008_v5 = vadd.f32 %v992_v43, %v657_v13  ;;  %v1334_v59 = vsel %vm757_vm8, %v10901_v31, %v13154_v25  ;;  %v11491_v10 = vsel %vm457_vm1, %v11162_v44, %v11168_v23  ;;  %v2061_v22 = vsel %vm677_vm5, %v2053_v50, %v2055_v9 }
 0x459   : > { %v1715_v30 = vsel %vm495_vm4, %v11066_v51, %v11105_v62  ;;  %v1734_v56 = vadd.f32 %v1717_v49, %v1355_v14  ;;  %v2079_v32 = vadd.f32 %v2061_v22, %v1735_v17  ;;  %v11497_v39 = vadd.f32 %v2361_v8, %v2077_v27  ;;  %4534 = vrot.lane.b32.xlu0 %v11343_v37, %s7155_s24  ;;  %v6868_v37 = vld [vmem:[#allocation2 + $0x20] sm:$0xff] }
 0x45a   : > { %v1004_v31 = vadd.f32 %v989_v63, %v653_v47  ;;  %v1349_v13 = vadd.f32 %v1333_v45, %v1005_v4  ;;  %v1352_v11 = vadd.f32 %v1335_v33, %v1008_v5  ;;  %v1336_v26 = vsel %vm757_vm8, %v13152_v42, %v13155_v19  ;;  %4540 = vrot.lane.b32.xlu1 %v11354_v40, %s7155_s24  ;;  %v2363_v27 = vpop.permute.xlu0 %2362  ;;  %v6870_v33 = vld [vmem:[#allocation2 + $0x10] sm:$0xff] }
 0x45b   : > { %v2058_v38 = vsel %vm677_vm5, %v11289_v57, %v11296_v24  ;;  %v2078_v50 = vadd.f32 %v2060_v7, %v1734_v56  ;;  %v11510_v43 = vmul.f32 %v6867_v35, %v11491_v10  ;;  %v11513_v47 = vmul.f32 %v6868_v37, %v11491_v10  ;;  %v11518_v40 = vpop.permute.xlu1 %2947  ;;  %v13160_v37 = vld [vmem:[#allocation137_spill] sm:$0xff] }
 0x45c   : > { %v1350_v2 = vadd.f32 %v1334_v59, %v1006_v48  ;;  %v1731_v16 = vadd.f32 %v1715_v30, %v1352_v11  ;;  %v2366_v4 = vsel %vm457_vm1, %v2361_v8, %v2363_v27  ;;  %v11516_v60 = vadd.f32 %v2363_v27, %v2079_v32  ;;  %v6869_v48 = vld [vmem:[#allocation2 + $0x8] sm:$0xfe]  ;;  %v13156_v8 = vld [vmem:[#allocation116_spill] sm:$0xff] }
 0x45d   : > { %v1353_v63 = vadd.f32 %v1336_v26, %v1009_v12  ;;  %v1713_v7 = vsel %vm495_vm4, %v11035_v6, %v11048_v21  ;;  %v2365_v49 = vsel %vm457_vm1, %v11408_v52, %v11429_v20  ;;  %v11526_v45 = vadd.f32 %v2366_v4, %v2078_v50  ;;  %4458 = vrot.lane.b32.xlu0 %v11377_v29, %s7157_s18 }
 0x45e   : > { %v2658_v42 = vmul.f32 %v6869_v48, %v11168_v23  ;;  %v11532_v14 = vmul.f32 %v6870_v33, %v11168_v23  ;;  %v2075_v12 = vadd.f32 %v2058_v38, %v1731_v16  ;;  %v2059_v17 = vsel %vm677_vm5, %v11296_v24, %v11324_v54  ;;  %4460 = vrot.lane.b32.xlu1 %v11380_v3, %s7157_s18  ;;  %v2950_v5 = vpop.permute.xlu0 %2949  ;;  %v13163_v33 = vld [vmem:[#allocation131_spill] sm:$0xff] }
 0x45f   : > { %v1732_v9 = vadd.f32 %v11105_v62, %v1353_v63  ;;  %v2057_v29 = vsel %vm677_vm5, %v11266_v34, %v11275_v61  ;;  %v2676_v25 = vrot.slane %v11510_v43, 4  ;;  %v2680_v59 = vrot.slane %v11513_v47, 4  ;;  %v2952_v62 = vpop.permute.xlu1 %2951 }
 0x460   : > { %v1729_v22 = vadd.f32 %v11048_v21, %v1350_v2  ;;  %v2056_v24 = vsel %vm677_vm5, %v11242_v53, %v11266_v34  ;;  %v2380_v54 = vadd.f32 %v2365_v49, %v2075_v12  ;;  %v11551_v3 = vsel %vm637_vm12, %v11518_v40, %v2950_v5 }
 0x461   : > { %v991_v61 = vsel %vm533_vm6, %v13156_v8, %v13149_v55  ;;  %v1728_v30 = vadd.f32 %v1713_v7, %v1349_v13  ;;  %v2076_v56 = vadd.f32 %v2059_v17, %v1732_v9  ;;  %v2966_v32 = vsel %vm637_vm12, %v2950_v5, %v2952_v62  ;;  %v13159_v13 = vld [vmem:[#allocation130_spill] sm:$0xff]  ;;  %v13161_v7 = vld [vmem:[#allocation135_spill] sm:$0xff]  ;;  %v13165_v17 = vld [vmem:[#allocation128_spill] sm:$0xff] }
 0x462   : > { %v13157_v21 = vrot.slane %v11340_v0, %v13128_v36  ;;  %v2677_v34 = vrot.slane %v2658_v42, 4  ;;  %v2682_v11 = vrot.slane %v11532_v14, 4  ;;  %v2073_v19 = vadd.f32 %v2057_v29, %v1729_v22  ;;  %v11573_v35 = vpop.permute.xlu0 %2953  ;;  %v6871_v5 = vld [vmem:[#allocation2 + $0x50] sm:$0xfe]  ;;  %v4632_v62 = vld [vmem:[#allocation9 + $0xe8] sm:$0xff] }
 0x463   : > { %v2364_v26 = vsel %vm457_vm1, %v11365_v41, %v11396_v1  ;;  %v13158_v55 = vrot.slane %v11340_v0, %v13129_v15  ;;  %v1712_v38 = vsel %vm495_vm4, %v13159_v13, %v11035_v6  ;;  %v2072_v50 = vadd.f32 %v2056_v24, %v1728_v30  ;;  %v2956_v63 = vpop.permute.xlu1 %2955  ;;  %v13162_v6 = vld [vmem:[#allocation107_spill] sm:$0xff]  ;;  %v6872_v13 = vld [vmem:[#allocation2 + $0x60] sm:$0x1] }
 0x464   : > { %4586 = vrot.lane.b32.xlu0 %v13157_v21, %s7154_s19  ;;  %v2381_v27 = vadd.f32 %v11429_v20, %v2076_v56  ;;  %v2681_v43 = vsel %vm2674_vm11, %v2676_v25, %v2680_v59  ;;  %v4523_v2 = vadd.f32 %v13160_v37, %v11386_v18  ;;  %v1348_v16 = vadd.f32 %v13151_v46, %v1004_v31  ;;  %v13164_v18 = vld [vmem:[#allocation129_spill] sm:$0xff] }
 0x465   : > { %4588 = vrot.lane.b32.xlu1 %v13158_v55, %s7154_s19  ;;  %v2378_v0 = vadd.f32 %v11396_v1, %v2073_v19  ;;  %v2703_v4 = vadd.f32 %v2681_v43, %v2380_v54  ;;  %v4524_v49 = vadd.f32 %v13162_v6, %v13161_v7  ;;  %v1007_v20 = vadd.f32 %v991_v61, %v11445_v28  ;;  %v4633_v54 = vld [vmem:[#allocation9 + $0xf0] sm:$0xff]  ;;  %v4630_v55 = vld [vmem:[#allocation9 + $0xd8] sm:$0xff] }
 0x466   : > { %v2377_v48 = vadd.f32 %v2364_v26, %v2072_v50  ;;  %v2967_v42 = vsel %vm637_vm12, %v11573_v35, %v2956_v63  ;;  %v1727_v12 = vadd.f32 %v1712_v38, %v1348_v16  ;;  %v1714_v46 = vsel %vm495_vm4, %v13164_v18, %v11066_v51  ;;  %v2958_v24 = vpop.permute.xlu0 %2957  ;;  %v4634_v51 = vld [vmem:[#allocation9 + $0xf8] sm:$0xff] }
 0x467   : > { %v2683_v1 = vsel %vm2674_vm11, %v2677_v34, %v2682_v11  ;;  %v11595_v31 = vadd.f32 %v2967_v42, %v2703_v4  ;;  %v1351_v28 = vadd.f32 %v13153_v58, %v1007_v20  ;;  %v11601_v9 = vmul.f32 %v13165_v17, %v11162_v44  ;;  %v3329_v56 = vpop.permute.xlu1 %3328  ;;  %4711 = vmatprep.subr.mxu0 %v4634_v51  ;;  %v4631_v58 = vld [vmem:[#allocation9 + $0xe0] sm:$0xff]  ;;  %v6874_v42 = vld [vmem:[#allocation2 + $0x78] sm:$0x1] }
 0x468   : > { %4456 = vrot.lane.b32.xlu0 %v13163_v33, %s7157_s18  ;;  %v2704_v29 = vadd.f32 %v2683_v1, %v2381_v27  ;;  %v2656_v22 = vmul.f32 %v6871_v5, %v11162_v44  ;;  %v2071_v8 = vadd.f32 %v11242_v53, %v1727_v12  ;;  %v2701_v61 = vadd.f32 %v2677_v34, %v2378_v0  ;;  %v13166_v34 = vld [vmem:[#allocation134_spill] sm:$0xff]  ;;  %v4628_v0 = vld [vmem:[#allocation9 + $0xc8] sm:$0xff]  ;;  %v4627_v4 = vld [vmem:[#allocation9 + $0xc0] sm:$0xff] }
 0x469   : > { %4548 = vrot.lane.b32.xlu1 %v4523_v2, %s7155_s24  ;;  %v2968_v30 = vsel %vm637_vm12, %v2956_v63, %v2958_v24  ;;  %4884 = vmatprep.subr.mxu1 %v4634_v51  ;;  %v1730_v21 = vadd.f32 %v1714_v46, %v1351_v28  ;;  %v2700_v19 = vadd.f32 %v2676_v25, %v2377_v48  ;;  %v4629_v27 = vld [vmem:[#allocation9 + $0xd0] sm:$0xff]  ;;  %v2678_v43 = vrot.slane %v11601_v9, 4  ;;  %v4622_v5 = vld [vmem:[#allocation9 + $0x98] sm:$0xff] }
 0x46a   : > { %v2985_v26 = vadd.f32 %v2968_v30, %v2704_v29  ;;  %4712 = vmatpush1.msra.mxu0 %v4633_v54  ;;  %v2662_v38 = vmul.f32 %v6872_v13, %v11162_v44  ;;  %v2376_v50 = vadd.f32 %v11365_v41, %v2071_v8  ;;  %v2982_v53 = vadd.f32 %v2966_v32, %v2701_v61  ;;  %v3331_v16 = vpop.permute.xlu0 %3330  ;;  %v4625_v48 = vld [vmem:[#allocation9 + $0xb0] sm:$0xff] }
 0x46b   : > { %4713 = vmatprep.subr.mxu0 %v4632_v62  ;;  %v2074_v25 = vadd.f32 %v11289_v57, %v1730_v21  ;;  %v2675_v37 = vrot.slane %v2656_v22, 4  ;;  %v2981_v2 = vadd.f32 %v11551_v3, %v2700_v19  ;;  %4885 = vmatpush1.msra.mxu1 %v4633_v54  ;;  %v3345_v44 = vsel %vm533_vm6, %v3329_v56, %v3331_v16  ;;  %v3335_v32 = vpop.permute.xlu1 %3334  ;;  %v4626_v57 = vld [vmem:[#allocation9 + $0xb8] sm:$0xff]  ;;  %v4621_v51 = vld [vmem:[#allocation9 + $0x90] sm:$0xff] }
 0x46c   : > { %4550 = vrot.lane.b32.xlu0 %v4524_v49, %s7155_s24  ;;  %4714 = vmatpush1.msra.mxu0 %v4631_v58  ;;  %v11615_v41 = vadd.f32 %v3331_v16, %v2982_v53  ;;  %v2684_v3 = vrot.slane %v2662_v38, 4  ;;  %v6873_v49 = vld [vmem:[#allocation2 + $0x70] sm:$0x1]  ;;  %v2664_v33 = vmul.f32 %v6874_v42, %v11168_v23  ;;  %v4605_v42 = vld [vmem:[#allocation9 + $0x10] sm:$0xff] }
 0x46d   : > { %4546 = vrot.lane.b32.xlu1 %v13166_v34, %s7155_s24  ;;  %4715 = vmatprep.subr.mxu0 %v4630_v55  ;;  %v2379_v63 = vadd.f32 %v11408_v52, %v2074_v25  ;;  %v11618_v7 = vadd.f32 %v3345_v44, %v2981_v2  ;;  %v2699_v6 = vadd.f32 %v2675_v37, %v2376_v50  ;;  %v4624_v52 = vld [vmem:[#allocation9 + $0xa8] sm:$0xff]  ;;  %v4611_v16 = vld [vmem:[#allocation9 + $0x40] sm:$0xff]  ;;  %v4610_v44 = vld [vmem:[#allocation9 + $0x38] sm:$0xff] }
 0x46e   : > { %4886 = vmatprep.subr.mxu1 %v4632_v62  ;;  %4716 = vmatpush1.msra.mxu0 %v4629_v27  ;;  %v2663_v20 = vmul.f32 %v6873_v49, %v11491_v10  ;;  %v2679_v12 = vsel %vm2674_vm11, %v2675_v37, %v2678_v43  ;;  %v3337_v18 = vpop.permute.xlu0 %3336  ;;  %v4623_v10 = vld [vmem:[#allocation9 + $0xa0] sm:$0xff]  ;;  %v2688_v54 = vrot.slane %v2664_v33, 4  ;;  %v4616_v50 = vld [vmem:[#allocation9 + $0x68] sm:$0xff] }
 0x46f   : > { %4887 = vmatpush1.msra.mxu1 %v4631_v58  ;;  %4717 = vmatprep.subr.mxu0 %v4628_v0  ;;  %v2980_v46 = vadd.f32 %v11518_v40, %v2699_v6  ;;  %v3347_v1 = vsel %vm533_vm6, %v3335_v32, %v3337_v18  ;;  %v11625_v28 = vadd.f32 %v3337_v18, %v2985_v26  ;;  %v3327_v17 = vpop.permute.xlu1 %3326  ;;  %v4619_v58 = vld [vmem:[#allocation9 + $0x80] sm:$0xff]  ;;  %v4618_v26 = vld [vmem:[#allocation9 + $0x78] sm:$0xff] }
 0x470   : > { %4888 = vmatprep.subr.mxu1 %v4630_v55  ;;  %4718 = vmatpush1.msra.mxu0 %v4627_v4  ;;  %v2702_v9 = vadd.f32 %v2679_v12, %v2379_v63  ;;  %v11628_v29 = vadd.f32 %v3347_v1, %v11595_v31  ;;  %v3344_v23 = vsel %vm533_vm6, %v3327_v17, %v3329_v56  ;;  %v2686_v24 = vrot.slane %v2663_v20, 4  ;;  %v4620_v31 = vld [vmem:[#allocation9 + $0x88] sm:$0xff]  ;;  %v4607_v49 = vld [vmem:[#allocation9 + $0x20] sm:$0xff]  ;;  %v4666_v17 = vld [vmem:[#allocation9 + $0x1f8] sm:$0xff] }
 0x471   : > { %4889 = vmatpush1.msra.mxu1 %v4629_v27  ;;  %4719 = vmatprep.subr.mxu0 %v4626_v57  ;;  %v3359_v22 = vadd.f32 %v3344_v23, %v2980_v46  ;;  %v2685_v40 = vsel %vm2674_vm11, %v2678_v43, %v2684_v3  ;;  %v2689_v55 = vsel %vm2674_vm11, %v2682_v11, %v2688_v54  ;;  %v4614_v11 = vld [vmem:[#allocation9 + $0x58] sm:$0xff]  ;;  %v4604_v12 = vld [vmem:[#allocation9 + $0x8] sm:$0xff]  ;;  %v4603_v46 = vld [vmem:[#allocation9] sm:$0xff] }
 0x472   : > { %4890 = vmatprep.subr.mxu1 %v4628_v0  ;;  %4720 = vmatpush1.msra.mxu0 %v4625_v48  ;;  %v2983_v62 = vadd.f32 %v11573_v35, %v2702_v9  ;;  %v3333_v8 = vpop.permute.xlu0 %3332  ;;  %v2705_v61 = vadd.f32 %v2685_v40, %v11497_v39  ;;  %v2687_v35 = vsel %vm2674_vm11, %v2680_v59, %v2686_v24  ;;  %v4617_v39 = vld [vmem:[#allocation9 + $0x70] sm:$0xff]  ;;  %v4615_v59 = vld [vmem:[#allocation9 + $0x60] sm:$0xff] }
 0x473   : > { %4891 = vmatpush1.msra.mxu1 %v4627_v4  ;;  %4721 = vmatprep.subr.mxu0 %v4624_v52  ;;  %v3346_v30 = vsel %vm533_vm6, %v3333_v8, %v3335_v32  ;;  %v2960_v56 = vpop.permute.xlu1 %2959  ;;  %v2706_v38 = vadd.f32 %v2687_v35, %v11526_v45  ;;  %v2707_v53 = vadd.f32 %v2689_v55, %v11516_v60  ;;  %v4613_v45 = vld [vmem:[#allocation9 + $0x50] sm:$0xff]  ;;  %v4612_v60 = vld [vmem:[#allocation9 + $0x48] sm:$0xff]  ;;  %v4663_v40 = vld [vmem:[#allocation9 + $0x1e0] sm:$0xff] }
 0x474   : > { %4892 = vmatprep.subr.mxu1 %v4626_v57  ;;  %4722 = vmatpush1.msra.mxu0 %v4623_v10  ;;  %v3362_v21 = vadd.f32 %v3346_v30, %v2983_v62  ;;  %v11635_v19 = vadd.f32 %v2960_v56, %v2705_v61  ;;  %v4609_v4 = vld [vmem:[#allocation9 + $0x30] sm:$0xff]  ;;  %v4608_v57 = vld [vmem:[#allocation9 + $0x28] sm:$0xff] }
 0x475   : > { %4893 = vmatpush1.msra.mxu1 %v4625_v48  ;;  %4723 = vmatprep.subr.mxu0 %v4622_v5  ;;  %v4665_v9 = vld [vmem:[#allocation9 + $0x1f0] sm:$0xff]  ;;  %v4660_v8 = vld [vmem:[#allocation9 + $0x1c8] sm:$0xff] }
 0x476   : > { %4894 = vmatprep.subr.mxu1 %v4624_v52  ;;  %4724 = vmatpush1.msra.mxu0 %v4621_v51  ;;  %v2962_v13 = vpop.permute.xlu0 %2961  ;;  %v4661_v54 = vld [vmem:[#allocation9 + $0x1d0] sm:$0xff] }
 0x477   : > { %4895 = vmatpush1.msra.mxu1 %v4623_v10  ;;  %4725 = vmatprep.subr.mxu0 %v4620_v31  ;;  %v2969_v34 = vsel %vm637_vm12, %v2960_v56, %v2962_v13  ;;  %v2964_v47 = vpop.permute.xlu1 %2963 }
 0x478   : > { %4896 = vmatprep.subr.mxu1 %v4622_v5  ;;  %4726 = vmatpush1.msra.mxu0 %v4619_v58  ;;  %v11646_v27 = vadd.f32 %v2969_v34, %v2706_v38  ;;  %v2970_v14 = vsel %vm637_vm12, %v2962_v13, %v2964_v47  ;;  %v4664_v5 = vld [vmem:[#allocation9 + $0x1e8] sm:$0xff]  ;;  %v4655_v13 = vld [vmem:[#allocation9 + $0x1a0] sm:$0xff]  ;;  %v4654_v38 = vld [vmem:[#allocation9 + $0x198] sm:$0xff] }
 0x479   : > { %4897 = vmatpush1.msra.mxu1 %v4621_v51  ;;  %4727 = vmatprep.subr.mxu0 %v4618_v26  ;;  %v11649_v43 = vadd.f32 %v2970_v14, %v2707_v53  ;;  %v4662_v51 = vld [vmem:[#allocation9 + $0x1d8] sm:$0xff]  ;;  %v4652_v34 = vld [vmem:[#allocation9 + $0x188] sm:$0xff] }
 0x47a   : > { %4898 = vmatprep.subr.mxu1 %v4620_v31  ;;  %4728 = vmatpush1.msra.mxu0 %v4617_v39  ;;  %v3671_v25 = vpop.permute.xlu0 %3670  ;;  %v4659_v31 = vld [vmem:[#allocation9 + $0x1c0] sm:$0xff] }
 0x47b   : > { %4899 = vmatpush1.msra.mxu1 %v4619_v58  ;;  %4729 = vmatprep.subr.mxu0 %v4616_v50  ;;  %v11651_v37 = vadd.f32 %v3671_v25, %v3359_v22  ;;  %v3673_v2 = vpop.permute.xlu1 %3672  ;;  %v4658_v58 = vld [vmem:[#allocation9 + $0x1b8] sm:$0xff] }
 0x47c   : > { %4900 = vmatprep.subr.mxu1 %v4618_v26  ;;  %4730 = vmatpush1.msra.mxu0 %v4615_v59  ;;  %v3688_v0 = vsel %vm757_vm8, %v3671_v25, %v3673_v2  ;;  %v4657_v26 = vld [vmem:[#allocation9 + $0x1b0] sm:$0xff] }
 0x47d   : > { %4901 = vmatpush1.msra.mxu1 %v4617_v39  ;;  %4731 = vmatprep.subr.mxu0 %v4614_v11  ;;  %v11655_v32 = vadd.f32 %v3688_v0, %v11618_v7  ;;  %v4606_v7 = vld [vmem:[#allocation9 + $0x18] sm:$0xff]  ;;  %v4656_v39 = vld [vmem:[#allocation9 + $0x1a8] sm:$0xff]  ;;  %v4649_v25 = vld [vmem:[#allocation9 + $0x170] sm:$0xff] }
 0x47e   : > { %4902 = vmatprep.subr.mxu1 %v4616_v50  ;;  %4732 = vmatpush1.msra.mxu0 %v4613_v45  ;;  %v3675_v63 = vpop.permute.xlu0 %3674  ;;  %v4653_v50 = vld [vmem:[#allocation9 + $0x190] sm:$0xff] }
 0x47f   : > { %4903 = vmatpush1.msra.mxu1 %v4615_v59  ;;  %4733 = vmatprep.subr.mxu0 %v4612_v60  ;;  %v3689_v3 = vsel %vm757_vm8, %v3673_v2, %v3675_v63  ;;  %v3677_v6 = vpop.permute.xlu1 %3676  ;;  %v4648_v2 = vld [vmem:[#allocation9 + $0x168] sm:$0xff] }
 0x480   : > { %4904 = vmatprep.subr.mxu1 %v4614_v11  ;;  %4734 = vmatpush1.msra.mxu0 %v4611_v16  ;;  %v3705_v20 = vadd.f32 %v3689_v3, %v11615_v41  ;;  %v11659_v48 = vadd.f32 %v3677_v6, %v3362_v21 }
 0x481   : > { %4905 = vmatpush1.msra.mxu1 %v4613_v45  ;;  %4735 = vmatprep.subr.mxu0 %v4610_v44 }
 0x482   : > { %4906 = vmatprep.subr.mxu1 %v4612_v60  ;;  %4736 = vmatpush1.msra.mxu0 %v4609_v4  ;;  %v3679_v33 = vpop.permute.xlu0 %3678 }
 0x483   : > { %4907 = vmatpush1.msra.mxu1 %v4611_v16  ;;  %4737 = vmatprep.subr.mxu0 %v4608_v57  ;;  %v3690_v18 = vsel %vm757_vm8, %v3677_v6, %v3679_v33  ;;  %v3681_v52 = vpop.permute.xlu1 %3680 }
 0x484   : > { %4908 = vmatprep.subr.mxu1 %v4610_v44  ;;  %4738 = vmatpush1.msra.mxu0 %v4607_v49  ;;  %v11663_v41 = vadd.f32 %v3690_v18, %v11628_v29  ;;  %v3691_v1 = vsel %vm757_vm8, %v3679_v33, %v3681_v52 }
 0x485   : > { %4909 = vmatpush1.msra.mxu1 %v4609_v4  ;;  %4739 = vmatprep.subr.mxu0 %v4606_v7  ;;  %v11667_v10 = vadd.f32 %v3691_v1, %v11625_v28 }
 0x486   : > { %4910 = vmatprep.subr.mxu1 %v4608_v57  ;;  %4740 = vmatpush1.msra.mxu0 %v4605_v42  ;;  %v3341_v23 = vpop.permute.xlu0 %3340 }
 0x487   : > { %4911 = vmatpush1.msra.mxu1 %v4607_v49  ;;  %4741 = vmatprep.subr.mxu0 %v4604_v12  ;;  %v3343_v22 = vpop.permute.xlu1 %3342 }
 0x488   : > { %4912 = vmatprep.subr.mxu1 %v4606_v7  ;;  %4742 = vmatpush1.msra.mxu0 %v4603_v46  ;;  %v3349_v29 = vsel %vm533_vm6, %v3341_v23, %v3343_v22  ;;  %v11671_v24 = vadd.f32 %v3343_v22, %v11649_v43  ;;  %v4650_v43 = vld [vmem:[#allocation9 + $0x178] sm:$0xff] }
 0x489   : > { %4913 = vmatpush1.msra.mxu1 %v4605_v42  ;;  %4743 = vmatprep.subr.mxu0 %v4666_v17  ;;  %v11674_v28 = vadd.f32 %v3349_v29, %v11646_v27  ;;  %v4651_v27 = vld [vmem:[#allocation9 + $0x180] sm:$0xff] }
 0x48a   : > { %4914 = vmatprep.subr.mxu1 %v4604_v12  ;;  %4744 = vmatpush2.msra.mxu0 %v4665_v9  ;;  %v4052_v62 = vpop.permute.xlu0 %4051 }
 0x48b   : > { %4915 = vmatpush1.msra.mxu1 %v4603_v46  ;;  %4745 = vmatprep.subr.mxu0 %v4664_v5  ;;  %v4054_v61 = vpop.permute.xlu1 %4053 }
 0x48c   : > { %4916 = vmatprep.subr.mxu1 %v4666_v17  ;;  %4746 = vmatpush2.msra.mxu0 %v4663_v40  ;;  %v4068_v30 = vsel %vm495_vm4, %v4052_v62, %v4054_v61  ;;  %v11677_v56 = vadd.f32 %v4054_v61, %v3705_v20 }
 0x48d   : > { %4917 = vmatpush2.msra.mxu1 %v4665_v9  ;;  %4747 = vmatprep.subr.mxu0 %v4662_v51  ;;  %v11680_v21 = vadd.f32 %v4068_v30, %v11655_v32 }
 0x48e   : > { %4918 = vmatprep.subr.mxu1 %v4664_v5  ;;  %4748 = vmatpush2.msra.mxu0 %v4661_v54  ;;  %v11682_v35 = vpop.permute.xlu0 %4057 }
 0x48f   : > { %4919 = vmatpush2.msra.mxu1 %v4663_v40  ;;  %4749 = vmatprep.subr.mxu0 %v4660_v8  ;;  %v11684_v55 = vpop.permute.xlu1 %4059 }
 0x490   : > { %4920 = vmatprep.subr.mxu1 %v4662_v51  ;;  %4750 = vmatpush2.msra.mxu0 %v4659_v31  ;;  %v4070_v5 = vsel %vm495_vm4, %v11682_v35, %v11684_v55 }
 0x491   : > { %4921 = vmatpush2.msra.mxu1 %v4661_v54  ;;  %4751 = vmatprep.subr.mxu0 %v4658_v58  ;;  %v4086_v54 = vadd.f32 %v4070_v5, %v11663_v41  ;;  %v4640_v5 = vld [vmem:[#allocation9 + $0x128] sm:$0xff] }
 0x492   : > { %4922 = vmatprep.subr.mxu1 %v4660_v8  ;;  %4752 = vmatpush2.msra.mxu0 %v4657_v26  ;;  %v3339_v53 = vpop.permute.xlu0 %3338 }
 0x493   : > { %4923 = vmatpush2.msra.mxu1 %v4659_v31  ;;  %4753 = vmatprep.subr.mxu0 %v4656_v39  ;;  %v3348_v47 = vsel %vm533_vm6, %v3339_v53, %v3341_v23  ;;  %v4050_v59 = vpop.permute.xlu1 %4049 }
 0x494   : > { %4924 = vmatprep.subr.mxu1 %v4658_v58  ;;  %4754 = vmatpush2.msra.mxu0 %v4655_v13  ;;  %v3365_v14 = vadd.f32 %v3348_v47, %v11635_v19  ;;  %v4067_v11 = vsel %vm495_vm4, %v4050_v59, %v4052_v62  ;;  %v4087_v62 = vadd.f32 %v11684_v55, %v11667_v10 }
 0x495   : > { %4925 = vmatpush2.msra.mxu1 %v4657_v26  ;;  %4755 = vmatprep.subr.mxu0 %v4654_v38  ;;  %v4082_v45 = vadd.f32 %v4067_v11, %v11651_v37 }
 0x496   : > { %4926 = vmatprep.subr.mxu1 %v4656_v39  ;;  %4756 = vmatpush2.msra.mxu0 %v4653_v50  ;;  %v4056_v60 = vpop.permute.xlu0 %4055 }
 0x497   : > { %4927 = vmatpush2.msra.mxu1 %v4655_v13  ;;  %4757 = vmatprep.subr.mxu0 %v4652_v34  ;;  %v4069_v16 = vsel %vm495_vm4, %v4056_v60, %v11682_v35  ;;  %v3683_v0 = vpop.permute.xlu1 %3682 }
 0x498   : > { %4928 = vmatprep.subr.mxu1 %v4654_v38  ;;  %4758 = vmatpush2.msra.mxu0 %v4651_v27  ;;  %v4085_v19 = vadd.f32 %v4069_v16, %v11659_v48  ;;  %v3709_v31 = vadd.f32 %v3683_v0, %v3365_v14  ;;  %v4647_v16 = vld [vmem:[#allocation9 + $0x160] sm:$0xff] }
 0x499   : > { %4929 = vmatpush2.msra.mxu1 %v4653_v50  ;;  %4759 = vmatprep.subr.mxu0 %v4650_v43 }
 0x49a   : > { %4930 = vmatprep.subr.mxu1 %v4652_v34  ;;  %4760 = vmatpush2.msra.mxu0 %v4649_v25  ;;  %v3685_v37 = vpop.permute.xlu0 %3684 }
 0x49b   : > { %4931 = vmatpush2.msra.mxu1 %v4651_v27  ;;  %4761 = vmatprep.subr.mxu0 %v4648_v2  ;;  %v3687_v44 = vpop.permute.xlu1 %3686  ;;  %v3692_v29 = vsel %vm757_vm8, %v3683_v0, %v3685_v37  ;;  %v4646_v0 = vld [vmem:[#allocation9 + $0x158] sm:$0xff] }
 0x49c   : > { %4932 = vmatprep.subr.mxu1 %v4650_v43  ;;  %v3693_v51 = vsel %vm757_vm8, %v3685_v37, %v3687_v44  ;;  %v3710_v39 = vadd.f32 %v3692_v29, %v11674_v28  ;;  %v4645_v37 = vld [vmem:[#allocation9 + $0x150] sm:$0xff]  ;;  %4762 = vmatpush2.msra.mxu0 %v4647_v16 }
 0x49d   : > { %4933 = vmatpush2.msra.mxu1 %v4649_v25  ;;  %v3711_v13 = vadd.f32 %v3693_v51, %v11671_v24  ;;  %4763 = vmatprep.subr.mxu0 %v4646_v0  ;;  %v4639_v51 = vld [vmem:[#allocation9 + $0x120] sm:$0xff] }
 0x49e   : > { %4934 = vmatprep.subr.mxu1 %v4648_v2  ;;  %4764 = vmatpush2.msra.mxu0 %v4645_v37 }
 0x49f   : > { %v4394_v32 = vpop.permute.xlu0 %4393  ;;  %4935 = vmatpush2.msra.mxu1 %v4647_v16 }
 0x4a0   : > { %v4396_v4 = vpop.permute.xlu1 %4395  ;;  %v4426_v41 = vadd.f32 %v4394_v32, %v4082_v45  ;;  %4936 = vmatprep.subr.mxu1 %v4646_v0 }
 0x4a1   : > { %v4411_v8 = vsel %vm677_vm5, %v4394_v32, %v4396_v4  ;;  %4937 = vmatpush2.msra.mxu1 %v4645_v37 }
 0x4a2   : > { %v4427_v55 = vadd.f32 %v4411_v8, %v11680_v21 }
 0x4a3   : > { %v4398_v63 = vpop.permute.xlu0 %4397 }
 0x4a4   : > { %v4400_v57 = vpop.permute.xlu1 %4399  ;;  %v4412_v61 = vsel %vm677_vm5, %v4396_v4, %v4398_v63  ;;  %v4644_v4 = vld [vmem:[#allocation9 + $0x148] sm:$0xff] }
 0x4a5   : > { %v4428_v50 = vadd.f32 %v4412_v61, %v11677_v56  ;;  %v4429_v28 = vadd.f32 %v4400_v57, %v4085_v19  ;;  %4765 = vmatprep.subr.mxu0 %v4644_v4  ;;  %4938 = vmatprep.subr.mxu1 %v4644_v4 }
 0x4a7   : > { %v4402_v3 = vpop.permute.xlu0 %4401 }
 0x4a8   : > { %v4404_v6 = vpop.permute.xlu1 %4403  ;;  %v4413_v30 = vsel %vm677_vm5, %v4400_v57, %v4402_v3 }
 0x4a9   : > { %v4414_v58 = vsel %vm677_vm5, %v4402_v3, %v4404_v6  ;;  %v4430_v47 = vadd.f32 %v4413_v30, %v4086_v54  ;;  %v4638_v30 = vld [vmem:[#allocation9 + $0x118] sm:$0xff] }
 0x4aa   : > { %v4431_v59 = vadd.f32 %v4414_v58, %v4087_v62 }
 0x4ab   : > { %v4064_v49 = vpop.permute.xlu0 %4063 }
 0x4ac   : > { %v4066_v20 = vpop.permute.xlu1 %4065 }
 0x4ad   : > { %v4072_v38 = vsel %vm495_vm4, %v4064_v49, %v4066_v20  ;;  %v4090_v24 = vadd.f32 %v4066_v20, %v3711_v13 }
 0x4ae   : > { %v4089_v11 = vadd.f32 %v4072_v38, %v3710_v39 }
 0x4af   : > { %v4447_v7 = vpop.permute.xlu0 %4446 }
 0x4b0   : > { %v4449_v42 = vpop.permute.xlu1 %4448 }
 0x4b1   : > { %v4463_v53 = vsel %vm533_vm6, %v4447_v7, %v4449_v42  ;;  %v4479_v21 = vadd.f32 %v4449_v42, %v4428_v50  ;;  %v4643_v42 = vld [vmem:[#allocation9 + $0x140] sm:$0xff] }
 0x4b2   : > { %v4478_v25 = vadd.f32 %v4463_v53, %v4427_v55  ;;  %4766 = vmatpush2.msra.mxu0 %v4643_v42  ;;  %4939 = vmatpush2.msra.mxu1 %v4643_v42  ;;  %v4637_v53 = vld [vmem:[#allocation9 + $0x110] sm:$0xff] }
 0x4b3   : > { %v4453_v33 = vpop.permute.xlu0 %4452 }
 0x4b4   : > { %v4455_v48 = vpop.permute.xlu1 %4454 }
 0x4b5   : > { %v4465_v34 = vsel %vm533_vm6, %v4453_v33, %v4455_v48  ;;  %v4482_v56 = vadd.f32 %v4455_v48, %v4431_v59 }
 0x4b6   : > { %v4481_v60 = vadd.f32 %v4465_v34, %v4430_v47  ;;  %v4636_v34 = vld [vmem:[#allocation9 + $0x108] sm:$0xff]  ;;  %v4635_v47 = vld [vmem:[#allocation9 + $0x100] sm:$0xff] }
 0x4b7   : > { %v4062_v12 = vpop.permute.xlu0 %4061 }
 0x4b8   : > { %v4445_v18 = vpop.permute.xlu1 %4444  ;;  %v4071_v26 = vsel %vm495_vm4, %v4062_v12, %v4064_v49 }
 0x4b9   : > { %v4088_v27 = vadd.f32 %v4071_v26, %v3709_v31  ;;  %v4462_v14 = vsel %vm533_vm6, %v4445_v18, %v4447_v7 }
 0x4ba   : > { %v4477_v44 = vadd.f32 %v4462_v14, %v4426_v41 }
 0x4bb   : > { %v4451_v52 = vpop.permute.xlu0 %4450 }
 0x4bc   : > { %v4406_v46 = vpop.permute.xlu1 %4405  ;;  %v4464_v43 = vsel %vm533_vm6, %v4451_v52, %v4453_v33  ;;  %v4642_v33 = vld [vmem:[#allocation9 + $0x138] sm:$0xff] }
 0x4bd   : > { %v4480_v63 = vadd.f32 %v4464_v43, %v4429_v28  ;;  %v11727_v57 = vadd.f32 %v4406_v46, %v4088_v27  ;;  %4767 = vmatprep.subr.mxu0 %v4642_v33  ;;  %4940 = vmatprep.subr.mxu1 %v4642_v33 }
 0x4bf   : > { %v4408_v1 = vpop.permute.xlu0 %4407 }
 0x4c0   : > { %v4410_v17 = vpop.permute.xlu1 %4409  ;;  %v4415_v3 = vsel %vm677_vm5, %v4406_v46, %v4408_v1  ;;  %v4641_v46 = vld [vmem:[#allocation9 + $0x130] sm:$0xff] }
 0x4c1   : > { %v4416_v6 = vsel %vm677_vm5, %v4408_v1, %v4410_v17  ;;  %v4433_v54 = vadd.f32 %v4415_v3, %v4089_v11  ;;  %4768 = vmatpush2.msra.mxu0 %v4641_v46  ;;  %4941 = vmatpush2.msra.mxu1 %v4641_v46 }
 0x4c2   : > { %4769 = vmatprep.subr.mxu0 %v4640_v5  ;;  %4942 = vmatprep.subr.mxu1 %v4640_v5 }
 0x4c3   : > { %v11693_v9 = vpop.permute.xlu0 %4536  ;;  %4770 = vmatpush2.msra.mxu0 %v4639_v51  ;;  %4943 = vmatpush2.msra.mxu1 %v4639_v51 }
 0x4c4   : > { %v4539_v23 = vpop.permute.xlu1 %4538  ;;  %4771 = vmatprep.subr.mxu0 %v4638_v30  ;;  %4944 = vmatprep.subr.mxu1 %v4638_v30 }
 0x4c5   : > { %v4553_v32 = vsel %vm495_vm4, %v11693_v9, %v4539_v23  ;;  %v4569_v49 = vadd.f32 %v4539_v23, %v4479_v21  ;;  %4772 = vmatpush2.msra.mxu0 %v4637_v53  ;;  %4945 = vmatpush2.msra.mxu1 %v4637_v53 }
 0x4c6   : > { %v4568_v48 = vadd.f32 %v4553_v32, %v4478_v25  ;;  %4773 = vmatprep.subr.mxu0 %v4636_v34  ;;  %4946 = vmatprep.subr.mxu1 %v4636_v34 }
 0x4c7   : > { %v11698_v22 = vpop.permute.xlu0 %4542  ;;  %4774 = vmatpush2.msra.mxu0 %v4635_v47  ;;  %4947 = vmatpush2.msra.mxu1 %v4635_v47 }
 0x4c8   : > { %v4545_v40 = vpop.permute.xlu1 %4544 }
 0x4c9   : > { %v4555_v19 = vsel %vm495_vm4, %v11698_v22, %v4545_v40  ;;  %v4572_v20 = vadd.f32 %v4545_v40, %v4482_v56 }
 0x4ca   : > { %v4571_v12 = vadd.f32 %v4555_v19, %v4481_v60 }
 0x4cb   : > { %v4535_v35 = vpop.permute.xlu0 %4534 }
 0x4cc   : > { %v4541_v10 = vpop.permute.xlu1 %4540  ;;  %v4552_v18 = vsel %vm495_vm4, %v4535_v35, %v11693_v9 }
 0x4cd   : > { %v4554_v40 = vsel %vm495_vm4, %v4541_v10, %v11698_v22  ;;  %v4434_v22 = vadd.f32 %v4416_v6, %v4090_v24  ;;  %v4567_v58 = vadd.f32 %v4552_v18, %v4477_v44 }
 0x4ce   : > { %v4570_v13 = vadd.f32 %v4554_v40, %v4480_v63 }
 0x4cf   : > { %v11719_v45 = vpop.permute.xlu0 %4458 }
 0x4d0   : > { %v11721_v2 = vpop.permute.xlu1 %4460 }
 0x4d1   : > { %v4467_v62 = vsel %vm533_vm6, %v11719_v45, %v11721_v2  ;;  %v4485_v55 = vadd.f32 %v11721_v2, %v4434_v22 }
 0x4d2   : > { %v4484_v10 = vadd.f32 %v4467_v62, %v4433_v54 }
 0x4d6   : > { %v11731_v7 = vpop.permute.xlu0 %4586 }
 0x4d7   : > { %v4589_v52 = vpop.permute.xlu1 %4588  ;;  %v11760_v59 = vadd.f32 %v11731_v7, %v4567_v58  ;;  %v11763_v27 = vadd.f32 %v11731_v7, %v4570_v13 }
 0x4d8   : > { %v4590_v1 = vsel %vm457_vm1, %v11731_v7, %v4589_v52  ;;  %v11737_v17 = vadd.f32 %v4589_v52, %v4569_v49  ;;  %v11739_v23 = vadd.f32 %v4589_v52, %v4572_v20 }
 0x4d9   : > { %v11743_v29 = vadd.f32 %v4590_v1, %v4568_v48  ;;  %v11745_v9 = vadd.f32 %v4590_v1, %v4571_v12  ;;  %v4676_v2 = vrot.slane %v11760_v59, 5  ;;  %v4677_v16 = vrot.slane %v11763_v27, 5 }
 0x4da   : > { %v4682_v8 = vrot.slane %v11737_v17, 5  ;;  %v4683_v61 = vrot.slane %v11739_v23, 5  ;;  %v4457_v31 = vpop.permute.xlu0 %4456 }
 0x4db   : > { %v4679_v26 = vrot.slane %v11743_v29, 5  ;;  %v4680_v35 = vrot.slane %v11745_v9, 5  ;;  %v4549_v39 = vpop.permute.xlu1 %4548  ;;  %v4466_v41 = vsel %vm533_vm6, %v4457_v31, %v11719_v45  ;;  %v4678_v63 = vsel %vm3222_vm9, %v4676_v2, %v4677_v16 }
 0x4dc   : > { %v4684_v38 = vsel %vm3222_vm9, %v4682_v8, %v4683_v61  ;;  %v4483_v11 = vadd.f32 %v4466_v41, %v11727_v57 }
 0x4dd   : > { %v4681_v50 = vsel %vm3222_vm9, %v4679_v26, %v4680_v35 }
 0x4de   : > { %v4551_v14 = vpop.permute.xlu0 %4550  ;;  %v6691_v28 = vpack.i.bf16 %v4684_v38, %v4681_v50 }
 0x4df   : > { %v4557_v24 = vsel %vm495_vm4, %v4549_v39, %v4551_v14  ;;  %v4575_v43 = vadd.f32 %v4551_v14, %v4485_v55  ;;  %v4547_v45 = vpop.permute.xlu1 %4546 }
 0x4e0   : > { %v4574_v25 = vadd.f32 %v4557_v24, %v4484_v10  ;;  %v4556_v21 = vsel %vm495_vm4, %v4547_v45, %v4549_v39  ;;  %6692 = vrot.lane.b32.xlu0 %v6691_v28, %s7158_s17 }
 0x4e1   : > { %v11769_v60 = vadd.f32 %v4589_v52, %v4575_v43  ;;  %v4573_v56 = vadd.f32 %v4556_v21, %v4483_v11 }
 0x4e2   : > { %v11773_v0 = vadd.f32 %v4590_v1, %v4574_v25 }
 0x4e3   : > { %v4689_v37 = vrot.slane %v11769_v60, 5  ;;  %v4600_v44 = vadd.f32 %v11731_v7, %v4573_v56 }
 0x4e4   : > { %v4687_v32 = vrot.slane %v11773_v0, 5 }
 0x4e5   : > { %v4685_v19 = vrot.slane %v4600_v44, 5  ;;  %v4690_v4 = vsel %vm3222_vm9, %v4683_v61, %v4689_v37 }
 0x4e6   : > { %v4688_v57 = vsel %vm3222_vm9, %v4680_v35, %v4687_v32 }
 0x4e7   : > { %v6696_v3 = vpack.i.bf16 %v4688_v57, %v4678_v63  ;;  %v4686_v6 = vsel %vm3222_vm9, %v4677_v16, %v4685_v19 }
 0x4e8   : > { %v6701_v49 = vpack.i.bf16 %v4686_v6, %v4690_v4 }
 0x4e9   : > { %6697 = vrot.lane.b32.xlu1 %v6696_v3, %s7158_s17 }
 0x4ea   : > { %6702 = vrot.lane.b32.xlu0 %v6701_v49, %s7158_s17 }
 0x552   : > { %v6693_v20 = vpop.permute.xlu0 %6692 }
 0x553   : > { %v6695_v42 = vunpack.i.h.bf16 %v6693_v20  ;;  %v6694_v7 = vunpack.i.l.bf16 %v6693_v20 }
 0x555   : > { %v4704_v33 = vsel %vm757_vm8, %v6694_v7, %v6695_v42 }
 0x556   : > { %4775 = vmatprep.mubr.f32.mxu0 %v4704_v33 }
 0x55b   : > { %v6698_v48 = vpop.permute.xlu1 %6697 }
 0x55c   : > { %v6703_v12 = vpop.permute.xlu0 %6702  ;;  %v6700_v18 = vunpack.i.h.bf16 %v6698_v48  ;;  %v6699_v52 = vunpack.i.l.bf16 %v6698_v48 }
 0x55d   : > { %v6704_v46 = vunpack.i.l.bf16 %v6703_v12  ;;  %v6705_v1 = vunpack.i.h.bf16 %v6703_v12 }
 0x55e   : > { %v4703_v5 = vsel %vm757_vm8, %v6699_v52, %v6694_v7 }
 0x55f   : > { %4776 = vmatmul.mubr.f32.vlgmr.msra.gmra.mxu0 %v4703_v5  ;;  %v4706_v40 = vsel %vm757_vm8, %v6700_v18, %v6704_v46  ;;  %v4705_v51 = vsel %vm757_vm8, %v6705_v1, %v6700_v18 }
 0x560   : > { %4781 = vmatprep.mubr.f32.mxu0 %v4706_v40 }
 0x563   : > { %4782 = vmatmul.mubr.f32.gmra.mxu0 %v4705_v51 }
 0x61f   : > { %v4777_v54 = vpop.f32.mrf.mxu0 }
 0x620   : > { %v4792_v62 = vrot.slane %v4777_v54, 3 }
 0x621   : > { %v4779_v8 = vpop.f32.mrf.mxu0 }
 0x622   : > { %v4793_v61 = vrot.slane %v4779_v8, 3  ;;  %4798 = vrot.lane.b32.xlu1 %v4792_v62, %s7154_s19 }
 0x623   : > { %v4783_v31 = vpop.f32.mrf.mxu0 }
 0x624   : > { %v4794_v30 = vrot.slane %v4783_v31, 3  ;;  %4800 = vrot.lane.b32.xlu0 %v4793_v61, %s7154_s19 }
 0x625   : > { %v4785_v22 = vpop.f32.mrf.mxu0 }
 0x626   : > { %v4796_v58 = vrot.slane %v4785_v22, 3  ;;  %v4795_v26 = vsel %vm2115_vm7, %v4792_v62, %v4794_v30  ;;  %v5009_v22 = vld [vmem:[#allocation8 + $0x1] ss:$8 sm:$0x3] }
 0x627   : > { %4802 = vrot.lane.b32.xlu1 %v4795_v26, %s7154_s19  ;;  %v5018_v26 = vrot.slane %v5009_v22, %v13129_v15 }
 0x628   : > { %v4797_v35 = vsel %vm2115_vm7, %v4793_v61, %v4796_v58 }
 0x629   : > { %4804 = vrot.lane.b32.xlu0 %v4797_v35, %s7154_s19 }
 0x62b   : > { %4806 = vrot.lane.b32.xlu1 %v4794_v30, %s7154_s19 }
 0x62d   : > { %4808 = vrot.lane.b32.xlu0 %v4796_v58, %s7154_s19  ;;  %v5014_v58 = vrot.slane %v5009_v22, %v13128_v36  ;;  %v5131_v22 = vld [vmem:[#allocation11 + $0x218] sm:$0xff] }
 0x694   : > { %v4799_v39 = vpop.permute.xlu1 %4798 }
 0x695   : > { %v11813_v28 = vsub.f32 %v11760_v59, %v4799_v39 }
 0x696   : > { %v4801_v13 = vpop.permute.xlu0 %4800 }
 0x697   : > { %v4810_v41 = vsel %vm457_vm1, %v4799_v39, %v4801_v13  ;;  %v11798_v38 = vsub.f32 %v11737_v17, %v4801_v13  ;;  %v4831_v2 = vmul.f32 %v11813_v28, %v11813_v28 }
 0x698   : > { %v11801_v10 = vsub.f32 %v11743_v29, %v4810_v41 }
 0x699   : > { %v4803_v55 = vpop.permute.xlu1 %4802  ;;  %v4833_v50 = vmul.f32 %v11798_v38, %v11798_v38  ;;  %v4849_v49 = vrot.slane %v4831_v2, 5 }
 0x69a   : > { %v11806_v53 = vsub.f32 %v11763_v27, %v4803_v55  ;;  %v4832_v17 = vmul.f32 %v11801_v10, %v11801_v10 }
 0x69b   : > { %v4805_v34 = vpop.permute.xlu0 %4804  ;;  %v4855_v43 = vrot.slane %v4833_v50, 5 }
 0x69c   : > { %v4811_v47 = vsel %vm457_vm1, %v4803_v55, %v4805_v34  ;;  %v11810_v14 = vsub.f32 %v11739_v23, %v4805_v34  ;;  %v4834_v23 = vmul.f32 %v11806_v53, %v11806_v53  ;;  %v4852_v16 = vrot.slane %v4832_v17, 5 }
 0x69d   : > { %v11818_v29 = vsub.f32 %v11745_v9, %v4811_v47  ;;  %v4807_v11 = vpop.permute.xlu1 %4806 }
 0x69e   : > { %v4836_v27 = vmul.f32 %v11810_v14, %v11810_v14  ;;  %v11822_v24 = vsub.f32 %v4600_v44, %v4807_v11  ;;  %v4850_v63 = vrot.slane %v4834_v23, 5 }
 0x69f   : > { %v4835_v59 = vmul.f32 %v11818_v29, %v11818_v29  ;;  %v4809_v45 = vpop.permute.xlu0 %4808 }
 0x6a0   : > { %v4856_v25 = vrot.slane %v4836_v27, 5  ;;  %v4837_v21 = vmul.f32 %v11822_v24, %v11822_v24  ;;  %v4812_v9 = vsel %vm457_vm1, %v4807_v11, %v4809_v45  ;;  %v11832_v56 = vsub.f32 %v11769_v60, %v4809_v45  ;;  %v5037_v45 = vld [vmem:[#allocation8 + $0x2] ss:$8 sm:$0x3] }
 0x6a1   : > { %v4853_v37 = vrot.slane %v4835_v59, 5  ;;  %v11837_v44 = vsub.f32 %v11773_v0, %v4812_v9  ;;  %v4851_v33 = vsel %vm3222_vm9, %v4849_v49, %v4850_v63  ;;  %v5042_v2 = vrot.slane %v5037_v45, %v13128_v36  ;;  %v5169_v49 = vld [vmem:[#allocation11 + $0x348] sm:$0xff] }
 0x6a2   : > { %v4858_v32 = vrot.slane %v4837_v21, 5  ;;  %v4839_v19 = vmul.f32 %v11832_v56, %v11832_v56  ;;  %v4857_v4 = vsel %vm3222_vm9, %v4855_v43, %v4856_v25 }
 0x6a3   : > { %v4838_v57 = vmul.f32 %v11837_v44, %v11837_v44  ;;  %v4854_v60 = vsel %vm3222_vm9, %v4852_v16, %v4853_v37 }
 0x6a4   : > { %v4862_v3 = vrot.slane %v4839_v19, 5  ;;  %v6706_v6 = vpack.i.bf16 %v4857_v4, %v4854_v60  ;;  %v4859_v0 = vsel %vm3222_vm9, %v4850_v63, %v4858_v32  ;;  %v5185_v32 = vld [vmem:[#allocation11 + $0x3c8] sm:$0xff]  ;;  %v5187_v19 = vld [vmem:[#allocation11 + $0x3d8] sm:$0xff]  ;;  %v5184_v4 = vld [vmem:[#allocation11 + $0x3c0] sm:$0xff] }
 0x6a5   : > { %v4860_v20 = vrot.slane %v4838_v57, 5  ;;  %5409 = vmatprep.subr.mxu0 %v5185_v32  ;;  %v5186_v63 = vld [vmem:[#allocation11 + $0x3d0] sm:$0xff]  ;;  %v5177_v57 = vld [vmem:[#allocation11 + $0x388] sm:$0xff]  ;;  %v5179_v60 = vld [vmem:[#allocation11 + $0x398] sm:$0xff]  ;;  %5486 = vmatprep.subr.mxu1 %v5187_v19 }
 0x6a6   : > { %6707 = vrot.lane.b32.xlu1 %v6706_v6, %s7158_s17  ;;  %v4863_v42 = vsel %vm3222_vm9, %v4856_v25, %v4862_v3  ;;  %5410 = vmatpush1.msra.mxu0 %v5184_v4  ;;  %v5176_v3 = vld [vmem:[#allocation11 + $0x380] sm:$0xff]  ;;  %v5178_v6 = vld [vmem:[#allocation11 + $0x390] sm:$0xff]  ;;  %v5083_v32 = vld [vmem:[#allocation11 + $0x98] sm:$0xff] }
 0x6a7   : > { %v6716_v7 = vpack.i.bf16 %v4859_v0, %v4863_v42  ;;  %v4861_v48 = vsel %vm3222_vm9, %v4853_v37, %v4860_v20  ;;  %v5046_v37 = vrot.slane %v5037_v45, %v13129_v15  ;;  %5411 = vmatprep.subr.mxu0 %v5177_v57  ;;  %v5171_v20 = vld [vmem:[#allocation11 + $0x358] sm:$0xff]  ;;  %v5168_v0 = vld [vmem:[#allocation11 + $0x340] sm:$0xff]  ;;  %v5170_v42 = vld [vmem:[#allocation11 + $0x350] sm:$0xff] }
 0x6a8   : > { %v6711_v12 = vpack.i.bf16 %v4861_v48, %v4851_v33  ;;  %5412 = vmatpush1.msra.mxu0 %v5176_v3  ;;  %v5163_v33 = vld [vmem:[#allocation11 + $0x318] sm:$0xff]  ;;  %v5160_v48 = vld [vmem:[#allocation11 + $0x300] sm:$0xff]  ;;  %v5082_v4 = vld [vmem:[#allocation11 + $0x90] sm:$0xff] }
 0x6a9   : > { %5413 = vmatprep.subr.mxu0 %v5169_v49  ;;  %v5096_v45 = vld [vmem:[#allocation11 + $0x100] sm:$0xff]  ;;  %v5075_v57 = vld [vmem:[#allocation11 + $0x58] sm:$0xff]  ;;  %v5074_v3 = vld [vmem:[#allocation11 + $0x50] sm:$0xff] }
 0x6aa   : > { %6717 = vrot.lane.b32.xlu1 %v6716_v7, %s7158_s17  ;;  %6712 = vrot.lane.b32.xlu0 %v6711_v12, %s7158_s17  ;;  %v5161_v7 = vld [vmem:[#allocation11 + $0x308] sm:$0xff]  ;;  %v5162_v12 = vld [vmem:[#allocation11 + $0x310] sm:$0xff]  ;;  %v5080_v19 = vld [vmem:[#allocation11 + $0x80] sm:$0xff] }
 0x6ab   : > { %5414 = vmatpush1.msra.mxu0 %v5168_v0  ;;  %v5067_v49 = vld [vmem:[#allocation11 + $0x18] sm:$0xff]  ;;  %v5066_v0 = vld [vmem:[#allocation11 + $0x10] sm:$0xff] }
 0x6ac   : > { %5415 = vmatprep.subr.mxu0 %v5161_v7  ;;  %v5315_v7 = vld [vmem:[#allocation11 + $0x7d8] sm:$0xff] }
 0x6ad   : > { %5416 = vmatpush1.msra.mxu0 %v5160_v48  ;;  %v5314_v48 = vld [vmem:[#allocation11 + $0x7d0] sm:$0xff] }
 0x6ae   : > { %5019 = vrot.lane.b32.xlu0 %v5014_v58, %s7154_s19  ;;  %5021 = vrot.lane.b32.xlu1 %v5018_v26, %s7154_s19  ;;  %v5128_v58 = vld [vmem:[#allocation11 + $0x200] sm:$0xff]  ;;  %v5130_v26 = vld [vmem:[#allocation11 + $0x210] sm:$0xff] }
 0x718   : > { %v6708_v18 = vpop.permute.xlu1 %6707 }
 0x719   : > { %v6710_v52 = vunpack.i.h.bf16 %v6708_v18  ;;  %v6709_v46 = vunpack.i.l.bf16 %v6708_v18  ;;  %v5153_v18 = vld [vmem:[#allocation11 + $0x2c8] sm:$0xff] }
 0x71a   : > { %5417 = vmatprep.subr.mxu0 %v5153_v18  ;;  %v5307_v18 = vld [vmem:[#allocation11 + $0x798] sm:$0xff] }
 0x71b   : > { %v4877_v1 = vsel %vm757_vm8, %v6709_v46, %v6710_v52  ;;  %v5155_v52 = vld [vmem:[#allocation11 + $0x2d8] sm:$0xff] }
 0x71c   : > { %4948 = vmatprep.mubr.f32.mxu1 %v4877_v1  ;;  %v6718_v5 = vpop.permute.xlu1 %6717  ;;  %v6713_v40 = vpop.permute.xlu0 %6712  ;;  %v5154_v1 = vld [vmem:[#allocation11 + $0x2d0] sm:$0xff] }
 0x71d   : > { %v6719_v51 = vunpack.i.l.bf16 %v6718_v5  ;;  %v6715_v54 = vunpack.i.h.bf16 %v6713_v40  ;;  %v6714_v62 = vunpack.i.l.bf16 %v6713_v40  ;;  %v6720_v8 = vunpack.i.h.bf16 %v6718_v5  ;;  %v5145_v5 = vld [vmem:[#allocation11 + $0x288] sm:$0xff]  ;;  %v5147_v40 = vld [vmem:[#allocation11 + $0x298] sm:$0xff] }
 0x71f   : > { %v4876_v61 = vsel %vm757_vm8, %v6714_v62, %v6709_v46  ;;  %v4879_v31 = vsel %vm757_vm8, %v6715_v54, %v6719_v51  ;;  %v4878_v30 = vsel %vm757_vm8, %v6720_v8, %v6715_v54  ;;  %v5152_v46 = vld [vmem:[#allocation11 + $0x2c0] sm:$0xff]  ;;  %v5146_v54 = vld [vmem:[#allocation11 + $0x290] sm:$0xff]  ;;  %v5137_v62 = vld [vmem:[#allocation11 + $0x248] sm:$0xff] }
 0x720   : > { %4949 = vmatmul.mubr.f32.vlgmr.msra.gmra.mxu1 %v4876_v61  ;;  %v5144_v51 = vld [vmem:[#allocation11 + $0x280] sm:$0xff]  ;;  %5418 = vmatpush1.msra.mxu0 %v5152_v46  ;;  %v5139_v8 = vld [vmem:[#allocation11 + $0x258] sm:$0xff]  ;;  %v5306_v46 = vld [vmem:[#allocation11 + $0x790] sm:$0xff] }
 0x721   : > { %4954 = vmatprep.mubr.f32.mxu1 %v4879_v31  ;;  %5487 = vmatpush1.msra.mxu1 %v5186_v63  ;;  %v5136_v61 = vld [vmem:[#allocation11 + $0x240] sm:$0xff]  ;;  %v5138_v31 = vld [vmem:[#allocation11 + $0x250] sm:$0xff]  ;;  %v5073_v63 = vld [vmem:[#allocation11 + $0x48] sm:$0xff] }
 0x722   : > { %5488 = vmatprep.subr.mxu1 %v5179_v60  ;;  %5419 = vmatprep.subr.mxu0 %v5145_v5  ;;  %v5072_v60 = vld [vmem:[#allocation11 + $0x40] sm:$0xff]  ;;  %v5299_v5 = vld [vmem:[#allocation11 + $0x758] sm:$0xff] }
 0x723   : > { %5489 = vmatpush1.msra.mxu1 %v5178_v6  ;;  %5420 = vmatpush1.msra.mxu0 %v5144_v51  ;;  %v5065_v6 = vld [vmem:[#allocation11 + $0x8] sm:$0xff]  ;;  %v5298_v51 = vld [vmem:[#allocation11 + $0x750] sm:$0xff] }
 0x724   : > { %4955 = vmatmul.mubr.f32.gmra.mxu1 %v4878_v30  ;;  %5490 = vmatprep.subr.mxu1 %v5171_v20  ;;  %v5129_v30 = vld [vmem:[#allocation11 + $0x208] sm:$0xff]  ;;  %v5064_v20 = vld [vmem:[#allocation11] sm:$0xff] }
 0x725   : > { %5491 = vmatpush1.msra.mxu1 %v5170_v42  ;;  %5421 = vmatprep.subr.mxu0 %v5137_v62  ;;  %v5313_v42 = vld [vmem:[#allocation11 + $0x7c8] sm:$0xff]  ;;  %v5291_v62 = vld [vmem:[#allocation11 + $0x718] sm:$0xff] }
 0x726   : > { %5492 = vmatprep.subr.mxu1 %v5163_v33  ;;  %5422 = vmatpush1.msra.mxu0 %v5136_v61  ;;  %v5312_v33 = vld [vmem:[#allocation11 + $0x7c0] sm:$0xff]  ;;  %v5290_v61 = vld [vmem:[#allocation11 + $0x710] sm:$0xff] }
 0x727   : > { %5493 = vmatpush1.msra.mxu1 %v5162_v12  ;;  %5423 = vmatprep.subr.mxu0 %v5129_v30  ;;  %v5305_v12 = vld [vmem:[#allocation11 + $0x788] sm:$0xff]  ;;  %v5283_v30 = vld [vmem:[#allocation11 + $0x6d8] sm:$0xff] }
 0x728   : > { %5494 = vmatprep.subr.mxu1 %v5155_v52  ;;  %5424 = vmatpush1.msra.mxu0 %v5128_v58  ;;  %v5304_v52 = vld [vmem:[#allocation11 + $0x780] sm:$0xff]  ;;  %v5282_v58 = vld [vmem:[#allocation11 + $0x6d0] sm:$0xff] }
 0x729   : > { %5495 = vmatpush1.msra.mxu1 %v5154_v1  ;;  %v5297_v1 = vld [vmem:[#allocation11 + $0x748] sm:$0xff] }
 0x72a   : > { %5496 = vmatprep.subr.mxu1 %v5147_v40  ;;  %v5296_v40 = vld [vmem:[#allocation11 + $0x740] sm:$0xff] }
 0x72b   : > { %5497 = vmatpush1.msra.mxu1 %v5146_v54  ;;  %v5289_v54 = vld [vmem:[#allocation11 + $0x708] sm:$0xff] }
 0x72c   : > { %5498 = vmatprep.subr.mxu1 %v5139_v8  ;;  %v5288_v8 = vld [vmem:[#allocation11 + $0x700] sm:$0xff] }
 0x72d   : > { %5499 = vmatpush1.msra.mxu1 %v5138_v31  ;;  %v5281_v31 = vld [vmem:[#allocation11 + $0x6c8] sm:$0xff] }
 0x72e   : > { %5500 = vmatprep.subr.mxu1 %v5131_v22  ;;  %v5280_v22 = vld [vmem:[#allocation11 + $0x6c0] sm:$0xff] }
 0x72f   : > { %5501 = vmatpush1.msra.mxu1 %v5130_v26  ;;  %v5273_v26 = vld [vmem:[#allocation11 + $0x688] sm:$0xff] }
 0x7e0   : > { %v4950_v35 = vpop.f32.mrf.mxu1 }
 0x7e1   : > { %v4951_v39 = vadd.f32 1e-06, %v4950_v35  ;;  %v5121_v35 = vld [vmem:[#allocation11 + $0x1c8] sm:$0xff] }
 0x7e2   : > { %v4952_v13 = vpop.f32.mrf.mxu1  ;;  %5425 = vmatprep.subr.mxu0 %v5121_v35  ;;  %v5275_v35 = vld [vmem:[#allocation11 + $0x698] sm:$0xff] }
 0x7e3   : > { %6731 = vrsqrt.f32 %v4951_v39  ;;  %v4953_v41 = vadd.f32 1e-06, %v4952_v13  ;;  %v5123_v39 = vld [vmem:[#allocation11 + $0x1d8] sm:$0xff]  ;;  %v5120_v13 = vld [vmem:[#allocation11 + $0x1c0] sm:$0xff] }
 0x7e4   : > { %v4956_v55 = vpop.f32.mrf.mxu1  ;;  %5502 = vmatprep.subr.mxu1 %v5123_v39  ;;  %5426 = vmatpush1.msra.mxu0 %v5120_v13  ;;  %v5272_v39 = vld [vmem:[#allocation11 + $0x680] sm:$0xff]  ;;  %v5274_v13 = vld [vmem:[#allocation11 + $0x690] sm:$0xff] }
 0x7e5   : > { %6733 = vrsqrt.f32 %v4953_v41  ;;  %v4957_v50 = vadd.f32 1e-06, %v4956_v55  ;;  %v5122_v41 = vld [vmem:[#allocation11 + $0x1d0] sm:$0xff]  ;;  %v5113_v55 = vld [vmem:[#allocation11 + $0x188] sm:$0xff] }
 0x7e6   : > { %v4958_v34 = vpop.f32.mrf.mxu1  ;;  %5503 = vmatpush1.msra.mxu1 %v5122_v41  ;;  %5427 = vmatprep.subr.mxu0 %v5113_v55  ;;  %v5265_v41 = vld [vmem:[#allocation11 + $0x648] sm:$0xff]  ;;  %v5267_v55 = vld [vmem:[#allocation11 + $0x658] sm:$0xff] }
 0x7e7   : > { %6735 = vrsqrt.f32 %v4957_v50  ;;  %v4959_v47 = vadd.f32 1e-06, %v4958_v34  ;;  %v5115_v50 = vld [vmem:[#allocation11 + $0x198] sm:$0xff]  ;;  %v5112_v34 = vld [vmem:[#allocation11 + $0x180] sm:$0xff] }
 0x7e8   : > { %5504 = vmatprep.subr.mxu1 %v5115_v50  ;;  %5428 = vmatpush1.msra.mxu0 %v5112_v34  ;;  %v5264_v50 = vld [vmem:[#allocation11 + $0x640] sm:$0xff]  ;;  %v5266_v34 = vld [vmem:[#allocation11 + $0x650] sm:$0xff] }
 0x7e9   : > { %6737 = vrsqrt.f32 %v4959_v47  ;;  %v5114_v47 = vld [vmem:[#allocation11 + $0x190] sm:$0xff] }
 0x7ea   : > { %5505 = vmatpush1.msra.mxu1 %v5114_v47  ;;  %v5257_v47 = vld [vmem:[#allocation11 + $0x608] sm:$0xff] }
 0x7f0   : > { %v6732_v17 = vpop.eup %6731 }
 0x7f1   : > { %v4969_v11 = vrot.slane %v6732_v17, 3  ;;  %v5105_v17 = vld [vmem:[#allocation11 + $0x148] sm:$0xff] }
 0x7f2   : > { %v6734_v27 = vpop.eup %6733  ;;  %5429 = vmatprep.subr.mxu0 %v5105_v17  ;;  %v5259_v17 = vld [vmem:[#allocation11 + $0x618] sm:$0xff] }
 0x7f3   : > { %v4970_v43 = vrot.slane %v6734_v27, 3  ;;  %4975 = vrot.lane.b32.xlu0 %v4969_v11, %s7154_s19  ;;  %v5104_v27 = vld [vmem:[#allocation11 + $0x140] sm:$0xff] }
 0x7f4   : > { %v6736_v23 = vpop.eup %6735  ;;  %5430 = vmatpush1.msra.mxu0 %v5104_v27  ;;  %v5258_v27 = vld [vmem:[#allocation11 + $0x610] sm:$0xff] }
 0x7f5   : > { %v4971_v59 = vrot.slane %v6736_v23, 3  ;;  %4977 = vrot.lane.b32.xlu1 %v4970_v43, %s7154_s19  ;;  %v5097_v23 = vld [vmem:[#allocation11 + $0x108] sm:$0xff] }
 0x7f6   : > { %v6738_v25 = vpop.eup %6737  ;;  %5431 = vmatprep.subr.mxu0 %v5097_v23  ;;  %v5251_v23 = vld [vmem:[#allocation11 + $0x5d8] sm:$0xff] }
 0x7f7   : > { %v4973_v21 = vrot.slane %v6738_v25, 3  ;;  %v4972_v9 = vsel %vm2115_vm7, %v4969_v11, %v4971_v59  ;;  %v5107_v11 = vld [vmem:[#allocation11 + $0x158] sm:$0xff]  ;;  %v5098_v25 = vld [vmem:[#allocation11 + $0x110] sm:$0xff]  ;;  %5432 = vmatpush1.msra.mxu0 %v5096_v45 }
 0x7f8   : > { %4979 = vrot.lane.b32.xlu0 %v4972_v9, %s7154_s19  ;;  %5506 = vmatprep.subr.mxu1 %v5107_v11  ;;  %v5091_v9 = vld [vmem:[#allocation11 + $0xd8] sm:$0xff]  ;;  %v5256_v11 = vld [vmem:[#allocation11 + $0x600] sm:$0xff]  ;;  %v5250_v45 = vld [vmem:[#allocation11 + $0x5d0] sm:$0xff] }
 0x7f9   : > { %v4974_v16 = vsel %vm2115_vm7, %v4970_v43, %v4973_v21  ;;  %v5106_v43 = vld [vmem:[#allocation11 + $0x150] sm:$0xff] }
 0x7fa   : > { %4981 = vrot.lane.b32.xlu1 %v4974_v16, %s7154_s19  ;;  %5507 = vmatpush1.msra.mxu1 %v5106_v43  ;;  %v5090_v16 = vld [vmem:[#allocation11 + $0xd0] sm:$0xff]  ;;  %v5249_v43 = vld [vmem:[#allocation11 + $0x5c8] sm:$0xff] }
 0x7fc   : > { %5047 = vrot.lane.b32.xlu0 %v5042_v2, %s7154_s19  ;;  %v5088_v2 = vld [vmem:[#allocation11 + $0xc0] sm:$0xff] }
 0x7fe   : > { %5049 = vrot.lane.b32.xlu1 %v5046_v37, %s7154_s19  ;;  %v5081_v37 = vld [vmem:[#allocation11 + $0x88] sm:$0xff] }
 0x800   : > { %4983 = vrot.lane.b32.xlu0 %v4971_v59, %s7154_s19  ;;  %v5099_v59 = vld [vmem:[#allocation11 + $0x118] sm:$0xff] }
 0x801   : > { %5508 = vmatprep.subr.mxu1 %v5099_v59  ;;  %v5248_v59 = vld [vmem:[#allocation11 + $0x5c0] sm:$0xff] }
 0x802   : > { %4985 = vrot.lane.b32.xlu1 %v4973_v21, %s7154_s19  ;;  %v5089_v21 = vld [vmem:[#allocation11 + $0xc8] sm:$0xff]  ;;  %5509 = vmatpush1.msra.mxu1 %v5098_v25  ;;  %s7160_s19 = smov [#allocation15]  }
 0x803   : > { %5433 = vmatprep.subr.mxu0 %v5089_v21  ;;  %5510 = vmatprep.subr.mxu1 %v5091_v9  ;;  %v5241_v25 = vld [vmem:[#allocation11 + $0x588] sm:$0xff]  ;;  %v5243_v21 = vld [vmem:[#allocation11 + $0x598] sm:$0xff]  ;;  %v5240_v9 = vld [vmem:[#allocation11 + $0x580] sm:$0xff]  ;;  %s7067_s24 = sshll.u32 %s7160_s19, 4  ;;  %s7068_s24 = int_to_ptr.vmem [resolvable:$false] %s7067_s24 }
 0x804   : > { %5434 = vmatpush1.msra.mxu0 %v5088_v2  ;;  %5511 = vmatpush1.msra.mxu1 %v5090_v16  ;;  %v5242_v2 = vld [vmem:[#allocation11 + $0x590] sm:$0xff]  ;;  %v5233_v16 = vld [vmem:[#allocation11 + $0x548] sm:$0xff]  ;;  %s7069_s21 = scalar_lea.vmem %s7068_s24, 1024  ;;  %p7070_p4 = scmp.lt.s32.totalorder %s11995_s12, %s7068_s24 }
 0x805   : > { %5435 = vmatprep.subr.mxu0 %v5081_v37  ;;  %5512 = vmatprep.subr.mxu1 %v5083_v32  ;;  %v5235_v37 = vld [vmem:[#allocation11 + $0x558] sm:$0xff]  ;;  %v5232_v32 = vld [vmem:[#allocation11 + $0x540] sm:$0xff]  ;;  %p7071_p8 = scmp.lt.s32.totalorder %s7069_s21, %s7063_s10 }
 0x806   : > { %5436 = vmatpush1.msra.mxu0 %v5080_v19  ;;  %5513 = vmatpush1.msra.mxu1 %v5082_v4  ;;  %v5234_v19 = vld [vmem:[#allocation11 + $0x550] sm:$0xff]  ;;  %v5225_v4 = vld [vmem:[#allocation11 + $0x508] sm:$0xff] }
 0x807   : > { %5437 = vmatprep.subr.mxu0 %v5073_v63  ;;  %5514 = vmatprep.subr.mxu1 %v5075_v57  ;;  %v5227_v63 = vld [vmem:[#allocation11 + $0x518] sm:$0xff]  ;;  %v5224_v57 = vld [vmem:[#allocation11 + $0x500] sm:$0xff]  ;;  %p7072_p7 = por %p7071_p8, %p7070_p4 }
 0x808   : > { %5438 = vmatpush1.msra.mxu0 %v5072_v60  ;;  %5515 = vmatpush1.msra.mxu1 %v5074_v3  ;;  %v5226_v60 = vld [vmem:[#allocation11 + $0x510] sm:$0xff]  ;;  %v11872_v3 = vpop.permute.xlu0 %5019 }
 0x809   : > { %5439 = vmatprep.subr.mxu0 %v5065_v6  ;;  %5516 = vmatprep.subr.mxu1 %v5067_v49  ;;  %v11874_v6 = vpop.permute.xlu1 %5021  ;;  %p7073_p6 = pnand %p7072_p7, %p7066_p2 }
 0x80a   : > { %5440 = vmatpush1.msra.mxu0 %v5064_v20  ;;  %5517 = vmatpush1.msra.mxu1 %v5066_v0  ;;  %v5217_v20 = vld [vmem:[#allocation11 + $0x4c8] sm:$0xff]  ;;  %v5219_v0 = vld [vmem:[#allocation11 + $0x4d8] sm:$0xff] }
 0x80b   : > { %5441 = vmatprep.subr.mxu0 %v5313_v42  ;;  %5518 = vmatprep.subr.mxu1 %v5315_v7  ;;  %v5216_v42 = vld [vmem:[#allocation11 + $0x4c0] sm:$0xff] }
 0x80c   : > { %5442 = vmatpush2.msra.mxu0 %v5312_v33  ;;  %5519 = vmatpush2.msra.mxu1 %v5314_v48  ;;  %v5218_v33 = vld [vmem:[#allocation11 + $0x4d0] sm:$0xff]  ;;  %v5209_v48 = vld [vmem:[#allocation11 + $0x488] sm:$0xff] }
 0x80d   : > { %5443 = vmatprep.subr.mxu0 %v5305_v12  ;;  %5520 = vmatprep.subr.mxu1 %v5307_v18  ;;  %v5211_v12 = vld [vmem:[#allocation11 + $0x498] sm:$0xff] }
 0x80e   : > { %5444 = vmatpush2.msra.mxu0 %v5304_v52  ;;  %5521 = vmatpush2.msra.mxu1 %v5306_v46  ;;  %v5208_v52 = vld [vmem:[#allocation11 + $0x480] sm:$0xff]  ;;  %v5210_v46 = vld [vmem:[#allocation11 + $0x490] sm:$0xff] }
 0x80f   : > { %5445 = vmatprep.subr.mxu0 %v5297_v1  ;;  %5522 = vmatprep.subr.mxu1 %v5299_v5  ;;  %v5201_v1 = vld [vmem:[#allocation11 + $0x448] sm:$0xff] }
 0x810   : > { %5446 = vmatpush2.msra.mxu0 %v5296_v40  ;;  %5523 = vmatpush2.msra.mxu1 %v5298_v51  ;;  %v5203_v40 = vld [vmem:[#allocation11 + $0x458] sm:$0xff] }
 0x811   : > { %5447 = vmatprep.subr.mxu0 %v5289_v54  ;;  %5524 = vmatprep.subr.mxu1 %v5291_v62 }
 0x812   : > { %5448 = vmatpush2.msra.mxu0 %v5288_v8  ;;  %5525 = vmatpush2.msra.mxu1 %v5290_v61 }
 0x813   : > { %5449 = vmatprep.subr.mxu0 %v5281_v31  ;;  %5526 = vmatprep.subr.mxu1 %v5283_v30  ;;  %v5200_v31 = vld [vmem:[#allocation11 + $0x440] sm:$0xff]  ;;  %v5202_v30 = vld [vmem:[#allocation11 + $0x450] sm:$0xff] }
 0x814   : > { %5450 = vmatpush2.msra.mxu0 %v5280_v22  ;;  %5527 = vmatpush2.msra.mxu1 %v5282_v58  ;;  %v5193_v22 = vld [vmem:[#allocation11 + $0x408] sm:$0xff] }
 0x815   : > { %5451 = vmatprep.subr.mxu0 %v5273_v26  ;;  %5528 = vmatprep.subr.mxu1 %v5275_v35  ;;  %v5195_v35 = vld [vmem:[#allocation11 + $0x418] sm:$0xff] }
 0x816   : > { %5452 = vmatpush2.msra.mxu0 %v5272_v39  ;;  %5529 = vmatpush2.msra.mxu1 %v5274_v13  ;;  %v5194_v39 = vld [vmem:[#allocation11 + $0x410] sm:$0xff]  ;;  %v5023_v13 = vsel %vm457_vm1, %v11872_v3, %v11874_v6 }
 0x817   : > { %5453 = vmatprep.subr.mxu0 %v5265_v41  ;;  %5530 = vmatprep.subr.mxu1 %v5267_v55 }
 0x818   : > { %5454 = vmatpush2.msra.mxu0 %v5264_v50  ;;  %5531 = vmatpush2.msra.mxu1 %v5266_v34 }
 0x819   : > { %5455 = vmatprep.subr.mxu0 %v5257_v47  ;;  %5532 = vmatprep.subr.mxu1 %v5259_v17  ;;  %v5189_v47 = vld [vmem:[#allocation11 + $0x3e8] sm:$0xff]  ;;  %v5191_v17 = vld [vmem:[#allocation11 + $0x3f8] sm:$0xff] }
 0x81a   : > { %5456 = vmatpush2.msra.mxu0 %v5256_v11  ;;  %5533 = vmatpush2.msra.mxu1 %v5258_v27 }
 0x81b   : > { %5457 = vmatprep.subr.mxu0 %v5249_v43  ;;  %5534 = vmatprep.subr.mxu1 %v5251_v23 }
 0x81c   : > { %5458 = vmatpush2.msra.mxu0 %v5248_v59  ;;  %5535 = vmatpush2.msra.mxu1 %v5250_v45 }
 0x81d   : > { %5459 = vmatprep.subr.mxu0 %v5241_v25  ;;  %5536 = vmatprep.subr.mxu1 %v5243_v21 }
 0x81e   : > { %5460 = vmatpush2.msra.mxu0 %v5240_v9  ;;  %5537 = vmatpush2.msra.mxu1 %v5242_v2 }
 0x81f   : > { %5461 = vmatprep.subr.mxu0 %v5233_v16  ;;  %5538 = vmatprep.subr.mxu1 %v5235_v37 }
 0x820   : > { %5462 = vmatpush2.msra.mxu0 %v5232_v32  ;;  %5539 = vmatpush2.msra.mxu1 %v5234_v19 }
 0x821   : > { %5463 = vmatprep.subr.mxu0 %v5225_v4  ;;  %5540 = vmatprep.subr.mxu1 %v5227_v63 }
 0x822   : > { %5464 = vmatpush2.msra.mxu0 %v5224_v57  ;;  %5541 = vmatpush2.msra.mxu1 %v5226_v60 }
 0x823   : > { %5465 = vmatprep.subr.mxu0 %v5217_v20  ;;  %5542 = vmatprep.subr.mxu1 %v5219_v0 }
 0x824   : > { %5466 = vmatpush2.msra.mxu0 %v5216_v42  ;;  %5543 = vmatpush2.msra.mxu1 %v5218_v33 }
 0x825   : > { %5467 = vmatprep.subr.mxu0 %v5209_v48  ;;  %5544 = vmatprep.subr.mxu1 %v5211_v12 }
 0x826   : > { %5468 = vmatpush2.msra.mxu0 %v5208_v52  ;;  %5545 = vmatpush2.msra.mxu1 %v5210_v46 }
 0x827   : > { %5469 = vmatprep.subr.mxu0 %v5201_v1  ;;  %5546 = vmatprep.subr.mxu1 %v5203_v40 }
 0x828   : > { %5470 = vmatpush2.msra.mxu0 %v5200_v31  ;;  %5547 = vmatpush2.msra.mxu1 %v5202_v30  ;;  %v5190_v31 = vld [vmem:[#allocation11 + $0x3f0] sm:$0xff]  ;;  %v5181_v30 = vld [vmem:[#allocation11 + $0x3a8] sm:$0xff] }
 0x829   : > { %5471 = vmatprep.subr.mxu0 %v5193_v22  ;;  %5548 = vmatprep.subr.mxu1 %v5195_v35  ;;  %v5183_v22 = vld [vmem:[#allocation11 + $0x3b8] sm:$0xff] }
 0x82a   : > { %5549 = vmatpush2.msra.mxu1 %v5194_v39  ;;  %v5175_v35 = vld [vmem:[#allocation11 + $0x378] sm:$0xff]  ;;  %v5174_v39 = vld [vmem:[#allocation11 + $0x370] sm:$0xff] }
 0x82b   : > { %5640 = vmatprep.subr.mxu1 %v5191_v17 }
 0x865   : > { %v4976_v49 = vpop.permute.xlu0 %4975 }
 0x866   : > { %v4999_v18 = vmul.f32 %v4976_v49, %v11813_v28 }
 0x867   : > { %v4978_v7 = vpop.permute.xlu1 %4977 }
 0x868   : > { %v4987_v5 = vsel %vm457_vm1, %v4976_v49, %v4978_v7  ;;  %v5001_v51 = vmul.f32 %v4978_v7, %v11798_v38  ;;  %v5027_v28 = vmul.f32 %v11872_v3, %v4999_v18 }
 0x869   : > { %v5000_v8 = vmul.f32 %v4987_v5, %v11801_v10 }
 0x86a   : > { %v4980_v54 = vpop.permute.xlu0 %4979  ;;  %v5029_v10 = vmul.f32 %v11874_v6, %v5001_v51 }
 0x86b   : > { %v5002_v62 = vmul.f32 %v4980_v54, %v11806_v53  ;;  %v5192_v53 = vld [vmem:[#allocation11 + $0x400] sm:$0xff]  ;;  %v5028_v11 = vmul.f32 %v5023_v13, %v5000_v8 }
 0x86c   : > { %v4982_v61 = vpop.permute.xlu1 %4981  ;;  %5472 = vmatpush2.msra.mxu0 %v5192_v53  ;;  %v5172_v53 = vld [vmem:[#allocation11 + $0x360] sm:$0xff] }
 0x86d   : > { %v5030_v58 = vmul.f32 %v11872_v3, %v5002_v62  ;;  %v4988_v26 = vsel %vm457_vm1, %v4980_v54, %v4982_v61  ;;  %v5004_v38 = vmul.f32 %v4982_v61, %v11810_v14  ;;  %5563 = vmatprep.subr.mxu0 %v5189_v47  ;;  %v5188_v61 = vld [vmem:[#allocation11 + $0x3e0] sm:$0xff] }
 0x86e   : > { %v5003_v41 = vmul.f32 %v4988_v26, %v11818_v29  ;;  %v5048_v55 = vpop.permute.xlu0 %5047  ;;  %v5182_v26 = vld [vmem:[#allocation11 + $0x3b0] sm:$0xff] }
 0x86f   : > { %v5032_v50 = vmul.f32 %v11874_v6, %v5004_v38  ;;  %v5055_v34 = vadd.f32 %v5048_v55, %v5027_v28  ;;  %v5058_v14 = vadd.f32 %v5048_v55, %v5030_v58  ;;  %v5180_v58 = vld [vmem:[#allocation11 + $0x3a0] sm:$0xff]  ;;  %v5173_v38 = vld [vmem:[#allocation11 + $0x368] sm:$0xff] }
 0x870   : > { %v5031_v27 = vmul.f32 %v5023_v13, %v5003_v41  ;;  %v5050_v43 = vpop.permute.xlu1 %5049  ;;  %v5167_v41 = vld [vmem:[#allocation11 + $0x338] sm:$0xff] }
 0x871   : > { %v5374_v23 = vrot.slane %v5055_v34, 5  ;;  %v5375_v59 = vrot.slane %v5058_v14, 5  ;;  %v5051_v29 = vsel %vm457_vm1, %v5048_v55, %v5050_v43  ;;  %v5057_v45 = vadd.f32 %v5050_v43, %v5029_v10  ;;  %v5165_v10 = vld [vmem:[#allocation11 + $0x328] sm:$0xff]  ;;  %v5164_v34 = vld [vmem:[#allocation11 + $0x320] sm:$0xff]  ;;  %v5166_v14 = vld [vmem:[#allocation11 + $0x330] sm:$0xff] }
 0x872   : > { %v5056_v25 = vadd.f32 %v5051_v29, %v5028_v11  ;;  %v5059_v21 = vadd.f32 %v5051_v29, %v5031_v27  ;;  %v5060_v9 = vadd.f32 %v5050_v43, %v5032_v50  ;;  %v4984_v2 = vpop.permute.xlu0 %4983  ;;  %v5157_v11 = vld [vmem:[#allocation11 + $0x2e8] sm:$0xff]  ;;  %v5159_v27 = vld [vmem:[#allocation11 + $0x2f8] sm:$0xff] }
 0x873   : > { %v5380_v16 = vrot.slane %v5057_v45, 5  ;;  %v5005_v37 = vmul.f32 %v4984_v2, %v11822_v24  ;;  %v5376_v32 = vsel %vm3222_vm9, %v5374_v23, %v5375_v59  ;;  %v5156_v23 = vld [vmem:[#allocation11 + $0x2e0] sm:$0xff]  ;;  %v5151_v45 = vld [vmem:[#allocation11 + $0x2b8] sm:$0xff] }
 0x874   : > { %v5377_v19 = vrot.slane %v5056_v25, 5  ;;  %v5378_v4 = vrot.slane %v5059_v21, 5  ;;  %v5381_v63 = vrot.slane %v5060_v9, 5  ;;  %v4986_v57 = vpop.permute.xlu1 %4985  ;;  %5389 = vrot.lane.b32.xlu1 %v5376_v32, %s7158_s17  ;;  %v5148_v25 = vld [vmem:[#allocation11 + $0x2a0] sm:$0xff]  ;;  %v5150_v21 = vld [vmem:[#allocation11 + $0x2b0] sm:$0xff]  ;;  %v5141_v9 = vld [vmem:[#allocation11 + $0x268] sm:$0xff] }
 0x875   : > { %v5033_v60 = vmul.f32 %v11872_v3, %v5005_v37  ;;  %v4989_v49 = vsel %vm457_vm1, %v4984_v2, %v4986_v57  ;;  %v5007_v20 = vmul.f32 %v4986_v57, %v11832_v56  ;;  %v5143_v2 = vld [vmem:[#allocation11 + $0x278] sm:$0xff]  ;;  %v5142_v37 = vld [vmem:[#allocation11 + $0x270] sm:$0xff]  ;;  %v5133_v32 = vld [vmem:[#allocation11 + $0x228] sm:$0xff] }
 0x876   : > { %v5006_v0 = vmul.f32 %v4989_v49, %v11837_v44  ;;  %v5379_v42 = vsel %vm3222_vm9, %v5377_v19, %v5378_v4  ;;  %v5382_v24 = vsel %vm3222_vm9, %v5380_v16, %v5381_v63  ;;  %v5140_v16 = vld [vmem:[#allocation11 + $0x260] sm:$0xff]  ;;  %v5135_v19 = vld [vmem:[#allocation11 + $0x238] sm:$0xff]  ;;  %v5125_v57 = vld [vmem:[#allocation11 + $0x1e8] sm:$0xff] }
 0x877   : > { %v5061_v7 = vadd.f32 %v5048_v55, %v5033_v60  ;;  %v5035_v33 = vmul.f32 %v11874_v6, %v5007_v20  ;;  %v6721_v48 = vpack.i.bf16 %v5382_v24, %v5379_v42  ;;  %v5127_v60 = vld [vmem:[#allocation11 + $0x1f8] sm:$0xff]  ;;  %v5124_v49 = vld [vmem:[#allocation11 + $0x1e0] sm:$0xff]  ;;  %v5126_v20 = vld [vmem:[#allocation11 + $0x1f0] sm:$0xff] }
 0x878   : > { %v5034_v12 = vmul.f32 %v5023_v13, %v5006_v0  ;;  %v5117_v0 = vld [vmem:[#allocation11 + $0x1a8] sm:$0xff]  ;;  %v5119_v42 = vld [vmem:[#allocation11 + $0x1b8] sm:$0xff]  ;;  %v5116_v24 = vld [vmem:[#allocation11 + $0x1a0] sm:$0xff] }
 0x879   : > { %v5383_v18 = vrot.slane %v5061_v7, 5  ;;  %v5063_v52 = vadd.f32 %v5050_v43, %v5035_v33  ;;  %6722 = vrot.lane.b32.xlu0 %v6721_v48, %s7158_s17  ;;  %v5118_v7 = vld [vmem:[#allocation11 + $0x1b0] sm:$0xff]  ;;  %v5109_v33 = vld [vmem:[#allocation11 + $0x168] sm:$0xff]  ;;  %v5111_v48 = vld [vmem:[#allocation11 + $0x178] sm:$0xff] }
 0x87a   : > { %v5062_v3 = vadd.f32 %v5051_v29, %v5034_v12  ;;  %v5149_v29 = vld [vmem:[#allocation11 + $0x2a8] sm:$0xff]  ;;  %v5108_v12 = vld [vmem:[#allocation11 + $0x160] sm:$0xff] }
 0x87b   : > { %v5387_v46 = vrot.slane %v5063_v52, 5  ;;  %v5384_v1 = vsel %vm3222_vm9, %v5375_v59, %v5383_v18  ;;  %v5158_v59 = vld [vmem:[#allocation11 + $0x2f0] sm:$0xff]  ;;  %v5101_v52 = vld [vmem:[#allocation11 + $0x128] sm:$0xff] }
 0x87c   : > { %v5385_v56 = vrot.slane %v5062_v3, 5  ;;  %5395 = vrot.lane.b32.xlu1 %v5384_v1, %s7158_s17  ;;  %v5110_v18 = vld [vmem:[#allocation11 + $0x170] sm:$0xff]  ;;  %v5103_v3 = vld [vmem:[#allocation11 + $0x138] sm:$0xff] }
 0x87d   : > { %v5388_v44 = vsel %vm3222_vm9, %v5381_v63, %v5387_v46  ;;  %v5134_v63 = vld [vmem:[#allocation11 + $0x230] sm:$0xff]  ;;  %v5100_v46 = vld [vmem:[#allocation11 + $0x120] sm:$0xff] }
 0x87e   : > { %v5386_v5 = vsel %vm3222_vm9, %v5378_v4, %v5385_v56  ;;  %v5132_v4 = vld [vmem:[#allocation11 + $0x220] sm:$0xff]  ;;  %v5102_v1 = vld [vmem:[#allocation11 + $0x130] sm:$0xff]  ;;  %v5093_v56 = vld [vmem:[#allocation11 + $0xe8] sm:$0xff] }
 0x87f   : > { %v6726_v40 = vpack.i.bf16 %v5388_v44, %v5386_v5  ;;  %v5095_v44 = vld [vmem:[#allocation11 + $0xf8] sm:$0xff]  ;;  %v5092_v5 = vld [vmem:[#allocation11 + $0xe0] sm:$0xff] }
 0x881   : > { %6727 = vrot.lane.b32.xlu0 %v6726_v40, %s7158_s17  ;;  %v5094_v40 = vld [vmem:[#allocation11 + $0xf0] sm:$0xff] }
 0x8e6   : > { %v5390_v62 = vpop.permute.xlu1 %5389 }
 0x8eb   : > { %v6723_v6 = vpop.permute.xlu0 %6722 }
 0x8ec   : > { %v6725_v51 = vunpack.i.h.bf16 %v6723_v6  ;;  %v6724_v54 = vunpack.i.l.bf16 %v6723_v6  ;;  %v5085_v6 = vld [vmem:[#allocation11 + $0xa8] sm:$0xff] }
 0x8ee   : > { %v5402_v28 = vsel %vm757_vm8, %v6724_v54, %v6725_v51  ;;  %v11910_v8 = vsel %vm757_vm8, %v5390_v62, %v6724_v54  ;;  %v5396_v47 = vpop.permute.xlu1 %5395  ;;  %v5087_v51 = vld [vmem:[#allocation11 + $0xb8] sm:$0xff]  ;;  %v5084_v54 = vld [vmem:[#allocation11 + $0xa0] sm:$0xff]  ;;  %v5086_v62 = vld [vmem:[#allocation11 + $0xb0] sm:$0xff] }
 0x8ef   : > { %5473 = vmatprep.mubr.f32.mxu0 %v5402_v28  ;;  %5550 = vmatprep.mubr.f32.mxu1 %v5402_v28 }
 0x8f0   : > { %5474 = vmatmul.mubr.f32.vlgmr.msra.gmra.mxu0 %v11910_v8  ;;  %5551 = vmatmul.mubr.f32.vlgmr.msra.gmra.mxu1 %v11910_v8 }
 0x8f1   : > { %5564 = vmatpush1.msra.mxu0 %v5188_v61  ;;  %5641 = vmatpush1.msra.mxu1 %v5190_v31  ;;  %v5079_v61 = vld [vmem:[#allocation11 + $0x78] sm:$0xff]  ;;  %v5076_v31 = vld [vmem:[#allocation11 + $0x60] sm:$0xff] }
 0x8f2   : > { %5565 = vmatprep.subr.mxu0 %v5181_v30  ;;  %5642 = vmatprep.subr.mxu1 %v5183_v22  ;;  %v5078_v30 = vld [vmem:[#allocation11 + $0x70] sm:$0xff]  ;;  %v5069_v22 = vld [vmem:[#allocation11 + $0x28] sm:$0xff] }
 0x8f3   : > { %5566 = vmatpush1.msra.mxu0 %v5180_v58  ;;  %5643 = vmatpush1.msra.mxu1 %v5182_v26  ;;  %v6728_v13 = vpop.permute.xlu0 %6727  ;;  %v5071_v58 = vld [vmem:[#allocation11 + $0x38] sm:$0xff]  ;;  %v5068_v26 = vld [vmem:[#allocation11 + $0x20] sm:$0xff] }
 0x8f4   : > { %v6730_v55 = vunpack.i.h.bf16 %v6728_v13  ;;  %v6729_v50 = vunpack.i.l.bf16 %v6728_v13  ;;  %5567 = vmatprep.subr.mxu0 %v5173_v38  ;;  %5644 = vmatprep.subr.mxu1 %v5175_v35  ;;  %v5070_v38 = vld [vmem:[#allocation11 + $0x30] sm:$0xff]  ;;  %v5317_v35 = vld [vmem:[#allocation11 + $0x7e8] sm:$0xff] }
 0x8f5   : > { %5568 = vmatpush1.msra.mxu0 %v5172_v53  ;;  %5645 = vmatpush1.msra.mxu1 %v5174_v39  ;;  %v5319_v53 = vld [vmem:[#allocation11 + $0x7f8] sm:$0xff]  ;;  %v5316_v39 = vld [vmem:[#allocation11 + $0x7e0] sm:$0xff]  ;;  %v5318_v13 = vld [vmem:[#allocation11 + $0x7f0] sm:$0xff] }
 0x8f6   : > { %5569 = vmatprep.subr.mxu0 %v5165_v10  ;;  %5646 = vmatprep.subr.mxu1 %v5167_v41  ;;  %v11915_v17 = vsel %vm757_vm8, %v6729_v50, %v6730_v55  ;;  %v11918_v43 = vsel %vm757_vm8, %v5396_v47, %v6729_v50  ;;  %v5309_v10 = vld [vmem:[#allocation11 + $0x7a8] sm:$0xff]  ;;  %v5311_v41 = vld [vmem:[#allocation11 + $0x7b8] sm:$0xff]  ;;  %v5308_v55 = vld [vmem:[#allocation11 + $0x7a0] sm:$0xff] }
 0x8f7   : > { %5570 = vmatpush1.msra.mxu0 %v5164_v34  ;;  %5647 = vmatpush1.msra.mxu1 %v5166_v14  ;;  %v5310_v50 = vld [vmem:[#allocation11 + $0x7b0] sm:$0xff]  ;;  %v5301_v34 = vld [vmem:[#allocation11 + $0x768] sm:$0xff]  ;;  %v5303_v14 = vld [vmem:[#allocation11 + $0x778] sm:$0xff] }
 0x8f8   : > { %5479 = vmatprep.mubr.f32.mxu0 %v11915_v17  ;;  %5556 = vmatprep.mubr.f32.mxu1 %v11915_v17  ;;  %v5300_v47 = vld [vmem:[#allocation11 + $0x760] sm:$0xff] }
 0x8f9   : > { %5571 = vmatprep.subr.mxu0 %v5157_v11  ;;  %5648 = vmatprep.subr.mxu1 %v5159_v27  ;;  %v5302_v11 = vld [vmem:[#allocation11 + $0x770] sm:$0xff]  ;;  %v5293_v27 = vld [vmem:[#allocation11 + $0x728] sm:$0xff] }
 0x8fa   : > { %5480 = vmatmul.mubr.f32.gmra.mxu0 %v11918_v43  ;;  %5557 = vmatmul.mubr.f32.gmra.mxu1 %v11918_v43 }
 0x8fb   : > { %5572 = vmatpush1.msra.mxu0 %v5156_v23  ;;  %5649 = vmatpush1.msra.mxu1 %v5158_v59  ;;  %v5295_v23 = vld [vmem:[#allocation11 + $0x738] sm:$0xff]  ;;  %v5292_v59 = vld [vmem:[#allocation11 + $0x720] sm:$0xff] }
 0x8fc   : > { %5573 = vmatprep.subr.mxu0 %v5149_v29  ;;  %5627 = vmatprep.mubr.f32.mxu0 %v5402_v28  ;;  %v5294_v29 = vld [vmem:[#allocation11 + $0x730] sm:$0xff] }
 0x8fd   : > { %5650 = vmatprep.subr.mxu1 %v5151_v45  ;;  %5704 = vmatprep.mubr.f32.mxu1 %v5402_v28  ;;  %v5077_v28 = vld [vmem:[#allocation11 + $0x68] sm:$0xff] }
 0x8fe   : > { %5574 = vmatpush1.msra.mxu0 %v5148_v25  ;;  %5651 = vmatpush1.msra.mxu1 %v5150_v21  ;;  %v5285_v45 = vld [vmem:[#allocation11 + $0x6e8] sm:$0xff]  ;;  %v5287_v25 = vld [vmem:[#allocation11 + $0x6f8] sm:$0xff]  ;;  %v5284_v21 = vld [vmem:[#allocation11 + $0x6e0] sm:$0xff] }
 0x8ff   : > { %5575 = vmatprep.subr.mxu0 %v5141_v9  ;;  %5652 = vmatprep.subr.mxu1 %v5143_v2  ;;  %v5286_v9 = vld [vmem:[#allocation11 + $0x6f0] sm:$0xff]  ;;  %v5277_v2 = vld [vmem:[#allocation11 + $0x6a8] sm:$0xff] }
 0x900   : > { %5576 = vmatpush1.msra.mxu0 %v5140_v16  ;;  %5653 = vmatpush1.msra.mxu1 %v5142_v37  ;;  %v5279_v16 = vld [vmem:[#allocation11 + $0x6b8] sm:$0xff]  ;;  %v5276_v37 = vld [vmem:[#allocation11 + $0x6a0] sm:$0xff] }
 0x901   : > { %5577 = vmatprep.subr.mxu0 %v5133_v32  ;;  %5654 = vmatprep.subr.mxu1 %v5135_v19  ;;  %v5278_v32 = vld [vmem:[#allocation11 + $0x6b0] sm:$0xff]  ;;  %v5269_v19 = vld [vmem:[#allocation11 + $0x668] sm:$0xff] }
 0x902   : > { %5578 = vmatpush1.msra.mxu0 %v5132_v4  ;;  %5655 = vmatpush1.msra.mxu1 %v5134_v63  ;;  %v5271_v4 = vld [vmem:[#allocation11 + $0x678] sm:$0xff]  ;;  %v5268_v63 = vld [vmem:[#allocation11 + $0x660] sm:$0xff] }
 0x903   : > { %5579 = vmatprep.subr.mxu0 %v5125_v57  ;;  %5656 = vmatprep.subr.mxu1 %v5127_v60  ;;  %v5270_v57 = vld [vmem:[#allocation11 + $0x670] sm:$0xff]  ;;  %v5261_v60 = vld [vmem:[#allocation11 + $0x628] sm:$0xff] }
 0x904   : > { %5580 = vmatpush1.msra.mxu0 %v5124_v49  ;;  %5657 = vmatpush1.msra.mxu1 %v5126_v20  ;;  %v5263_v49 = vld [vmem:[#allocation11 + $0x638] sm:$0xff]  ;;  %v5260_v20 = vld [vmem:[#allocation11 + $0x620] sm:$0xff] }
 0x905   : > { %5581 = vmatprep.subr.mxu0 %v5117_v0  ;;  %5658 = vmatprep.subr.mxu1 %v5119_v42  ;;  %v5262_v0 = vld [vmem:[#allocation11 + $0x630] sm:$0xff]  ;;  %v5253_v42 = vld [vmem:[#allocation11 + $0x5e8] sm:$0xff] }
 0x906   : > { %5582 = vmatpush1.msra.mxu0 %v5116_v24  ;;  %5659 = vmatpush1.msra.mxu1 %v5118_v7  ;;  %v5255_v24 = vld [vmem:[#allocation11 + $0x5f8] sm:$0xff]  ;;  %v5252_v7 = vld [vmem:[#allocation11 + $0x5e0] sm:$0xff] }
 0x907   : > { %5583 = vmatprep.subr.mxu0 %v5109_v33  ;;  %5660 = vmatprep.subr.mxu1 %v5111_v48  ;;  %v5254_v33 = vld [vmem:[#allocation11 + $0x5f0] sm:$0xff]  ;;  %v5245_v48 = vld [vmem:[#allocation11 + $0x5a8] sm:$0xff] }
 0x908   : > { %5584 = vmatpush1.msra.mxu0 %v5108_v12  ;;  %5661 = vmatpush1.msra.mxu1 %v5110_v18  ;;  %v5247_v12 = vld [vmem:[#allocation11 + $0x5b8] sm:$0xff]  ;;  %v5244_v18 = vld [vmem:[#allocation11 + $0x5a0] sm:$0xff] }
 0x909   : > { %5585 = vmatprep.subr.mxu0 %v5101_v52  ;;  %5662 = vmatprep.subr.mxu1 %v5103_v3  ;;  %v5246_v52 = vld [vmem:[#allocation11 + $0x5b0] sm:$0xff]  ;;  %v5237_v3 = vld [vmem:[#allocation11 + $0x568] sm:$0xff] }
 0x90a   : > { %5586 = vmatpush1.msra.mxu0 %v5100_v46  ;;  %5663 = vmatpush1.msra.mxu1 %v5102_v1  ;;  %v5239_v46 = vld [vmem:[#allocation11 + $0x578] sm:$0xff]  ;;  %v5236_v1 = vld [vmem:[#allocation11 + $0x560] sm:$0xff] }
 0x90b   : > { %5587 = vmatprep.subr.mxu0 %v5093_v56  ;;  %5664 = vmatprep.subr.mxu1 %v5095_v44  ;;  %v5238_v56 = vld [vmem:[#allocation11 + $0x570] sm:$0xff]  ;;  %v5229_v44 = vld [vmem:[#allocation11 + $0x528] sm:$0xff] }
 0x90c   : > { %5588 = vmatpush1.msra.mxu0 %v5092_v5  ;;  %5665 = vmatpush1.msra.mxu1 %v5094_v40  ;;  %v5231_v5 = vld [vmem:[#allocation11 + $0x538] sm:$0xff]  ;;  %v5228_v40 = vld [vmem:[#allocation11 + $0x520] sm:$0xff] }
 0x90d   : > { %5589 = vmatprep.subr.mxu0 %v5085_v6  ;;  %5666 = vmatprep.subr.mxu1 %v5087_v51  ;;  %v5230_v6 = vld [vmem:[#allocation11 + $0x530] sm:$0xff]  ;;  %v5221_v51 = vld [vmem:[#allocation11 + $0x4e8] sm:$0xff] }
 0x90e   : > { %5590 = vmatpush1.msra.mxu0 %v5084_v54  ;;  %5667 = vmatpush1.msra.mxu1 %v5086_v62  ;;  %v5223_v54 = vld [vmem:[#allocation11 + $0x4f8] sm:$0xff]  ;;  %v5220_v62 = vld [vmem:[#allocation11 + $0x4e0] sm:$0xff] }
 0x90f   : > { %5591 = vmatprep.subr.mxu0 %v5077_v28  ;;  %5668 = vmatprep.subr.mxu1 %v5079_v61  ;;  %v5222_v28 = vld [vmem:[#allocation11 + $0x4f0] sm:$0xff]  ;;  %v5213_v61 = vld [vmem:[#allocation11 + $0x4a8] sm:$0xff] }
 0x910   : > { %5592 = vmatpush1.msra.mxu0 %v5076_v31  ;;  %5669 = vmatpush1.msra.mxu1 %v5078_v30  ;;  %v5215_v31 = vld [vmem:[#allocation11 + $0x4b8] sm:$0xff]  ;;  %v5212_v30 = vld [vmem:[#allocation11 + $0x4a0] sm:$0xff] }
 0x911   : > { %5593 = vmatprep.subr.mxu0 %v5069_v22  ;;  %5670 = vmatprep.subr.mxu1 %v5071_v58  ;;  %v5214_v22 = vld [vmem:[#allocation11 + $0x4b0] sm:$0xff]  ;;  %v5205_v58 = vld [vmem:[#allocation11 + $0x468] sm:$0xff] }
 0x912   : > { %5594 = vmatpush1.msra.mxu0 %v5068_v26  ;;  %5671 = vmatpush1.msra.mxu1 %v5070_v38  ;;  %v5207_v26 = vld [vmem:[#allocation11 + $0x478] sm:$0xff]  ;;  %v5204_v38 = vld [vmem:[#allocation11 + $0x460] sm:$0xff] }
 0x913   : > { %5595 = vmatprep.subr.mxu0 %v5317_v35  ;;  %5672 = vmatprep.subr.mxu1 %v5319_v53  ;;  %v5206_v35 = vld [vmem:[#allocation11 + $0x470] sm:$0xff]  ;;  %v5197_v53 = vld [vmem:[#allocation11 + $0x428] sm:$0xff] }
 0x914   : > { %5596 = vmatpush2.msra.mxu0 %v5316_v39  ;;  %5673 = vmatpush2.msra.mxu1 %v5318_v13  ;;  %v5199_v39 = vld [vmem:[#allocation11 + $0x438] sm:$0xff]  ;;  %v5196_v13 = vld [vmem:[#allocation11 + $0x420] sm:$0xff] }
 0x915   : > { %5597 = vmatprep.subr.mxu0 %v5309_v10  ;;  %5674 = vmatprep.subr.mxu1 %v5311_v41  ;;  %v5198_v10 = vld [vmem:[#allocation11 + $0x430] sm:$0xff]  ;;  %v5828_v41 = vld [vmem:[#allocation12 + $0xf8] sm:$0xff] }
 0x916   : > { %5598 = vmatpush2.msra.mxu0 %v5308_v55  ;;  %5675 = vmatpush2.msra.mxu1 %v5310_v50  ;;  %v5892_v55 = vld [vmem:[#allocation12 + $0x2f8] sm:$0xff]  ;;  %v5827_v50 = vld [vmem:[#allocation12 + $0xf0] sm:$0xff] }
 0x917   : > { %5599 = vmatprep.subr.mxu0 %v5301_v34  ;;  %5676 = vmatprep.subr.mxu1 %v5303_v14  ;;  %v5891_v34 = vld [vmem:[#allocation12 + $0x2f0] sm:$0xff]  ;;  %v5826_v14 = vld [vmem:[#allocation12 + $0xe8] sm:$0xff] }
 0x918   : > { %5600 = vmatpush2.msra.mxu0 %v5300_v47  ;;  %5677 = vmatpush2.msra.mxu1 %v5302_v11  ;;  %v5890_v47 = vld [vmem:[#allocation12 + $0x2e8] sm:$0xff]  ;;  %v5825_v11 = vld [vmem:[#allocation12 + $0xe0] sm:$0xff] }
 0x919   : > { %5601 = vmatprep.subr.mxu0 %v5293_v27  ;;  %5678 = vmatprep.subr.mxu1 %v5295_v23  ;;  %v5889_v27 = vld [vmem:[#allocation12 + $0x2e0] sm:$0xff]  ;;  %v5824_v23 = vld [vmem:[#allocation12 + $0xd8] sm:$0xff] }
 0x91a   : > { %5602 = vmatpush2.msra.mxu0 %v5292_v59  ;;  %5679 = vmatpush2.msra.mxu1 %v5294_v29  ;;  %v5823_v59 = vld [vmem:[#allocation12 + $0xd0] sm:$0xff] }
 0x91b   : > { %5603 = vmatprep.subr.mxu0 %v5285_v45  ;;  %5680 = vmatprep.subr.mxu1 %v5287_v25  ;;  %v5887_v29 = vld [vmem:[#allocation12 + $0x2d0] sm:$0xff]  ;;  %v5886_v45 = vld [vmem:[#allocation12 + $0x2c8] sm:$0xff]  ;;  %v5821_v25 = vld [vmem:[#allocation12 + $0xc0] sm:$0xff] }
 0x91c   : > { %5604 = vmatpush2.msra.mxu0 %v5284_v21  ;;  %5681 = vmatpush2.msra.mxu1 %v5286_v9  ;;  %v5885_v21 = vld [vmem:[#allocation12 + $0x2c0] sm:$0xff]  ;;  %v5820_v9 = vld [vmem:[#allocation12 + $0xb8] sm:$0xff] }
 0x91d   : > { %5605 = vmatprep.subr.mxu0 %v5277_v2  ;;  %5682 = vmatprep.subr.mxu1 %v5279_v16  ;;  %v5884_v2 = vld [vmem:[#allocation12 + $0x2b8] sm:$0xff]  ;;  %v5883_v16 = vld [vmem:[#allocation12 + $0x2b0] sm:$0xff] }
 0x91e   : > { %5606 = vmatpush2.msra.mxu0 %v5276_v37  ;;  %5683 = vmatpush2.msra.mxu1 %v5278_v32  ;;  %v5818_v37 = vld [vmem:[#allocation12 + $0xa8] sm:$0xff] }
 0x91f   : > { %5607 = vmatprep.subr.mxu0 %v5269_v19  ;;  %5684 = vmatprep.subr.mxu1 %v5271_v4  ;;  %v5882_v32 = vld [vmem:[#allocation12 + $0x2a8] sm:$0xff]  ;;  %v5817_v19 = vld [vmem:[#allocation12 + $0xa0] sm:$0xff] }
 0x920   : > { %5608 = vmatpush2.msra.mxu0 %v5268_v63  ;;  %5685 = vmatpush2.msra.mxu1 %v5270_v57  ;;  %v5881_v4 = vld [vmem:[#allocation12 + $0x2a0] sm:$0xff]  ;;  %v5816_v63 = vld [vmem:[#allocation12 + $0x98] sm:$0xff] }
 0x921   : > { %5609 = vmatprep.subr.mxu0 %v5261_v60  ;;  %5686 = vmatprep.subr.mxu1 %v5263_v49  ;;  %v5880_v57 = vld [vmem:[#allocation12 + $0x298] sm:$0xff]  ;;  %v5815_v60 = vld [vmem:[#allocation12 + $0x90] sm:$0xff] }
 0x922   : > { %5610 = vmatpush2.msra.mxu0 %v5260_v20  ;;  %5687 = vmatpush2.msra.mxu1 %v5262_v0  ;;  %v5879_v49 = vld [vmem:[#allocation12 + $0x290] sm:$0xff]  ;;  %v5814_v20 = vld [vmem:[#allocation12 + $0x88] sm:$0xff] }
 0x923   : > { %5611 = vmatprep.subr.mxu0 %v5253_v42  ;;  %5688 = vmatprep.subr.mxu1 %v5255_v24  ;;  %v5878_v0 = vld [vmem:[#allocation12 + $0x288] sm:$0xff]  ;;  %v5813_v42 = vld [vmem:[#allocation12 + $0x80] sm:$0xff] }
 0x924   : > { %5612 = vmatpush2.msra.mxu0 %v5252_v7  ;;  %5689 = vmatpush2.msra.mxu1 %v5254_v33  ;;  %v5877_v24 = vld [vmem:[#allocation12 + $0x280] sm:$0xff]  ;;  %v5812_v7 = vld [vmem:[#allocation12 + $0x78] sm:$0xff] }
 0x925   : > { %5613 = vmatprep.subr.mxu0 %v5245_v48  ;;  %5690 = vmatprep.subr.mxu1 %v5247_v12  ;;  %v5876_v33 = vld [vmem:[#allocation12 + $0x278] sm:$0xff]  ;;  %v5811_v48 = vld [vmem:[#allocation12 + $0x70] sm:$0xff] }
 0x926   : > { %5614 = vmatpush2.msra.mxu0 %v5244_v18  ;;  %5691 = vmatpush2.msra.mxu1 %v5246_v52  ;;  %v5875_v12 = vld [vmem:[#allocation12 + $0x270] sm:$0xff]  ;;  %v5810_v18 = vld [vmem:[#allocation12 + $0x68] sm:$0xff] }
 0x927   : > { %5615 = vmatprep.subr.mxu0 %v5237_v3  ;;  %5692 = vmatprep.subr.mxu1 %v5239_v46  ;;  %v5874_v52 = vld [vmem:[#allocation12 + $0x268] sm:$0xff]  ;;  %v5809_v3 = vld [vmem:[#allocation12 + $0x60] sm:$0xff] }
 0x928   : > { %5616 = vmatpush2.msra.mxu0 %v5236_v1  ;;  %5693 = vmatpush2.msra.mxu1 %v5238_v56  ;;  %v5873_v46 = vld [vmem:[#allocation12 + $0x260] sm:$0xff]  ;;  %v5808_v1 = vld [vmem:[#allocation12 + $0x58] sm:$0xff] }
 0x929   : > { %5617 = vmatprep.subr.mxu0 %v5229_v44  ;;  %5694 = vmatprep.subr.mxu1 %v5231_v5  ;;  %v5872_v56 = vld [vmem:[#allocation12 + $0x258] sm:$0xff]  ;;  %v5807_v44 = vld [vmem:[#allocation12 + $0x50] sm:$0xff] }
 0x92a   : > { %5618 = vmatpush2.msra.mxu0 %v5228_v40  ;;  %5695 = vmatpush2.msra.mxu1 %v5230_v6  ;;  %v5871_v5 = vld [vmem:[#allocation12 + $0x250] sm:$0xff]  ;;  %v5806_v40 = vld [vmem:[#allocation12 + $0x48] sm:$0xff] }
 0x92b   : > { %5619 = vmatprep.subr.mxu0 %v5221_v51  ;;  %5696 = vmatprep.subr.mxu1 %v5223_v54  ;;  %v5870_v6 = vld [vmem:[#allocation12 + $0x248] sm:$0xff]  ;;  %v5805_v51 = vld [vmem:[#allocation12 + $0x40] sm:$0xff] }
 0x92c   : > { %5620 = vmatpush2.msra.mxu0 %v5220_v62  ;;  %5697 = vmatpush2.msra.mxu1 %v5222_v28  ;;  %v5869_v54 = vld [vmem:[#allocation12 + $0x240] sm:$0xff]  ;;  %v5804_v62 = vld [vmem:[#allocation12 + $0x38] sm:$0xff] }
 0x92d   : > { %5621 = vmatprep.subr.mxu0 %v5213_v61  ;;  %5698 = vmatprep.subr.mxu1 %v5215_v31  ;;  %v5868_v28 = vld [vmem:[#allocation12 + $0x238] sm:$0xff]  ;;  %v5803_v61 = vld [vmem:[#allocation12 + $0x30] sm:$0xff] }
 0x92e   : > { %5622 = vmatpush2.msra.mxu0 %v5212_v30  ;;  %5699 = vmatpush2.msra.mxu1 %v5214_v22  ;;  %v5867_v31 = vld [vmem:[#allocation12 + $0x230] sm:$0xff]  ;;  %v5802_v30 = vld [vmem:[#allocation12 + $0x28] sm:$0xff] }
 0x92f   : > { %5623 = vmatprep.subr.mxu0 %v5205_v58  ;;  %5700 = vmatprep.subr.mxu1 %v5207_v26  ;;  %v5866_v22 = vld [vmem:[#allocation12 + $0x228] sm:$0xff]  ;;  %v5801_v58 = vld [vmem:[#allocation12 + $0x20] sm:$0xff] }
 0x930   : > { %5624 = vmatpush2.msra.mxu0 %v5204_v38  ;;  %5701 = vmatpush2.msra.mxu1 %v5206_v35  ;;  %v5865_v26 = vld [vmem:[#allocation12 + $0x220] sm:$0xff]  ;;  %v5800_v38 = vld [vmem:[#allocation12 + $0x18] sm:$0xff] }
 0x931   : > { %5625 = vmatprep.subr.mxu0 %v5197_v53  ;;  %5702 = vmatprep.subr.mxu1 %v5199_v39  ;;  %v5864_v35 = vld [vmem:[#allocation12 + $0x218] sm:$0xff]  ;;  %v5799_v53 = vld [vmem:[#allocation12 + $0x10] sm:$0xff] }
 0x932   : > { %5626 = vmatpush2.msra.mxu0 %v5196_v13  ;;  %5703 = vmatpush2.msra.mxu1 %v5198_v10  ;;  %v5863_v39 = vld [vmem:[#allocation12 + $0x210] sm:$0xff]  ;;  %v5798_v13 = vld [vmem:[#allocation12 + $0x8] sm:$0xff] }
 0x933   : > { %5628 = vmatmul.mubr.f32.vlgmr.msra.gmra.mxu0 %v11910_v8  ;;  %5705 = vmatmul.mubr.f32.vlgmr.msra.gmra.mxu1 %v11910_v8  ;;  %v5888_v8 = vld [vmem:[#allocation12 + $0x2d8] sm:$0xff]  ;;  %v5862_v10 = vld [vmem:[#allocation12 + $0x208] sm:$0xff] }
 0x934   : > { %5633 = vmatprep.mubr.f32.mxu0 %v11915_v17  ;;  %5710 = vmatprep.mubr.f32.mxu1 %v11915_v17  ;;  %v5822_v17 = vld [vmem:[#allocation12 + $0xc8] sm:$0xff] }
 0x935   : > { %6066 = vmatprep.subr.mxu0 %v5828_v41  ;;  %6143 = vmatprep.subr.mxu1 %v5892_v55  ;;  %v5797_v41 = vld [vmem:[#allocation12] sm:$0xff] }
 0x936   : > { %6067 = vmatpush1.msra.mxu0 %v5827_v50  ;;  %6144 = vmatpush1.msra.mxu1 %v5891_v34  ;;  %v5861_v55 = vld [vmem:[#allocation12 + $0x200] sm:$0xff]  ;;  %v5860_v50 = vld [vmem:[#allocation12 + $0x1f8] sm:$0xff] }
 0x937   : > { %5634 = vmatmul.mubr.f32.gmra.mxu0 %v11918_v43  ;;  %5711 = vmatmul.mubr.f32.gmra.mxu1 %v11918_v43  ;;  %v5819_v43 = vld [vmem:[#allocation12 + $0xb0] sm:$0xff]  ;;  %v5924_v34 = vld [vmem:[#allocation12 + $0x3f8] sm:$0xff] }
 0x938   : > { %6068 = vmatprep.subr.mxu0 %v5826_v14  ;;  %6145 = vmatprep.subr.mxu1 %v5890_v47  ;;  %v5859_v14 = vld [vmem:[#allocation12 + $0x1f0] sm:$0xff] }
 0x939   : > { %6069 = vmatpush1.msra.mxu0 %v5825_v11  ;;  %6146 = vmatpush1.msra.mxu1 %v5889_v27  ;;  %v5923_v47 = vld [vmem:[#allocation12 + $0x3f0] sm:$0xff]  ;;  %v5858_v11 = vld [vmem:[#allocation12 + $0x1e8] sm:$0xff] }
 0x93a   : > { %6070 = vmatprep.subr.mxu0 %v5824_v23  ;;  %6147 = vmatprep.subr.mxu1 %v5888_v8  ;;  %v5922_v27 = vld [vmem:[#allocation12 + $0x3e8] sm:$0xff]  ;;  %v5857_v23 = vld [vmem:[#allocation12 + $0x1e0] sm:$0xff] }
 0x93b   : > { %6071 = vmatpush1.msra.mxu0 %v5823_v59  ;;  %6148 = vmatpush1.msra.mxu1 %v5887_v29  ;;  %v5921_v8 = vld [vmem:[#allocation12 + $0x3e0] sm:$0xff]  ;;  %v5856_v59 = vld [vmem:[#allocation12 + $0x1d8] sm:$0xff] }
 0x93c   : > { %6072 = vmatprep.subr.mxu0 %v5822_v17  ;;  %6149 = vmatprep.subr.mxu1 %v5886_v45  ;;  %v5920_v29 = vld [vmem:[#allocation12 + $0x3d8] sm:$0xff]  ;;  %v5855_v17 = vld [vmem:[#allocation12 + $0x1d0] sm:$0xff] }
 0x93d   : > { %6073 = vmatpush1.msra.mxu0 %v5821_v25  ;;  %6150 = vmatpush1.msra.mxu1 %v5885_v21  ;;  %v5919_v45 = vld [vmem:[#allocation12 + $0x3d0] sm:$0xff]  ;;  %v5854_v25 = vld [vmem:[#allocation12 + $0x1c8] sm:$0xff] }
 0x93e   : > { %6074 = vmatprep.subr.mxu0 %v5820_v9  ;;  %6151 = vmatprep.subr.mxu1 %v5884_v2  ;;  %v5918_v21 = vld [vmem:[#allocation12 + $0x3c8] sm:$0xff]  ;;  %v5853_v9 = vld [vmem:[#allocation12 + $0x1c0] sm:$0xff] }
 0x93f   : > { %6075 = vmatpush1.msra.mxu0 %v5819_v43  ;;  %6152 = vmatpush1.msra.mxu1 %v5883_v16  ;;  %v5917_v2 = vld [vmem:[#allocation12 + $0x3c0] sm:$0xff]  ;;  %v5852_v43 = vld [vmem:[#allocation12 + $0x1b8] sm:$0xff] }
 0x940   : > { %6076 = vmatprep.subr.mxu0 %v5818_v37  ;;  %6153 = vmatprep.subr.mxu1 %v5882_v32  ;;  %v5916_v16 = vld [vmem:[#allocation12 + $0x3b8] sm:$0xff]  ;;  %v5851_v37 = vld [vmem:[#allocation12 + $0x1b0] sm:$0xff] }
 0x941   : > { %6077 = vmatpush1.msra.mxu0 %v5817_v19  ;;  %6154 = vmatpush1.msra.mxu1 %v5881_v4  ;;  %v5915_v32 = vld [vmem:[#allocation12 + $0x3b0] sm:$0xff]  ;;  %v5850_v19 = vld [vmem:[#allocation12 + $0x1a8] sm:$0xff] }
 0x942   : > { %6078 = vmatprep.subr.mxu0 %v5816_v63  ;;  %6155 = vmatprep.subr.mxu1 %v5880_v57  ;;  %v5914_v4 = vld [vmem:[#allocation12 + $0x3a8] sm:$0xff]  ;;  %v5849_v63 = vld [vmem:[#allocation12 + $0x1a0] sm:$0xff] }
 0x943   : > { %6079 = vmatpush1.msra.mxu0 %v5815_v60  ;;  %6156 = vmatpush1.msra.mxu1 %v5879_v49  ;;  %v5913_v57 = vld [vmem:[#allocation12 + $0x3a0] sm:$0xff]  ;;  %v5848_v60 = vld [vmem:[#allocation12 + $0x198] sm:$0xff] }
 0x944   : > { %6080 = vmatprep.subr.mxu0 %v5814_v20  ;;  %6157 = vmatprep.subr.mxu1 %v5878_v0  ;;  %v5912_v49 = vld [vmem:[#allocation12 + $0x398] sm:$0xff]  ;;  %v5847_v20 = vld [vmem:[#allocation12 + $0x190] sm:$0xff] }
 0x945   : > { %6081 = vmatpush1.msra.mxu0 %v5813_v42  ;;  %6158 = vmatpush1.msra.mxu1 %v5877_v24  ;;  %v5911_v0 = vld [vmem:[#allocation12 + $0x390] sm:$0xff]  ;;  %v5846_v42 = vld [vmem:[#allocation12 + $0x188] sm:$0xff] }
 0x946   : > { %6082 = vmatprep.subr.mxu0 %v5812_v7  ;;  %6159 = vmatprep.subr.mxu1 %v5876_v33  ;;  %v5910_v24 = vld [vmem:[#allocation12 + $0x388] sm:$0xff]  ;;  %v5845_v7 = vld [vmem:[#allocation12 + $0x180] sm:$0xff] }
 0x947   : > { %6083 = vmatpush1.msra.mxu0 %v5811_v48  ;;  %6160 = vmatpush1.msra.mxu1 %v5875_v12  ;;  %v5909_v33 = vld [vmem:[#allocation12 + $0x380] sm:$0xff]  ;;  %v5844_v48 = vld [vmem:[#allocation12 + $0x178] sm:$0xff] }
 0x948   : > { %6084 = vmatprep.subr.mxu0 %v5810_v18  ;;  %6161 = vmatprep.subr.mxu1 %v5874_v52  ;;  %v5908_v12 = vld [vmem:[#allocation12 + $0x378] sm:$0xff]  ;;  %v5843_v18 = vld [vmem:[#allocation12 + $0x170] sm:$0xff] }
 0x949   : > { %6085 = vmatpush1.msra.mxu0 %v5809_v3  ;;  %6162 = vmatpush1.msra.mxu1 %v5873_v46  ;;  %v5907_v52 = vld [vmem:[#allocation12 + $0x370] sm:$0xff]  ;;  %v5842_v3 = vld [vmem:[#allocation12 + $0x168] sm:$0xff] }
 0x94a   : > { %6086 = vmatprep.subr.mxu0 %v5808_v1  ;;  %6163 = vmatprep.subr.mxu1 %v5872_v56  ;;  %v5906_v46 = vld [vmem:[#allocation12 + $0x368] sm:$0xff]  ;;  %v5841_v1 = vld [vmem:[#allocation12 + $0x160] sm:$0xff] }
 0x94b   : > { %6087 = vmatpush1.msra.mxu0 %v5807_v44  ;;  %6164 = vmatpush1.msra.mxu1 %v5871_v5  ;;  %v5905_v56 = vld [vmem:[#allocation12 + $0x360] sm:$0xff]  ;;  %v5840_v44 = vld [vmem:[#allocation12 + $0x158] sm:$0xff] }
 0x94c   : > { %6088 = vmatprep.subr.mxu0 %v5806_v40  ;;  %6165 = vmatprep.subr.mxu1 %v5870_v6  ;;  %v5904_v5 = vld [vmem:[#allocation12 + $0x358] sm:$0xff]  ;;  %v5839_v40 = vld [vmem:[#allocation12 + $0x150] sm:$0xff] }
 0x94d   : > { %6089 = vmatpush1.msra.mxu0 %v5805_v51  ;;  %6166 = vmatpush1.msra.mxu1 %v5869_v54  ;;  %v5903_v6 = vld [vmem:[#allocation12 + $0x350] sm:$0xff]  ;;  %v5838_v51 = vld [vmem:[#allocation12 + $0x148] sm:$0xff] }
 0x94e   : > { %6090 = vmatprep.subr.mxu0 %v5804_v62  ;;  %6167 = vmatprep.subr.mxu1 %v5868_v28  ;;  %v5902_v54 = vld [vmem:[#allocation12 + $0x348] sm:$0xff]  ;;  %v5837_v62 = vld [vmem:[#allocation12 + $0x140] sm:$0xff] }
 0x94f   : > { %6091 = vmatpush1.msra.mxu0 %v5803_v61  ;;  %6168 = vmatpush1.msra.mxu1 %v5867_v31  ;;  %v5901_v28 = vld [vmem:[#allocation12 + $0x340] sm:$0xff]  ;;  %v5836_v61 = vld [vmem:[#allocation12 + $0x138] sm:$0xff] }
 0x950   : > { %6092 = vmatprep.subr.mxu0 %v5802_v30  ;;  %6169 = vmatprep.subr.mxu1 %v5866_v22  ;;  %v5900_v31 = vld [vmem:[#allocation12 + $0x338] sm:$0xff]  ;;  %v5835_v30 = vld [vmem:[#allocation12 + $0x130] sm:$0xff] }
 0x951   : > { %6093 = vmatpush1.msra.mxu0 %v5801_v58  ;;  %6170 = vmatpush1.msra.mxu1 %v5865_v26  ;;  %v5899_v22 = vld [vmem:[#allocation12 + $0x330] sm:$0xff]  ;;  %v5834_v58 = vld [vmem:[#allocation12 + $0x128] sm:$0xff] }
 0x952   : > { %6094 = vmatprep.subr.mxu0 %v5800_v38  ;;  %6171 = vmatprep.subr.mxu1 %v5864_v35  ;;  %v5898_v26 = vld [vmem:[#allocation12 + $0x328] sm:$0xff]  ;;  %v5833_v38 = vld [vmem:[#allocation12 + $0x120] sm:$0xff] }
 0x953   : > { %6095 = vmatpush1.msra.mxu0 %v5799_v53  ;;  %6172 = vmatpush1.msra.mxu1 %v5863_v39  ;;  %v5897_v35 = vld [vmem:[#allocation12 + $0x320] sm:$0xff]  ;;  %v5832_v53 = vld [vmem:[#allocation12 + $0x118] sm:$0xff] }
 0x954   : > { %6096 = vmatprep.subr.mxu0 %v5798_v13  ;;  %6173 = vmatprep.subr.mxu1 %v5862_v10  ;;  %v5896_v39 = vld [vmem:[#allocation12 + $0x318] sm:$0xff]  ;;  %v5831_v13 = vld [vmem:[#allocation12 + $0x110] sm:$0xff] }
 0x955   : > { %6097 = vmatpush1.msra.mxu0 %v5797_v41  ;;  %6174 = vmatpush1.msra.mxu1 %v5861_v55  ;;  %v5895_v10 = vld [vmem:[#allocation12 + $0x310] sm:$0xff]  ;;  %v5830_v41 = vld [vmem:[#allocation12 + $0x108] sm:$0xff] }
 0x956   : > { %6098 = vmatprep.subr.mxu0 %v5860_v50  ;;  %6175 = vmatprep.subr.mxu1 %v5924_v34  ;;  %v5894_v55 = vld [vmem:[#allocation12 + $0x308] sm:$0xff]  ;;  %v5829_v50 = vld [vmem:[#allocation12 + $0x100] sm:$0xff] }
 0x957   : > { %6099 = vmatpush2.msra.mxu0 %v5859_v14  ;;  %6176 = vmatpush2.msra.mxu1 %v5923_v47  ;;  %v5893_v34 = vld [vmem:[#allocation12 + $0x300] sm:$0xff]  ;;  %v5956_v14 = vld [vmem:[#allocation12 + $0x4f8] sm:$0xff] }
 0x958   : > { %6100 = vmatprep.subr.mxu0 %v5858_v11  ;;  %6177 = vmatprep.subr.mxu1 %v5922_v27  ;;  %v6020_v47 = vld [vmem:[#allocation12 + $0x6f8] sm:$0xff] }
 0x959   : > { %6101 = vmatpush2.msra.mxu0 %v5857_v23  ;;  %6178 = vmatpush2.msra.mxu1 %v5921_v8  ;;  %v5321_v11 = vld [vmem:[#allocation8 + $0x3] ss:$8 sm:$0xf] }
 0x95a   : > { %6102 = vmatprep.subr.mxu0 %v5856_v59  ;;  %6179 = vmatprep.subr.mxu1 %v5920_v29  ;;  %v5322_v27 = vld [vmem:[#allocation8 + $0x3] ss:$8 sm:$0xf0] }
 0x95b   : > { %6103 = vmatpush2.msra.mxu0 %v5855_v17  ;;  %6180 = vmatpush2.msra.mxu1 %v5919_v45  ;;  %v11930_v23 = vor.u32 %v5322_v27, %v5321_v11  ;;  %v13167_v8 = vld [vmem:[#allocation21_spill] sm:$0xff] }
 0x95c   : > { %6104 = vmatprep.subr.mxu0 %v5854_v25  ;;  %6181 = vmatprep.subr.mxu1 %v5918_v21  ;;  %v5335_v59 = vsub.s32 2, %v13167_v8  ;;  %v5339_v29 = vsub.s32 3, %v13167_v8  ;;  %v5950_v11 = vld [vmem:[#allocation12 + $0x4c8] sm:$0xff] }
 0x95d   : > { %6105 = vmatpush2.msra.mxu0 %v5853_v9  ;;  %6182 = vmatpush2.msra.mxu1 %v5917_v2  ;;  %v5328_v17 = vrot.slane %v11930_v23, %v13128_v36  ;;  %v5332_v9 = vrot.slane %v11930_v23, %v13129_v15 }
 0x95e   : > { %6106 = vmatprep.subr.mxu0 %v5852_v43  ;;  %6183 = vmatprep.subr.mxu1 %v5916_v16  ;;  %v5336_v45 = vrot.slane %v11930_v23, %v5335_v59  ;;  %v5340_v2 = vrot.slane %v11930_v23, %v5339_v29  ;;  %v6014_v59 = vld [vmem:[#allocation12 + $0x6c8] sm:$0xff]  ;;  %v5949_v29 = vld [vmem:[#allocation12 + $0x4c0] sm:$0xff] }
 0x95f   : > { %6107 = vmatpush2.msra.mxu0 %v5851_v37  ;;  %6184 = vmatpush2.msra.mxu1 %v5915_v32 }
 0x960   : > { %6108 = vmatprep.subr.mxu0 %v5850_v19  ;;  %6185 = vmatprep.subr.mxu1 %v5914_v4 }
 0x961   : > { %6109 = vmatpush2.msra.mxu0 %v5849_v63  ;;  %6186 = vmatpush2.msra.mxu1 %v5913_v57 }
 0x962   : > { %6110 = vmatprep.subr.mxu0 %v5848_v60  ;;  %6187 = vmatprep.subr.mxu1 %v5912_v49 }
 0x963   : > { %6111 = vmatpush2.msra.mxu0 %v5847_v20  ;;  %6188 = vmatpush2.msra.mxu1 %v5911_v0 }
 0x964   : > { %6112 = vmatprep.subr.mxu0 %v5846_v42  ;;  %6189 = vmatprep.subr.mxu1 %v5910_v24 }
 0x965   : > { %6113 = vmatpush2.msra.mxu0 %v5845_v7  ;;  %6190 = vmatpush2.msra.mxu1 %v5909_v33 }
 0x966   : > { %6114 = vmatprep.subr.mxu0 %v5844_v48  ;;  %6191 = vmatprep.subr.mxu1 %v5908_v12 }
 0x967   : > { %6115 = vmatpush2.msra.mxu0 %v5843_v18  ;;  %6192 = vmatpush2.msra.mxu1 %v5907_v52 }
 0x968   : > { %6116 = vmatprep.subr.mxu0 %v5842_v3  ;;  %6193 = vmatprep.subr.mxu1 %v5906_v46 }
 0x969   : > { %6117 = vmatpush2.msra.mxu0 %v5841_v1  ;;  %6194 = vmatpush2.msra.mxu1 %v5905_v56 }
 0x96a   : > { %6118 = vmatprep.subr.mxu0 %v5840_v44  ;;  %6195 = vmatprep.subr.mxu1 %v5904_v5 }
 0x96b   : > { %6119 = vmatpush2.msra.mxu0 %v5839_v40  ;;  %6196 = vmatpush2.msra.mxu1 %v5903_v6 }
 0x96c   : > { %6120 = vmatprep.subr.mxu0 %v5838_v51  ;;  %6197 = vmatprep.subr.mxu1 %v5902_v54 }
 0x96d   : > { %6121 = vmatpush2.msra.mxu0 %v5837_v62  ;;  %6198 = vmatpush2.msra.mxu1 %v5901_v28 }
 0x96e   : > { %6122 = vmatprep.subr.mxu0 %v5836_v61  ;;  %6199 = vmatprep.subr.mxu1 %v5900_v31 }
 0x96f   : > { %6123 = vmatpush2.msra.mxu0 %v5835_v30  ;;  %6200 = vmatpush2.msra.mxu1 %v5899_v22 }
 0x970   : > { %6124 = vmatprep.subr.mxu0 %v5834_v58  ;;  %6201 = vmatprep.subr.mxu1 %v5898_v26  ;;  %v5955_v26 = vld [vmem:[#allocation12 + $0x4f0] sm:$0xff] }
 0x971   : > { %6125 = vmatpush2.msra.mxu0 %v5833_v38  ;;  %6202 = vmatpush2.msra.mxu1 %v5897_v35  ;;  %v6019_v35 = vld [vmem:[#allocation12 + $0x6f0] sm:$0xff] }
 0x972   : > { %6126 = vmatprep.subr.mxu0 %v5832_v53  ;;  %6203 = vmatprep.subr.mxu1 %v5896_v39  ;;  %v5954_v53 = vld [vmem:[#allocation12 + $0x4e8] sm:$0xff] }
 0x973   : > { %6127 = vmatpush2.msra.mxu0 %v5831_v13  ;;  %6204 = vmatpush2.msra.mxu1 %v5895_v10  ;;  %v6018_v39 = vld [vmem:[#allocation12 + $0x6e8] sm:$0xff]  ;;  %v5953_v13 = vld [vmem:[#allocation12 + $0x4e0] sm:$0xff] }
 0x974   : > { %6128 = vmatprep.subr.mxu0 %v5830_v41  ;;  %6205 = vmatprep.subr.mxu1 %v5894_v55  ;;  %v6017_v41 = vld [vmem:[#allocation12 + $0x6e0] sm:$0xff]  ;;  %v5952_v55 = vld [vmem:[#allocation12 + $0x4d8] sm:$0xff] }
 0x975   : > { %6129 = vmatpush2.msra.mxu0 %v5829_v50  ;;  %6206 = vmatpush2.msra.mxu1 %v5893_v34  ;;  %v6016_v34 = vld [vmem:[#allocation12 + $0x6d8] sm:$0xff] }
 0x976   : > { %6220 = vmatprep.subr.mxu0 %v5956_v14  ;;  %6297 = vmatprep.subr.mxu1 %v6020_v47  ;;  %v5951_v14 = vld [vmem:[#allocation12 + $0x4d0] sm:$0xff] }
 0x977   : > { %v6015_v47 = vld [vmem:[#allocation12 + $0x6d0] sm:$0xff] }
 0x9b0   : > { %v5475_v25 = vpop.f32.mrf.mxu0  ;;  %v5552_v21 = vpop.f32.mrf.mxu1 }
 0x9b1   : > { %v5476_v43 = vadd.f32 %v5475_v25, %v5328_v17  ;;  %v5553_v16 = vadd.f32 %v5552_v21, %v5336_v45  ;;  %v6013_v21 = vld [vmem:[#allocation12 + $0x6c0] sm:$0xff] }
 0x9b2   : > { %v5477_v37 = vpop.f32.mrf.mxu0  ;;  %v5554_v32 = vpop.f32.mrf.mxu1 }
 0x9b3   : > { %v5733_v19 = vmul.f32 0.70710677, %v5476_v43  ;;  %v5735_v4 = vmul.f32 0.70710677, %v5553_v16  ;;  %v5478_v63 = vadd.f32 %v5477_v37, %v5332_v9  ;;  %v5555_v57 = vadd.f32 %v5554_v32, %v5340_v2 }
 0x9b4   : > { %v5717_v62 = vmul.f32 0.5, %v5476_v43  ;;  %v5719_v31 = vmul.f32 0.5, %v5553_v16 }
 0x9b5   : > { %6739 = verf.f32 %v5733_v19  ;;  %v5734_v60 = vmul.f32 0.70710677, %v5478_v63  ;;  %v5736_v49 = vmul.f32 0.70710677, %v5555_v57  ;;  %v5718_v51 = vmul.f32 0.5, %v5478_v63  ;;  %v6012_v19 = vld [vmem:[#allocation12 + $0x6b8] sm:$0xff] }
 0x9b6   : > { %6741 = verf.f32 %v5735_v4  ;;  %v5720_v28 = vmul.f32 0.5, %v5555_v57 }
 0x9b7   : > { %6743 = verf.f32 %v5734_v60 }
 0x9b8   : > { %6745 = verf.f32 %v5736_v49  ;;  %v5947_v49 = vld [vmem:[#allocation12 + $0x4b0] sm:$0xff] }
 0x9ba   : > { %v5481_v20 = vpop.f32.mrf.mxu0  ;;  %v5558_v0 = vpop.f32.mrf.mxu1 }
 0x9bb   : > { %v11940_v42 = vadd.f32 %v5481_v20, %v5328_v17  ;;  %v11942_v24 = vadd.f32 %v5558_v0, %v5336_v45  ;;  %v6011_v0 = vld [vmem:[#allocation12 + $0x6b0] sm:$0xff] }
 0x9bc   : > { %v5483_v7 = vpop.f32.mrf.mxu0  ;;  %v5560_v33 = vpop.f32.mrf.mxu1 }
 0x9bd   : > { %v5741_v48 = vmul.f32 0.70710677, %v11940_v42  ;;  %v5743_v12 = vmul.f32 0.70710677, %v11942_v24  ;;  %v5484_v18 = vadd.f32 %v5483_v7, %v5332_v9  ;;  %v5561_v52 = vadd.f32 %v5560_v33, %v5340_v2  ;;  %v5948_v2 = vld [vmem:[#allocation12 + $0x4b8] sm:$0xff]  ;;  %v6010_v7 = vld [vmem:[#allocation12 + $0x6a8] sm:$0xff] }
 0x9be   : > { %v5725_v16 = vmul.f32 0.5, %v11940_v42  ;;  %v5727_v4 = vmul.f32 0.5, %v11942_v24  ;;  %v5946_v42 = vld [vmem:[#allocation12 + $0x4a8] sm:$0xff]  ;;  %v5945_v33 = vld [vmem:[#allocation12 + $0x4a0] sm:$0xff] }
 0x9bf   : > { %6747 = verf.f32 %v5741_v48  ;;  %v5742_v3 = vmul.f32 0.70710677, %v5484_v18  ;;  %v5744_v46 = vmul.f32 0.70710677, %v5561_v52  ;;  %v5726_v25 = vmul.f32 0.5, %v5484_v18  ;;  %v6009_v24 = vld [vmem:[#allocation12 + $0x6a0] sm:$0xff] }
 0x9c0   : > { %6749 = verf.f32 %v5743_v12  ;;  %v5728_v37 = vmul.f32 0.5, %v5561_v52  ;;  %v5944_v48 = vld [vmem:[#allocation12 + $0x498] sm:$0xff]  ;;  %v5943_v18 = vld [vmem:[#allocation12 + $0x490] sm:$0xff] }
 0x9c1   : > { %6751 = verf.f32 %v5742_v3  ;;  %v6008_v12 = vld [vmem:[#allocation12 + $0x698] sm:$0xff]  ;;  %v6007_v52 = vld [vmem:[#allocation12 + $0x690] sm:$0xff]  ;;  %v5942_v3 = vld [vmem:[#allocation12 + $0x488] sm:$0xff] }
 0x9c2   : > { %v6740_v1 = vpop.eup %6739  ;;  %6753 = verf.f32 %v5744_v46  ;;  %v6006_v46 = vld [vmem:[#allocation12 + $0x688] sm:$0xff] }
 0x9c3   : > { %v6742_v56 = vpop.eup %6741  ;;  %v5765_v5 = vadd.f32 1.0, %v6740_v1  ;;  %v5941_v1 = vld [vmem:[#allocation12 + $0x480] sm:$0xff] }
 0x9c4   : > { %v6744_v44 = vpop.eup %6743  ;;  %v5767_v6 = vadd.f32 1.0, %v6742_v56  ;;  %v6005_v56 = vld [vmem:[#allocation12 + $0x680] sm:$0xff] }
 0x9c5   : > { %v6746_v40 = vpop.eup %6745  ;;  %v5766_v54 = vadd.f32 1.0, %v6744_v44  ;;  %v5781_v22 = vmul.f32 %v5765_v5, %v5717_v62  ;;  %v5940_v44 = vld [vmem:[#allocation12 + $0x478] sm:$0xff]  ;;  %v5937_v62 = vld [vmem:[#allocation12 + $0x460] sm:$0xff] }
 0x9c6   : > { %v5768_v61 = vadd.f32 1.0, %v6746_v40  ;;  %v5783_v38 = vmul.f32 %v5767_v6, %v5719_v31  ;;  %v6004_v5 = vld [vmem:[#allocation12 + $0x678] sm:$0xff]  ;;  %v5939_v40 = vld [vmem:[#allocation12 + $0x470] sm:$0xff] }
 0x9c7   : > { %v5782_v30 = vmul.f32 %v5766_v54, %v5718_v51  ;;  %v6003_v6 = vld [vmem:[#allocation12 + $0x670] sm:$0xff]  ;;  %v5938_v51 = vld [vmem:[#allocation12 + $0x468] sm:$0xff]  ;;  %v6000_v31 = vld [vmem:[#allocation12 + $0x658] sm:$0xff] }
 0x9c8   : > { %v5784_v58 = vmul.f32 %v5768_v61, %v5720_v28  ;;  %v6002_v54 = vld [vmem:[#allocation12 + $0x668] sm:$0xff]  ;;  %v6001_v28 = vld [vmem:[#allocation12 + $0x660] sm:$0xff]  ;;  %v5936_v61 = vld [vmem:[#allocation12 + $0x458] sm:$0xff] }
 0x9c9   : > { %6130 = vmatprep.mubr.f32.mxu0 %v5782_v30  ;;  %v5935_v30 = vld [vmem:[#allocation12 + $0x450] sm:$0xff] }
 0x9ca   : > { %6207 = vmatprep.mubr.f32.mxu1 %v5784_v58  ;;  %6131 = vmatmul.mubr.f32.vlgmr.msra.gmra.mxu0 %v5781_v22  ;;  %v5999_v22 = vld [vmem:[#allocation12 + $0x650] sm:$0xff]  ;;  %v5934_v58 = vld [vmem:[#allocation12 + $0x448] sm:$0xff] }
 0x9cb   : > { %6208 = vmatmul.mubr.f32.vlgmr.msra.gmra.mxu1 %v5783_v38  ;;  %6221 = vmatpush1.msra.mxu0 %v5955_v26  ;;  %v5998_v26 = vld [vmem:[#allocation12 + $0x648] sm:$0xff]  ;;  %v5933_v38 = vld [vmem:[#allocation12 + $0x440] sm:$0xff] }
 0x9cc   : > { %v6748_v10 = vpop.eup %6747  ;;  %6298 = vmatpush1.msra.mxu1 %v6019_v35  ;;  %6222 = vmatprep.subr.mxu0 %v5954_v53  ;;  %v5997_v35 = vld [vmem:[#allocation12 + $0x640] sm:$0xff]  ;;  %v5932_v53 = vld [vmem:[#allocation12 + $0x438] sm:$0xff] }
 0x9cd   : > { %v6750_v50 = vpop.eup %6749  ;;  %6299 = vmatprep.subr.mxu1 %v6018_v39  ;;  %6223 = vmatpush1.msra.mxu0 %v5953_v13  ;;  %v5773_v17 = vadd.f32 1.0, %v6748_v10  ;;  %v5996_v39 = vld [vmem:[#allocation12 + $0x638] sm:$0xff]  ;;  %v5931_v13 = vld [vmem:[#allocation12 + $0x430] sm:$0xff] }
 0x9ce   : > { %v6752_v27 = vpop.eup %6751  ;;  %6300 = vmatpush1.msra.mxu1 %v6017_v41  ;;  %6224 = vmatprep.subr.mxu0 %v5952_v55  ;;  %v5775_v43 = vadd.f32 1.0, %v6750_v50  ;;  %v5995_v10 = vld [vmem:[#allocation12 + $0x630] sm:$0xff]  ;;  %v5930_v41 = vld [vmem:[#allocation12 + $0x428] sm:$0xff]  ;;  %v5929_v50 = vld [vmem:[#allocation12 + $0x420] sm:$0xff] }
 0x9cf   : > { %v6754_v45 = vpop.eup %6753  ;;  %6301 = vmatprep.subr.mxu1 %v6016_v34  ;;  %6225 = vmatpush1.msra.mxu0 %v5951_v14  ;;  %v5774_v9 = vadd.f32 1.0, %v6752_v27  ;;  %v5789_v60 = vmul.f32 %v5773_v17, %v5725_v16  ;;  %v5994_v55 = vld [vmem:[#allocation12 + $0x628] sm:$0xff]  ;;  %v5993_v34 = vld [vmem:[#allocation12 + $0x620] sm:$0xff]  ;;  %v5928_v14 = vld [vmem:[#allocation12 + $0x418] sm:$0xff]  ;;  %v5343_v16 = vsub.s32 4, %v13167_v8 }
 0x9d0   : > { %6302 = vmatpush1.msra.mxu1 %v6015_v47  ;;  %6226 = vmatprep.subr.mxu0 %v5950_v11  ;;  %v5776_v32 = vadd.f32 1.0, %v6754_v45  ;;  %v5791_v20 = vmul.f32 %v5775_v43, %v5727_v4  ;;  %v5992_v47 = vld [vmem:[#allocation12 + $0x618] sm:$0xff]  ;;  %v5927_v11 = vld [vmem:[#allocation12 + $0x410] sm:$0xff]  ;;  %v5925_v17 = vld [vmem:[#allocation12 + $0x400] sm:$0xff] }
 0x9d1   : > { %6303 = vmatprep.subr.mxu1 %v6014_v59  ;;  %6227 = vmatpush1.msra.mxu0 %v5949_v29  ;;  %v5790_v63 = vmul.f32 %v5774_v9, %v5726_v25  ;;  %v5991_v27 = vld [vmem:[#allocation12 + $0x610] sm:$0xff]  ;;  %v5926_v59 = vld [vmem:[#allocation12 + $0x408] sm:$0xff]  ;;  %v5989_v45 = vld [vmem:[#allocation12 + $0x600] sm:$0xff] }
 0x9d2   : > { %6304 = vmatpush1.msra.mxu1 %v6013_v21  ;;  %v5792_v57 = vmul.f32 %v5776_v32, %v5728_v37  ;;  %6228 = vmatprep.subr.mxu0 %v5948_v2  ;;  %v5990_v29 = vld [vmem:[#allocation12 + $0x608] sm:$0xff]  ;;  %v5988_v25 = vld [vmem:[#allocation12 + $0x5f8] sm:$0xff]  ;;  %v5987_v9 = vld [vmem:[#allocation12 + $0x5f0] sm:$0xff]  ;;  %v5351_v37 = vsub.s32 6, %v13167_v8 }
 0x9d3   : > { %6136 = vmatprep.mubr.f32.mxu0 %v5790_v63  ;;  %6305 = vmatprep.subr.mxu1 %v6012_v19  ;;  %v6052_v21 = vld [vmem:[#allocation12 + $0x7f8] sm:$0xff]  ;;  %v6051_v2 = vld [vmem:[#allocation12 + $0x7f0] sm:$0xff]  ;;  %v5986_v43 = vld [vmem:[#allocation12 + $0x5e8] sm:$0xff] }
 0x9d4   : > { %6213 = vmatprep.mubr.f32.mxu1 %v5792_v57  ;;  %6137 = vmatmul.mubr.f32.gmra.mxu0 %v5789_v60  ;;  %v6050_v32 = vld [vmem:[#allocation12 + $0x7e8] sm:$0xff]  ;;  %v5985_v19 = vld [vmem:[#allocation12 + $0x5e0] sm:$0xff]  ;;  %v5984_v63 = vld [vmem:[#allocation12 + $0x5d8] sm:$0xff] }
 0x9d5   : > { %6214 = vmatmul.mubr.f32.gmra.mxu1 %v5791_v20  ;;  %6229 = vmatpush1.msra.mxu0 %v5947_v49  ;;  %v6049_v4 = vld [vmem:[#allocation12 + $0x7e0] sm:$0xff]  ;;  %v6048_v57 = vld [vmem:[#allocation12 + $0x7d8] sm:$0xff]  ;;  %v5983_v60 = vld [vmem:[#allocation12 + $0x5d0] sm:$0xff]  ;;  %v5347_v49 = vsub.s32 5, %v13167_v8  ;;  %v5355_v20 = vsub.s32 7, %v13167_v8 }
 0x9d6   : > { %6306 = vmatpush1.msra.mxu1 %v6011_v0  ;;  %6230 = vmatprep.subr.mxu0 %v5946_v42  ;;  %v6047_v0 = vld [vmem:[#allocation12 + $0x7d0] sm:$0xff]  ;;  %v5344_v42 = vrot.slane %v11930_v23, %v5343_v16 }
 0x9d7   : > { %6307 = vmatprep.subr.mxu1 %v6010_v7  ;;  %6231 = vmatpush1.msra.mxu0 %v5945_v33  ;;  %v5352_v7 = vrot.slane %v11930_v23, %v5351_v37  ;;  %v5982_v33 = vld [vmem:[#allocation12 + $0x5c8] sm:$0xff]  ;;  %v5348_v8 = vrot.slane %v11930_v23, %v5347_v49  ;;  %v6031_v49 = vld [vmem:[#allocation12 + $0x750] sm:$0xff] }
 0x9d8   : > { %6308 = vmatpush1.msra.mxu1 %v6009_v24  ;;  %6232 = vmatprep.subr.mxu0 %v5944_v48  ;;  %v6046_v24 = vld [vmem:[#allocation12 + $0x7c8] sm:$0xff]  ;;  %v5981_v48 = vld [vmem:[#allocation12 + $0x5c0] sm:$0xff] }
 0x9d9   : > { %6309 = vmatprep.subr.mxu1 %v6008_v12  ;;  %6233 = vmatpush1.msra.mxu0 %v5943_v18  ;;  %v6045_v12 = vld [vmem:[#allocation12 + $0x7c0] sm:$0xff]  ;;  %v5980_v18 = vld [vmem:[#allocation12 + $0x5b8] sm:$0xff]  ;;  %v6034_v37 = vld [vmem:[#allocation12 + $0x768] sm:$0xff] }
 0x9da   : > { %6310 = vmatpush1.msra.mxu1 %v6007_v52  ;;  %6234 = vmatprep.subr.mxu0 %v5942_v3 }
 0x9db   : > { %6311 = vmatprep.subr.mxu1 %v6006_v46  ;;  %6235 = vmatpush1.msra.mxu0 %v5941_v1  ;;  %v5356_v46 = vrot.slane %v11930_v23, %v5355_v20  ;;  %v6044_v1 = vld [vmem:[#allocation12 + $0x7b8] sm:$0xff]  ;;  %v5966_v20 = vld [vmem:[#allocation12 + $0x548] sm:$0xff] }
 0x9dc   : > { %6312 = vmatpush1.msra.mxu1 %v6005_v56  ;;  %6236 = vmatprep.subr.mxu0 %v5940_v44  ;;  %v5979_v56 = vld [vmem:[#allocation12 + $0x5b0] sm:$0xff] }
 0x9dd   : > { %6313 = vmatprep.subr.mxu1 %v6004_v5  ;;  %6237 = vmatpush1.msra.mxu0 %v5939_v40  ;;  %v6043_v40 = vld [vmem:[#allocation12 + $0x7b0] sm:$0xff] }
 0x9de   : > { %6314 = vmatpush1.msra.mxu1 %v6003_v6  ;;  %6238 = vmatprep.subr.mxu0 %v5938_v51  ;;  %v5978_v6 = vld [vmem:[#allocation12 + $0x5a8] sm:$0xff] }
 0x9df   : > { %6315 = vmatprep.subr.mxu1 %v6002_v54  ;;  %6239 = vmatpush1.msra.mxu0 %v5937_v62  ;;  %v6042_v62 = vld [vmem:[#allocation12 + $0x7a8] sm:$0xff] }
 0x9e0   : > { %6316 = vmatpush1.msra.mxu1 %v6001_v28  ;;  %6240 = vmatprep.subr.mxu0 %v5936_v61  ;;  %v5977_v28 = vld [vmem:[#allocation12 + $0x5a0] sm:$0xff] }
 0x9e1   : > { %6317 = vmatprep.subr.mxu1 %v6000_v31  ;;  %6241 = vmatpush1.msra.mxu0 %v5935_v30  ;;  %v6041_v31 = vld [vmem:[#allocation12 + $0x7a0] sm:$0xff]  ;;  %v5976_v30 = vld [vmem:[#allocation12 + $0x598] sm:$0xff] }
 0x9e2   : > { %6318 = vmatpush1.msra.mxu1 %v5999_v22  ;;  %6242 = vmatprep.subr.mxu0 %v5934_v58 }
 0x9e3   : > { %6319 = vmatprep.subr.mxu1 %v5998_v26  ;;  %6243 = vmatpush1.msra.mxu0 %v5933_v38 }
 0x9e4   : > { %6320 = vmatpush1.msra.mxu1 %v5997_v35  ;;  %6244 = vmatprep.subr.mxu0 %v5932_v53  ;;  %v6040_v35 = vld [vmem:[#allocation12 + $0x798] sm:$0xff]  ;;  %v5975_v53 = vld [vmem:[#allocation12 + $0x590] sm:$0xff] }
 0x9e5   : > { %6321 = vmatprep.subr.mxu1 %v5996_v39  ;;  %6245 = vmatpush1.msra.mxu0 %v5931_v13 }
 0x9e6   : > { %6322 = vmatpush1.msra.mxu1 %v5995_v10  ;;  %6246 = vmatprep.subr.mxu0 %v5930_v41  ;;  %v6039_v10 = vld [vmem:[#allocation12 + $0x790] sm:$0xff]  ;;  %v5974_v41 = vld [vmem:[#allocation12 + $0x588] sm:$0xff] }
 0x9e7   : > { %6323 = vmatprep.subr.mxu1 %v5994_v55  ;;  %6247 = vmatpush1.msra.mxu0 %v5929_v50 }
 0x9e8   : > { %6324 = vmatpush1.msra.mxu1 %v5993_v34  ;;  %6248 = vmatprep.subr.mxu0 %v5928_v14  ;;  %v6038_v14 = vld [vmem:[#allocation12 + $0x788] sm:$0xff] }
 0x9e9   : > { %6325 = vmatprep.subr.mxu1 %v5992_v47  ;;  %6249 = vmatpush1.msra.mxu0 %v5927_v11  ;;  %v5973_v47 = vld [vmem:[#allocation12 + $0x580] sm:$0xff] }
 0x9ea   : > { %6326 = vmatpush1.msra.mxu1 %v5991_v27  ;;  %6250 = vmatprep.subr.mxu0 %v5926_v59  ;;  %v6037_v59 = vld [vmem:[#allocation12 + $0x780] sm:$0xff] }
 0x9eb   : > { %6327 = vmatprep.subr.mxu1 %v5990_v29  ;;  %6251 = vmatpush1.msra.mxu0 %v5925_v17  ;;  %v5972_v29 = vld [vmem:[#allocation12 + $0x578] sm:$0xff] }
 0x9ec   : > { %6328 = vmatpush1.msra.mxu1 %v5989_v45  ;;  %6252 = vmatprep.subr.mxu0 %v5988_v25 }
 0x9ed   : > { %6329 = vmatprep.subr.mxu1 %v6052_v21  ;;  %6253 = vmatpush2.msra.mxu0 %v5987_v9  ;;  %v6036_v21 = vld [vmem:[#allocation12 + $0x778] sm:$0xff]  ;;  %v5971_v9 = vld [vmem:[#allocation12 + $0x570] sm:$0xff] }
 0x9ee   : > { %6330 = vmatpush2.msra.mxu1 %v6051_v2  ;;  %6254 = vmatprep.subr.mxu0 %v5986_v43  ;;  %v6035_v2 = vld [vmem:[#allocation12 + $0x770] sm:$0xff]  ;;  %v5970_v43 = vld [vmem:[#allocation12 + $0x568] sm:$0xff] }
 0x9ef   : > { %6331 = vmatprep.subr.mxu1 %v6050_v32  ;;  %6255 = vmatpush2.msra.mxu0 %v5985_v19  ;;  %v5969_v32 = vld [vmem:[#allocation12 + $0x560] sm:$0xff] }
 0x9f0   : > { %6332 = vmatpush2.msra.mxu1 %v6049_v4  ;;  %6256 = vmatprep.subr.mxu0 %v5984_v63  ;;  %v6033_v4 = vld [vmem:[#allocation12 + $0x760] sm:$0xff]  ;;  %v5968_v63 = vld [vmem:[#allocation12 + $0x558] sm:$0xff] }
 0x9f1   : > { %6333 = vmatprep.subr.mxu1 %v6048_v57  ;;  %6257 = vmatpush2.msra.mxu0 %v5983_v60  ;;  %v6032_v57 = vld [vmem:[#allocation12 + $0x758] sm:$0xff]  ;;  %v5967_v60 = vld [vmem:[#allocation12 + $0x550] sm:$0xff] }
 0x9f2   : > { %6334 = vmatpush2.msra.mxu1 %v6047_v0  ;;  %6258 = vmatprep.subr.mxu0 %v5982_v33  ;;  %v6030_v0 = vld [vmem:[#allocation12 + $0x748] sm:$0xff]  ;;  %v5964_v33 = vld [vmem:[#allocation12 + $0x538] sm:$0xff] }
 0x9f3   : > { %v5629_v52 = vpop.f32.mrf.mxu0  ;;  %v5706_v3 = vpop.f32.mrf.mxu1  ;;  %6335 = vmatprep.subr.mxu1 %v6046_v24  ;;  %6259 = vmatpush2.msra.mxu0 %v5981_v48  ;;  %v6028_v24 = vld [vmem:[#allocation12 + $0x738] sm:$0xff]  ;;  %v5963_v48 = vld [vmem:[#allocation12 + $0x530] sm:$0xff] }
 0x9f4   : > { %v11956_v44 = vadd.f32 %v5629_v52, %v5344_v42  ;;  %v11958_v5 = vadd.f32 %v5706_v3, %v5352_v7  ;;  %6336 = vmatpush2.msra.mxu1 %v6045_v12  ;;  %6260 = vmatprep.subr.mxu0 %v5980_v18  ;;  %v6027_v12 = vld [vmem:[#allocation12 + $0x730] sm:$0xff]  ;;  %v5962_v18 = vld [vmem:[#allocation12 + $0x528] sm:$0xff] }
 0x9f5   : > { %v5631_v51 = vpop.f32.mrf.mxu0  ;;  %v5708_v54 = vpop.f32.mrf.mxu1  ;;  %6337 = vmatprep.subr.mxu1 %v6044_v1  ;;  %6261 = vmatpush2.msra.mxu0 %v5979_v56  ;;  %v6026_v3 = vld [vmem:[#allocation12 + $0x728] sm:$0xff]  ;;  %v6025_v1 = vld [vmem:[#allocation12 + $0x720] sm:$0xff]  ;;  %v5960_v56 = vld [vmem:[#allocation12 + $0x518] sm:$0xff] }
 0x9f6   : > { %v5737_v61 = vmul.f32 0.70710677, %v11956_v44  ;;  %v5739_v23 = vmul.f32 0.70710677, %v11958_v5  ;;  %v11962_v22 = vadd.f32 %v5631_v51, %v5348_v8  ;;  %v11964_v58 = vadd.f32 %v5708_v54, %v5356_v46  ;;  %6338 = vmatpush2.msra.mxu1 %v6043_v40  ;;  %6262 = vmatprep.subr.mxu0 %v5978_v6  ;;  %v6024_v40 = vld [vmem:[#allocation12 + $0x718] sm:$0xff]  ;;  %v5959_v6 = vld [vmem:[#allocation12 + $0x510] sm:$0xff] }
 0x9f7   : > { %v5635_v26 = vpop.f32.mrf.mxu0  ;;  %v5712_v38 = vpop.f32.mrf.mxu1  ;;  %6339 = vmatprep.subr.mxu1 %v6042_v62  ;;  %6263 = vmatpush2.msra.mxu0 %v5977_v28  ;;  %v6023_v62 = vld [vmem:[#allocation12 + $0x710] sm:$0xff]  ;;  %v5958_v28 = vld [vmem:[#allocation12 + $0x508] sm:$0xff] }
 0x9f8   : > { %6755 = verf.f32 %v5737_v61  ;;  %v11966_v39 = vadd.f32 %v5635_v26, %v5344_v42  ;;  %v11968_v13 = vadd.f32 %v5712_v38, %v5352_v7  ;;  %v5738_v55 = vmul.f32 0.70710677, %v11962_v22  ;;  %6340 = vmatpush2.msra.mxu1 %v6041_v31  ;;  %6264 = vmatprep.subr.mxu0 %v5976_v30  ;;  %v5965_v42 = vld [vmem:[#allocation12 + $0x540] sm:$0xff]  ;;  %v6022_v30 = vld [vmem:[#allocation12 + $0x708] sm:$0xff] }
 0x9f9   : > { %6757 = verf.f32 %v5739_v23  ;;  %v5637_v50 = vpop.f32.mrf.mxu0  ;;  %v5714_v34 = vpop.f32.mrf.mxu1  ;;  %v5740_v11 = vmul.f32 0.70710677, %v11964_v58  ;;  %6341 = vmatprep.subr.mxu1 %v6040_v35  ;;  %6265 = vmatpush2.msra.mxu0 %v5975_v53  ;;  %v6029_v7 = vld [vmem:[#allocation12 + $0x740] sm:$0xff]  ;;  %v5722_v31 = vmul.f32 0.5, %v11962_v22  ;;  %v5721_v53 = vmul.f32 0.5, %v11956_v44 }
 0x9fa   : > { %v5745_v27 = vmul.f32 0.70710677, %v11966_v39  ;;  %6759 = verf.f32 %v5738_v55  ;;  %v5747_v17 = vmul.f32 0.70710677, %v11968_v13  ;;  %v11974_v45 = vadd.f32 %v5637_v50, %v5348_v8  ;;  %6342 = vmatpush2.msra.mxu1 %v6039_v10  ;;  %6266 = vmatprep.subr.mxu0 %v5974_v41  ;;  %v5961_v8 = vld [vmem:[#allocation12 + $0x520] sm:$0xff] }
 0x9fb   : > { %v11976_v25 = vadd.f32 %v5714_v34, %v5356_v46  ;;  %6761 = verf.f32 %v5740_v11  ;;  %6343 = vmatprep.subr.mxu1 %v6038_v14  ;;  %6267 = vmatpush2.msra.mxu0 %v5973_v47  ;;  %v5957_v26 = vld [vmem:[#allocation12 + $0x500] sm:$0xff]  ;;  %v5724_v10 = vmul.f32 0.5, %v11964_v58  ;;  %v5723_v34 = vmul.f32 0.5, %v11958_v5 }
 0x9fc   : > { %6763 = verf.f32 %v5745_v27  ;;  %v5746_v16 = vmul.f32 0.70710677, %v11974_v45  ;;  %6344 = vmatpush2.msra.mxu1 %v6037_v59  ;;  %6268 = vmatprep.subr.mxu0 %v5972_v29  ;;  %v6021_v41 = vld [vmem:[#allocation12 + $0x700] sm:$0xff]  ;;  %v5730_v58 = vmul.f32 0.5, %v11974_v45 }
 0x9fd   : > { %6765 = verf.f32 %v5747_v17  ;;  %v5748_v19 = vmul.f32 0.70710677, %v11976_v25  ;;  %6345 = vmatprep.subr.mxu1 %v6036_v21  ;;  %6269 = vmatpush2.msra.mxu0 %v5971_v9  ;;  %v5729_v21 = vmul.f32 0.5, %v11966_v39  ;;  %v5732_v5 = vmul.f32 0.5, %v11976_v25 }
 0x9fe   : > { %6767 = verf.f32 %v5746_v16  ;;  %6346 = vmatpush2.msra.mxu1 %v6035_v2  ;;  %6270 = vmatprep.subr.mxu0 %v5970_v43  ;;  %v5731_v2 = vmul.f32 0.5, %v11968_v13  ;;  %v6054_v45 = vld [vmem:[#allocation8 + $0x6] ss:$8 sm:$0x3] }
 0x9ff   : > { %6769 = verf.f32 %v5748_v19  ;;  %6347 = vmatprep.subr.mxu1 %v6034_v37  ;;  %6271 = vmatpush2.msra.mxu0 %v5969_v32  ;;  %v6059_v39 = vrot.slane %v6054_v45, %v13128_v36 }
 0xa00   : > { %6348 = vmatpush2.msra.mxu1 %v6033_v4  ;;  %6272 = vmatprep.subr.mxu0 %v5968_v63  ;;  %v6063_v63 = vrot.slane %v6054_v45, %v13129_v15 }
 0xa01   : > { %6349 = vmatprep.subr.mxu1 %v6032_v57  ;;  %6273 = vmatpush2.msra.mxu0 %v5967_v60 }
 0xa02   : > { %6350 = vmatpush2.msra.mxu1 %v6031_v49  ;;  %6274 = vmatprep.subr.mxu0 %v5966_v20 }
 0xa03   : > { %6351 = vmatprep.subr.mxu1 %v6030_v0  ;;  %6275 = vmatpush2.msra.mxu0 %v5965_v42  ;;  %v6375_v42 = vld [vmem:[#allocation8 + $0x7] ss:$8 sm:$0x3] }
 0xa04   : > { %6352 = vmatpush2.msra.mxu1 %v6029_v7  ;;  %6276 = vmatprep.subr.mxu0 %v5964_v33 }
 0xa05   : > { %v6756_v52 = vpop.eup %6755  ;;  %6353 = vmatprep.subr.mxu1 %v6028_v24  ;;  %6277 = vmatpush2.msra.mxu0 %v5963_v48 }
 0xa06   : > { %v6758_v46 = vpop.eup %6757  ;;  %6354 = vmatpush2.msra.mxu1 %v6027_v12  ;;  %6278 = vmatprep.subr.mxu0 %v5962_v18  ;;  %v5769_v54 = vadd.f32 1.0, %v6756_v52 }
 0xa07   : > { %v6760_v51 = vpop.eup %6759  ;;  %6355 = vmatprep.subr.mxu1 %v6026_v3  ;;  %6279 = vmatpush2.msra.mxu0 %v5961_v8  ;;  %v5771_v23 = vadd.f32 1.0, %v6758_v46  ;;  %v6380_v8 = vrot.slane %v6375_v42, %v13128_v36 }
 0xa08   : > { %v6762_v61 = vpop.eup %6761  ;;  %6356 = vmatpush2.msra.mxu1 %v6025_v1  ;;  %6280 = vmatprep.subr.mxu0 %v5960_v56  ;;  %v5770_v38 = vadd.f32 1.0, %v6760_v51  ;;  %v5785_v47 = vmul.f32 %v5769_v54, %v5721_v53  ;;  %v6384_v51 = vrot.slane %v6375_v42, %v13129_v15  ;;  %v6876_v15 = vld [vmem:[#allocation2 + $0x8] sm:$0xff] }
 0xa09   : > { %v6764_v35 = vpop.eup %6763  ;;  %6357 = vmatprep.subr.mxu1 %v6024_v40  ;;  %6281 = vmatpush2.msra.mxu0 %v5959_v6  ;;  %v5772_v55 = vadd.f32 1.0, %v6762_v61  ;;  %v5787_v44 = vmul.f32 %v5771_v23, %v5723_v34  ;;  %v6877_v34 = vld [vmem:[#allocation2 + $0x20] sm:$0xff] }
 0xa0a   : > { %v6766_v50 = vpop.eup %6765  ;;  %6358 = vmatpush2.msra.mxu1 %v6023_v62  ;;  %6282 = vmatprep.subr.mxu0 %v5958_v28  ;;  %v5786_v22 = vmul.f32 %v5770_v38, %v5722_v31  ;;  %v5777_v27 = vadd.f32 1.0, %v6764_v35 }
 0xa0b   : > { %v6768_v14 = vpop.eup %6767  ;;  %6359 = vmatprep.subr.mxu1 %v6022_v30  ;;  %6283 = vmatpush2.msra.mxu0 %v5957_v26  ;;  %v5788_v11 = vmul.f32 %v5772_v55, %v5724_v10  ;;  %v5779_v17 = vadd.f32 1.0, %v6766_v50  ;;  %v6875_v26 = vld [vmem:[#allocation2 + $0x68] sm:$0xff] }
 0xa0c   : > { %v6770_v59 = vpop.eup %6769  ;;  %6284 = vmatprep.mubr.f32.mxu0 %v5786_v22  ;;  %6360 = vmatpush2.msra.mxu1 %v6021_v41  ;;  %v5778_v29 = vadd.f32 1.0, %v6768_v14  ;;  %v5793_v37 = vmul.f32 %v5777_v27, %v5729_v21 }
 0xa0d   : > { %6361 = vmatprep.mubr.f32.mxu1 %v5788_v11  ;;  %6285 = vmatmul.mubr.f32.vlgmr.msra.gmra.mxu0 %v5785_v47  ;;  %v5780_v9 = vadd.f32 1.0, %v6770_v59  ;;  %v5795_v32 = vmul.f32 %v5779_v17, %v5731_v2  ;;  %v6878_v47 = vld [vmem:[#allocation2 + $0x10] sm:$0xff] }
 0xa0e   : > { %6362 = vmatmul.mubr.f32.vlgmr.msra.gmra.mxu1 %v5787_v44  ;;  %v5794_v43 = vmul.f32 %v5778_v29, %v5730_v58 }
 0xa0f   : > { %v5796_v16 = vmul.f32 %v5780_v9, %v5732_v5 }
 0xa10   : > { %6290 = vmatprep.mubr.f32.mxu0 %v5794_v43 }
 0xa11   : > { %6367 = vmatprep.mubr.f32.mxu1 %v5796_v16  ;;  %6291 = vmatmul.mubr.f32.gmra.mxu0 %v5793_v37 }
 0xa12   : > { %6368 = vmatmul.mubr.f32.gmra.mxu1 %v5795_v32 }
 0xa8a   : > { %v6132_v19 = vpop.f32.mrf.mxu0 }
 0xa8b   : > { %v6209_v4 = vpop.f32.mrf.mxu1  ;;  %v6133_v13 = vadd.f32 %v6132_v19, %v6059_v39 }
 0xa8c   : > { %v6134_v25 = vpop.f32.mrf.mxu0 }
 0xa8d   : > { %v6211_v57 = vpop.f32.mrf.mxu1  ;;  %v6135_v20 = vadd.f32 %v6134_v25, %v6063_v63  ;;  %v6210_v7 = vadd.f32 %v6209_v4, %v6133_v13 }
 0xa8f   : > { %v6212_v12 = vadd.f32 %v6211_v57, %v6135_v20 }
 0xa94   : > { %v6138_v60 = vpop.f32.mrf.mxu0 }
 0xa95   : > { %v6215_v49 = vpop.f32.mrf.mxu1  ;;  %v6139_v33 = vadd.f32 %v6138_v60, %v6059_v39 }
 0xa96   : > { %v6140_v0 = vpop.f32.mrf.mxu0 }
 0xa97   : > { %v6217_v24 = vpop.f32.mrf.mxu1  ;;  %v6141_v18 = vadd.f32 %v6140_v0, %v6063_v63  ;;  %v6216_v1 = vadd.f32 %v6215_v49, %v6139_v33 }
 0xa99   : > { %v6218_v62 = vadd.f32 %v6217_v24, %v6141_v18 }
 0xacd   : > { %v6286_v48 = vpop.f32.mrf.mxu0 }
 0xace   : > { %v6287_v52 = vadd.f32 %v6286_v48, %v6210_v7  ;;  %v6363_v3 = vpop.f32.mrf.mxu1 }
 0xacf   : > { %v6288_v46 = vpop.f32.mrf.mxu0 }
 0xad0   : > { %v6364_v56 = vadd.f32 %v6363_v3, %v6287_v52  ;;  %v6289_v40 = vadd.f32 %v6288_v46, %v6212_v12  ;;  %v6365_v6 = vpop.f32.mrf.mxu1 }
 0xad1   : > { %v6292_v54 = vpop.f32.mrf.mxu0 }
 0xad2   : > { %v6387_v28 = vmul.f32 %v6380_v8, %v6364_v56  ;;  %v6366_v61 = vadd.f32 %v6365_v6, %v6289_v40  ;;  %v6293_v23 = vadd.f32 %v6292_v54, %v6216_v1  ;;  %v6369_v31 = vpop.f32.mrf.mxu1 }
 0xad3   : > { %v6294_v30 = vpop.f32.mrf.mxu0 }
 0xad4   : > { %v6391_v38 = vadd.f32 %v6875_v26, %v6387_v28  ;;  %v6388_v35 = vmul.f32 %v6384_v51, %v6366_v61  ;;  %v6370_v36 = vadd.f32 %v6369_v31, %v6293_v23  ;;  %v6295_v53 = vadd.f32 %v6294_v30, %v6218_v62  ;;  %v6371_v10 = vpop.f32.mrf.mxu1 }
 0xad6   : > { %6395 = vst [vmem:[%s406_s25] sm:$0xff] %v6391_v38  ;;  %v6392_v41 = vadd.f32 %v6876_v15, %v6388_v35  ;;  %v6389_v55 = vmul.f32 %v6380_v8, %v6370_v36  ;;  %v6372_v50 = vadd.f32 %v6371_v10, %v6295_v53 }
 0xad8   : > { %6396 = vst [vmem:[%s406_s25 + $0x8] sm:$0xff] %v6392_v41  ;;  %v6393_v22 = vadd.f32 %v6877_v34, %v6389_v55  ;;  %v6390_v14 = vmul.f32 %v6384_v51, %v6372_v50 }
 0xada   : > { %6397 = vst [vmem:[%s406_s25 + $0x10] sm:$0xff] %v6393_v22  ;;  %v6394_v11 = vadd.f32 %v6878_v47, %v6390_v14 }
 0xadc   : > { %6398 = vst [vmem:[%s406_s25 + $0x18] sm:$0xff] %v6394_v11 }
 0xadd   : > { %7076 = shalt.err (!%p7073_p6)
}
 0xade   : > { %s7077_s18 = scalar_lea.hbm %s12000_s15, 512  ;;  %s7081_s25 = scalar_lea.hbm %s12052_s8, 1024 }
 0xadf   : > { %p7078_p5 = scmp.ne.s32.totalorder %s12000_s15, %s7077_s18  ;;  %p7082_p9 = scmp.lt.s32.totalorder %s12000_s15, %s12052_s8 }
 0xae0   : > { %p7083_p10 = scmp.lt.s32.totalorder %s7081_s25, %s7077_s18 }
 0xae1   : > { %p7079_p1 = pnand %p7078_p5, %p13168_p13 }
 0xae2   : > { %p7084_p11 = por %p7083_p10, %p7082_p9 }
 0xae3   : > { %p7080_p3 = pneg %p7079_p1 }
 0xae5   : > { %p7085_p12 = pnand %p7084_p11, %p7080_p3 }
 0xae7   : > { %7088 = shalt.err (!%p7085_p12)
}
 0xae8   : > { %s7161_s1 = smov 256  }
 0xae9   : > { %6597 = dma.vmem_to_hbm [thread:$0]  (%p13168_p13), %s11995_s12, 512, %s12000_s15, %s6400_s22, %s7161_s1, %s7161_s1, %s7153_s11  }
 0xaea PF: > { %s6428_s10 = sand.u32 1, %s7127_s27   ;;  %p13169_p0 = scmp.ne.s32.totalorder %s12341_s30, 0 }
 0xaeb   : > { %p13170_p2 = scmp.ge.s32.totalorder %s7139_s6, 2  ;;  %s6429_s19 = scalar_lea.sflag [#allocation5], %s6428_s10 }
 0xaed   : > { %p6623_p4 = pnand %p13170_p2, %p13169_p0 }
 0xaef   : > { %p6624_p8 = pneg %p6623_p4 }
 0xaf1   : > { %7122 = dma.done.wait (%p6624_p8), %s6429_s19, 512  }
 0xaf2   : > { %7124 = vsyncadd (%p6624_p8), %s6429_s19, 4294966784  ;;  %p24_p7 = scmp.ge.s32.totalorder %s7319_s14, 4   ;;  %s13171_s27 = smov %s7131_s28 }
 0xaf3   : > { %s13172_s28 = smov %s7135_s29  ;;  %s13173_s29 = smov %s7330_s23 }
 0xaf4   : > { %s13174_s6 = smov %s7319_s14  ;;  %26 = sbr.rel (!%p24_p7) target bundleno = 10 (0xa), region = 174 }
 0xaf9   :  { %6434 = vsyncpa [#allocation4], 1 }
 0xafa   :  { %6436 = vsyncpa [#allocation4 + $0x1], 1 }
 0xafb   :  { %6437 = vsyncpa [#allocation7], 1 }
 0xafc   :  { %6438 = vsyncpa [#allocation10], 1 }
 0xafd   :  { %6439 = vsyncpa [#allocation13], 1 }
 0xafe   :  { %6440 = vsyncpa [#allocation5], 1 }
 0xaff   :  { %6442 = vsyncpa [#allocation5 + $0x1], 1 }

</bundles_post_ra>
